<compile_context>
chip_gen: v7x
topology: tpu7x:2x2x1
jax: 0.10.0
libtpu: 0.0.40
codegen_flags: <defaults>
</compile_context>

<pallas_src>
import functools
import math

import jax
import jax.numpy as jnp
from jax import lax
from jax.experimental import pallas as pl
from jax.experimental.pallas import tpu as pltpu


# ----------------------------------------------------------------------------
# small helpers
# ----------------------------------------------------------------------------

def _ln(x, g, b, eps):
    mu = jnp.mean(x, axis=-1, keepdims=True)
    var = jnp.mean((x - mu) ** 2, axis=-1, keepdims=True)
    return (x - mu) * lax.rsqrt(var + eps) * g + b


def _round_up(n, m):
    return ((n + m - 1) // m) * m


def _bcast_spec(shape, n_grid):
    """Full-array block, same block for every grid step (stays resident in VMEM)."""
    zeros = (0,) * len(shape)
    if n_grid == 1:
        return pl.BlockSpec(shape, lambda b: zeros)
    return pl.BlockSpec(shape, lambda b, d: zeros)


def _depth_spec(shape):
    """Per-layer slice of a (depth, ...) stacked weight, indexed by the depth grid axis."""
    blk = (1,) + tuple(shape[1:])
    zeros = (0,) * (len(shape) - 1)
    return pl.BlockSpec(blk, lambda b, d: (d,) + zeros)


# ----------------------------------------------------------------------------
# Fused Pallas kernels
# ----------------------------------------------------------------------------

def _gd_kernel(rel_ref, ctr_ref, gw1, gb1, gw2, gb2, pw1, pb1, pw2, pb2, o_ref):
    # GroupDivider mini-PointNet token encoder + positional-embedding MLP.
    # rel arrives transposed as (Bb, 3, G, S) so the lane dim is S (no trailing-3 padding).
    rel = rel_ref[...]                                          # (Bb, 3, G, S) f32
    ctr = ctr_ref[...]                                          # (Bb, 3, G)    f32
    Bb, _, G, S = rel.shape
    D = o_ref.shape[2]

    w1 = gw1[...]                                               # (3, E) f32
    E = w1.shape[1]

    def row4(i):                                                # (1,1,1,E) row of w1
        return w1[i:i + 1, :][None, None]

    # K=3 contraction as 3 VPU FMAs (avoid a K=3 MXU pass).
    feat = (rel[:, 0, :, :, None] * row4(0)
            + rel[:, 1, :, :, None] * row4(1)
            + rel[:, 2, :, :, None] * row4(2)
            + gb1[...])                                         # (Bb, G, S, E)
    feat = jnp.maximum(feat, 0.0)
    pooled = jnp.max(feat, axis=2)                              # (Bb, G, E)
    tok = (jnp.dot(pooled.reshape(Bb * G, E).astype(jnp.bfloat16), gw2[...],
                   preferred_element_type=jnp.float32) + gb2[...])       # (Bb*G, D)

    wp = pw1[...]                                               # (3, H) f32
    H = wp.shape[1]

    def prow(i):                                                # (1,1,H) row of wp
        return wp[i:i + 1, :][None]

    p1 = (ctr[:, 0, :, None] * prow(0)
          + ctr[:, 1, :, None] * prow(1)
          + ctr[:, 2, :, None] * prow(2)
          + pb1[...])                                           # (Bb, G, H)
    # TODO(synk): PyTorch nn.GELU defaults to the erf form; tanh approximation used here.
    p1 = jax.nn.gelu(p1, approximate=True)
    pos = (jnp.dot(p1.reshape(Bb * G, H).astype(jnp.bfloat16), pw2[...],
                   preferred_element_type=jnp.float32) + pb2[...])       # (Bb*G, D)

    o_ref[...] = (tok + pos).reshape(Bb, G, D)


def _transformer_kernel(x_ref, ln1g, ln1b, wq, bq, wk, bk, wv, bv, wo, bo,
                        ln2g, ln2b, fw1, fb1, fw2, fb2,
                        iw1, ib1, iw2, ib2,
                        o_ref, score_ref, *, eps):
    # TODO(synk): TransformerEncoder definition not provided; standard pre-norm
    # single-head attention + GELU FFN blocks. One (batch-block, layer) grid step;
    # activations carried across the depth axis in the resident output block.
    d_idx = pl.program_id(1)

    @pl.when(d_idx == 0)
    def _init():
        o_ref[...] = x_ref[...]

    x = o_ref[...]                                              # (Bb, G, D) f32
    Bb, G, D = x.shape

    def proj(lhs_bf16, w_ref, b_ref):                           # bf16 MXU, f32 accumulate
        return jnp.dot(lhs_bf16, w_ref[0],
                       preferred_element_type=jnp.float32) + b_ref[0]

    # --- pre-norm self attention (QKV kept as separate weight matrices) ---------
    h = _ln(x, ln1g[0], ln1b[0], eps)
    h2 = h.reshape(Bb * G, D).astype(jnp.bfloat16)
    q = proj(h2, wq, bq).reshape(Bb, G, D)                      # 1/sqrt(D) folded into wq/bq
    k = proj(h2, wk, bk).reshape(Bb, G, D)
    v = proj(h2, wv, bv).reshape(Bb, G, D)
    s = jnp.einsum('bqd,bkd->bqk', q.astype(jnp.bfloat16), k.astype(jnp.bfloat16),
                   preferred_element_type=jnp.float32)
    s = s - jnp.max(s, axis=-1, keepdims=True)
    p = jnp.exp(s)
    p = p * pl.reciprocal(jnp.sum(p, axis=-1, keepdims=True), approx=True)
    ctx = jnp.einsum('bqk,bkd->bqd', p.astype(jnp.bfloat16), v.astype(jnp.bfloat16),
                     preferred_element_type=jnp.float32)
    x = x + proj(ctx.reshape(Bb * G, D).astype(jnp.bfloat16), wo, bo).reshape(Bb, G, D)

    # --- pre-norm GELU FFN -------------------------------------------------------
    h = _ln(x, ln2g[0], ln2b[0], eps)
    ff = jax.nn.gelu(proj(h.reshape(Bb * G, D).astype(jnp.bfloat16), fw1, fb1),
                     approximate=True)
    x = x + proj(ff.astype(jnp.bfloat16), fw2, fb2).reshape(Bb, G, D)

    o_ref[...] = x

    # --- importance predictor fused onto the last layer's iteration ---------------
    @pl.when(d_idx == pl.num_programs(1) - 1)
    def _score():
        hs = jnp.maximum(
            jnp.dot(x.reshape(Bb * G, D).astype(jnp.bfloat16), iw1[...],
                    preferred_element_type=jnp.float32) + ib1[...], 0.0)
        hs3 = hs.reshape(Bb, G, D)
        sc = jnp.sum(hs3 * iw2[...], axis=-1) + ib2[...]        # (Bb, G) lane reduce
        score_ref[...] = sc[:, None, :]                          # lane-dense (Bb, 1, G)


def _mamba_kernel(x_ref, lng, lnb, wu, bu, wg, bg, alog, wout, bout, o_ref, *, eps):
    # TODO(synk): MambaEncoder definition not provided; simplified gated selective-EMA
    # block (LN -> in-proj -> parallel linear-recurrence scan -> gate -> out-proj, residual).
    d_idx = pl.program_id(1)

    @pl.when(d_idx == 0)
    def _init():
        o_ref[...] = x_ref[...]

    x = o_ref[...]                                              # (Bb, G, D) f32
    Bb, G, D = x.shape
    h = _ln(x, lng[0], lnb[0], eps)
    h2 = h.reshape(Bb * G, D).astype(jnp.bfloat16)
    u = (jnp.dot(h2, wu[0], preferred_element_type=jnp.float32) + bu[0]).reshape(Bb, G, D)
    g = (jnp.dot(h2, wg[0], preferred_element_type=jnp.float32) + bg[0]).reshape(Bb, G, D)
    a = jax.nn.sigmoid(alog[...])                               # (1, 1, D) f32

    # parallel inclusive scan of s_t = a * s_{t-1} + (1 - a) * u_t  (Hillis-Steele,
    # composition of affine maps; log2(G) full-tile VPU steps, no scratch / row stores)
    A = jnp.broadcast_to(a, u.shape)                            # per-step multiplier
    Sv = (1.0 - a) * u                                          # per-step additive term
    off = 1
    while off < G:
        a_pad = jnp.ones((Bb, off, D), A.dtype)
        s_pad = jnp.zeros((Bb, off, D), Sv.dtype)
        A_sh = jnp.concatenate([a_pad, A[:, :G - off, :]], axis=1)
        S_sh = jnp.concatenate([s_pad, Sv[:, :G - off, :]], axis=1)
        Sv = Sv + A * S_sh
        A = A * A_sh
        off *= 2

    y = Sv * (g * jax.nn.sigmoid(g))                            # gated (SiLU) output, f32
    y2 = y.reshape(Bb * G, D).astype(jnp.bfloat16)
    o_ref[...] = x + (jnp.dot(y2, wout[0], preferred_element_type=jnp.float32)
                      + bout[0]).reshape(Bb, G, D)


def _fusion_head_kernel(xd_ref, xa_ref,
                        wq1, bq1, wk1, bk1, wv1, bv1, wo1, bo1,
                        wq2, bq2, wk2, bk2, wv2, bv2, wo2, bo2,
                        fwa, fwb, fb, ng, nb, hw1, hb1, hw2, hb2,
                        o_ref, *, eps):
    # TODO(synk): BiCrossFusion / SegmentationHead definitions not provided; bidirectional
    # cross attention + linear fuse (split-weight, no concat), LayerNorm, pointwise seg head.
    xd = xd_ref[...]                                            # (Bb, G, D) f32
    xa = xa_ref[...]
    Bb, G, D = xd.shape

    def proj2(lhs_bf16, w_ref, b_ref):
        return jnp.dot(lhs_bf16, w_ref[...], preferred_element_type=jnp.float32) + b_ref[...]

    def cross(q_in, kv_in, wq, bq, wk, bk, wv, bv, wo, bo):
        q2 = q_in.reshape(Bb * G, D).astype(jnp.bfloat16)
        kv2 = kv_in.reshape(Bb * G, D).astype(jnp.bfloat16)
        q = proj2(q2, wq, bq).reshape(Bb, G, D)                 # scale folded into wq/bq
        k = proj2(kv2, wk, bk).reshape(Bb, G, D)
        v = proj2(kv2, wv, bv).reshape(Bb, G, D)
        s = jnp.einsum('bqd,bkd->bqk', q.astype(jnp.bfloat16), k.astype(jnp.bfloat16),
                       preferred_element_type=jnp.float32)
        s = s - jnp.max(s, axis=-1, keepdims=True)
        p = jnp.exp(s)
        p = p * pl.reciprocal(jnp.sum(p, axis=-1, keepdims=True), approx=True)
        ctx = jnp.einsum('bqk,bkd->bqd', p.astype(jnp.bfloat16), v.astype(jnp.bfloat16),
                         preferred_element_type=jnp.float32)
        return proj2(ctx.reshape(Bb * G, D).astype(jnp.bfloat16), wo, bo)   # (Bb*G, D)

    y1 = cross(xd, xa, wq1, bq1, wk1, bk1, wv1, bv1, wo1, bo1)
    y2 = cross(xa, xd, wq2, bq2, wk2, bk2, wv2, bv2, wo2, bo2)
    # fuse: two (D,D) matmuls summed — same FLOPs as the concat form, no lane relayout.
    fused = (jnp.dot(y1.astype(jnp.bfloat16), fwa[...], preferred_element_type=jnp.float32)
             + jnp.dot(y2.astype(jnp.bfloat16), fwb[...], preferred_element_type=jnp.float32)
             + fb[...])                                         # (Bb*G, D)
    xn = _ln(fused, ng[...], nb[...], eps)
    hh = jnp.maximum(proj2(xn.astype(jnp.bfloat16), hw1, hb1), 0.0)
    out = proj2(hh.astype(jnp.bfloat16), hw2, hb2)              # (Bb*G, seg_pad) lane-dense
    o_ref[...] = out.reshape(Bb, G, -1)


# ----------------------------------------------------------------------------
# Parameters (deterministic synthetic init)
# ----------------------------------------------------------------------------

GD_KEYS = ("gd_w1", "gd_b1", "gd_w2", "gd_b2", "p_w1", "p_b1", "p_w2", "p_b2")
T_KEYS = ("t_ln1_g", "t_ln1_b", "t_wq", "t_bq", "t_wk", "t_bk", "t_wv", "t_bv",
          "t_wo", "t_bo", "t_ln2_g", "t_ln2_b", "t_fw1", "t_fb1", "t_fw2", "t_fb2")
I_KEYS = ("i_w1", "i_b1", "i_w2", "i_b2")
M_KEYS = ("m_ln_g", "m_ln_b", "m_w_u", "m_b_u", "m_w_g", "m_b_g", "m_a",
          "m_w_out", "m_b_out")
F_KEYS = ("f1_wq", "f1_bq", "f1_wk", "f1_bk", "f1_wv", "f1_bv", "f1_wo", "f1_bo",
          "f2_wq", "f2_bq", "f2_wk", "f2_bk", "f2_wv", "f2_bv", "f2_wo", "f2_bo",
          "fuse_wa", "fuse_wb", "fuse_b", "n_g", "n_b", "h_w1", "h_b1", "h_w2", "h_b2")


def make_params(key, cfg):
    keys = iter(jax.random.split(key, 192))

    def w(shape, scale=0.02):
        return scale * jax.random.normal(next(keys), shape, dtype=jnp.float32)

    def wb(shape, scale=0.02):                 # bf16 matmul weights (MXU-native)
        return w(shape, scale).astype(jnp.bfloat16)

    def zeros(shape):
        return jnp.zeros(shape, jnp.float32)

    def ones(shape):
        return jnp.ones(shape, jnp.float32)

    d = cfg["trans_dim"]
    e = cfg["encoder_dims"]
    depth = cfg["depth"]
    seg_pad = _round_up(cfg["seg_num_all"], 128)
    att_scale = 1.0 / math.sqrt(d)             # folded into Q projections

    params = {
        # GroupDivider mini-PointNet + pos_embed
        "gd_w1": w((3, e)), "gd_b1": zeros((1, e)),
        "gd_w2": wb((e, d)), "gd_b2": zeros((1, d)),
        "p_w1": w((3, 128)), "p_b1": zeros((1, 128)),
        "p_w2": wb((128, d)), "p_b2": zeros((1, d)),
        # transformer (per-layer weights stacked over depth; Q/K/V kept separate so
        # the kernel never slices a fused projection at non-128 lane offsets)
        "t_ln1_g": ones((depth, 1, d)), "t_ln1_b": zeros((depth, 1, d)),
        "t_wq": (w((depth, d, d)) * att_scale).astype(jnp.bfloat16),
        "t_bq": zeros((depth, 1, d)),          # zero bias -> scale fold is a no-op here
        "t_wk": wb((depth, d, d)), "t_bk": zeros((depth, 1, d)),
        "t_wv": wb((depth, d, d)), "t_bv": zeros((depth, 1, d)),
        "t_wo": wb((depth, d, d)), "t_bo": zeros((depth, 1, d)),
        "t_ln2_g": ones((depth, 1, d)), "t_ln2_b": zeros((depth, 1, d)),
        "t_fw1": wb((depth, d, 4 * d)), "t_fb1": zeros((depth, 1, 4 * d)),
        "t_fw2": wb((depth, 4 * d, d)), "t_fb2": zeros((depth, 1, d)),
        # importance predictor: Linear(D,D) ReLU Linear(D,1); second layer kept as a
        # (1, D) row so it becomes a lane-reduce producing a lane-dense (B,1,G) score
        "i_w1": wb((d, d)), "i_b1": zeros((1, d)),
        "i_w2": w((1, d)), "i_b2": zeros((1, 1)),
        # mamba encoder (shared weights for both orderings; stacked over depth; in-proj split)
        "m_ln_g": ones((depth, 1, d)), "m_ln_b": zeros((depth, 1, d)),
        "m_w_u": wb((depth, d, d)), "m_b_u": zeros((depth, 1, d)),
        "m_w_g": wb((depth, d, d)), "m_b_g": zeros((depth, 1, d)),
        "m_a": w((depth, 1, d), scale=1.0),
        "m_w_out": wb((depth, d, d)), "m_b_out": zeros((depth, 1, d)),
        # bidirectional cross fusion (K/V/fuse weights kept separate, scale folded into Q)
        "f1_wq": (w((d, d)) * att_scale).astype(jnp.bfloat16), "f1_bq": zeros((1, d)),
        "f1_wk": wb((d, d)), "f1_bk": zeros((1, d)),
        "f1_wv": wb((d, d)), "f1_bv": zeros((1, d)),
        "f1_wo": wb((d, d)), "f1_bo": zeros((1, d)),
        "f2_wq": (w((d, d)) * att_scale).astype(jnp.bfloat16), "f2_bq": zeros((1, d)),
        "f2_wk": wb((d, d)), "f2_bk": zeros((1, d)),
        "f2_wv": wb((d, d)), "f2_bv": zeros((1, d)),
        "f2_wo": wb((d, d)), "f2_bo": zeros((1, d)),
        "fuse_wa": wb((d, d)), "fuse_wb": wb((d, d)), "fuse_b": zeros((1, d)),
        # final LayerNorm
        "n_g": ones((1, d)), "n_b": zeros((1, d)),
        # segmentation head (Conv1d k=1 equivalent); last layer padded to a lane-dense width
        "h_w1": wb((d, d // 2)), "h_b1": zeros((1, d // 2)),
        "h_w2": wb((d // 2, seg_pad)), "h_b2": zeros((1, seg_pad)),
    }
    return params


# ----------------------------------------------------------------------------
# Forward pass
# ----------------------------------------------------------------------------

def tramba_ultra_forward(pts, params, cfg):
    B, N, _ = pts.shape
    G = cfg["num_group"]
    S = cfg["group_size"]
    D = cfg["trans_dim"]
    seg_n = cfg["seg_num_all"]
    depth = cfg["depth"]
    seg_pad = _round_up(seg_n, 128)
    eps = 1e-5
    vmem_lim = 64 * 1024 * 1024

    # Batch-blocking: Bb batches per grid step. At demo scale all batches fit in one fat
    # step (per-step overhead dominates otherwise); Bb must divide B.
    Bb = cfg.get("batch_block", B)
    assert B % Bb == 0

    # ---- GroupDivider grouping (data-dependent kNN gather stays in plain JAX) ----
    # TODO(synk): GroupDivider definition not provided; strided center sampling +
    # kNN grouping + mini-PointNet token encoder used as a representative architecture.
    stride = max(N // G, 1)
    center = pts[:, ::stride, :][:, :G, :]                                   # (B,G,3)
    d2 = jnp.sum((pts[:, None, :, :] - center[:, :, None, :]) ** 2, -1)      # (B,G,N)
    _, knn_idx = lax.top_k(-d2, S)                                           # (B,G,S)
    pts_e = jnp.broadcast_to(pts[:, None, :, :], (B, G, N, 3))
    idx_e = jnp.broadcast_to(knn_idx[:, :, :, None], (B, G, S, 3))
    neighbors = jnp.take_along_axis(pts_e, idx_e, axis=2)                    # (B,G,S,3)
    rel = neighbors - center[:, :, None, :]                                  # (B,G,S,3)
    rel_t = jnp.transpose(rel, (0, 3, 1, 2))       # (B,3,G,S): lane-dense, no trailing-3
    ctr_t = jnp.transpose(center, (0, 2, 1))       # (B,3,G)

    # ---- fused GroupDivider token encoder + positional embedding -----------------
    x = pl.pallas_call(
        _gd_kernel,
        out_shape=jax.ShapeDtypeStruct((B, G, D), jnp.float32),
        grid=(B // Bb,),
        in_specs=[pl.BlockSpec((Bb, 3, G, S), lambda b: (b, 0, 0, 0)),
                  pl.BlockSpec((Bb, 3, G), lambda b: (b, 0, 0))]
                 + [_bcast_spec(params[k].shape, 1) for k in GD_KEYS],
        out_specs=pl.BlockSpec((Bb, G, D), lambda b: (b, 0, 0)),
        compiler_params=pltpu.CompilerParams(dimension_semantics=("parallel",)),
    )(rel_t, ctr_t, *[params[k] for k in GD_KEYS])

    # ---- fused TransformerEncoder (all layers) + ImportancePredictor -------------
    # TODO(synk): TransformerEncoder definition not provided; standard pre-norm
    # single-head attention + GELU FFN blocks.
    x, score = pl.pallas_call(
        functools.partial(_transformer_kernel, eps=eps),
        out_shape=(jax.ShapeDtypeStruct((B, G, D), jnp.float32),
                   jax.ShapeDtypeStruct((B, 1, G), jnp.float32)),
        grid=(B // Bb, depth),
        in_specs=[pl.BlockSpec((Bb, G, D), lambda b, d: (b, 0, 0))]
                 + [_depth_spec(params[k].shape) for k in T_KEYS]
                 + [_bcast_spec(params[k].shape, 2) for k in I_KEYS],
        out_specs=(pl.BlockSpec((Bb, G, D), lambda b, d: (b, 0, 0)),
                   pl.BlockSpec((Bb, 1, G), lambda b, d: (b, 0, 0))),
        compiler_params=pltpu.CompilerParams(
            dimension_semantics=("parallel", "arbitrary"),
            vmem_limit_bytes=vmem_lim),
    )(x, *[params[k] for k in T_KEYS], *[params[k] for k in I_KEYS])
    score = score[:, 0, :]                                                   # (B, G)

    # ---- importance-ordered dual paths (sort + gather in plain JAX) ---------------
    idx_desc = jnp.argsort(-score, axis=1)
    idx_asc = jnp.argsort(score, axis=1)

    def gather(idx):
        return jnp.take_along_axis(x, jnp.broadcast_to(idx[:, :, None], (B, G, D)), axis=1)

    # batch the two paths (shared mamba weights): (2B, G, D)
    x_both = jnp.concatenate([gather(idx_desc), gather(idx_asc)], axis=0)

    # ---- fused MambaEncoder (all layers, both paths in one call) ------------------
    x_both = pl.pallas_call(
        functools.partial(_mamba_kernel, eps=eps),
        out_shape=jax.ShapeDtypeStruct((2 * B, G, D), jnp.float32),
        grid=(2 * B // Bb, depth),
        in_specs=[pl.BlockSpec((Bb, G, D), lambda b, d: (b, 0, 0))]
                 + [_depth_spec(params[k].shape) for k in M_KEYS],
        out_specs=pl.BlockSpec((Bb, G, D), lambda b, d: (b, 0, 0)),
        compiler_params=pltpu.CompilerParams(
            dimension_semantics=("parallel", "arbitrary"),
            vmem_limit_bytes=vmem_lim),
    )(x_both, *[params[k] for k in M_KEYS])

    # ---- fused BiCrossFusion + final LayerNorm + segmentation head ----------------
    nb_blocks = B // Bb
    seg = pl.pallas_call(
        functools.partial(_fusion_head_kernel, eps=eps),
        out_shape=jax.ShapeDtypeStruct((B, G, seg_pad), jnp.float32),
        grid=(nb_blocks,),
        in_specs=[pl.BlockSpec((Bb, G, D), lambda b: (b, 0, 0)),
                  pl.BlockSpec((Bb, G, D), lambda b: (b + nb_blocks, 0, 0))]
                 + [_bcast_spec(params[k].shape, 1) for k in F_KEYS],
        out_specs=pl.BlockSpec((Bb, G, seg_pad), lambda b: (b, 0, 0)),
        compiler_params=pltpu.CompilerParams(dimension_semantics=("parallel",)),
    )(x_both, x_both, *[params[k] for k in F_KEYS])

    return seg[:, :, :seg_n]


# ----------------------------------------------------------------------------
# Demo
# ----------------------------------------------------------------------------

if __name__ == "__main__":
    cfg = {
        "trans_dim": 32,
        "depth": 2,
        "group_size": 16,
        "num_group": 8,
        "encoder_dims": 64,
        "seg_num_all": 4,
    }
    key = jax.random.PRNGKey(0)
    k_pts, k_par = jax.random.split(key)
    B, N = 2, 128
    pts = jax.random.normal(k_pts, (B, N, 3), dtype=jnp.float32)
    params = make_params(k_par, cfg)

    fwd = jax.jit(functools.partial(tramba_ultra_forward, cfg=cfg))
    out = fwd(pts, params)
    out = jax.block_until_ready(out)

    assert out.shape == (B, cfg["num_group"], cfg["seg_num_all"]), out.shape
    assert bool(jnp.all(jnp.isfinite(out)))
    print("KERNEL_OK")
</pallas_src>

<mosaic_0001>
module attributes {stable_mosaic.version = 11 : i64} {
  func.func @_gd_kernel(%arg0: i32, %arg1: memref<2x3x8x16xf32, #tpu.memory_space<vmem>>, %arg2: memref<2x3x8xf32, #tpu.memory_space<vmem>>, %arg3: memref<3x64xf32, #tpu.memory_space<vmem>>, %arg4: memref<1x64xf32, #tpu.memory_space<vmem>>, %arg5: memref<64x32xbf16, #tpu.memory_space<vmem>>, %arg6: memref<1x32xf32, #tpu.memory_space<vmem>>, %arg7: memref<3x128xf32, #tpu.memory_space<vmem>>, %arg8: memref<1x128xf32, #tpu.memory_space<vmem>>, %arg9: memref<128x32xbf16, #tpu.memory_space<vmem>>, %arg10: memref<1x32xf32, #tpu.memory_space<vmem>>, %arg11: memref<2x8x32xf32, #tpu.memory_space<vmem>>) attributes {dimension_semantics = [#tpu.dimension_semantics<parallel>], iteration_bounds = array<i64: 1>, scalar_prefetch = 0 : i64, scratch_operands = 0 : i64, tpu.core_type = #tpu.core_type<tc>, window_params = [{transform_indices = @transform_0, window_bounds = array<i64: 2, 3, 8, 16>}, {transform_indices = @transform_1, window_bounds = array<i64: 2, 3, 8>}, {pipeline_mode = #tpu.pipeline_mode<synchronous>, transform_indices = @transform_2, window_bounds = array<i64: 3, 64>}, {pipeline_mode = #tpu.pipeline_mode<synchronous>, transform_indices = @transform_3, window_bounds = array<i64: 1, 64>}, {pipeline_mode = #tpu.pipeline_mode<synchronous>, transform_indices = @transform_4, window_bounds = array<i64: 64, 32>}, {pipeline_mode = #tpu.pipeline_mode<synchronous>, transform_indices = @transform_5, window_bounds = array<i64: 1, 32>}, {pipeline_mode = #tpu.pipeline_mode<synchronous>, transform_indices = @transform_6, window_bounds = array<i64: 3, 128>}, {pipeline_mode = #tpu.pipeline_mode<synchronous>, transform_indices = @transform_7, window_bounds = array<i64: 1, 128>}, {pipeline_mode = #tpu.pipeline_mode<synchronous>, transform_indices = @transform_8, window_bounds = array<i64: 128, 32>}, {pipeline_mode = #tpu.pipeline_mode<synchronous>, transform_indices = @transform_9, window_bounds = array<i64: 1, 32>}, {transform_indices = @transform_10, window_bounds = array<i64: 2, 8, 32>}]} {
    %c0 = arith.constant 0 : index
    %c0_0 = arith.constant 0 : index
    %c0_1 = arith.constant 0 : index
    %c0_2 = arith.constant 0 : index
    %0 = vector.load %arg1[%c0, %c0_0, %c0_1, %c0_2] : memref<2x3x8x16xf32, #tpu.memory_space<vmem>>, vector<2x3x8x16xf32>
    %c0_3 = arith.constant 0 : index
    %c0_4 = arith.constant 0 : index
    %c0_5 = arith.constant 0 : index
    %1 = vector.load %arg2[%c0_3, %c0_4, %c0_5] : memref<2x3x8xf32, #tpu.memory_space<vmem>>, vector<2x3x8xf32>
    %c0_6 = arith.constant 0 : index
    %c0_7 = arith.constant 0 : index
    %2 = vector.load %arg3[%c0_6, %c0_7] : memref<3x64xf32, #tpu.memory_space<vmem>>, vector<3x64xf32>
    %3 = vector.extract_strided_slice %0 {offsets = [0, 0, 0, 0], sizes = [2, 1, 8, 16], strides = [1, 1, 1, 1]} : vector<2x3x8x16xf32> to vector<2x1x8x16xf32>
    %4 = vector.shape_cast %3 : vector<2x1x8x16xf32> to vector<2x8x16xf32>
    %5 = vector.shape_cast %4 : vector<2x8x16xf32> to vector<2x8x16x1xf32>
    %6 = vector.extract_strided_slice %2 {offsets = [0, 0], sizes = [1, 64], strides = [1, 1]} : vector<3x64xf32> to vector<1x64xf32>
    %7 = vector.shape_cast %6 : vector<1x64xf32> to vector<1x1x1x64xf32>
    %8 = vector.broadcast %5 : vector<2x8x16x1xf32> to vector<2x8x16x64xf32>
    %9 = vector.broadcast %7 : vector<1x1x1x64xf32> to vector<2x8x16x64xf32>
    %10 = arith.mulf %8, %9 : vector<2x8x16x64xf32>
    %11 = vector.extract_strided_slice %0 {offsets = [0, 1, 0, 0], sizes = [2, 1, 8, 16], strides = [1, 1, 1, 1]} : vector<2x3x8x16xf32> to vector<2x1x8x16xf32>
    %12 = vector.shape_cast %11 : vector<2x1x8x16xf32> to vector<2x8x16xf32>
    %13 = vector.shape_cast %12 : vector<2x8x16xf32> to vector<2x8x16x1xf32>
    %14 = vector.extract_strided_slice %2 {offsets = [1, 0], sizes = [1, 64], strides = [1, 1]} : vector<3x64xf32> to vector<1x64xf32>
    %15 = vector.shape_cast %14 : vector<1x64xf32> to vector<1x1x1x64xf32>
    %16 = vector.broadcast %13 : vector<2x8x16x1xf32> to vector<2x8x16x64xf32>
    %17 = vector.broadcast %15 : vector<1x1x1x64xf32> to vector<2x8x16x64xf32>
    %18 = arith.mulf %16, %17 : vector<2x8x16x64xf32>
    %19 = arith.addf %10, %18 : vector<2x8x16x64xf32>
    %20 = vector.extract_strided_slice %0 {offsets = [0, 2, 0, 0], sizes = [2, 1, 8, 16], strides = [1, 1, 1, 1]} : vector<2x3x8x16xf32> to vector<2x1x8x16xf32>
    %21 = vector.shape_cast %20 : vector<2x1x8x16xf32> to vector<2x8x16xf32>
    %22 = vector.shape_cast %21 : vector<2x8x16xf32> to vector<2x8x16x1xf32>
    %23 = vector.extract_strided_slice %2 {offsets = [2, 0], sizes = [1, 64], strides = [1, 1]} : vector<3x64xf32> to vector<1x64xf32>
    %24 = vector.shape_cast %23 : vector<1x64xf32> to vector<1x1x1x64xf32>
    %25 = vector.broadcast %22 : vector<2x8x16x1xf32> to vector<2x8x16x64xf32>
    %26 = vector.broadcast %24 : vector<1x1x1x64xf32> to vector<2x8x16x64xf32>
    %27 = arith.mulf %25, %26 : vector<2x8x16x64xf32>
    %28 = arith.addf %19, %27 : vector<2x8x16x64xf32>
    %c0_8 = arith.constant 0 : index
    %c0_9 = arith.constant 0 : index
    %29 = vector.load %arg4[%c0_8, %c0_9] : memref<1x64xf32, #tpu.memory_space<vmem>>, vector<1x64xf32>
    %30 = vector.shape_cast %29 : vector<1x64xf32> to vector<1x1x1x64xf32>
    %31 = vector.broadcast %30 : vector<1x1x1x64xf32> to vector<2x8x16x64xf32>
    %32 = arith.addf %28, %31 : vector<2x8x16x64xf32>
    %cst = arith.constant 0.000000e+00 : f32
    %33 = vector.broadcast %cst : f32 to vector<2x8x16x64xf32>
    %34 = arith.maximumf %32, %33 : vector<2x8x16x64xf32>
    %cst_10 = arith.constant dense<0xFF800000> : vector<2x8x64xf32>
    %35 = vector.multi_reduction <maximumf>, %34, %cst_10 [2] : vector<2x8x16x64xf32> to vector<2x8x64xf32>
    %36 = vector.shape_cast %35 : vector<2x8x64xf32> to vector<16x64xf32>
    %37 = arith.truncf %36 : vector<16x64xf32> to vector<16x64xbf16>
    %c0_11 = arith.constant 0 : index
    %c0_12 = arith.constant 0 : index
    %38 = vector.load %arg5[%c0_11, %c0_12] : memref<64x32xbf16, #tpu.memory_space<vmem>>, vector<64x32xbf16>
    %cst_13 = arith.constant dense<0.000000e+00> : vector<16x32xf32>
    %39 = tpu.matmul %37, %38, %cst_13 {dimension_numbers = #tpu.dot_dimension_numbers<[1], [0], [0], [1], [0, 0, 1, 1], [], []>} : vector<16x64xbf16>, vector<64x32xbf16>, vector<16x32xf32> -> vector<16x32xf32>
    %c0_14 = arith.constant 0 : index
    %c0_15 = arith.constant 0 : index
    %40 = vector.load %arg6[%c0_14, %c0_15] : memref<1x32xf32, #tpu.memory_space<vmem>>, vector<1x32xf32>
    %41 = vector.broadcast %40 : vector<1x32xf32> to vector<16x32xf32>
    %42 = arith.addf %39, %41 : vector<16x32xf32>
    %c0_16 = arith.constant 0 : index
    %c0_17 = arith.constant 0 : index
    %43 = vector.load %arg7[%c0_16, %c0_17] : memref<3x128xf32, #tpu.memory_space<vmem>>, vector<3x128xf32>
    %44 = vector.extract_strided_slice %1 {offsets = [0, 0, 0], sizes = [2, 1, 8], strides = [1, 1, 1]} : vector<2x3x8xf32> to vector<2x1x8xf32>
    %45 = vector.shape_cast %44 : vector<2x1x8xf32> to vector<2x8xf32>
    %46 = vector.shape_cast %45 : vector<2x8xf32> to vector<2x8x1xf32>
    %47 = vector.extract_strided_slice %43 {offsets = [0, 0], sizes = [1, 128], strides = [1, 1]} : vector<3x128xf32> to vector<1x128xf32>
    %48 = vector.shape_cast %47 : vector<1x128xf32> to vector<1x1x128xf32>
    %49 = vector.broadcast %46 : vector<2x8x1xf32> to vector<2x8x128xf32>
    %50 = vector.broadcast %48 : vector<1x1x128xf32> to vector<2x8x128xf32>
    %51 = arith.mulf %49, %50 : vector<2x8x128xf32>
    %52 = vector.extract_strided_slice %1 {offsets = [0, 1, 0], sizes = [2, 1, 8], strides = [1, 1, 1]} : vector<2x3x8xf32> to vector<2x1x8xf32>
    %53 = vector.shape_cast %52 : vector<2x1x8xf32> to vector<2x8xf32>
    %54 = vector.shape_cast %53 : vector<2x8xf32> to vector<2x8x1xf32>
    %55 = vector.extract_strided_slice %43 {offsets = [1, 0], sizes = [1, 128], strides = [1, 1]} : vector<3x128xf32> to vector<1x128xf32>
    %56 = vector.shape_cast %55 : vector<1x128xf32> to vector<1x1x128xf32>
    %57 = vector.broadcast %54 : vector<2x8x1xf32> to vector<2x8x128xf32>
    %58 = vector.broadcast %56 : vector<1x1x128xf32> to vector<2x8x128xf32>
    %59 = arith.mulf %57, %58 : vector<2x8x128xf32>
    %60 = arith.addf %51, %59 : vector<2x8x128xf32>
    %61 = vector.extract_strided_slice %1 {offsets = [0, 2, 0], sizes = [2, 1, 8], strides = [1, 1, 1]} : vector<2x3x8xf32> to vector<2x1x8xf32>
    %62 = vector.shape_cast %61 : vector<2x1x8xf32> to vector<2x8xf32>
    %63 = vector.shape_cast %62 : vector<2x8xf32> to vector<2x8x1xf32>
    %64 = vector.extract_strided_slice %43 {offsets = [2, 0], sizes = [1, 128], strides = [1, 1]} : vector<3x128xf32> to vector<1x128xf32>
    %65 = vector.shape_cast %64 : vector<1x128xf32> to vector<1x1x128xf32>
    %66 = vector.broadcast %63 : vector<2x8x1xf32> to vector<2x8x128xf32>
    %67 = vector.broadcast %65 : vector<1x1x128xf32> to vector<2x8x128xf32>
    %68 = arith.mulf %66, %67 : vector<2x8x128xf32>
    %69 = arith.addf %60, %68 : vector<2x8x128xf32>
    %c0_18 = arith.constant 0 : index
    %c0_19 = arith.constant 0 : index
    %70 = vector.load %arg8[%c0_18, %c0_19] : memref<1x128xf32, #tpu.memory_space<vmem>>, vector<1x128xf32>
    %71 = vector.shape_cast %70 : vector<1x128xf32> to vector<1x1x128xf32>
    %72 = vector.broadcast %71 : vector<1x1x128xf32> to vector<2x8x128xf32>
    %73 = arith.addf %69, %72 : vector<2x8x128xf32>
    %74 = arith.mulf %73, %73 : vector<2x8x128xf32>
    %75 = arith.mulf %73, %74 : vector<2x8x128xf32>
    %cst_20 = arith.constant 4.471500e-02 : f32
    %76 = vector.broadcast %cst_20 : f32 to vector<2x8x128xf32>
    %77 = arith.mulf %76, %75 : vector<2x8x128xf32>
    %78 = arith.addf %73, %77 : vector<2x8x128xf32>
    %cst_21 = arith.constant 0.797884583 : f32
    %79 = vector.broadcast %cst_21 : f32 to vector<2x8x128xf32>
    %80 = arith.mulf %79, %78 : vector<2x8x128xf32>
    %81 = math.tanh %80 : vector<2x8x128xf32>
    %cst_22 = arith.constant 1.000000e+00 : f32
    %82 = vector.broadcast %cst_22 : f32 to vector<2x8x128xf32>
    %83 = arith.addf %82, %81 : vector<2x8x128xf32>
    %cst_23 = arith.constant 5.000000e-01 : f32
    %84 = vector.broadcast %cst_23 : f32 to vector<2x8x128xf32>
    %85 = arith.mulf %84, %83 : vector<2x8x128xf32>
    %86 = arith.mulf %73, %85 : vector<2x8x128xf32>
    %87 = vector.shape_cast %86 : vector<2x8x128xf32> to vector<16x128xf32>
    %88 = arith.truncf %87 : vector<16x128xf32> to vector<16x128xbf16>
    %c0_24 = arith.constant 0 : index
    %c0_25 = arith.constant 0 : index
    %89 = vector.load %arg9[%c0_24, %c0_25] : memref<128x32xbf16, #tpu.memory_space<vmem>>, vector<128x32xbf16>
    %cst_26 = arith.constant dense<0.000000e+00> : vector<16x32xf32>
    %90 = tpu.matmul %88, %89, %cst_26 {dimension_numbers = #tpu.dot_dimension_numbers<[1], [0], [0], [1], [0, 0, 1, 1], [], []>} : vector<16x128xbf16>, vector<128x32xbf16>, vector<16x32xf32> -> vector<16x32xf32>
    %c0_27 = arith.constant 0 : index
    %c0_28 = arith.constant 0 : index
    %91 = vector.load %arg10[%c0_27, %c0_28] : memref<1x32xf32, #tpu.memory_space<vmem>>, vector<1x32xf32>
    %92 = vector.broadcast %91 : vector<1x32xf32> to vector<16x32xf32>
    %93 = arith.addf %90, %92 : vector<16x32xf32>
    %94 = arith.addf %42, %93 : vector<16x32xf32>
    %95 = vector.shape_cast %94 : vector<16x32xf32> to vector<2x8x32xf32>
    %c0_29 = arith.constant 0 : index
    %c0_30 = arith.constant 0 : index
    %c0_31 = arith.constant 0 : index
    %96 = vector.load %arg11[%c0_29, %c0_30, %c0_31] : memref<2x8x32xf32, #tpu.memory_space<vmem>>, vector<2x8x32xf32>
    tpu.vector_store %arg11[%c0_29, %c0_30, %c0_31], %95 {strides = array<i32>} : memref<2x8x32xf32, #tpu.memory_space<vmem>>, vector<2x8x32xf32>,
    return
  }
  func.func @transform_0(%arg0: i32) -> (i32, i32, i32, i32) {
    %c0_i32 = arith.constant 0 : i32
    %c0_i32_0 = arith.constant 0 : i32
    %c0_i32_1 = arith.constant 0 : i32
    %c0_i32_2 = arith.constant 0 : i32
    return %arg0, %c0_i32, %c0_i32_0, %c0_i32_1 : i32, i32, i32, i32
  }
  func.func @transform_1(%arg0: i32) -> (i32, i32, i32) {
    %c0_i32 = arith.constant 0 : i32
    %c0_i32_0 = arith.constant 0 : i32
    %c0_i32_1 = arith.constant 0 : i32
    return %arg0, %c0_i32, %c0_i32_0 : i32, i32, i32
  }
  func.func @transform_2(%arg0: i32) -> (i32, i32) {
    %c0_i32 = arith.constant 0 : i32
    %c0_i32_0 = arith.constant 0 : i32
    %c0_i32_1 = arith.constant 0 : i32
    return %c0_i32, %c0_i32_0 : i32, i32
  }
  func.func @transform_3(%arg0: i32) -> (i32, i32) {
    %c0_i32 = arith.constant 0 : i32
    %c0_i32_0 = arith.constant 0 : i32
    %c0_i32_1 = arith.constant 0 : i32
    return %c0_i32, %c0_i32_0 : i32, i32
  }
  func.func @transform_4(%arg0: i32) -> (i32, i32) {
    %c0_i32 = arith.constant 0 : i32
    %c0_i32_0 = arith.constant 0 : i32
    %c0_i32_1 = arith.constant 0 : i32
    return %c0_i32, %c0_i32_0 : i32, i32
  }
  func.func @transform_5(%arg0: i32) -> (i32, i32) {
    %c0_i32 = arith.constant 0 : i32
    %c0_i32_0 = arith.constant 0 : i32
    %c0_i32_1 = arith.constant 0 : i32
    return %c0_i32, %c0_i32_0 : i32, i32
  }
  func.func @transform_6(%arg0: i32) -> (i32, i32) {
    %c0_i32 = arith.constant 0 : i32
    %c0_i32_0 = arith.constant 0 : i32
    %c0_i32_1 = arith.constant 0 : i32
    return %c0_i32, %c0_i32_0 : i32, i32
  }
  func.func @transform_7(%arg0: i32) -> (i32, i32) {
    %c0_i32 = arith.constant 0 : i32
    %c0_i32_0 = arith.constant 0 : i32
    %c0_i32_1 = arith.constant 0 : i32
    return %c0_i32, %c0_i32_0 : i32, i32
  }
  func.func @transform_8(%arg0: i32) -> (i32, i32) {
    %c0_i32 = arith.constant 0 : i32
    %c0_i32_0 = arith.constant 0 : i32
    %c0_i32_1 = arith.constant 0 : i32
    return %c0_i32, %c0_i32_0 : i32, i32
  }
  func.func @transform_9(%arg0: i32) -> (i32, i32) {
    %c0_i32 = arith.constant 0 : i32
    %c0_i32_0 = arith.constant 0 : i32
    %c0_i32_1 = arith.constant 0 : i32
    return %c0_i32, %c0_i32_0 : i32, i32
  }
  func.func @transform_10(%arg0: i32) -> (i32, i32, i32) {
    %c0_i32 = arith.constant 0 : i32
    %c0_i32_0 = arith.constant 0 : i32
    %c0_i32_1 = arith.constant 0 : i32
    return %arg0, %c0_i32, %c0_i32_0 : i32, i32, i32
  }
}

module attributes {stable_mosaic.version = 11 : i64} {
  func.func @_transformer_kernel(%arg0: i32, %arg1: i32, %arg2: memref<2x8x32xf32, #tpu.memory_space<vmem>>, %arg3: memref<1x1x32xf32, #tpu.memory_space<vmem>>, %arg4: memref<1x1x32xf32, #tpu.memory_space<vmem>>, %arg5: memref<1x32x32xbf16, #tpu.memory_space<vmem>>, %arg6: memref<1x1x32xf32, #tpu.memory_space<vmem>>, %arg7: memref<1x32x32xbf16, #tpu.memory_space<vmem>>, %arg8: memref<1x1x32xf32, #tpu.memory_space<vmem>>, %arg9: memref<1x32x32xbf16, #tpu.memory_space<vmem>>, %arg10: memref<1x1x32xf32, #tpu.memory_space<vmem>>, %arg11: memref<1x32x32xbf16, #tpu.memory_space<vmem>>, %arg12: memref<1x1x32xf32, #tpu.memory_space<vmem>>, %arg13: memref<1x1x32xf32, #tpu.memory_space<vmem>>, %arg14: memref<1x1x32xf32, #tpu.memory_space<vmem>>, %arg15: memref<1x32x128xbf16, #tpu.memory_space<vmem>>, %arg16: memref<1x1x128xf32, #tpu.memory_space<vmem>>, %arg17: memref<1x128x32xbf16, #tpu.memory_space<vmem>>, %arg18: memref<1x1x32xf32, #tpu.memory_space<vmem>>, %arg19: memref<32x32xbf16, #tpu.memory_space<vmem>>, %arg20: memref<1x32xf32, #tpu.memory_space<vmem>>, %arg21: memref<1x32xf32, #tpu.memory_space<vmem>>, %arg22: memref<1x1xf32, #tpu.memory_space<vmem>>, %arg23: memref<2x8x32xf32, #tpu.memory_space<vmem>>, %arg24: memref<2x1x8xf32, #tpu.memory_space<vmem>>) attributes {dimension_semantics = [#tpu.dimension_semantics<parallel>, #tpu.dimension_semantics<arbitrary>], iteration_bounds = array<i64: 1, 2>, scalar_prefetch = 0 : i64, scratch_operands = 0 : i64, tpu.core_type = #tpu.core_type<tc>, window_params = [{transform_indices = @transform_0, window_bounds = array<i64: 2, 8, 32>}, {transform_indices = @transform_1, window_bounds = array<i64: 1, 1, 32>}, {transform_indices = @transform_2, window_bounds = array<i64: 1, 1, 32>}, {transform_indices = @transform_3, window_bounds = array<i64: 1, 32, 32>}, {transform_indices = @transform_4, window_bounds = array<i64: 1, 1, 32>}, {transform_indices = @transform_5, window_bounds = array<i64: 1, 32, 32>}, {transform_indices = @transform_6, window_bounds = array<i64: 1, 1, 32>}, {transform_indices = @transform_7, window_bounds = array<i64: 1, 32, 32>}, {transform_indices = @transform_8, window_bounds = array<i64: 1, 1, 32>}, {transform_indices = @transform_9, window_bounds = array<i64: 1, 32, 32>}, {transform_indices = @transform_10, window_bounds = array<i64: 1, 1, 32>}, {transform_indices = @transform_11, window_bounds = array<i64: 1, 1, 32>}, {transform_indices = @transform_12, window_bounds = array<i64: 1, 1, 32>}, {transform_indices = @transform_13, window_bounds = array<i64: 1, 32, 128>}, {transform_indices = @transform_14, window_bounds = array<i64: 1, 1, 128>}, {transform_indices = @transform_15, window_bounds = array<i64: 1, 128, 32>}, {transform_indices = @transform_16, window_bounds = array<i64: 1, 1, 32>}, {pipeline_mode = #tpu.pipeline_mode<synchronous>, transform_indices = @transform_17, window_bounds = array<i64: 32, 32>}, {pipeline_mode = #tpu.pipeline_mode<synchronous>, transform_indices = @transform_18, window_bounds = array<i64: 1, 32>}, {pipeline_mode = #tpu.pipeline_mode<synchronous>, transform_indices = @transform_19, window_bounds = array<i64: 1, 32>}, {pipeline_mode = #tpu.pipeline_mode<synchronous>, transform_indices = @transform_20, window_bounds = array<i64: 1, 1>}, {transform_indices = @transform_21, window_bounds = array<i64: 2, 8, 32>}, {transform_indices = @transform_22, window_bounds = array<i64: 2, 1, 8>}]} {
    %c0_i32 = arith.constant 0 : i32
    %0 = arith.cmpi eq, %arg1, %c0_i32 : i32
    %1 = arith.extui %0 : i1 to i32
    %c0_i32_0 = arith.constant 0 : i32
    %2 = arith.cmpi ne, %1, %c0_i32_0 : i32
    scf.if %2 {
      %c0_78 = arith.constant 0 : index
      %c0_79 = arith.constant 0 : index
      %c0_80 = arith.constant 0 : index
      %149 = vector.load %arg2[%c0_78, %c0_79, %c0_80] : memref<2x8x32xf32, #tpu.memory_space<vmem>>, vector<2x8x32xf32>
      %c0_81 = arith.constant 0 : index
      %c0_82 = arith.constant 0 : index
      %c0_83 = arith.constant 0 : index
      %150 = vector.load %arg23[%c0_81, %c0_82, %c0_83] : memref<2x8x32xf32, #tpu.memory_space<vmem>>, vector<2x8x32xf32>
      tpu.vector_store %arg23[%c0_81, %c0_82, %c0_83], %149 {strides = array<i32>} : memref<2x8x32xf32, #tpu.memory_space<vmem>>, vector<2x8x32xf32>,
    } else {
    }
    %c0 = arith.constant 0 : index
    %c0_1 = arith.constant 0 : index
    %c0_2 = arith.constant 0 : index
    %3 = vector.load %arg23[%c0, %c0_1, %c0_2] : memref<2x8x32xf32, #tpu.memory_space<vmem>>, vector<2x8x32xf32>
    %c0_3 = arith.constant 0 : index
    %c0_4 = arith.constant 0 : index
    %c0_5 = arith.constant 0 : index
    %4 = vector.load %arg3[%c0_3, %c0_4, %c0_5] : memref<1x1x32xf32, #tpu.memory_space<vmem>>, vector<1x1x32xf32>
    %5 = vector.shape_cast %4 : vector<1x1x32xf32> to vector<1x32xf32>
    %c0_6 = arith.constant 0 : index
    %c0_7 = arith.constant 0 : index
    %c0_8 = arith.constant 0 : index
    %6 = vector.load %arg4[%c0_6, %c0_7, %c0_8] : memref<1x1x32xf32, #tpu.memory_space<vmem>>, vector<1x1x32xf32>
    %7 = vector.shape_cast %6 : vector<1x1x32xf32> to vector<1x32xf32>
    %cst = arith.constant dense<0.000000e+00> : vector<2x8xf32>
    %8 = vector.multi_reduction <add>, %3, %cst [2] : vector<2x8x32xf32> to vector<2x8xf32>
    %9 = vector.shape_cast %8 : vector<2x8xf32> to vector<2x8x1xf32>
    %cst_9 = arith.constant 3.200000e+01 : f32
    %10 = vector.broadcast %cst_9 : f32 to vector<2x8x1xf32>
    %11 = arith.divf %9, %10 : vector<2x8x1xf32>
    %12 = vector.broadcast %11 : vector<2x8x1xf32> to vector<2x8x32xf32>
    %13 = arith.subf %3, %12 : vector<2x8x32xf32>
    %14 = arith.mulf %13, %13 : vector<2x8x32xf32>
    %cst_10 = arith.constant dense<0.000000e+00> : vector<2x8xf32>
    %15 = vector.multi_reduction <add>, %14, %cst_10 [2] : vector<2x8x32xf32> to vector<2x8xf32>
    %16 = vector.shape_cast %15 : vector<2x8xf32> to vector<2x8x1xf32>
    %cst_11 = arith.constant 3.200000e+01 : f32
    %17 = vector.broadcast %cst_11 : f32 to vector<2x8x1xf32>
    %18 = arith.divf %16, %17 : vector<2x8x1xf32>
    %19 = vector.broadcast %11 : vector<2x8x1xf32> to vector<2x8x32xf32>
    %20 = arith.subf %3, %19 : vector<2x8x32xf32>
    %cst_12 = arith.constant 9.99999974E-6 : f32
    %21 = vector.broadcast %cst_12 : f32 to vector<2x8x1xf32>
    %22 = arith.addf %18, %21 : vector<2x8x1xf32>
    %23 = math.rsqrt %22 : vector<2x8x1xf32>
    %24 = vector.broadcast %23 : vector<2x8x1xf32> to vector<2x8x32xf32>
    %25 = arith.mulf %20, %24 : vector<2x8x32xf32>
    %26 = vector.shape_cast %5 : vector<1x32xf32> to vector<1x1x32xf32>
    %27 = vector.broadcast %26 : vector<1x1x32xf32> to vector<2x8x32xf32>
    %28 = arith.mulf %25, %27 : vector<2x8x32xf32>
    %29 = vector.shape_cast %7 : vector<1x32xf32> to vector<1x1x32xf32>
    %30 = vector.broadcast %29 : vector<1x1x32xf32> to vector<2x8x32xf32>
    %31 = arith.addf %28, %30 : vector<2x8x32xf32>
    %32 = vector.shape_cast %31 : vector<2x8x32xf32> to vector<16x32xf32>
    %33 = arith.truncf %32 : vector<16x32xf32> to vector<16x32xbf16>
    %c0_13 = arith.constant 0 : index
    %c0_14 = arith.constant 0 : index
    %c0_15 = arith.constant 0 : index
    %34 = vector.load %arg5[%c0_13, %c0_14, %c0_15] : memref<1x32x32xbf16, #tpu.memory_space<vmem>>, vector<1x32x32xbf16>
    %35 = vector.shape_cast %34 : vector<1x32x32xbf16> to vector<32x32xbf16>
    %cst_16 = arith.constant dense<0.000000e+00> : vector<16x32xf32>
    %36 = tpu.matmul %33, %35, %cst_16 {dimension_numbers = #tpu.dot_dimension_numbers<[1], [0], [0], [1], [0, 0, 1, 1], [], []>} : vector<16x32xbf16>, vector<32x32xbf16>, vector<16x32xf32> -> vector<16x32xf32>
    %c0_17 = arith.constant 0 : index
    %c0_18 = arith.constant 0 : index
    %c0_19 = arith.constant 0 : index
    %37 = vector.load %arg6[%c0_17, %c0_18, %c0_19] : memref<1x1x32xf32, #tpu.memory_space<vmem>>, vector<1x1x32xf32>
    %38 = vector.shape_cast %37 : vector<1x1x32xf32> to vector<1x32xf32>
    %39 = vector.broadcast %38 : vector<1x32xf32> to vector<16x32xf32>
    %40 = arith.addf %36, %39 : vector<16x32xf32>
    %41 = vector.shape_cast %40 : vector<16x32xf32> to vector<2x8x32xf32>
    %c0_20 = arith.constant 0 : index
    %c0_21 = arith.constant 0 : index
    %c0_22 = arith.constant 0 : index
    %42 = vector.load %arg7[%c0_20, %c0_21, %c0_22] : memref<1x32x32xbf16, #tpu.memory_space<vmem>>, vector<1x32x32xbf16>
    %43 = vector.shape_cast %42 : vector<1x32x32xbf16> to vector<32x32xbf16>
    %cst_23 = arith.constant dense<0.000000e+00> : vector<16x32xf32>
    %44 = tpu.matmul %33, %43, %cst_23 {dimension_numbers = #tpu.dot_dimension_numbers<[1], [0], [0], [1], [0, 0, 1, 1], [], []>} : vector<16x32xbf16>, vector<32x32xbf16>, vector<16x32xf32> -> vector<16x32xf32>
    %c0_24 = arith.constant 0 : index
    %c0_25 = arith.constant 0 : index
    %c0_26 = arith.constant 0 : index
    %45 = vector.load %arg8[%c0_24, %c0_25, %c0_26] : memref<1x1x32xf32, #tpu.memory_space<vmem>>, vector<1x1x32xf32>
    %46 = vector.shape_cast %45 : vector<1x1x32xf32> to vector<1x32xf32>
    %47 = vector.broadcast %46 : vector<1x32xf32> to vector<16x32xf32>
    %48 = arith.addf %44, %47 : vector<16x32xf32>
    %49 = vector.shape_cast %48 : vector<16x32xf32> to vector<2x8x32xf32>
    %c0_27 = arith.constant 0 : index
    %c0_28 = arith.constant 0 : index
    %c0_29 = arith.constant 0 : index
    %50 = vector.load %arg9[%c0_27, %c0_28, %c0_29] : memref<1x32x32xbf16, #tpu.memory_space<vmem>>, vector<1x32x32xbf16>
    %51 = vector.shape_cast %50 : vector<1x32x32xbf16> to vector<32x32xbf16>
    %cst_30 = arith.constant dense<0.000000e+00> : vector<16x32xf32>
    %52 = tpu.matmul %33, %51, %cst_30 {dimension_numbers = #tpu.dot_dimension_numbers<[1], [0], [0], [1], [0, 0, 1, 1], [], []>} : vector<16x32xbf16>, vector<32x32xbf16>, vector<16x32xf32> -> vector<16x32xf32>
    %c0_31 = arith.constant 0 : index
    %c0_32 = arith.constant 0 : index
    %c0_33 = arith.constant 0 : index
    %53 = vector.load %arg10[%c0_31, %c0_32, %c0_33] : memref<1x1x32xf32, #tpu.memory_space<vmem>>, vector<1x1x32xf32>
    %54 = vector.shape_cast %53 : vector<1x1x32xf32> to vector<1x32xf32>
    %55 = vector.broadcast %54 : vector<1x32xf32> to vector<16x32xf32>
    %56 = arith.addf %52, %55 : vector<16x32xf32>
    %57 = vector.shape_cast %56 : vector<16x32xf32> to vector<2x8x32xf32>
    %58 = arith.truncf %41 : vector<2x8x32xf32> to vector<2x8x32xbf16>
    %59 = arith.truncf %49 : vector<2x8x32xf32> to vector<2x8x32xbf16>
    "tpu.trace_start"() <{level = 10 : i32, message = "bqd,bkd->bqk"}> : () -> ()
    %cst_34 = arith.constant dense<0.000000e+00> : vector<2x8x8xf32>
    %60 = tpu.matmul %58, %59, %cst_34 {dimension_numbers = #tpu.dot_dimension_numbers<[2], [2], [1], [1], [0, 0, 0, 1, 1, 1], [0], [0]>} : vector<2x8x32xbf16>, vector<2x8x32xbf16>, vector<2x8x8xf32> -> vector<2x8x8xf32>
    "tpu.trace_stop"() : () -> ()
    %cst_35 = arith.constant dense<0xFF800000> : vector<2x8xf32>
    %61 = vector.multi_reduction <maximumf>, %60, %cst_35 [2] : vector<2x8x8xf32> to vector<2x8xf32>
    %62 = vector.shape_cast %61 : vector<2x8xf32> to vector<2x8x1xf32>
    %63 = vector.broadcast %62 : vector<2x8x1xf32> to vector<2x8x8xf32>
    %64 = arith.subf %60, %63 : vector<2x8x8xf32>
    %65 = math.exp %64 : vector<2x8x8xf32>
    %cst_36 = arith.constant dense<0.000000e+00> : vector<2x8xf32>
    %66 = vector.multi_reduction <add>, %65, %cst_36 [2] : vector<2x8x8xf32> to vector<2x8xf32>
    %67 = vector.shape_cast %66 : vector<2x8xf32> to vector<2x8x1xf32>
    %68 = tpu.reciprocal %67 {approx = true} : vector<2x8x1xf32> -> vector<2x8x1xf32>
    %69 = vector.broadcast %68 : vector<2x8x1xf32> to vector<2x8x8xf32>
    %70 = arith.mulf %65, %69 : vector<2x8x8xf32>
    %71 = arith.truncf %70 : vector<2x8x8xf32> to vector<2x8x8xbf16>
    %72 = arith.truncf %57 : vector<2x8x32xf32> to vector<2x8x32xbf16>
    "tpu.trace_start"() <{level = 10 : i32, message = "bqk,bkd->bqd"}> : () -> ()
    %cst_37 = arith.constant dense<0.000000e+00> : vector<2x8x32xf32>
    %73 = tpu.matmul %71, %72, %cst_37 {dimension_numbers = #tpu.dot_dimension_numbers<[2], [1], [1], [2], [0, 0, 0, 1, 1, 2], [0], [0]>} : vector<2x8x8xbf16>, vector<2x8x32xbf16>, vector<2x8x32xf32> -> vector<2x8x32xf32>
    "tpu.trace_stop"() : () -> ()
    %74 = vector.shape_cast %73 : vector<2x8x32xf32> to vector<16x32xf32>
    %75 = arith.truncf %74 : vector<16x32xf32> to vector<16x32xbf16>
    %c0_38 = arith.constant 0 : index
    %c0_39 = arith.constant 0 : index
    %c0_40 = arith.constant 0 : index
    %76 = vector.load %arg11[%c0_38, %c0_39, %c0_40] : memref<1x32x32xbf16, #tpu.memory_space<vmem>>, vector<1x32x32xbf16>
    %77 = vector.shape_cast %76 : vector<1x32x32xbf16> to vector<32x32xbf16>
    %cst_41 = arith.constant dense<0.000000e+00> : vector<16x32xf32>
    %78 = tpu.matmul %75, %77, %cst_41 {dimension_numbers = #tpu.dot_dimension_numbers<[1], [0], [0], [1], [0, 0, 1, 1], [], []>} : vector<16x32xbf16>, vector<32x32xbf16>, vector<16x32xf32> -> vector<16x32xf32>
    %c0_42 = arith.constant 0 : index
    %c0_43 = arith.constant 0 : index
    %c0_44 = arith.constant 0 : index
    %79 = vector.load %arg12[%c0_42, %c0_43, %c0_44] : memref<1x1x32xf32, #tpu.memory_space<vmem>>, vector<1x1x32xf32>
    %80 = vector.shape_cast %79 : vector<1x1x32xf32> to vector<1x32xf32>
    %81 = vector.broadcast %80 : vector<1x32xf32> to vector<16x32xf32>
    %82 = arith.addf %78, %81 : vector<16x32xf32>
    %83 = vector.shape_cast %82 : vector<16x32xf32> to vector<2x8x32xf32>
    %84 = arith.addf %3, %83 : vector<2x8x32xf32>
    %c0_45 = arith.constant 0 : index
    %c0_46 = arith.constant 0 : index
    %c0_47 = arith.constant 0 : index
    %85 = vector.load %arg13[%c0_45, %c0_46, %c0_47] : memref<1x1x32xf32, #tpu.memory_space<vmem>>, vector<1x1x32xf32>
    %86 = vector.shape_cast %85 : vector<1x1x32xf32> to vector<1x32xf32>
    %c0_48 = arith.constant 0 : index
    %c0_49 = arith.constant 0 : index
    %c0_50 = arith.constant 0 : index
    %87 = vector.load %arg14[%c0_48, %c0_49, %c0_50] : memref<1x1x32xf32, #tpu.memory_space<vmem>>, vector<1x1x32xf32>
    %88 = vector.shape_cast %87 : vector<1x1x32xf32> to vector<1x32xf32>
    %cst_51 = arith.constant dense<0.000000e+00> : vector<2x8xf32>
    %89 = vector.multi_reduction <add>, %84, %cst_51 [2] : vector<2x8x32xf32> to vector<2x8xf32>
    %90 = vector.shape_cast %89 : vector<2x8xf32> to vector<2x8x1xf32>
    %cst_52 = arith.constant 3.200000e+01 : f32
    %91 = vector.broadcast %cst_52 : f32 to vector<2x8x1xf32>
    %92 = arith.divf %90, %91 : vector<2x8x1xf32>
    %93 = vector.broadcast %92 : vector<2x8x1xf32> to vector<2x8x32xf32>
    %94 = arith.subf %84, %93 : vector<2x8x32xf32>
    %95 = arith.mulf %94, %94 : vector<2x8x32xf32>
    %cst_53 = arith.constant dense<0.000000e+00> : vector<2x8xf32>
    %96 = vector.multi_reduction <add>, %95, %cst_53 [2] : vector<2x8x32xf32> to vector<2x8xf32>
    %97 = vector.shape_cast %96 : vector<2x8xf32> to vector<2x8x1xf32>
    %cst_54 = arith.constant 3.200000e+01 : f32
    %98 = vector.broadcast %cst_54 : f32 to vector<2x8x1xf32>
    %99 = arith.divf %97, %98 : vector<2x8x1xf32>
    %100 = vector.broadcast %92 : vector<2x8x1xf32> to vector<2x8x32xf32>
    %101 = arith.subf %84, %100 : vector<2x8x32xf32>
    %cst_55 = arith.constant 9.99999974E-6 : f32
    %102 = vector.broadcast %cst_55 : f32 to vector<2x8x1xf32>
    %103 = arith.addf %99, %102 : vector<2x8x1xf32>
    %104 = math.rsqrt %103 : vector<2x8x1xf32>
    %105 = vector.broadcast %104 : vector<2x8x1xf32> to vector<2x8x32xf32>
    %106 = arith.mulf %101, %105 : vector<2x8x32xf32>
    %107 = vector.shape_cast %86 : vector<1x32xf32> to vector<1x1x32xf32>
    %108 = vector.broadcast %107 : vector<1x1x32xf32> to vector<2x8x32xf32>
    %109 = arith.mulf %106, %108 : vector<2x8x32xf32>
    %110 = vector.shape_cast %88 : vector<1x32xf32> to vector<1x1x32xf32>
    %111 = vector.broadcast %110 : vector<1x1x32xf32> to vector<2x8x32xf32>
    %112 = arith.addf %109, %111 : vector<2x8x32xf32>
    %113 = vector.shape_cast %112 : vector<2x8x32xf32> to vector<16x32xf32>
    %114 = arith.truncf %113 : vector<16x32xf32> to vector<16x32xbf16>
    %c0_56 = arith.constant 0 : index
    %c0_57 = arith.constant 0 : index
    %c0_58 = arith.constant 0 : index
    %115 = vector.load %arg15[%c0_56, %c0_57, %c0_58] : memref<1x32x128xbf16, #tpu.memory_space<vmem>>, vector<1x32x128xbf16>
    %116 = vector.shape_cast %115 : vector<1x32x128xbf16> to vector<32x128xbf16>
    %cst_59 = arith.constant dense<0.000000e+00> : vector<16x128xf32>
    %117 = tpu.matmul %114, %116, %cst_59 {dimension_numbers = #tpu.dot_dimension_numbers<[1], [0], [0], [1], [0, 0, 1, 1], [], []>} : vector<16x32xbf16>, vector<32x128xbf16>, vector<16x128xf32> -> vector<16x128xf32>
    %c0_60 = arith.constant 0 : index
    %c0_61 = arith.constant 0 : index
    %c0_62 = arith.constant 0 : index
    %118 = vector.load %arg16[%c0_60, %c0_61, %c0_62] : memref<1x1x128xf32, #tpu.memory_space<vmem>>, vector<1x1x128xf32>
    %119 = vector.shape_cast %118 : vector<1x1x128xf32> to vector<1x128xf32>
    %120 = vector.broadcast %119 : vector<1x128xf32> to vector<16x128xf32>
    %121 = arith.addf %117, %120 : vector<16x128xf32>
    %122 = arith.mulf %121, %121 : vector<16x128xf32>
    %123 = arith.mulf %121, %122 : vector<16x128xf32>
    %cst_63 = arith.constant 4.471500e-02 : f32
    %124 = vector.broadcast %cst_63 : f32 to vector<16x128xf32>
    %125 = arith.mulf %124, %123 : vector<16x128xf32>
    %126 = arith.addf %121, %125 : vector<16x128xf32>
    %cst_64 = arith.constant 0.797884583 : f32
    %127 = vector.broadcast %cst_64 : f32 to vector<16x128xf32>
    %128 = arith.mulf %127, %126 : vector<16x128xf32>
    %129 = math.tanh %128 : vector<16x128xf32>
    %cst_65 = arith.constant 1.000000e+00 : f32
    %130 = vector.broadcast %cst_65 : f32 to vector<16x128xf32>
    %131 = arith.addf %130, %129 : vector<16x128xf32>
    %cst_66 = arith.constant 5.000000e-01 : f32
    %132 = vector.broadcast %cst_66 : f32 to vector<16x128xf32>
    %133 = arith.mulf %132, %131 : vector<16x128xf32>
    %134 = arith.mulf %121, %133 : vector<16x128xf32>
    %135 = arith.truncf %134 : vector<16x128xf32> to vector<16x128xbf16>
    %c0_67 = arith.constant 0 : index
    %c0_68 = arith.constant 0 : index
    %c0_69 = arith.constant 0 : index
    %136 = vector.load %arg17[%c0_67, %c0_68, %c0_69] : memref<1x128x32xbf16, #tpu.memory_space<vmem>>, vector<1x128x32xbf16>
    %137 = vector.shape_cast %136 : vector<1x128x32xbf16> to vector<128x32xbf16>
    %cst_70 = arith.constant dense<0.000000e+00> : vector<16x32xf32>
    %138 = tpu.matmul %135, %137, %cst_70 {dimension_numbers = #tpu.dot_dimension_numbers<[1], [0], [0], [1], [0, 0, 1, 1], [], []>} : vector<16x128xbf16>, vector<128x32xbf16>, vector<16x32xf32> -> vector<16x32xf32>
    %c0_71 = arith.constant 0 : index
    %c0_72 = arith.constant 0 : index
    %c0_73 = arith.constant 0 : index
    %139 = vector.load %arg18[%c0_71, %c0_72, %c0_73] : memref<1x1x32xf32, #tpu.memory_space<vmem>>, vector<1x1x32xf32>
    %140 = vector.shape_cast %139 : vector<1x1x32xf32> to vector<1x32xf32>
    %141 = vector.broadcast %140 : vector<1x32xf32> to vector<16x32xf32>
    %142 = arith.addf %138, %141 : vector<16x32xf32>
    %143 = vector.shape_cast %142 : vector<16x32xf32> to vector<2x8x32xf32>
    %144 = arith.addf %84, %143 : vector<2x8x32xf32>
    %c0_74 = arith.constant 0 : index
    %c0_75 = arith.constant 0 : index
    %c0_76 = arith.constant 0 : index
    %145 = vector.load %arg23[%c0_74, %c0_75, %c0_76] : memref<2x8x32xf32, #tpu.memory_space<vmem>>, vector<2x8x32xf32>
    tpu.vector_store %arg23[%c0_74, %c0_75, %c0_76], %144 {strides = array<i32>} : memref<2x8x32xf32, #tpu.memory_space<vmem>>, vector<2x8x32xf32>,
    %c1_i32 = arith.constant 1 : i32
    %146 = arith.cmpi eq, %arg1, %c1_i32 : i32
    %147 = arith.extui %146 : i1 to i32
    %c0_i32_77 = arith.constant 0 : i32
    %148 = arith.cmpi ne, %147, %c0_i32_77 : i32
    scf.if %148 {
      %149 = vector.shape_cast %144 : vector<2x8x32xf32> to vector<16x32xf32>
      %150 = arith.truncf %149 : vector<16x32xf32> to vector<16x32xbf16>
      %c0_78 = arith.constant 0 : index
      %c0_79 = arith.constant 0 : index
      %151 = vector.load %arg19[%c0_78, %c0_79] : memref<32x32xbf16, #tpu.memory_space<vmem>>, vector<32x32xbf16>
      %cst_80 = arith.constant dense<0.000000e+00> : vector<16x32xf32>
      %152 = tpu.matmul %150, %151, %cst_80 {dimension_numbers = #tpu.dot_dimension_numbers<[1], [0], [0], [1], [0, 0, 1, 1], [], []>} : vector<16x32xbf16>, vector<32x32xbf16>, vector<16x32xf32> -> vector<16x32xf32>
      %c0_81 = arith.constant 0 : index
      %c0_82 = arith.constant 0 : index
      %153 = vector.load %arg20[%c0_81, %c0_82] : memref<1x32xf32, #tpu.memory_space<vmem>>, vector<1x32xf32>
      %154 = vector.broadcast %153 : vector<1x32xf32> to vector<16x32xf32>
      %155 = arith.addf %152, %154 : vector<16x32xf32>
      %cst_83 = arith.constant 0.000000e+00 : f32
      %156 = vector.broadcast %cst_83 : f32 to vector<16x32xf32>
      %157 = arith.maximumf %155, %156 : vector<16x32xf32>
      %158 = vector.shape_cast %157 : vector<16x32xf32> to vector<2x8x32xf32>
      %c0_84 = arith.constant 0 : index
      %c0_85 = arith.constant 0 : index
      %159 = vector.load %arg21[%c0_84, %c0_85] : memref<1x32xf32, #tpu.memory_space<vmem>>, vector<1x32xf32>
      %160 = vector.shape_cast %159 : vector<1x32xf32> to vector<1x1x32xf32>
      %161 = vector.broadcast %160 : vector<1x1x32xf32> to vector<2x8x32xf32>
      %162 = arith.mulf %158, %161 : vector<2x8x32xf32>
      %cst_86 = arith.constant dense<0.000000e+00> : vector<2x8xf32>
      %163 = vector.multi_reduction <add>, %162, %cst_86 [2] : vector<2x8x32xf32> to vector<2x8xf32>
      %c0_87 = arith.constant 0 : index
      %c0_88 = arith.constant 0 : index
      %164 = vector.load %arg22[%c0_87, %c0_88] : memref<1x1xf32, #tpu.memory_space<vmem>>, vector<1x1xf32>
      %165 = vector.broadcast %164 : vector<1x1xf32> to vector<2x8xf32>
      %166 = arith.addf %163, %165 : vector<2x8xf32>
      %167 = vector.shape_cast %166 : vector<2x8xf32> to vector<2x1x8xf32>
      %c0_89 = arith.constant 0 : index
      %c0_90 = arith.constant 0 : index
      %c0_91 = arith.constant 0 : index
      %168 = vector.load %arg24[%c0_89, %c0_90, %c0_91] : memref<2x1x8xf32, #tpu.memory_space<vmem>>, vector<2x1x8xf32>
      tpu.vector_store %arg24[%c0_89, %c0_90, %c0_91], %167 {strides = array<i32>} : memref<2x1x8xf32, #tpu.memory_space<vmem>>, vector<2x1x8xf32>,
    } else {
    }
    return
  }
  func.func @transform_0(%arg0: i32, %arg1: i32) -> (i32, i32, i32) {
    %c0_i32 = arith.constant 0 : i32
    %c0_i32_0 = arith.constant 0 : i32
    %c0_i32_1 = arith.constant 0 : i32
    return %arg0, %c0_i32, %c0_i32_0 : i32, i32, i32
  }
  func.func @transform_1(%arg0: i32, %arg1: i32) -> (i32, i32, i32) {
    %c0_i32 = arith.constant 0 : i32
    %c0_i32_0 = arith.constant 0 : i32
    %c0_i32_1 = arith.constant 0 : i32
    return %arg1, %c0_i32, %c0_i32_0 : i32, i32, i32
  }
  func.func @transform_2(%arg0: i32, %arg1: i32) -> (i32, i32, i32) {
    %c0_i32 = arith.constant 0 : i32
    %c0_i32_0 = arith.constant 0 : i32
    %c0_i32_1 = arith.constant 0 : i32
    return %arg1, %c0_i32, %c0_i32_0 : i32, i32, i32
  }
  func.func @transform_3(%arg0: i32, %arg1: i32) -> (i32, i32, i32) {
    %c0_i32 = arith.constant 0 : i32
    %c0_i32_0 = arith.constant 0 : i32
    %c0_i32_1 = arith.constant 0 : i32
    return %arg1, %c0_i32, %c0_i32_0 : i32, i32, i32
  }
  func.func @transform_4(%arg0: i32, %arg1: i32) -> (i32, i32, i32) {
    %c0_i32 = arith.constant 0 : i32
    %c0_i32_0 = arith.constant 0 : i32
    %c0_i32_1 = arith.constant 0 : i32
    return %arg1, %c0_i32, %c0_i32_0 : i32, i32, i32
  }
  func.func @transform_5(%arg0: i32, %arg1: i32) -> (i32, i32, i32) {
    %c0_i32 = arith.constant 0 : i32
    %c0_i32_0 = arith.constant 0 : i32
    %c0_i32_1 = arith.constant 0 : i32
    return %arg1, %c0_i32, %c0_i32_0 : i32, i32, i32
  }
  func.func @transform_6(%arg0: i32, %arg1: i32) -> (i32, i32, i32) {
    %c0_i32 = arith.constant 0 : i32
    %c0_i32_0 = arith.constant 0 : i32
    %c0_i32_1 = arith.constant 0 : i32
    return %arg1, %c0_i32, %c0_i32_0 : i32, i32, i32
  }
  func.func @transform_7(%arg0: i32, %arg1: i32) -> (i32, i32, i32) {
    %c0_i32 = arith.constant 0 : i32
    %c0_i32_0 = arith.constant 0 : i32
    %c0_i32_1 = arith.constant 0 : i32
    return %arg1, %c0_i32, %c0_i32_0 : i32, i32, i32
  }
  func.func @transform_8(%arg0: i32, %arg1: i32) -> (i32, i32, i32) {
    %c0_i32 = arith.constant 0 : i32
    %c0_i32_0 = arith.constant 0 : i32
    %c0_i32_1 = arith.constant 0 : i32
    return %arg1, %c0_i32, %c0_i32_0 : i32, i32, i32
  }
  func.func @transform_9(%arg0: i32, %arg1: i32) -> (i32, i32, i32) {
    %c0_i32 = arith.constant 0 : i32
    %c0_i32_0 = arith.constant 0 : i32
    %c0_i32_1 = arith.constant 0 : i32
    return %arg1, %c0_i32, %c0_i32_0 : i32, i32, i32
  }
  func.func @transform_10(%arg0: i32, %arg1: i32) -> (i32, i32, i32) {
    %c0_i32 = arith.constant 0 : i32
    %c0_i32_0 = arith.constant 0 : i32
    %c0_i32_1 = arith.constant 0 : i32
    return %arg1, %c0_i32, %c0_i32_0 : i32, i32, i32
  }
  func.func @transform_11(%arg0: i32, %arg1: i32) -> (i32, i32, i32) {
    %c0_i32 = arith.constant 0 : i32
    %c0_i32_0 = arith.constant 0 : i32
    %c0_i32_1 = arith.constant 0 : i32
    return %arg1, %c0_i32, %c0_i32_0 : i32, i32, i32
  }
  func.func @transform_12(%arg0: i32, %arg1: i32) -> (i32, i32, i32) {
    %c0_i32 = arith.constant 0 : i32
    %c0_i32_0 = arith.constant 0 : i32
    %c0_i32_1 = arith.constant 0 : i32
    return %arg1, %c0_i32, %c0_i32_0 : i32, i32, i32
  }
  func.func @transform_13(%arg0: i32, %arg1: i32) -> (i32, i32, i32) {
    %c0_i32 = arith.constant 0 : i32
    %c0_i32_0 = arith.constant 0 : i32
    %c0_i32_1 = arith.constant 0 : i32
    return %arg1, %c0_i32, %c0_i32_0 : i32, i32, i32
  }
  func.func @transform_14(%arg0: i32, %arg1: i32) -> (i32, i32, i32) {
    %c0_i32 = arith.constant 0 : i32
    %c0_i32_0 = arith.constant 0 : i32
    %c0_i32_1 = arith.constant 0 : i32
    return %arg1, %c0_i32, %c0_i32_0 : i32, i32, i32
  }
  func.func @transform_15(%arg0: i32, %arg1: i32) -> (i32, i32, i32) {
    %c0_i32 = arith.constant 0 : i32
    %c0_i32_0 = arith.constant 0 : i32
    %c0_i32_1 = arith.constant 0 : i32
    return %arg1, %c0_i32, %c0_i32_0 : i32, i32, i32
  }
  func.func @transform_16(%arg0: i32, %arg1: i32) -> (i32, i32, i32) {
    %c0_i32 = arith.constant 0 : i32
    %c0_i32_0 = arith.constant 0 : i32
    %c0_i32_1 = arith.constant 0 : i32
    return %arg1, %c0_i32, %c0_i32_0 : i32, i32, i32
  }
  func.func @transform_17(%arg0: i32, %arg1: i32) -> (i32, i32) {
    %c0_i32 = arith.constant 0 : i32
    %c0_i32_0 = arith.constant 0 : i32
    %c0_i32_1 = arith.constant 0 : i32
    return %c0_i32, %c0_i32_0 : i32, i32
  }
  func.func @transform_18(%arg0: i32, %arg1: i32) -> (i32, i32) {
    %c0_i32 = arith.constant 0 : i32
    %c0_i32_0 = arith.constant 0 : i32
    %c0_i32_1 = arith.constant 0 : i32
    return %c0_i32, %c0_i32_0 : i32, i32
  }
  func.func @transform_19(%arg0: i32, %arg1: i32) -> (i32, i32) {
    %c0_i32 = arith.constant 0 : i32
    %c0_i32_0 = arith.constant 0 : i32
    %c0_i32_1 = arith.constant 0 : i32
    return %c0_i32, %c0_i32_0 : i32, i32
  }
  func.func @transform_20(%arg0: i32, %arg1: i32) -> (i32, i32) {
    %c0_i32 = arith.constant 0 : i32
    %c0_i32_0 = arith.constant 0 : i32
    %c0_i32_1 = arith.constant 0 : i32
    return %c0_i32, %c0_i32_0 : i32, i32
  }
  func.func @transform_21(%arg0: i32, %arg1: i32) -> (i32, i32, i32) {
    %c0_i32 = arith.constant 0 : i32
    %c0_i32_0 = arith.constant 0 : i32
    %c0_i32_1 = arith.constant 0 : i32
    return %arg0, %c0_i32, %c0_i32_0 : i32, i32, i32
  }
  func.func @transform_22(%arg0: i32, %arg1: i32) -> (i32, i32, i32) {
    %c0_i32 = arith.constant 0 : i32
    %c0_i32_0 = arith.constant 0 : i32
    %c0_i32_1 = arith.constant 0 : i32
    return %arg0, %c0_i32, %c0_i32_0 : i32, i32, i32
  }
}

module attributes {stable_mosaic.version = 11 : i64} {
  func.func @_mamba_kernel(%arg0: i32, %arg1: i32, %arg2: memref<2x8x32xf32, #tpu.memory_space<vmem>>, %arg3: memref<1x1x32xf32, #tpu.memory_space<vmem>>, %arg4: memref<1x1x32xf32, #tpu.memory_space<vmem>>, %arg5: memref<1x32x32xbf16, #tpu.memory_space<vmem>>, %arg6: memref<1x1x32xf32, #tpu.memory_space<vmem>>, %arg7: memref<1x32x32xbf16, #tpu.memory_space<vmem>>, %arg8: memref<1x1x32xf32, #tpu.memory_space<vmem>>, %arg9: memref<1x1x32xf32, #tpu.memory_space<vmem>>, %arg10: memref<1x32x32xbf16, #tpu.memory_space<vmem>>, %arg11: memref<1x1x32xf32, #tpu.memory_space<vmem>>, %arg12: memref<2x8x32xf32, #tpu.memory_space<vmem>>) attributes {dimension_semantics = [#tpu.dimension_semantics<parallel>, #tpu.dimension_semantics<arbitrary>], iteration_bounds = array<i64: 2, 2>, scalar_prefetch = 0 : i64, scratch_operands = 0 : i64, tpu.core_type = #tpu.core_type<tc>, window_params = [{transform_indices = @transform_0, window_bounds = array<i64: 2, 8, 32>}, {transform_indices = @transform_1, window_bounds = array<i64: 1, 1, 32>}, {transform_indices = @transform_2, window_bounds = array<i64: 1, 1, 32>}, {transform_indices = @transform_3, window_bounds = array<i64: 1, 32, 32>}, {transform_indices = @transform_4, window_bounds = array<i64: 1, 1, 32>}, {transform_indices = @transform_5, window_bounds = array<i64: 1, 32, 32>}, {transform_indices = @transform_6, window_bounds = array<i64: 1, 1, 32>}, {transform_indices = @transform_7, window_bounds = array<i64: 1, 1, 32>}, {transform_indices = @transform_8, window_bounds = array<i64: 1, 32, 32>}, {transform_indices = @transform_9, window_bounds = array<i64: 1, 1, 32>}, {transform_indices = @transform_10, window_bounds = array<i64: 2, 8, 32>}]} {
    %c0_i32 = arith.constant 0 : i32
    %0 = arith.cmpi eq, %arg1, %c0_i32 : i32
    %1 = arith.extui %0 : i1 to i32
    %c0_i32_0 = arith.constant 0 : i32
    %2 = arith.cmpi ne, %1, %c0_i32_0 : i32
    scf.if %2 {
      %c0_48 = arith.constant 0 : index
      %c0_49 = arith.constant 0 : index
      %c0_50 = arith.constant 0 : index
      %104 = vector.load %arg2[%c0_48, %c0_49, %c0_50] : memref<2x8x32xf32, #tpu.memory_space<vmem>>, vector<2x8x32xf32>
      %c0_51 = arith.constant 0 : index
      %c0_52 = arith.constant 0 : index
      %c0_53 = arith.constant 0 : index
      %105 = vector.load %arg12[%c0_51, %c0_52, %c0_53] : memref<2x8x32xf32, #tpu.memory_space<vmem>>, vector<2x8x32xf32>
      tpu.vector_store %arg12[%c0_51, %c0_52, %c0_53], %104 {strides = array<i32>} : memref<2x8x32xf32, #tpu.memory_space<vmem>>, vector<2x8x32xf32>,
    } else {
    }
    %c0 = arith.constant 0 : index
    %c0_1 = arith.constant 0 : index
    %c0_2 = arith.constant 0 : index
    %3 = vector.load %arg12[%c0, %c0_1, %c0_2] : memref<2x8x32xf32, #tpu.memory_space<vmem>>, vector<2x8x32xf32>
    %c0_3 = arith.constant 0 : index
    %c0_4 = arith.constant 0 : index
    %c0_5 = arith.constant 0 : index
    %4 = vector.load %arg3[%c0_3, %c0_4, %c0_5] : memref<1x1x32xf32, #tpu.memory_space<vmem>>, vector<1x1x32xf32>
    %5 = vector.shape_cast %4 : vector<1x1x32xf32> to vector<1x32xf32>
    %c0_6 = arith.constant 0 : index
    %c0_7 = arith.constant 0 : index
    %c0_8 = arith.constant 0 : index
    %6 = vector.load %arg4[%c0_6, %c0_7, %c0_8] : memref<1x1x32xf32, #tpu.memory_space<vmem>>, vector<1x1x32xf32>
    %7 = vector.shape_cast %6 : vector<1x1x32xf32> to vector<1x32xf32>
    %cst = arith.constant dense<0.000000e+00> : vector<2x8xf32>
    %8 = vector.multi_reduction <add>, %3, %cst [2] : vector<2x8x32xf32> to vector<2x8xf32>
    %9 = vector.shape_cast %8 : vector<2x8xf32> to vector<2x8x1xf32>
    %cst_9 = arith.constant 3.200000e+01 : f32
    %10 = vector.broadcast %cst_9 : f32 to vector<2x8x1xf32>
    %11 = arith.divf %9, %10 : vector<2x8x1xf32>
    %12 = vector.broadcast %11 : vector<2x8x1xf32> to vector<2x8x32xf32>
    %13 = arith.subf %3, %12 : vector<2x8x32xf32>
    %14 = arith.mulf %13, %13 : vector<2x8x32xf32>
    %cst_10 = arith.constant dense<0.000000e+00> : vector<2x8xf32>
    %15 = vector.multi_reduction <add>, %14, %cst_10 [2] : vector<2x8x32xf32> to vector<2x8xf32>
    %16 = vector.shape_cast %15 : vector<2x8xf32> to vector<2x8x1xf32>
    %cst_11 = arith.constant 3.200000e+01 : f32
    %17 = vector.broadcast %cst_11 : f32 to vector<2x8x1xf32>
    %18 = arith.divf %16, %17 : vector<2x8x1xf32>
    %19 = vector.broadcast %11 : vector<2x8x1xf32> to vector<2x8x32xf32>
    %20 = arith.subf %3, %19 : vector<2x8x32xf32>
    %cst_12 = arith.constant 9.99999974E-6 : f32
    %21 = vector.broadcast %cst_12 : f32 to vector<2x8x1xf32>
    %22 = arith.addf %18, %21 : vector<2x8x1xf32>
    %23 = math.rsqrt %22 : vector<2x8x1xf32>
    %24 = vector.broadcast %23 : vector<2x8x1xf32> to vector<2x8x32xf32>
    %25 = arith.mulf %20, %24 : vector<2x8x32xf32>
    %26 = vector.shape_cast %5 : vector<1x32xf32> to vector<1x1x32xf32>
    %27 = vector.broadcast %26 : vector<1x1x32xf32> to vector<2x8x32xf32>
    %28 = arith.mulf %25, %27 : vector<2x8x32xf32>
    %29 = vector.shape_cast %7 : vector<1x32xf32> to vector<1x1x32xf32>
    %30 = vector.broadcast %29 : vector<1x1x32xf32> to vector<2x8x32xf32>
    %31 = arith.addf %28, %30 : vector<2x8x32xf32>
    %32 = vector.shape_cast %31 : vector<2x8x32xf32> to vector<16x32xf32>
    %33 = arith.truncf %32 : vector<16x32xf32> to vector<16x32xbf16>
    %c0_13 = arith.constant 0 : index
    %c0_14 = arith.constant 0 : index
    %c0_15 = arith.constant 0 : index
    %34 = vector.load %arg5[%c0_13, %c0_14, %c0_15] : memref<1x32x32xbf16, #tpu.memory_space<vmem>>, vector<1x32x32xbf16>
    %35 = vector.shape_cast %34 : vector<1x32x32xbf16> to vector<32x32xbf16>
    %cst_16 = arith.constant dense<0.000000e+00> : vector<16x32xf32>
    %36 = tpu.matmul %33, %35, %cst_16 {dimension_numbers = #tpu.dot_dimension_numbers<[1], [0], [0], [1], [0, 0, 1, 1], [], []>} : vector<16x32xbf16>, vector<32x32xbf16>, vector<16x32xf32> -> vector<16x32xf32>
    %c0_17 = arith.constant 0 : index
    %c0_18 = arith.constant 0 : index
    %c0_19 = arith.constant 0 : index
    %37 = vector.load %arg6[%c0_17, %c0_18, %c0_19] : memref<1x1x32xf32, #tpu.memory_space<vmem>>, vector<1x1x32xf32>
    %38 = vector.shape_cast %37 : vector<1x1x32xf32> to vector<1x32xf32>
    %39 = vector.broadcast %38 : vector<1x32xf32> to vector<16x32xf32>
    %40 = arith.addf %36, %39 : vector<16x32xf32>
    %41 = vector.shape_cast %40 : vector<16x32xf32> to vector<2x8x32xf32>
    %c0_20 = arith.constant 0 : index
    %c0_21 = arith.constant 0 : index
    %c0_22 = arith.constant 0 : index
    %42 = vector.load %arg7[%c0_20, %c0_21, %c0_22] : memref<1x32x32xbf16, #tpu.memory_space<vmem>>, vector<1x32x32xbf16>
    %43 = vector.shape_cast %42 : vector<1x32x32xbf16> to vector<32x32xbf16>
    %cst_23 = arith.constant dense<0.000000e+00> : vector<16x32xf32>
    %44 = tpu.matmul %33, %43, %cst_23 {dimension_numbers = #tpu.dot_dimension_numbers<[1], [0], [0], [1], [0, 0, 1, 1], [], []>} : vector<16x32xbf16>, vector<32x32xbf16>, vector<16x32xf32> -> vector<16x32xf32>
    %c0_24 = arith.constant 0 : index
    %c0_25 = arith.constant 0 : index
    %c0_26 = arith.constant 0 : index
    %45 = vector.load %arg8[%c0_24, %c0_25, %c0_26] : memref<1x1x32xf32, #tpu.memory_space<vmem>>, vector<1x1x32xf32>
    %46 = vector.shape_cast %45 : vector<1x1x32xf32> to vector<1x32xf32>
    %47 = vector.broadcast %46 : vector<1x32xf32> to vector<16x32xf32>
    %48 = arith.addf %44, %47 : vector<16x32xf32>
    %49 = vector.shape_cast %48 : vector<16x32xf32> to vector<2x8x32xf32>
    %c0_27 = arith.constant 0 : index
    %c0_28 = arith.constant 0 : index
    %c0_29 = arith.constant 0 : index
    %50 = vector.load %arg9[%c0_27, %c0_28, %c0_29] : memref<1x1x32xf32, #tpu.memory_space<vmem>>, vector<1x1x32xf32>
    %51 = arith.negf %50 : vector<1x1x32xf32>
    %52 = math.exp %51 : vector<1x1x32xf32>
    %cst_30 = arith.constant 1.000000e+00 : f32
    %53 = vector.broadcast %cst_30 : f32 to vector<1x1x32xf32>
    %54 = arith.addf %53, %52 : vector<1x1x32xf32>
    %55 = arith.divf %53, %54 : vector<1x1x32xf32>
    %56 = vector.shape_cast %55 : vector<1x1x32xf32> to vector<1x1x32xf32>
    %57 = vector.broadcast %56 : vector<1x1x32xf32> to vector<2x8x32xf32>
    %cst_31 = arith.constant 1.000000e+00 : f32
    %58 = vector.broadcast %cst_31 : f32 to vector<1x1x32xf32>
    %59 = arith.subf %58, %55 : vector<1x1x32xf32>
    %60 = vector.broadcast %59 : vector<1x1x32xf32> to vector<2x8x32xf32>
    %61 = arith.mulf %60, %41 : vector<2x8x32xf32>
    %cst_32 = arith.constant 1.000000e+00 : f32
    %62 = vector.broadcast %cst_32 : f32 to vector<2x1x32xf32>
    %cst_33 = arith.constant 0.000000e+00 : f32
    %63 = vector.broadcast %cst_33 : f32 to vector<2x1x32xf32>
    %64 = vector.extract_strided_slice %57 {offsets = [0, 0, 0], sizes = [2, 7, 32], strides = [1, 1, 1]} : vector<2x8x32xf32> to vector<2x7x32xf32>
    %65 = tpu.concatenate %62, %64 in 1 : vector<2x1x32xf32>, vector<2x7x32xf32> -> vector<2x8x32xf32>
    %66 = vector.extract_strided_slice %61 {offsets = [0, 0, 0], sizes = [2, 7, 32], strides = [1, 1, 1]} : vector<2x8x32xf32> to vector<2x7x32xf32>
    %67 = tpu.concatenate %63, %66 in 1 : vector<2x1x32xf32>, vector<2x7x32xf32> -> vector<2x8x32xf32>
    %68 = arith.mulf %57, %67 : vector<2x8x32xf32>
    %69 = arith.addf %61, %68 : vector<2x8x32xf32>
    %70 = arith.mulf %57, %65 : vector<2x8x32xf32>
    %cst_34 = arith.constant 1.000000e+00 : f32
    %71 = vector.broadcast %cst_34 : f32 to vector<2x2x32xf32>
    %cst_35 = arith.constant 0.000000e+00 : f32
    %72 = vector.broadcast %cst_35 : f32 to vector<2x2x32xf32>
    %73 = vector.extract_strided_slice %70 {offsets = [0, 0, 0], sizes = [2, 6, 32], strides = [1, 1, 1]} : vector<2x8x32xf32> to vector<2x6x32xf32>
    %74 = tpu.concatenate %71, %73 in 1 : vector<2x2x32xf32>, vector<2x6x32xf32> -> vector<2x8x32xf32>
    %75 = vector.extract_strided_slice %69 {offsets = [0, 0, 0], sizes = [2, 6, 32], strides = [1, 1, 1]} : vector<2x8x32xf32> to vector<2x6x32xf32>
    %76 = tpu.concatenate %72, %75 in 1 : vector<2x2x32xf32>, vector<2x6x32xf32> -> vector<2x8x32xf32>
    %77 = arith.mulf %70, %76 : vector<2x8x32xf32>
    %78 = arith.addf %69, %77 : vector<2x8x32xf32>
    %79 = arith.mulf %70, %74 : vector<2x8x32xf32>
    %cst_36 = arith.constant 0.000000e+00 : f32
    %80 = vector.broadcast %cst_36 : f32 to vector<2x4x32xf32>
    %81 = vector.extract_strided_slice %78 {offsets = [0, 0, 0], sizes = [2, 4, 32], strides = [1, 1, 1]} : vector<2x8x32xf32> to vector<2x4x32xf32>
    %82 = tpu.concatenate %80, %81 in 1 : vector<2x4x32xf32>, vector<2x4x32xf32> -> vector<2x8x32xf32>
    %83 = arith.mulf %79, %82 : vector<2x8x32xf32>
    %84 = arith.addf %78, %83 : vector<2x8x32xf32>
    %85 = arith.negf %49 : vector<2x8x32xf32>
    %86 = math.exp %85 : vector<2x8x32xf32>
    %cst_37 = arith.constant 1.000000e+00 : f32
    %87 = vector.broadcast %cst_37 : f32 to vector<2x8x32xf32>
    %88 = arith.addf %87, %86 : vector<2x8x32xf32>
    %89 = arith.divf %87, %88 : vector<2x8x32xf32>
    %90 = arith.mulf %49, %89 : vector<2x8x32xf32>
    %91 = arith.mulf %84, %90 : vector<2x8x32xf32>
    %92 = vector.shape_cast %91 : vector<2x8x32xf32> to vector<16x32xf32>
    %93 = arith.truncf %92 : vector<16x32xf32> to vector<16x32xbf16>
    %c0_38 = arith.constant 0 : index
    %c0_39 = arith.constant 0 : index
    %c0_40 = arith.constant 0 : index
    %94 = vector.load %arg10[%c0_38, %c0_39, %c0_40] : memref<1x32x32xbf16, #tpu.memory_space<vmem>>, vector<1x32x32xbf16>
    %95 = vector.shape_cast %94 : vector<1x32x32xbf16> to vector<32x32xbf16>
    %cst_41 = arith.constant dense<0.000000e+00> : vector<16x32xf32>
    %96 = tpu.matmul %93, %95, %cst_41 {dimension_numbers = #tpu.dot_dimension_numbers<[1], [0], [0], [1], [0, 0, 1, 1], [], []>} : vector<16x32xbf16>, vector<32x32xbf16>, vector<16x32xf32> -> vector<16x32xf32>
    %c0_42 = arith.constant 0 : index
    %c0_43 = arith.constant 0 : index
    %c0_44 = arith.constant 0 : index
    %97 = vector.load %arg11[%c0_42, %c0_43, %c0_44] : memref<1x1x32xf32, #tpu.memory_space<vmem>>, vector<1x1x32xf32>
    %98 = vector.shape_cast %97 : vector<1x1x32xf32> to vector<1x32xf32>
    %99 = vector.broadcast %98 : vector<1x32xf32> to vector<16x32xf32>
    %100 = arith.addf %96, %99 : vector<16x32xf32>
    %101 = vector.shape_cast %100 : vector<16x32xf32> to vector<2x8x32xf32>
    %102 = arith.addf %3, %101 : vector<2x8x32xf32>
    %c0_45 = arith.constant 0 : index
    %c0_46 = arith.constant 0 : index
    %c0_47 = arith.constant 0 : index
    %103 = vector.load %arg12[%c0_45, %c0_46, %c0_47] : memref<2x8x32xf32, #tpu.memory_space<vmem>>, vector<2x8x32xf32>
    tpu.vector_store %arg12[%c0_45, %c0_46, %c0_47], %102 {strides = array<i32>} : memref<2x8x32xf32, #tpu.memory_space<vmem>>, vector<2x8x32xf32>,
    return
  }
  func.func @transform_0(%arg0: i32, %arg1: i32) -> (i32, i32, i32) {
    %c0_i32 = arith.constant 0 : i32
    %c0_i32_0 = arith.constant 0 : i32
    %c0_i32_1 = arith.constant 0 : i32
    return %arg0, %c0_i32, %c0_i32_0 : i32, i32, i32
  }
  func.func @transform_1(%arg0: i32, %arg1: i32) -> (i32, i32, i32) {
    %c0_i32 = arith.constant 0 : i32
    %c0_i32_0 = arith.constant 0 : i32
    %c0_i32_1 = arith.constant 0 : i32
    return %arg1, %c0_i32, %c0_i32_0 : i32, i32, i32
  }
  func.func @transform_2(%arg0: i32, %arg1: i32) -> (i32, i32, i32) {
    %c0_i32 = arith.constant 0 : i32
    %c0_i32_0 = arith.constant 0 : i32
    %c0_i32_1 = arith.constant 0 : i32
    return %arg1, %c0_i32, %c0_i32_0 : i32, i32, i32
  }
  func.func @transform_3(%arg0: i32, %arg1: i32) -> (i32, i32, i32) {
    %c0_i32 = arith.constant 0 : i32
    %c0_i32_0 = arith.constant 0 : i32
    %c0_i32_1 = arith.constant 0 : i32
    return %arg1, %c0_i32, %c0_i32_0 : i32, i32, i32
  }
  func.func @transform_4(%arg0: i32, %arg1: i32) -> (i32, i32, i32) {
    %c0_i32 = arith.constant 0 : i32
    %c0_i32_0 = arith.constant 0 : i32
    %c0_i32_1 = arith.constant 0 : i32
    return %arg1, %c0_i32, %c0_i32_0 : i32, i32, i32
  }
  func.func @transform_5(%arg0: i32, %arg1: i32) -> (i32, i32, i32) {
    %c0_i32 = arith.constant 0 : i32
    %c0_i32_0 = arith.constant 0 : i32
    %c0_i32_1 = arith.constant 0 : i32
    return %arg1, %c0_i32, %c0_i32_0 : i32, i32, i32
  }
  func.func @transform_6(%arg0: i32, %arg1: i32) -> (i32, i32, i32) {
    %c0_i32 = arith.constant 0 : i32
    %c0_i32_0 = arith.constant 0 : i32
    %c0_i32_1 = arith.constant 0 : i32
    return %arg1, %c0_i32, %c0_i32_0 : i32, i32, i32
  }
  func.func @transform_7(%arg0: i32, %arg1: i32) -> (i32, i32, i32) {
    %c0_i32 = arith.constant 0 : i32
    %c0_i32_0 = arith.constant 0 : i32
    %c0_i32_1 = arith.constant 0 : i32
    return %arg1, %c0_i32, %c0_i32_0 : i32, i32, i32
  }
  func.func @transform_8(%arg0: i32, %arg1: i32) -> (i32, i32, i32) {
    %c0_i32 = arith.constant 0 : i32
    %c0_i32_0 = arith.constant 0 : i32
    %c0_i32_1 = arith.constant 0 : i32
    return %arg1, %c0_i32, %c0_i32_0 : i32, i32, i32
  }
  func.func @transform_9(%arg0: i32, %arg1: i32) -> (i32, i32, i32) {
    %c0_i32 = arith.constant 0 : i32
    %c0_i32_0 = arith.constant 0 : i32
    %c0_i32_1 = arith.constant 0 : i32
    return %arg1, %c0_i32, %c0_i32_0 : i32, i32, i32
  }
  func.func @transform_10(%arg0: i32, %arg1: i32) -> (i32, i32, i32) {
    %c0_i32 = arith.constant 0 : i32
    %c0_i32_0 = arith.constant 0 : i32
    %c0_i32_1 = arith.constant 0 : i32
    return %arg0, %c0_i32, %c0_i32_0 : i32, i32, i32
  }
}

module attributes {stable_mosaic.version = 11 : i64} {
  func.func @_fusion_head_kernel(%arg0: i32, %arg1: memref<2x8x32xf32, #tpu.memory_space<vmem>>, %arg2: memref<2x8x32xf32, #tpu.memory_space<vmem>>, %arg3: memref<32x32xbf16, #tpu.memory_space<vmem>>, %arg4: memref<1x32xf32, #tpu.memory_space<vmem>>, %arg5: memref<32x32xbf16, #tpu.memory_space<vmem>>, %arg6: memref<1x32xf32, #tpu.memory_space<vmem>>, %arg7: memref<32x32xbf16, #tpu.memory_space<vmem>>, %arg8: memref<1x32xf32, #tpu.memory_space<vmem>>, %arg9: memref<32x32xbf16, #tpu.memory_space<vmem>>, %arg10: memref<1x32xf32, #tpu.memory_space<vmem>>, %arg11: memref<32x32xbf16, #tpu.memory_space<vmem>>, %arg12: memref<1x32xf32, #tpu.memory_space<vmem>>, %arg13: memref<32x32xbf16, #tpu.memory_space<vmem>>, %arg14: memref<1x32xf32, #tpu.memory_space<vmem>>, %arg15: memref<32x32xbf16, #tpu.memory_space<vmem>>, %arg16: memref<1x32xf32, #tpu.memory_space<vmem>>, %arg17: memref<32x32xbf16, #tpu.memory_space<vmem>>, %arg18: memref<1x32xf32, #tpu.memory_space<vmem>>, %arg19: memref<32x32xbf16, #tpu.memory_space<vmem>>, %arg20: memref<32x32xbf16, #tpu.memory_space<vmem>>, %arg21: memref<1x32xf32, #tpu.memory_space<vmem>>, %arg22: memref<1x32xf32, #tpu.memory_space<vmem>>, %arg23: memref<1x32xf32, #tpu.memory_space<vmem>>, %arg24: memref<32x16xbf16, #tpu.memory_space<vmem>>, %arg25: memref<1x16xf32, #tpu.memory_space<vmem>>, %arg26: memref<16x128xbf16, #tpu.memory_space<vmem>>, %arg27: memref<1x128xf32, #tpu.memory_space<vmem>>, %arg28: memref<2x8x128xf32, #tpu.memory_space<vmem>>) attributes {dimension_semantics = [#tpu.dimension_semantics<parallel>], iteration_bounds = array<i64: 1>, scalar_prefetch = 0 : i64, scratch_operands = 0 : i64, tpu.core_type = #tpu.core_type<tc>, window_params = [{transform_indices = @transform_0, window_bounds = array<i64: 2, 8, 32>}, {transform_indices = @transform_1, window_bounds = array<i64: 2, 8, 32>}, {pipeline_mode = #tpu.pipeline_mode<synchronous>, transform_indices = @transform_2, window_bounds = array<i64: 32, 32>}, {pipeline_mode = #tpu.pipeline_mode<synchronous>, transform_indices = @transform_3, window_bounds = array<i64: 1, 32>}, {pipeline_mode = #tpu.pipeline_mode<synchronous>, transform_indices = @transform_4, window_bounds = array<i64: 32, 32>}, {pipeline_mode = #tpu.pipeline_mode<synchronous>, transform_indices = @transform_5, window_bounds = array<i64: 1, 32>}, {pipeline_mode = #tpu.pipeline_mode<synchronous>, transform_indices = @transform_6, window_bounds = array<i64: 32, 32>}, {pipeline_mode = #tpu.pipeline_mode<synchronous>, transform_indices = @transform_7, window_bounds = array<i64: 1, 32>}, {pipeline_mode = #tpu.pipeline_mode<synchronous>, transform_indices = @transform_8, window_bounds = array<i64: 32, 32>}, {pipeline_mode = #tpu.pipeline_mode<synchronous>, transform_indices = @transform_9, window_bounds = array<i64: 1, 32>}, {pipeline_mode = #tpu.pipeline_mode<synchronous>, transform_indices = @transform_10, window_bounds = array<i64: 32, 32>}, {pipeline_mode = #tpu.pipeline_mode<synchronous>, transform_indices = @transform_11, window_bounds = array<i64: 1, 32>}, {pipeline_mode = #tpu.pipeline_mode<synchronous>, transform_indices = @transform_12, window_bounds = array<i64: 32, 32>}, {pipeline_mode = #tpu.pipeline_mode<synchronous>, transform_indices = @transform_13, window_bounds = array<i64: 1, 32>}, {pipeline_mode = #tpu.pipeline_mode<synchronous>, transform_indices = @transform_14, window_bounds = array<i64: 32, 32>}, {pipeline_mode = #tpu.pipeline_mode<synchronous>, transform_indices = @transform_15, window_bounds = array<i64: 1, 32>}, {pipeline_mode = #tpu.pipeline_mode<synchronous>, transform_indices = @transform_16, window_bounds = array<i64: 32, 32>}, {pipeline_mode = #tpu.pipeline_mode<synchronous>, transform_indices = @transform_17, window_bounds = array<i64: 1, 32>}, {pipeline_mode = #tpu.pipeline_mode<synchronous>, transform_indices = @transform_18, window_bounds = array<i64: 32, 32>}, {pipeline_mode = #tpu.pipeline_mode<synchronous>, transform_indices = @transform_19, window_bounds = array<i64: 32, 32>}, {pipeline_mode = #tpu.pipeline_mode<synchronous>, transform_indices = @transform_20, window_bounds = array<i64: 1, 32>}, {pipeline_mode = #tpu.pipeline_mode<synchronous>, transform_indices = @transform_21, window_bounds = array<i64: 1, 32>}, {pipeline_mode = #tpu.pipeline_mode<synchronous>, transform_indices = @transform_22, window_bounds = array<i64: 1, 32>}, {pipeline_mode = #tpu.pipeline_mode<synchronous>, transform_indices = @transform_23, window_bounds = array<i64: 32, 16>}, {pipeline_mode = #tpu.pipeline_mode<synchronous>, transform_indices = @transform_24, window_bounds = array<i64: 1, 16>}, {pipeline_mode = #tpu.pipeline_mode<synchronous>, transform_indices = @transform_25, window_bounds = array<i64: 16, 128>}, {pipeline_mode = #tpu.pipeline_mode<synchronous>, transform_indices = @transform_26, window_bounds = array<i64: 1, 128>}, {transform_indices = @transform_27, window_bounds = array<i64: 2, 8, 128>}]} {
    %c0 = arith.constant 0 : index
    %c0_0 = arith.constant 0 : index
    %c0_1 = arith.constant 0 : index
    %0 = vector.load %arg1[%c0, %c0_0, %c0_1] : memref<2x8x32xf32, #tpu.memory_space<vmem>>, vector<2x8x32xf32>
    %c0_2 = arith.constant 0 : index
    %c0_3 = arith.constant 0 : index
    %c0_4 = arith.constant 0 : index
    %1 = vector.load %arg2[%c0_2, %c0_3, %c0_4] : memref<2x8x32xf32, #tpu.memory_space<vmem>>, vector<2x8x32xf32>
    %2 = vector.shape_cast %0 : vector<2x8x32xf32> to vector<16x32xf32>
    %3 = arith.truncf %2 : vector<16x32xf32> to vector<16x32xbf16>
    %4 = vector.shape_cast %1 : vector<2x8x32xf32> to vector<16x32xf32>
    %5 = arith.truncf %4 : vector<16x32xf32> to vector<16x32xbf16>
    %c0_5 = arith.constant 0 : index
    %c0_6 = arith.constant 0 : index
    %6 = vector.load %arg3[%c0_5, %c0_6] : memref<32x32xbf16, #tpu.memory_space<vmem>>, vector<32x32xbf16>
    %cst = arith.constant dense<0.000000e+00> : vector<16x32xf32>
    %7 = tpu.matmul %3, %6, %cst {dimension_numbers = #tpu.dot_dimension_numbers<[1], [0], [0], [1], [0, 0, 1, 1], [], []>} : vector<16x32xbf16>, vector<32x32xbf16>, vector<16x32xf32> -> vector<16x32xf32>
    %c0_7 = arith.constant 0 : index
    %c0_8 = arith.constant 0 : index
    %8 = vector.load %arg4[%c0_7, %c0_8] : memref<1x32xf32, #tpu.memory_space<vmem>>, vector<1x32xf32>
    %9 = vector.broadcast %8 : vector<1x32xf32> to vector<16x32xf32>
    %10 = arith.addf %7, %9 : vector<16x32xf32>
    %11 = vector.shape_cast %10 : vector<16x32xf32> to vector<2x8x32xf32>
    %c0_9 = arith.constant 0 : index
    %c0_10 = arith.constant 0 : index
    %12 = vector.load %arg5[%c0_9, %c0_10] : memref<32x32xbf16, #tpu.memory_space<vmem>>, vector<32x32xbf16>
    %cst_11 = arith.constant dense<0.000000e+00> : vector<16x32xf32>
    %13 = tpu.matmul %5, %12, %cst_11 {dimension_numbers = #tpu.dot_dimension_numbers<[1], [0], [0], [1], [0, 0, 1, 1], [], []>} : vector<16x32xbf16>, vector<32x32xbf16>, vector<16x32xf32> -> vector<16x32xf32>
    %c0_12 = arith.constant 0 : index
    %c0_13 = arith.constant 0 : index
    %14 = vector.load %arg6[%c0_12, %c0_13] : memref<1x32xf32, #tpu.memory_space<vmem>>, vector<1x32xf32>
    %15 = vector.broadcast %14 : vector<1x32xf32> to vector<16x32xf32>
    %16 = arith.addf %13, %15 : vector<16x32xf32>
    %17 = vector.shape_cast %16 : vector<16x32xf32> to vector<2x8x32xf32>
    %c0_14 = arith.constant 0 : index
    %c0_15 = arith.constant 0 : index
    %18 = vector.load %arg7[%c0_14, %c0_15] : memref<32x32xbf16, #tpu.memory_space<vmem>>, vector<32x32xbf16>
    %cst_16 = arith.constant dense<0.000000e+00> : vector<16x32xf32>
    %19 = tpu.matmul %5, %18, %cst_16 {dimension_numbers = #tpu.dot_dimension_numbers<[1], [0], [0], [1], [0, 0, 1, 1], [], []>} : vector<16x32xbf16>, vector<32x32xbf16>, vector<16x32xf32> -> vector<16x32xf32>
    %c0_17 = arith.constant 0 : index
    %c0_18 = arith.constant 0 : index
    %20 = vector.load %arg8[%c0_17, %c0_18] : memref<1x32xf32, #tpu.memory_space<vmem>>, vector<1x32xf32>
    %21 = vector.broadcast %20 : vector<1x32xf32> to vector<16x32xf32>
    %22 = arith.addf %19, %21 : vector<16x32xf32>
    %23 = vector.shape_cast %22 : vector<16x32xf32> to vector<2x8x32xf32>
    %24 = arith.truncf %11 : vector<2x8x32xf32> to vector<2x8x32xbf16>
    %25 = arith.truncf %17 : vector<2x8x32xf32> to vector<2x8x32xbf16>
    "tpu.trace_start"() <{level = 10 : i32, message = "bqd,bkd->bqk"}> : () -> ()
    %cst_19 = arith.constant dense<0.000000e+00> : vector<2x8x8xf32>
    %26 = tpu.matmul %24, %25, %cst_19 {dimension_numbers = #tpu.dot_dimension_numbers<[2], [2], [1], [1], [0, 0, 0, 1, 1, 1], [0], [0]>} : vector<2x8x32xbf16>, vector<2x8x32xbf16>, vector<2x8x8xf32> -> vector<2x8x8xf32>
    "tpu.trace_stop"() : () -> ()
    %cst_20 = arith.constant dense<0xFF800000> : vector<2x8xf32>
    %27 = vector.multi_reduction <maximumf>, %26, %cst_20 [2] : vector<2x8x8xf32> to vector<2x8xf32>
    %28 = vector.shape_cast %27 : vector<2x8xf32> to vector<2x8x1xf32>
    %29 = vector.broadcast %28 : vector<2x8x1xf32> to vector<2x8x8xf32>
    %30 = arith.subf %26, %29 : vector<2x8x8xf32>
    %31 = math.exp %30 : vector<2x8x8xf32>
    %cst_21 = arith.constant dense<0.000000e+00> : vector<2x8xf32>
    %32 = vector.multi_reduction <add>, %31, %cst_21 [2] : vector<2x8x8xf32> to vector<2x8xf32>
    %33 = vector.shape_cast %32 : vector<2x8xf32> to vector<2x8x1xf32>
    %34 = tpu.reciprocal %33 {approx = true} : vector<2x8x1xf32> -> vector<2x8x1xf32>
    %35 = vector.broadcast %34 : vector<2x8x1xf32> to vector<2x8x8xf32>
    %36 = arith.mulf %31, %35 : vector<2x8x8xf32>
    %37 = arith.truncf %36 : vector<2x8x8xf32> to vector<2x8x8xbf16>
    %38 = arith.truncf %23 : vector<2x8x32xf32> to vector<2x8x32xbf16>
    "tpu.trace_start"() <{level = 10 : i32, message = "bqk,bkd->bqd"}> : () -> ()
    %cst_22 = arith.constant dense<0.000000e+00> : vector<2x8x32xf32>
    %39 = tpu.matmul %37, %38, %cst_22 {dimension_numbers = #tpu.dot_dimension_numbers<[2], [1], [1], [2], [0, 0, 0, 1, 1, 2], [0], [0]>} : vector<2x8x8xbf16>, vector<2x8x32xbf16>, vector<2x8x32xf32> -> vector<2x8x32xf32>
    "tpu.trace_stop"() : () -> ()
    %40 = vector.shape_cast %39 : vector<2x8x32xf32> to vector<16x32xf32>
    %41 = arith.truncf %40 : vector<16x32xf32> to vector<16x32xbf16>
    %c0_23 = arith.constant 0 : index
    %c0_24 = arith.constant 0 : index
    %42 = vector.load %arg9[%c0_23, %c0_24] : memref<32x32xbf16, #tpu.memory_space<vmem>>, vector<32x32xbf16>
    %cst_25 = arith.constant dense<0.000000e+00> : vector<16x32xf32>
    %43 = tpu.matmul %41, %42, %cst_25 {dimension_numbers = #tpu.dot_dimension_numbers<[1], [0], [0], [1], [0, 0, 1, 1], [], []>} : vector<16x32xbf16>, vector<32x32xbf16>, vector<16x32xf32> -> vector<16x32xf32>
    %c0_26 = arith.constant 0 : index
    %c0_27 = arith.constant 0 : index
    %44 = vector.load %arg10[%c0_26, %c0_27] : memref<1x32xf32, #tpu.memory_space<vmem>>, vector<1x32xf32>
    %45 = vector.broadcast %44 : vector<1x32xf32> to vector<16x32xf32>
    %46 = arith.addf %43, %45 : vector<16x32xf32>
    %47 = vector.shape_cast %1 : vector<2x8x32xf32> to vector<16x32xf32>
    %48 = arith.truncf %47 : vector<16x32xf32> to vector<16x32xbf16>
    %49 = vector.shape_cast %0 : vector<2x8x32xf32> to vector<16x32xf32>
    %50 = arith.truncf %49 : vector<16x32xf32> to vector<16x32xbf16>
    %c0_28 = arith.constant 0 : index
    %c0_29 = arith.constant 0 : index
    %51 = vector.load %arg11[%c0_28, %c0_29] : memref<32x32xbf16, #tpu.memory_space<vmem>>, vector<32x32xbf16>
    %cst_30 = arith.constant dense<0.000000e+00> : vector<16x32xf32>
    %52 = tpu.matmul %48, %51, %cst_30 {dimension_numbers = #tpu.dot_dimension_numbers<[1], [0], [0], [1], [0, 0, 1, 1], [], []>} : vector<16x32xbf16>, vector<32x32xbf16>, vector<16x32xf32> -> vector<16x32xf32>
    %c0_31 = arith.constant 0 : index
    %c0_32 = arith.constant 0 : index
    %53 = vector.load %arg12[%c0_31, %c0_32] : memref<1x32xf32, #tpu.memory_space<vmem>>, vector<1x32xf32>
    %54 = vector.broadcast %53 : vector<1x32xf32> to vector<16x32xf32>
    %55 = arith.addf %52, %54 : vector<16x32xf32>
    %56 = vector.shape_cast %55 : vector<16x32xf32> to vector<2x8x32xf32>
    %c0_33 = arith.constant 0 : index
    %c0_34 = arith.constant 0 : index
    %57 = vector.load %arg13[%c0_33, %c0_34] : memref<32x32xbf16, #tpu.memory_space<vmem>>, vector<32x32xbf16>
    %cst_35 = arith.constant dense<0.000000e+00> : vector<16x32xf32>
    %58 = tpu.matmul %50, %57, %cst_35 {dimension_numbers = #tpu.dot_dimension_numbers<[1], [0], [0], [1], [0, 0, 1, 1], [], []>} : vector<16x32xbf16>, vector<32x32xbf16>, vector<16x32xf32> -> vector<16x32xf32>
    %c0_36 = arith.constant 0 : index
    %c0_37 = arith.constant 0 : index
    %59 = vector.load %arg14[%c0_36, %c0_37] : memref<1x32xf32, #tpu.memory_space<vmem>>, vector<1x32xf32>
    %60 = vector.broadcast %59 : vector<1x32xf32> to vector<16x32xf32>
    %61 = arith.addf %58, %60 : vector<16x32xf32>
    %62 = vector.shape_cast %61 : vector<16x32xf32> to vector<2x8x32xf32>
    %c0_38 = arith.constant 0 : index
    %c0_39 = arith.constant 0 : index
    %63 = vector.load %arg15[%c0_38, %c0_39] : memref<32x32xbf16, #tpu.memory_space<vmem>>, vector<32x32xbf16>
    %cst_40 = arith.constant dense<0.000000e+00> : vector<16x32xf32>
    %64 = tpu.matmul %50, %63, %cst_40 {dimension_numbers = #tpu.dot_dimension_numbers<[1], [0], [0], [1], [0, 0, 1, 1], [], []>} : vector<16x32xbf16>, vector<32x32xbf16>, vector<16x32xf32> -> vector<16x32xf32>
    %c0_41 = arith.constant 0 : index
    %c0_42 = arith.constant 0 : index
    %65 = vector.load %arg16[%c0_41, %c0_42] : memref<1x32xf32, #tpu.memory_space<vmem>>, vector<1x32xf32>
    %66 = vector.broadcast %65 : vector<1x32xf32> to vector<16x32xf32>
    %67 = arith.addf %64, %66 : vector<16x32xf32>
    %68 = vector.shape_cast %67 : vector<16x32xf32> to vector<2x8x32xf32>
    %69 = arith.truncf %56 : vector<2x8x32xf32> to vector<2x8x32xbf16>
    %70 = arith.truncf %62 : vector<2x8x32xf32> to vector<2x8x32xbf16>
    "tpu.trace_start"() <{level = 10 : i32, message = "bqd,bkd->bqk"}> : () -> ()
    %cst_43 = arith.constant dense<0.000000e+00> : vector<2x8x8xf32>
    %71 = tpu.matmul %69, %70, %cst_43 {dimension_numbers = #tpu.dot_dimension_numbers<[2], [2], [1], [1], [0, 0, 0, 1, 1, 1], [0], [0]>} : vector<2x8x32xbf16>, vector<2x8x32xbf16>, vector<2x8x8xf32> -> vector<2x8x8xf32>
    "tpu.trace_stop"() : () -> ()
    %cst_44 = arith.constant dense<0xFF800000> : vector<2x8xf32>
    %72 = vector.multi_reduction <maximumf>, %71, %cst_44 [2] : vector<2x8x8xf32> to vector<2x8xf32>
    %73 = vector.shape_cast %72 : vector<2x8xf32> to vector<2x8x1xf32>
    %74 = vector.broadcast %73 : vector<2x8x1xf32> to vector<2x8x8xf32>
    %75 = arith.subf %71, %74 : vector<2x8x8xf32>
    %76 = math.exp %75 : vector<2x8x8xf32>
    %cst_45 = arith.constant dense<0.000000e+00> : vector<2x8xf32>
    %77 = vector.multi_reduction <add>, %76, %cst_45 [2] : vector<2x8x8xf32> to vector<2x8xf32>
    %78 = vector.shape_cast %77 : vector<2x8xf32> to vector<2x8x1xf32>
    %79 = tpu.reciprocal %78 {approx = true} : vector<2x8x1xf32> -> vector<2x8x1xf32>
    %80 = vector.broadcast %79 : vector<2x8x1xf32> to vector<2x8x8xf32>
    %81 = arith.mulf %76, %80 : vector<2x8x8xf32>
    %82 = arith.truncf %81 : vector<2x8x8xf32> to vector<2x8x8xbf16>
    %83 = arith.truncf %68 : vector<2x8x32xf32> to vector<2x8x32xbf16>
    "tpu.trace_start"() <{level = 10 : i32, message = "bqk,bkd->bqd"}> : () -> ()
    %cst_46 = arith.constant dense<0.000000e+00> : vector<2x8x32xf32>
    %84 = tpu.matmul %82, %83, %cst_46 {dimension_numbers = #tpu.dot_dimension_numbers<[2], [1], [1], [2], [0, 0, 0, 1, 1, 2], [0], [0]>} : vector<2x8x8xbf16>, vector<2x8x32xbf16>, vector<2x8x32xf32> -> vector<2x8x32xf32>
    "tpu.trace_stop"() : () -> ()
    %85 = vector.shape_cast %84 : vector<2x8x32xf32> to vector<16x32xf32>
    %86 = arith.truncf %85 : vector<16x32xf32> to vector<16x32xbf16>
    %c0_47 = arith.constant 0 : index
    %c0_48 = arith.constant 0 : index
    %87 = vector.load %arg17[%c0_47, %c0_48] : memref<32x32xbf16, #tpu.memory_space<vmem>>, vector<32x32xbf16>
    %cst_49 = arith.constant dense<0.000000e+00> : vector<16x32xf32>
    %88 = tpu.matmul %86, %87, %cst_49 {dimension_numbers = #tpu.dot_dimension_numbers<[1], [0], [0], [1], [0, 0, 1, 1], [], []>} : vector<16x32xbf16>, vector<32x32xbf16>, vector<16x32xf32> -> vector<16x32xf32>
    %c0_50 = arith.constant 0 : index
    %c0_51 = arith.constant 0 : index
    %89 = vector.load %arg18[%c0_50, %c0_51] : memref<1x32xf32, #tpu.memory_space<vmem>>, vector<1x32xf32>
    %90 = vector.broadcast %89 : vector<1x32xf32> to vector<16x32xf32>
    %91 = arith.addf %88, %90 : vector<16x32xf32>
    %92 = arith.truncf %46 : vector<16x32xf32> to vector<16x32xbf16>
    %c0_52 = arith.constant 0 : index
    %c0_53 = arith.constant 0 : index
    %93 = vector.load %arg19[%c0_52, %c0_53] : memref<32x32xbf16, #tpu.memory_space<vmem>>, vector<32x32xbf16>
    %cst_54 = arith.constant dense<0.000000e+00> : vector<16x32xf32>
    %94 = tpu.matmul %92, %93, %cst_54 {dimension_numbers = #tpu.dot_dimension_numbers<[1], [0], [0], [1], [0, 0, 1, 1], [], []>} : vector<16x32xbf16>, vector<32x32xbf16>, vector<16x32xf32> -> vector<16x32xf32>
    %95 = arith.truncf %91 : vector<16x32xf32> to vector<16x32xbf16>
    %c0_55 = arith.constant 0 : index
    %c0_56 = arith.constant 0 : index
    %96 = vector.load %arg20[%c0_55, %c0_56] : memref<32x32xbf16, #tpu.memory_space<vmem>>, vector<32x32xbf16>
    %cst_57 = arith.constant dense<0.000000e+00> : vector<16x32xf32>
    %97 = tpu.matmul %95, %96, %cst_57 {dimension_numbers = #tpu.dot_dimension_numbers<[1], [0], [0], [1], [0, 0, 1, 1], [], []>} : vector<16x32xbf16>, vector<32x32xbf16>, vector<16x32xf32> -> vector<16x32xf32>
    %98 = arith.addf %94, %97 : vector<16x32xf32>
    %c0_58 = arith.constant 0 : index
    %c0_59 = arith.constant 0 : index
    %99 = vector.load %arg21[%c0_58, %c0_59] : memref<1x32xf32, #tpu.memory_space<vmem>>, vector<1x32xf32>
    %100 = vector.broadcast %99 : vector<1x32xf32> to vector<16x32xf32>
    %101 = arith.addf %98, %100 : vector<16x32xf32>
    %c0_60 = arith.constant 0 : index
    %c0_61 = arith.constant 0 : index
    %102 = vector.load %arg22[%c0_60, %c0_61] : memref<1x32xf32, #tpu.memory_space<vmem>>, vector<1x32xf32>
    %c0_62 = arith.constant 0 : index
    %c0_63 = arith.constant 0 : index
    %103 = vector.load %arg23[%c0_62, %c0_63] : memref<1x32xf32, #tpu.memory_space<vmem>>, vector<1x32xf32>
    %cst_64 = arith.constant dense<0.000000e+00> : vector<16xf32>
    %104 = vector.multi_reduction <add>, %101, %cst_64 [1] : vector<16x32xf32> to vector<16xf32>
    %105 = vector.shape_cast %104 : vector<16xf32> to vector<16x1xf32>
    %cst_65 = arith.constant 3.200000e+01 : f32
    %106 = vector.broadcast %cst_65 : f32 to vector<16x1xf32>
    %107 = arith.divf %105, %106 : vector<16x1xf32>
    %108 = vector.broadcast %107 : vector<16x1xf32> to vector<16x32xf32>
    %109 = arith.subf %101, %108 : vector<16x32xf32>
    %110 = arith.mulf %109, %109 : vector<16x32xf32>
    %cst_66 = arith.constant dense<0.000000e+00> : vector<16xf32>
    %111 = vector.multi_reduction <add>, %110, %cst_66 [1] : vector<16x32xf32> to vector<16xf32>
    %112 = vector.shape_cast %111 : vector<16xf32> to vector<16x1xf32>
    %cst_67 = arith.constant 3.200000e+01 : f32
    %113 = vector.broadcast %cst_67 : f32 to vector<16x1xf32>
    %114 = arith.divf %112, %113 : vector<16x1xf32>
    %115 = vector.broadcast %107 : vector<16x1xf32> to vector<16x32xf32>
    %116 = arith.subf %101, %115 : vector<16x32xf32>
    %cst_68 = arith.constant 9.99999974E-6 : f32
    %117 = vector.broadcast %cst_68 : f32 to vector<16x1xf32>
    %118 = arith.addf %114, %117 : vector<16x1xf32>
    %119 = math.rsqrt %118 : vector<16x1xf32>
    %120 = vector.broadcast %119 : vector<16x1xf32> to vector<16x32xf32>
    %121 = arith.mulf %116, %120 : vector<16x32xf32>
    %122 = vector.broadcast %102 : vector<1x32xf32> to vector<16x32xf32>
    %123 = arith.mulf %121, %122 : vector<16x32xf32>
    %124 = vector.broadcast %103 : vector<1x32xf32> to vector<16x32xf32>
    %125 = arith.addf %123, %124 : vector<16x32xf32>
    %126 = arith.truncf %125 : vector<16x32xf32> to vector<16x32xbf16>
    %c0_69 = arith.constant 0 : index
    %c0_70 = arith.constant 0 : index
    %127 = vector.load %arg24[%c0_69, %c0_70] : memref<32x16xbf16, #tpu.memory_space<vmem>>, vector<32x16xbf16>
    %cst_71 = arith.constant dense<0.000000e+00> : vector<16x16xf32>
    %128 = tpu.matmul %126, %127, %cst_71 {dimension_numbers = #tpu.dot_dimension_numbers<[1], [0], [0], [1], [0, 0, 1, 1], [], []>} : vector<16x32xbf16>, vector<32x16xbf16>, vector<16x16xf32> -> vector<16x16xf32>
    %c0_72 = arith.constant 0 : index
    %c0_73 = arith.constant 0 : index
    %129 = vector.load %arg25[%c0_72, %c0_73] : memref<1x16xf32, #tpu.memory_space<vmem>>, vector<1x16xf32>
    %130 = vector.broadcast %129 : vector<1x16xf32> to vector<16x16xf32>
    %131 = arith.addf %128, %130 : vector<16x16xf32>
    %cst_74 = arith.constant 0.000000e+00 : f32
    %132 = vector.broadcast %cst_74 : f32 to vector<16x16xf32>
    %133 = arith.maximumf %131, %132 : vector<16x16xf32>
    %134 = arith.truncf %133 : vector<16x16xf32> to vector<16x16xbf16>
    %c0_75 = arith.constant 0 : index
    %c0_76 = arith.constant 0 : index
    %135 = vector.load %arg26[%c0_75, %c0_76] : memref<16x128xbf16, #tpu.memory_space<vmem>>, vector<16x128xbf16>
    %cst_77 = arith.constant dense<0.000000e+00> : vector<16x128xf32>
    %136 = tpu.matmul %134, %135, %cst_77 {dimension_numbers = #tpu.dot_dimension_numbers<[1], [0], [0], [1], [0, 0, 1, 1], [], []>} : vector<16x16xbf16>, vector<16x128xbf16>, vector<16x128xf32> -> vector<16x128xf32>
    %c0_78 = arith.constant 0 : index
    %c0_79 = arith.constant 0 : index
    %137 = vector.load %arg27[%c0_78, %c0_79] : memref<1x128xf32, #tpu.memory_space<vmem>>, vector<1x128xf32>
    %138 = vector.broadcast %137 : vector<1x128xf32> to vector<16x128xf32>
    %139 = arith.addf %136, %138 : vector<16x128xf32>
    %140 = vector.shape_cast %139 : vector<16x128xf32> to vector<2x8x128xf32>
    %c0_80 = arith.constant 0 : index
    %c0_81 = arith.constant 0 : index
    %c0_82 = arith.constant 0 : index
    %141 = vector.load %arg28[%c0_80, %c0_81, %c0_82] : memref<2x8x128xf32, #tpu.memory_space<vmem>>, vector<2x8x128xf32>
    tpu.vector_store %arg28[%c0_80, %c0_81, %c0_82], %140 {strides = array<i32>} : memref<2x8x128xf32, #tpu.memory_space<vmem>>, vector<2x8x128xf32>,
    return
  }
  func.func @transform_0(%arg0: i32) -> (i32, i32, i32) {
    %c0_i32 = arith.constant 0 : i32
    %c0_i32_0 = arith.constant 0 : i32
    %c0_i32_1 = arith.constant 0 : i32
    return %arg0, %c0_i32, %c0_i32_0 : i32, i32, i32
  }
  func.func @transform_1(%arg0: i32) -> (i32, i32, i32) {
    %c1_i32 = arith.constant 1 : i32
    %0 = arith.addi %arg0, %c1_i32 : i32
    %c0_i32 = arith.constant 0 : i32
    %c0_i32_0 = arith.constant 0 : i32
    %c0_i32_1 = arith.constant 0 : i32
    return %0, %c0_i32, %c0_i32_0 : i32, i32, i32
  }
  func.func @transform_2(%arg0: i32) -> (i32, i32) {
    %c0_i32 = arith.constant 0 : i32
    %c0_i32_0 = arith.constant 0 : i32
    %c0_i32_1 = arith.constant 0 : i32
    return %c0_i32, %c0_i32_0 : i32, i32
  }
  func.func @transform_3(%arg0: i32) -> (i32, i32) {
    %c0_i32 = arith.constant 0 : i32
    %c0_i32_0 = arith.constant 0 : i32
    %c0_i32_1 = arith.constant 0 : i32
    return %c0_i32, %c0_i32_0 : i32, i32
  }
  func.func @transform_4(%arg0: i32) -> (i32, i32) {
    %c0_i32 = arith.constant 0 : i32
    %c0_i32_0 = arith.constant 0 : i32
    %c0_i32_1 = arith.constant 0 : i32
    return %c0_i32, %c0_i32_0 : i32, i32
  }
  func.func @transform_5(%arg0: i32) -> (i32, i32) {
    %c0_i32 = arith.constant 0 : i32
    %c0_i32_0 = arith.constant 0 : i32
    %c0_i32_1 = arith.constant 0 : i32
    return %c0_i32, %c0_i32_0 : i32, i32
  }
  func.func @transform_6(%arg0: i32) -> (i32, i32) {
    %c0_i32 = arith.constant 0 : i32
    %c0_i32_0 = arith.constant 0 : i32
    %c0_i32_1 = arith.constant 0 : i32
    return %c0_i32, %c0_i32_0 : i32, i32
  }
  func.func @transform_7(%arg0: i32) -> (i32, i32) {
    %c0_i32 = arith.constant 0 : i32
    %c0_i32_0 = arith.constant 0 : i32
    %c0_i32_1 = arith.constant 0 : i32
    return %c0_i32, %c0_i32_0 : i32, i32
  }
  func.func @transform_8(%arg0: i32) -> (i32, i32) {
    %c0_i32 = arith.constant 0 : i32
    %c0_i32_0 = arith.constant 0 : i32
    %c0_i32_1 = arith.constant 0 : i32
    return %c0_i32, %c0_i32_0 : i32, i32
  }
  func.func @transform_9(%arg0: i32) -> (i32, i32) {
    %c0_i32 = arith.constant 0 : i32
    %c0_i32_0 = arith.constant 0 : i32
    %c0_i32_1 = arith.constant 0 : i32
    return %c0_i32, %c0_i32_0 : i32, i32
  }
  func.func @transform_10(%arg0: i32) -> (i32, i32) {
    %c0_i32 = arith.constant 0 : i32
    %c0_i32_0 = arith.constant 0 : i32
    %c0_i32_1 = arith.constant 0 : i32
    return %c0_i32, %c0_i32_0 : i32, i32
  }
  func.func @transform_11(%arg0: i32) -> (i32, i32) {
    %c0_i32 = arith.constant 0 : i32
    %c0_i32_0 = arith.constant 0 : i32
    %c0_i32_1 = arith.constant 0 : i32
    return %c0_i32, %c0_i32_0 : i32, i32
  }
  func.func @transform_12(%arg0: i32) -> (i32, i32) {
    %c0_i32 = arith.constant 0 : i32
    %c0_i32_0 = arith.constant 0 : i32
    %c0_i32_1 = arith.constant 0 : i32
    return %c0_i32, %c0_i32_0 : i32, i32
  }
  func.func @transform_13(%arg0: i32) -> (i32, i32) {
    %c0_i32 = arith.constant 0 : i32
    %c0_i32_0 = arith.constant 0 : i32
    %c0_i32_1 = arith.constant 0 : i32
    return %c0_i32, %c0_i32_0 : i32, i32
  }
  func.func @transform_14(%arg0: i32) -> (i32, i32) {
    %c0_i32 = arith.constant 0 : i32
    %c0_i32_0 = arith.constant 0 : i32
    %c0_i32_1 = arith.constant 0 : i32
    return %c0_i32, %c0_i32_0 : i32, i32
  }
  func.func @transform_15(%arg0: i32) -> (i32, i32) {
    %c0_i32 = arith.constant 0 : i32
    %c0_i32_0 = arith.constant 0 : i32
    %c0_i32_1 = arith.constant 0 : i32
    return %c0_i32, %c0_i32_0 : i32, i32
  }
  func.func @transform_16(%arg0: i32) -> (i32, i32) {
    %c0_i32 = arith.constant 0 : i32
    %c0_i32_0 = arith.constant 0 : i32
    %c0_i32_1 = arith.constant 0 : i32
    return %c0_i32, %c0_i32_0 : i32, i32
  }
  func.func @transform_17(%arg0: i32) -> (i32, i32) {
    %c0_i32 = arith.constant 0 : i32
    %c0_i32_0 = arith.constant 0 : i32
    %c0_i32_1 = arith.constant 0 : i32
    return %c0_i32, %c0_i32_0 : i32, i32
  }
  func.func @transform_18(%arg0: i32) -> (i32, i32) {
    %c0_i32 = arith.constant 0 : i32
    %c0_i32_0 = arith.constant 0 : i32
    %c0_i32_1 = arith.constant 0 : i32
    return %c0_i32, %c0_i32_0 : i32, i32
  }
  func.func @transform_19(%arg0: i32) -> (i32, i32) {
    %c0_i32 = arith.constant 0 : i32
    %c0_i32_0 = arith.constant 0 : i32
    %c0_i32_1 = arith.constant 0 : i32
    return %c0_i32, %c0_i32_0 : i32, i32
  }
  func.func @transform_20(%arg0: i32) -> (i32, i32) {
    %c0_i32 = arith.constant 0 : i32
    %c0_i32_0 = arith.constant 0 : i32
    %c0_i32_1 = arith.constant 0 : i32
    return %c0_i32, %c0_i32_0 : i32, i32
  }
  func.func @transform_21(%arg0: i32) -> (i32, i32) {
    %c0_i32 = arith.constant 0 : i32
    %c0_i32_0 = arith.constant 0 : i32
    %c0_i32_1 = arith.constant 0 : i32
    return %c0_i32, %c0_i32_0 : i32, i32
  }
  func.func @transform_22(%arg0: i32) -> (i32, i32) {
    %c0_i32 = arith.constant 0 : i32
    %c0_i32_0 = arith.constant 0 : i32
    %c0_i32_1 = arith.constant 0 : i32
    return %c0_i32, %c0_i32_0 : i32, i32
  }
  func.func @transform_23(%arg0: i32) -> (i32, i32) {
    %c0_i32 = arith.constant 0 : i32
    %c0_i32_0 = arith.constant 0 : i32
    %c0_i32_1 = arith.constant 0 : i32
    return %c0_i32, %c0_i32_0 : i32, i32
  }
  func.func @transform_24(%arg0: i32) -> (i32, i32) {
    %c0_i32 = arith.constant 0 : i32
    %c0_i32_0 = arith.constant 0 : i32
    %c0_i32_1 = arith.constant 0 : i32
    return %c0_i32, %c0_i32_0 : i32, i32
  }
  func.func @transform_25(%arg0: i32) -> (i32, i32) {
    %c0_i32 = arith.constant 0 : i32
    %c0_i32_0 = arith.constant 0 : i32
    %c0_i32_1 = arith.constant 0 : i32
    return %c0_i32, %c0_i32_0 : i32, i32
  }
  func.func @transform_26(%arg0: i32) -> (i32, i32) {
    %c0_i32 = arith.constant 0 : i32
    %c0_i32_0 = arith.constant 0 : i32
    %c0_i32_1 = arith.constant 0 : i32
    return %c0_i32, %c0_i32_0 : i32, i32
  }
  func.func @transform_27(%arg0: i32) -> (i32, i32, i32) {
    %c0_i32 = arith.constant 0 : i32
    %c0_i32_0 = arith.constant 0 : i32
    %c0_i32_1 = arith.constant 0 : i32
    return %arg0, %c0_i32, %c0_i32_0 : i32, i32, i32
  }
}

</mosaic_0001>

<bundles_post_ra>
// kernel: neg.2
= control target key start
LH: loop header
LB: loop body
LE: loop exit
PB: predicated region body
PF: predicated region fallthrough
CT: control target
= control target key end

     0   :  { %s40_s0 = inlined_call_operand.vmem [shape: f32[2,8,128], index: 0, kind: input, shape index: {}]   ;;  %s41_s1 = inlined_call_operand.vmem [shape: f32[2,8,128], index: 1, kind: output, shape index: {}]  }
   0x1   :  { %v2_v0 = vld [vmem:[%s40_s0] sm:$0xff]  ;;  %v16_v1 = vld [vmem:[%s40_s0 + $0x8] sm:$0xff] }
   0x2   :  { %v5_v2 = vxor.u32 2147483648, %v2_v0  ;;  %v12_v3 = vxor.u32 2147483648, %v16_v1 }
   0x4   :  { %7 = vst [vmem:[%s41_s1] sm:$0xff] %v5_v2  ;;  %17 = vst [vmem:[%s41_s1 + $0x8] sm:$0xff] %v12_v3 }

// kernel: sub.13
= control target key start
LH: loop header
LB: loop body
LE: loop exit
PB: predicated region body
PF: predicated region fallthrough
CT: control target
= control target key end

     0   :  { %s1738_s0 = inlined_call_operand.vmem [shape: f32[2,128,3], index: 0, kind: input, shape index: {}]   ;;  %s1739_s1 = inlined_call_operand.vmem [shape: f32[2,8,128,3], index: 1, kind: output, shape index: {}]  }
   0x1   :  { %v4_v0 = vld [vmem:[%s1738_s0] sm:$0xff]  ;;  %v594_v2 = vld [vmem:[%s1738_s0 + $0x8] sm:$0xff]  ;;  %v612_v4 = vld [vmem:[%s1738_s0 + $0x10] sm:$0xff] }
   0x2   :  { %v578_v1 = vld [vmem:[%s1738_s0 + $0x80] sm:$0xff]  ;;  %5 = vst [vmem:[%s1739_s1] sm:$0xff] %v4_v0  ;;  %580 = vst [vmem:[%s1739_s1 + $0x80] sm:$0xff] %v4_v0  ;;  %v596_v3 = vld [vmem:[%s1738_s0 + $0x88] sm:$0xff] }
   0x3   :  { %579 = vst [vmem:[%s1739_s1 + $0x400] sm:$0xff] %v578_v1  ;;  %581 = vst [vmem:[%s1739_s1 + $0x480] sm:$0xff] %v578_v1  ;;  %v614_v5 = vld [vmem:[%s1738_s0 + $0x90] sm:$0xff]  ;;  %v630_v6 = vld [vmem:[%s1738_s0 + $0x18] sm:$0xff] }
   0x4   :  { %582 = vst [vmem:[%s1739_s1 + $0x100] sm:$0xff] %v4_v0  ;;  %583 = vst [vmem:[%s1739_s1 + $0x500] sm:$0xff] %v578_v1  ;;  %v632_v7 = vld [vmem:[%s1738_s0 + $0x98] sm:$0xff]  ;;  %v648_v8 = vld [vmem:[%s1738_s0 + $0x20] sm:$0xff] }
   0x5   :  { %584 = vst [vmem:[%s1739_s1 + $0x180] sm:$0xff] %v4_v0  ;;  %585 = vst [vmem:[%s1739_s1 + $0x580] sm:$0xff] %v578_v1  ;;  %v650_v9 = vld [vmem:[%s1738_s0 + $0xa0] sm:$0xff]  ;;  %v666_v10 = vld [vmem:[%s1738_s0 + $0x28] sm:$0xff] }
   0x6   :  { %586 = vst [vmem:[%s1739_s1 + $0x200] sm:$0xff] %v4_v0  ;;  %587 = vst [vmem:[%s1739_s1 + $0x600] sm:$0xff] %v578_v1  ;;  %v668_v11 = vld [vmem:[%s1738_s0 + $0xa8] sm:$0xff]  ;;  %v684_v12 = vld [vmem:[%s1738_s0 + $0x30] sm:$0xff] }
   0x7   :  { %588 = vst [vmem:[%s1739_s1 + $0x280] sm:$0xff] %v4_v0  ;;  %589 = vst [vmem:[%s1739_s1 + $0x680] sm:$0xff] %v578_v1  ;;  %v686_v13 = vld [vmem:[%s1738_s0 + $0xb0] sm:$0xff]  ;;  %v702_v14 = vld [vmem:[%s1738_s0 + $0x38] sm:$0xff] }
   0x8   :  { %590 = vst [vmem:[%s1739_s1 + $0x300] sm:$0xff] %v4_v0  ;;  %591 = vst [vmem:[%s1739_s1 + $0x700] sm:$0xff] %v578_v1  ;;  %v704_v15 = vld [vmem:[%s1738_s0 + $0xb8] sm:$0xff]  ;;  %v720_v16 = vld [vmem:[%s1738_s0 + $0x40] sm:$0xff] }
   0x9   :  { %592 = vst [vmem:[%s1739_s1 + $0x380] sm:$0xff] %v4_v0  ;;  %593 = vst [vmem:[%s1739_s1 + $0x780] sm:$0xff] %v578_v1  ;;  %v722_v17 = vld [vmem:[%s1738_s0 + $0xc0] sm:$0xff]  ;;  %v738_v18 = vld [vmem:[%s1738_s0 + $0x48] sm:$0xff] }
   0xa   :  { %595 = vst [vmem:[%s1739_s1 + $0x8] sm:$0xff] %v594_v2  ;;  %598 = vst [vmem:[%s1739_s1 + $0x88] sm:$0xff] %v594_v2  ;;  %v740_v19 = vld [vmem:[%s1738_s0 + $0xc8] sm:$0xff]  ;;  %v756_v20 = vld [vmem:[%s1738_s0 + $0x50] sm:$0xff] }
   0xb   :  { %600 = vst [vmem:[%s1739_s1 + $0x108] sm:$0xff] %v594_v2  ;;  %602 = vst [vmem:[%s1739_s1 + $0x188] sm:$0xff] %v594_v2  ;;  %v758_v21 = vld [vmem:[%s1738_s0 + $0xd0] sm:$0xff]  ;;  %v774_v22 = vld [vmem:[%s1738_s0 + $0x58] sm:$0xff] }
   0xc   :  { %604 = vst [vmem:[%s1739_s1 + $0x208] sm:$0xff] %v594_v2  ;;  %606 = vst [vmem:[%s1739_s1 + $0x288] sm:$0xff] %v594_v2  ;;  %v776_v23 = vld [vmem:[%s1738_s0 + $0xd8] sm:$0xff]  ;;  %v792_v24 = vld [vmem:[%s1738_s0 + $0x60] sm:$0xff] }
   0xd   :  { %608 = vst [vmem:[%s1739_s1 + $0x308] sm:$0xff] %v594_v2  ;;  %610 = vst [vmem:[%s1739_s1 + $0x388] sm:$0xff] %v594_v2  ;;  %v794_v25 = vld [vmem:[%s1738_s0 + $0xe0] sm:$0xff]  ;;  %v810_v26 = vld [vmem:[%s1738_s0 + $0x68] sm:$0xff] }
   0xe   :  { %597 = vst [vmem:[%s1739_s1 + $0x408] sm:$0xff] %v596_v3  ;;  %599 = vst [vmem:[%s1739_s1 + $0x488] sm:$0xff] %v596_v3  ;;  %v812_v27 = vld [vmem:[%s1738_s0 + $0xe8] sm:$0xff]  ;;  %v828_v28 = vld [vmem:[%s1738_s0 + $0x70] sm:$0xff] }
   0xf   :  { %601 = vst [vmem:[%s1739_s1 + $0x508] sm:$0xff] %v596_v3  ;;  %603 = vst [vmem:[%s1739_s1 + $0x588] sm:$0xff] %v596_v3  ;;  %v830_v29 = vld [vmem:[%s1738_s0 + $0xf0] sm:$0xff]  ;;  %v846_v30 = vld [vmem:[%s1738_s0 + $0x78] sm:$0xff] }
  0x10   :  { %605 = vst [vmem:[%s1739_s1 + $0x608] sm:$0xff] %v596_v3  ;;  %607 = vst [vmem:[%s1739_s1 + $0x688] sm:$0xff] %v596_v3  ;;  %v848_v31 = vld [vmem:[%s1738_s0 + $0xf8] sm:$0xff] }
  0x11   :  { %609 = vst [vmem:[%s1739_s1 + $0x708] sm:$0xff] %v596_v3  ;;  %611 = vst [vmem:[%s1739_s1 + $0x788] sm:$0xff] %v596_v3 }
  0x12   :  { %613 = vst [vmem:[%s1739_s1 + $0x10] sm:$0xff] %v612_v4  ;;  %615 = vst [vmem:[%s1739_s1 + $0x410] sm:$0xff] %v614_v5 }
  0x13   :  { %616 = vst [vmem:[%s1739_s1 + $0x90] sm:$0xff] %v612_v4  ;;  %617 = vst [vmem:[%s1739_s1 + $0x490] sm:$0xff] %v614_v5 }
  0x14   :  { %618 = vst [vmem:[%s1739_s1 + $0x110] sm:$0xff] %v612_v4  ;;  %619 = vst [vmem:[%s1739_s1 + $0x510] sm:$0xff] %v614_v5 }
  0x15   :  { %620 = vst [vmem:[%s1739_s1 + $0x190] sm:$0xff] %v612_v4  ;;  %621 = vst [vmem:[%s1739_s1 + $0x590] sm:$0xff] %v614_v5 }
  0x16   :  { %622 = vst [vmem:[%s1739_s1 + $0x210] sm:$0xff] %v612_v4  ;;  %623 = vst [vmem:[%s1739_s1 + $0x610] sm:$0xff] %v614_v5 }
  0x17   :  { %624 = vst [vmem:[%s1739_s1 + $0x290] sm:$0xff] %v612_v4  ;;  %625 = vst [vmem:[%s1739_s1 + $0x690] sm:$0xff] %v614_v5 }
  0x18   :  { %626 = vst [vmem:[%s1739_s1 + $0x310] sm:$0xff] %v612_v4  ;;  %627 = vst [vmem:[%s1739_s1 + $0x710] sm:$0xff] %v614_v5 }
  0x19   :  { %628 = vst [vmem:[%s1739_s1 + $0x390] sm:$0xff] %v612_v4  ;;  %629 = vst [vmem:[%s1739_s1 + $0x790] sm:$0xff] %v614_v5 }
  0x1a   :  { %631 = vst [vmem:[%s1739_s1 + $0x18] sm:$0xff] %v630_v6  ;;  %633 = vst [vmem:[%s1739_s1 + $0x418] sm:$0xff] %v632_v7 }
  0x1b   :  { %634 = vst [vmem:[%s1739_s1 + $0x98] sm:$0xff] %v630_v6  ;;  %635 = vst [vmem:[%s1739_s1 + $0x498] sm:$0xff] %v632_v7 }
  0x1c   :  { %636 = vst [vmem:[%s1739_s1 + $0x118] sm:$0xff] %v630_v6  ;;  %637 = vst [vmem:[%s1739_s1 + $0x518] sm:$0xff] %v632_v7 }
  0x1d   :  { %638 = vst [vmem:[%s1739_s1 + $0x198] sm:$0xff] %v630_v6  ;;  %639 = vst [vmem:[%s1739_s1 + $0x598] sm:$0xff] %v632_v7 }
  0x1e   :  { %640 = vst [vmem:[%s1739_s1 + $0x218] sm:$0xff] %v630_v6  ;;  %641 = vst [vmem:[%s1739_s1 + $0x618] sm:$0xff] %v632_v7 }
  0x1f   :  { %642 = vst [vmem:[%s1739_s1 + $0x298] sm:$0xff] %v630_v6  ;;  %643 = vst [vmem:[%s1739_s1 + $0x698] sm:$0xff] %v632_v7 }
  0x20   :  { %644 = vst [vmem:[%s1739_s1 + $0x318] sm:$0xff] %v630_v6  ;;  %645 = vst [vmem:[%s1739_s1 + $0x718] sm:$0xff] %v632_v7 }
  0x21   :  { %646 = vst [vmem:[%s1739_s1 + $0x398] sm:$0xff] %v630_v6  ;;  %647 = vst [vmem:[%s1739_s1 + $0x798] sm:$0xff] %v632_v7 }
  0x22   :  { %649 = vst [vmem:[%s1739_s1 + $0x20] sm:$0xff] %v648_v8  ;;  %652 = vst [vmem:[%s1739_s1 + $0xa0] sm:$0xff] %v648_v8 }
  0x23   :  { %654 = vst [vmem:[%s1739_s1 + $0x120] sm:$0xff] %v648_v8  ;;  %656 = vst [vmem:[%s1739_s1 + $0x1a0] sm:$0xff] %v648_v8 }
  0x24   :  { %658 = vst [vmem:[%s1739_s1 + $0x220] sm:$0xff] %v648_v8  ;;  %660 = vst [vmem:[%s1739_s1 + $0x2a0] sm:$0xff] %v648_v8 }
  0x25   :  { %662 = vst [vmem:[%s1739_s1 + $0x320] sm:$0xff] %v648_v8  ;;  %664 = vst [vmem:[%s1739_s1 + $0x3a0] sm:$0xff] %v648_v8 }
  0x26   :  { %651 = vst [vmem:[%s1739_s1 + $0x420] sm:$0xff] %v650_v9  ;;  %653 = vst [vmem:[%s1739_s1 + $0x4a0] sm:$0xff] %v650_v9 }
  0x27   :  { %655 = vst [vmem:[%s1739_s1 + $0x520] sm:$0xff] %v650_v9  ;;  %657 = vst [vmem:[%s1739_s1 + $0x5a0] sm:$0xff] %v650_v9 }
  0x28   :  { %659 = vst [vmem:[%s1739_s1 + $0x620] sm:$0xff] %v650_v9  ;;  %661 = vst [vmem:[%s1739_s1 + $0x6a0] sm:$0xff] %v650_v9 }
  0x29   :  { %663 = vst [vmem:[%s1739_s1 + $0x720] sm:$0xff] %v650_v9  ;;  %665 = vst [vmem:[%s1739_s1 + $0x7a0] sm:$0xff] %v650_v9 }
  0x2a   :  { %667 = vst [vmem:[%s1739_s1 + $0x28] sm:$0xff] %v666_v10  ;;  %669 = vst [vmem:[%s1739_s1 + $0x428] sm:$0xff] %v668_v11 }
  0x2b   :  { %670 = vst [vmem:[%s1739_s1 + $0xa8] sm:$0xff] %v666_v10  ;;  %671 = vst [vmem:[%s1739_s1 + $0x4a8] sm:$0xff] %v668_v11 }
  0x2c   :  { %672 = vst [vmem:[%s1739_s1 + $0x128] sm:$0xff] %v666_v10  ;;  %673 = vst [vmem:[%s1739_s1 + $0x528] sm:$0xff] %v668_v11 }
  0x2d   :  { %674 = vst [vmem:[%s1739_s1 + $0x1a8] sm:$0xff] %v666_v10  ;;  %675 = vst [vmem:[%s1739_s1 + $0x5a8] sm:$0xff] %v668_v11 }
  0x2e   :  { %676 = vst [vmem:[%s1739_s1 + $0x228] sm:$0xff] %v666_v10  ;;  %677 = vst [vmem:[%s1739_s1 + $0x628] sm:$0xff] %v668_v11 }
  0x2f   :  { %678 = vst [vmem:[%s1739_s1 + $0x2a8] sm:$0xff] %v666_v10  ;;  %679 = vst [vmem:[%s1739_s1 + $0x6a8] sm:$0xff] %v668_v11 }
  0x30   :  { %680 = vst [vmem:[%s1739_s1 + $0x328] sm:$0xff] %v666_v10  ;;  %681 = vst [vmem:[%s1739_s1 + $0x728] sm:$0xff] %v668_v11 }
  0x31   :  { %682 = vst [vmem:[%s1739_s1 + $0x3a8] sm:$0xff] %v666_v10  ;;  %683 = vst [vmem:[%s1739_s1 + $0x7a8] sm:$0xff] %v668_v11 }
  0x32   :  { %685 = vst [vmem:[%s1739_s1 + $0x30] sm:$0xff] %v684_v12  ;;  %687 = vst [vmem:[%s1739_s1 + $0x430] sm:$0xff] %v686_v13 }
  0x33   :  { %688 = vst [vmem:[%s1739_s1 + $0xb0] sm:$0xff] %v684_v12  ;;  %689 = vst [vmem:[%s1739_s1 + $0x4b0] sm:$0xff] %v686_v13 }
  0x34   :  { %690 = vst [vmem:[%s1739_s1 + $0x130] sm:$0xff] %v684_v12  ;;  %691 = vst [vmem:[%s1739_s1 + $0x530] sm:$0xff] %v686_v13 }
  0x35   :  { %692 = vst [vmem:[%s1739_s1 + $0x1b0] sm:$0xff] %v684_v12  ;;  %693 = vst [vmem:[%s1739_s1 + $0x5b0] sm:$0xff] %v686_v13 }
  0x36   :  { %694 = vst [vmem:[%s1739_s1 + $0x230] sm:$0xff] %v684_v12  ;;  %695 = vst [vmem:[%s1739_s1 + $0x630] sm:$0xff] %v686_v13 }
  0x37   :  { %696 = vst [vmem:[%s1739_s1 + $0x2b0] sm:$0xff] %v684_v12  ;;  %697 = vst [vmem:[%s1739_s1 + $0x6b0] sm:$0xff] %v686_v13 }
  0x38   :  { %698 = vst [vmem:[%s1739_s1 + $0x330] sm:$0xff] %v684_v12  ;;  %699 = vst [vmem:[%s1739_s1 + $0x730] sm:$0xff] %v686_v13 }
  0x39   :  { %700 = vst [vmem:[%s1739_s1 + $0x3b0] sm:$0xff] %v684_v12  ;;  %701 = vst [vmem:[%s1739_s1 + $0x7b0] sm:$0xff] %v686_v13 }
  0x3a   :  { %703 = vst [vmem:[%s1739_s1 + $0x38] sm:$0xff] %v702_v14  ;;  %706 = vst [vmem:[%s1739_s1 + $0xb8] sm:$0xff] %v702_v14 }
  0x3b   :  { %708 = vst [vmem:[%s1739_s1 + $0x138] sm:$0xff] %v702_v14  ;;  %710 = vst [vmem:[%s1739_s1 + $0x1b8] sm:$0xff] %v702_v14 }
  0x3c   :  { %712 = vst [vmem:[%s1739_s1 + $0x238] sm:$0xff] %v702_v14  ;;  %714 = vst [vmem:[%s1739_s1 + $0x2b8] sm:$0xff] %v702_v14 }
  0x3d   :  { %716 = vst [vmem:[%s1739_s1 + $0x338] sm:$0xff] %v702_v14  ;;  %718 = vst [vmem:[%s1739_s1 + $0x3b8] sm:$0xff] %v702_v14 }
  0x3e   :  { %705 = vst [vmem:[%s1739_s1 + $0x438] sm:$0xff] %v704_v15  ;;  %707 = vst [vmem:[%s1739_s1 + $0x4b8] sm:$0xff] %v704_v15 }
  0x3f   :  { %709 = vst [vmem:[%s1739_s1 + $0x538] sm:$0xff] %v704_v15  ;;  %711 = vst [vmem:[%s1739_s1 + $0x5b8] sm:$0xff] %v704_v15 }
  0x40   :  { %713 = vst [vmem:[%s1739_s1 + $0x638] sm:$0xff] %v704_v15  ;;  %715 = vst [vmem:[%s1739_s1 + $0x6b8] sm:$0xff] %v704_v15 }
  0x41   :  { %717 = vst [vmem:[%s1739_s1 + $0x738] sm:$0xff] %v704_v15  ;;  %719 = vst [vmem:[%s1739_s1 + $0x7b8] sm:$0xff] %v704_v15 }
  0x42   :  { %721 = vst [vmem:[%s1739_s1 + $0x40] sm:$0xff] %v720_v16  ;;  %723 = vst [vmem:[%s1739_s1 + $0x440] sm:$0xff] %v722_v17 }
  0x43   :  { %724 = vst [vmem:[%s1739_s1 + $0xc0] sm:$0xff] %v720_v16  ;;  %725 = vst [vmem:[%s1739_s1 + $0x4c0] sm:$0xff] %v722_v17 }
  0x44   :  { %726 = vst [vmem:[%s1739_s1 + $0x140] sm:$0xff] %v720_v16  ;;  %727 = vst [vmem:[%s1739_s1 + $0x540] sm:$0xff] %v722_v17 }
  0x45   :  { %728 = vst [vmem:[%s1739_s1 + $0x1c0] sm:$0xff] %v720_v16  ;;  %729 = vst [vmem:[%s1739_s1 + $0x5c0] sm:$0xff] %v722_v17 }
  0x46   :  { %730 = vst [vmem:[%s1739_s1 + $0x240] sm:$0xff] %v720_v16  ;;  %731 = vst [vmem:[%s1739_s1 + $0x640] sm:$0xff] %v722_v17 }
  0x47   :  { %732 = vst [vmem:[%s1739_s1 + $0x2c0] sm:$0xff] %v720_v16  ;;  %733 = vst [vmem:[%s1739_s1 + $0x6c0] sm:$0xff] %v722_v17 }
  0x48   :  { %734 = vst [vmem:[%s1739_s1 + $0x340] sm:$0xff] %v720_v16  ;;  %735 = vst [vmem:[%s1739_s1 + $0x740] sm:$0xff] %v722_v17 }
  0x49   :  { %736 = vst [vmem:[%s1739_s1 + $0x3c0] sm:$0xff] %v720_v16  ;;  %737 = vst [vmem:[%s1739_s1 + $0x7c0] sm:$0xff] %v722_v17 }
  0x4a   :  { %739 = vst [vmem:[%s1739_s1 + $0x48] sm:$0xff] %v738_v18  ;;  %741 = vst [vmem:[%s1739_s1 + $0x448] sm:$0xff] %v740_v19 }
  0x4b   :  { %742 = vst [vmem:[%s1739_s1 + $0xc8] sm:$0xff] %v738_v18  ;;  %743 = vst [vmem:[%s1739_s1 + $0x4c8] sm:$0xff] %v740_v19 }
  0x4c   :  { %744 = vst [vmem:[%s1739_s1 + $0x148] sm:$0xff] %v738_v18  ;;  %745 = vst [vmem:[%s1739_s1 + $0x548] sm:$0xff] %v740_v19 }
  0x4d   :  { %746 = vst [vmem:[%s1739_s1 + $0x1c8] sm:$0xff] %v738_v18  ;;  %747 = vst [vmem:[%s1739_s1 + $0x5c8] sm:$0xff] %v740_v19 }
  0x4e   :  { %748 = vst [vmem:[%s1739_s1 + $0x248] sm:$0xff] %v738_v18  ;;  %749 = vst [vmem:[%s1739_s1 + $0x648] sm:$0xff] %v740_v19 }
  0x4f   :  { %750 = vst [vmem:[%s1739_s1 + $0x2c8] sm:$0xff] %v738_v18  ;;  %751 = vst [vmem:[%s1739_s1 + $0x6c8] sm:$0xff] %v740_v19 }
  0x50   :  { %752 = vst [vmem:[%s1739_s1 + $0x348] sm:$0xff] %v738_v18  ;;  %753 = vst [vmem:[%s1739_s1 + $0x748] sm:$0xff] %v740_v19 }
  0x51   :  { %754 = vst [vmem:[%s1739_s1 + $0x3c8] sm:$0xff] %v738_v18  ;;  %755 = vst [vmem:[%s1739_s1 + $0x7c8] sm:$0xff] %v740_v19 }
  0x52   :  { %757 = vst [vmem:[%s1739_s1 + $0x50] sm:$0xff] %v756_v20  ;;  %760 = vst [vmem:[%s1739_s1 + $0xd0] sm:$0xff] %v756_v20 }
  0x53   :  { %762 = vst [vmem:[%s1739_s1 + $0x150] sm:$0xff] %v756_v20  ;;  %764 = vst [vmem:[%s1739_s1 + $0x1d0] sm:$0xff] %v756_v20 }
  0x54   :  { %766 = vst [vmem:[%s1739_s1 + $0x250] sm:$0xff] %v756_v20  ;;  %768 = vst [vmem:[%s1739_s1 + $0x2d0] sm:$0xff] %v756_v20 }
  0x55   :  { %770 = vst [vmem:[%s1739_s1 + $0x350] sm:$0xff] %v756_v20  ;;  %772 = vst [vmem:[%s1739_s1 + $0x3d0] sm:$0xff] %v756_v20 }
  0x56   :  { %759 = vst [vmem:[%s1739_s1 + $0x450] sm:$0xff] %v758_v21  ;;  %761 = vst [vmem:[%s1739_s1 + $0x4d0] sm:$0xff] %v758_v21 }
  0x57   :  { %763 = vst [vmem:[%s1739_s1 + $0x550] sm:$0xff] %v758_v21  ;;  %765 = vst [vmem:[%s1739_s1 + $0x5d0] sm:$0xff] %v758_v21 }
  0x58   :  { %767 = vst [vmem:[%s1739_s1 + $0x650] sm:$0xff] %v758_v21  ;;  %769 = vst [vmem:[%s1739_s1 + $0x6d0] sm:$0xff] %v758_v21 }
  0x59   :  { %771 = vst [vmem:[%s1739_s1 + $0x750] sm:$0xff] %v758_v21  ;;  %773 = vst [vmem:[%s1739_s1 + $0x7d0] sm:$0xff] %v758_v21 }
  0x5a   :  { %775 = vst [vmem:[%s1739_s1 + $0x58] sm:$0xff] %v774_v22  ;;  %777 = vst [vmem:[%s1739_s1 + $0x458] sm:$0xff] %v776_v23 }
  0x5b   :  { %778 = vst [vmem:[%s1739_s1 + $0xd8] sm:$0xff] %v774_v22  ;;  %779 = vst [vmem:[%s1739_s1 + $0x4d8] sm:$0xff] %v776_v23 }
  0x5c   :  { %780 = vst [vmem:[%s1739_s1 + $0x158] sm:$0xff] %v774_v22  ;;  %781 = vst [vmem:[%s1739_s1 + $0x558] sm:$0xff] %v776_v23 }
  0x5d   :  { %782 = vst [vmem:[%s1739_s1 + $0x1d8] sm:$0xff] %v774_v22  ;;  %783 = vst [vmem:[%s1739_s1 + $0x5d8] sm:$0xff] %v776_v23 }
  0x5e   :  { %784 = vst [vmem:[%s1739_s1 + $0x258] sm:$0xff] %v774_v22  ;;  %785 = vst [vmem:[%s1739_s1 + $0x658] sm:$0xff] %v776_v23 }
  0x5f   :  { %786 = vst [vmem:[%s1739_s1 + $0x2d8] sm:$0xff] %v774_v22  ;;  %787 = vst [vmem:[%s1739_s1 + $0x6d8] sm:$0xff] %v776_v23 }
  0x60   :  { %788 = vst [vmem:[%s1739_s1 + $0x358] sm:$0xff] %v774_v22  ;;  %789 = vst [vmem:[%s1739_s1 + $0x758] sm:$0xff] %v776_v23 }
  0x61   :  { %790 = vst [vmem:[%s1739_s1 + $0x3d8] sm:$0xff] %v774_v22  ;;  %791 = vst [vmem:[%s1739_s1 + $0x7d8] sm:$0xff] %v776_v23 }
  0x62   :  { %793 = vst [vmem:[%s1739_s1 + $0x60] sm:$0xff] %v792_v24  ;;  %795 = vst [vmem:[%s1739_s1 + $0x460] sm:$0xff] %v794_v25 }
  0x63   :  { %796 = vst [vmem:[%s1739_s1 + $0xe0] sm:$0xff] %v792_v24  ;;  %797 = vst [vmem:[%s1739_s1 + $0x4e0] sm:$0xff] %v794_v25 }
  0x64   :  { %798 = vst [vmem:[%s1739_s1 + $0x160] sm:$0xff] %v792_v24  ;;  %799 = vst [vmem:[%s1739_s1 + $0x560] sm:$0xff] %v794_v25 }
  0x65   :  { %800 = vst [vmem:[%s1739_s1 + $0x1e0] sm:$0xff] %v792_v24  ;;  %801 = vst [vmem:[%s1739_s1 + $0x5e0] sm:$0xff] %v794_v25 }
  0x66   :  { %802 = vst [vmem:[%s1739_s1 + $0x260] sm:$0xff] %v792_v24  ;;  %803 = vst [vmem:[%s1739_s1 + $0x660] sm:$0xff] %v794_v25 }
  0x67   :  { %804 = vst [vmem:[%s1739_s1 + $0x2e0] sm:$0xff] %v792_v24  ;;  %805 = vst [vmem:[%s1739_s1 + $0x6e0] sm:$0xff] %v794_v25 }
  0x68   :  { %806 = vst [vmem:[%s1739_s1 + $0x360] sm:$0xff] %v792_v24  ;;  %807 = vst [vmem:[%s1739_s1 + $0x760] sm:$0xff] %v794_v25 }
  0x69   :  { %808 = vst [vmem:[%s1739_s1 + $0x3e0] sm:$0xff] %v792_v24  ;;  %809 = vst [vmem:[%s1739_s1 + $0x7e0] sm:$0xff] %v794_v25 }
  0x6a   :  { %811 = vst [vmem:[%s1739_s1 + $0x68] sm:$0xff] %v810_v26  ;;  %814 = vst [vmem:[%s1739_s1 + $0xe8] sm:$0xff] %v810_v26 }
  0x6b   :  { %816 = vst [vmem:[%s1739_s1 + $0x168] sm:$0xff] %v810_v26  ;;  %818 = vst [vmem:[%s1739_s1 + $0x1e8] sm:$0xff] %v810_v26 }
  0x6c   :  { %820 = vst [vmem:[%s1739_s1 + $0x268] sm:$0xff] %v810_v26  ;;  %822 = vst [vmem:[%s1739_s1 + $0x2e8] sm:$0xff] %v810_v26 }
  0x6d   :  { %824 = vst [vmem:[%s1739_s1 + $0x368] sm:$0xff] %v810_v26  ;;  %826 = vst [vmem:[%s1739_s1 + $0x3e8] sm:$0xff] %v810_v26 }
  0x6e   :  { %813 = vst [vmem:[%s1739_s1 + $0x468] sm:$0xff] %v812_v27  ;;  %815 = vst [vmem:[%s1739_s1 + $0x4e8] sm:$0xff] %v812_v27 }
  0x6f   :  { %817 = vst [vmem:[%s1739_s1 + $0x568] sm:$0xff] %v812_v27  ;;  %819 = vst [vmem:[%s1739_s1 + $0x5e8] sm:$0xff] %v812_v27 }
  0x70   :  { %821 = vst [vmem:[%s1739_s1 + $0x668] sm:$0xff] %v812_v27  ;;  %823 = vst [vmem:[%s1739_s1 + $0x6e8] sm:$0xff] %v812_v27 }
  0x71   :  { %825 = vst [vmem:[%s1739_s1 + $0x768] sm:$0xff] %v812_v27  ;;  %827 = vst [vmem:[%s1739_s1 + $0x7e8] sm:$0xff] %v812_v27 }
  0x72   :  { %829 = vst [vmem:[%s1739_s1 + $0x70] sm:$0xff] %v828_v28  ;;  %831 = vst [vmem:[%s1739_s1 + $0x470] sm:$0xff] %v830_v29 }
  0x73   :  { %832 = vst [vmem:[%s1739_s1 + $0xf0] sm:$0xff] %v828_v28  ;;  %833 = vst [vmem:[%s1739_s1 + $0x4f0] sm:$0xff] %v830_v29 }
  0x74   :  { %834 = vst [vmem:[%s1739_s1 + $0x170] sm:$0xff] %v828_v28  ;;  %835 = vst [vmem:[%s1739_s1 + $0x570] sm:$0xff] %v830_v29 }
  0x75   :  { %836 = vst [vmem:[%s1739_s1 + $0x1f0] sm:$0xff] %v828_v28  ;;  %837 = vst [vmem:[%s1739_s1 + $0x5f0] sm:$0xff] %v830_v29 }
  0x76   :  { %838 = vst [vmem:[%s1739_s1 + $0x270] sm:$0xff] %v828_v28  ;;  %839 = vst [vmem:[%s1739_s1 + $0x670] sm:$0xff] %v830_v29 }
  0x77   :  { %840 = vst [vmem:[%s1739_s1 + $0x2f0] sm:$0xff] %v828_v28  ;;  %841 = vst [vmem:[%s1739_s1 + $0x6f0] sm:$0xff] %v830_v29 }
  0x78   :  { %842 = vst [vmem:[%s1739_s1 + $0x370] sm:$0xff] %v828_v28  ;;  %843 = vst [vmem:[%s1739_s1 + $0x770] sm:$0xff] %v830_v29 }
  0x79   :  { %844 = vst [vmem:[%s1739_s1 + $0x3f0] sm:$0xff] %v828_v28  ;;  %845 = vst [vmem:[%s1739_s1 + $0x7f0] sm:$0xff] %v830_v29 }
  0x7a   :  { %847 = vst [vmem:[%s1739_s1 + $0x78] sm:$0xff] %v846_v30  ;;  %849 = vst [vmem:[%s1739_s1 + $0x478] sm:$0xff] %v848_v31 }
  0x7b   :  { %850 = vst [vmem:[%s1739_s1 + $0xf8] sm:$0xff] %v846_v30  ;;  %851 = vst [vmem:[%s1739_s1 + $0x4f8] sm:$0xff] %v848_v31 }
  0x7c   :  { %852 = vst [vmem:[%s1739_s1 + $0x178] sm:$0xff] %v846_v30  ;;  %853 = vst [vmem:[%s1739_s1 + $0x578] sm:$0xff] %v848_v31 }
  0x7d   :  { %854 = vst [vmem:[%s1739_s1 + $0x1f8] sm:$0xff] %v846_v30  ;;  %855 = vst [vmem:[%s1739_s1 + $0x5f8] sm:$0xff] %v848_v31 }
  0x7e   :  { %856 = vst [vmem:[%s1739_s1 + $0x278] sm:$0xff] %v846_v30  ;;  %857 = vst [vmem:[%s1739_s1 + $0x678] sm:$0xff] %v848_v31 }
  0x7f   :  { %858 = vst [vmem:[%s1739_s1 + $0x2f8] sm:$0xff] %v846_v30  ;;  %859 = vst [vmem:[%s1739_s1 + $0x6f8] sm:$0xff] %v848_v31 }
  0x80   :  { %860 = vst [vmem:[%s1739_s1 + $0x378] sm:$0xff] %v846_v30  ;;  %861 = vst [vmem:[%s1739_s1 + $0x778] sm:$0xff] %v848_v31 }
  0x81   :  { %862 = vst [vmem:[%s1739_s1 + $0x3f8] sm:$0xff] %v846_v30  ;;  %863 = vst [vmem:[%s1739_s1 + $0x7f8] sm:$0xff] %v848_v31 }

// kernel: tramba_ultra_forward.4
= control target key start
LH: loop header
LB: loop body
LE: loop exit
PB: predicated region body
PF: predicated region fallthrough
CT: control target
= control target key end

     0   :  { %v46_v0 = vlaneseq  ;;  %s2195_s0 = inlined_call_operand.vmem [shape: f32[2,3,8,16], index: 0, kind: input, shape index: {}]   ;;  %s2196_s1 = inlined_call_operand.vmem [shape: f32[2,3,8], index: 1, kind: input, shape index: {}]   ;;  %s2197_s2 = inlined_call_operand.vmem [shape: f32[3,64], index: 2, kind: input, shape index: {}]   ;;  %s2198_s3 = inlined_call_operand.vmem [shape: f32[1,64], index: 3, kind: input, shape index: {}]   ;;  %s2199_s4 = inlined_call_operand.vmem [shape: bf16[64,32], index: 4, kind: input, shape index: {}]   ;;  %s2200_s5 = inlined_call_operand.vmem [shape: f32[1,32], index: 5, kind: input, shape index: {}]   ;;  %s2201_s6 = inlined_call_operand.vmem [shape: f32[3,128], index: 6, kind: input, shape index: {}]   ;;  %s2202_s7 = inlined_call_operand.vmem [shape: f32[1,128], index: 7, kind: input, shape index: {}]   ;;  %s2203_s8 = inlined_call_operand.vmem [shape: bf16[128,32], index: 8, kind: input, shape index: {}]   ;;  %s2204_s9 = inlined_call_operand.vmem [shape: f32[1,32], index: 9, kind: input, shape index: {}]   ;;  %s2205_s10 = inlined_call_operand.hbm [shape: f32[2,8,32], index: 10, kind: output, shape index: {}]  }
   0x1   :  { %v1518_v1 = vld [vmem:[%s2195_s0] sm:$0xff]  ;;  %v1544_v10 = vld [vmem:[%s2195_s0 + $0x18] sm:$0xff]  ;;  %v1549_v11 = vld [vmem:[%s2195_s0 + $0x8] sm:$0xff] }
   0x2   :  { %v1520_v2 = vshrl.u32 %v46_v0, 7  ;;  %v1556_v13 = vld [vmem:[%s2195_s0 + $0x20] sm:$0xff] }
   0x4   :  { %v1523_v3 = vsub.s32 1, %v1520_v2  ;;  %v1526_v4 = vsub.s32 0, %v1520_v2  ;;  %v1529_v5 = vsub.s32 4, %v1520_v2  ;;  %v1532_v6 = vsub.s32 5, %v1520_v2 }
   0x5   :  { %v1535_v7 = vsub.s32 6, %v1520_v2 }
   0x6   :  { %v60_v8 = vrot.slane %v1518_v1, %v1523_v3  ;;  %v49_v9 = vrot.slane %v1518_v1, %v1526_v4  ;;  %v137_v12 = vrot.slane %v1544_v10, %v1526_v4  ;;  %v1560_v14 = vrot.slane %v1518_v1, %v1529_v5 }
   0x7   :  { %v1564_v15 = vrot.slane %v1544_v10, %v1529_v5  ;;  %v1568_v16 = vrot.slane %v1549_v11, %v1529_v5 }
   0x8   :  { %62 = vbcast.lane.b32.xlu1 %v60_v8, 256  ;;  %51 = vbcast.lane.b32.xlu0 %v49_v9, 256 }
   0xc   :  { %66 = vbcast.lane.b32.xlu1 %v60_v8, 264  ;;  %55 = vbcast.lane.b32.xlu0 %v49_v9, 264 }
   0xd   :  { %15 = vsyncpa [#allocation3], 0  ;;  %v1572_v17 = vrot.slane %v1556_v13, %v1529_v5  ;;  %v1576_v18 = vrot.slane %v1518_v1, %v1532_v6  ;;  %v1580_v19 = vrot.slane %v1544_v10, %v1532_v6  ;;  %v1584_v20 = vrot.slane %v1549_v11, %v1532_v6  ;;  %v1613_v28 = vld [vmem:[%s2195_s0 + $0x10] sm:$0xff]  ;;  %v1675_v52 = vld [vmem:[%s2195_s0 + $0x28] sm:$0xff]  ;;  %s1457_s13 = smov [#allocation2]  }
   0xe   :  { %v1588_v21 = vrot.slane %v1556_v13, %v1532_v6  ;;  %v1592_v22 = vrot.slane %v1518_v1, %v1535_v7  ;;  %v1596_v23 = vrot.slane %v1544_v10, %v1535_v7  ;;  %v1600_v24 = vrot.slane %v1549_v11, %v1535_v7  ;;  %s1330_s14 = sshll.u32 %s1457_s13, 4  ;;  %s1331_s14 = int_to_ptr.vmem [resolvable:$true] %s1330_s14 }
   0xf   :  { %v148_v25 = vrot.slane %v1544_v10, %v1523_v3  ;;  %v1606_v26 = vrot.slane %v1556_v13, %v1535_v7  ;;  %v261_v27 = vrot.slane %v1549_v11, %v1526_v4  ;;  %v1617_v29 = vrot.slane %v1613_v28, %v1529_v5  ;;  %p1436_p1 = scmp.lt.s32.totalorder %s1331_s14, %s1331_s14 }
  0x10   :  { %143 = vbcast.lane.b32.xlu1 %v137_v12, 264  ;;  %139 = vbcast.lane.b32.xlu0 %v137_v12, 256  ;;  %v272_v30 = vrot.slane %v1549_v11, %v1523_v3  ;;  %v349_v31 = vrot.slane %v1556_v13, %v1526_v4  ;;  %v360_v32 = vrot.slane %v1556_v13, %v1523_v3  ;;  %v1626_v33 = vsub.s32 2, %v1520_v2 }
  0x11   :  { %v1631_v35 = vsub.s32 7, %v1520_v2  ;;  %v81_v42 = vsub.s32 3, %v1520_v2  ;;  %v1659_v45 = vrot.slane %v1613_v28, %v1532_v6  ;;  %v1665_v48 = vrot.slane %v1613_v28, %v1535_v7 }
  0x12   :  { %v71_v34 = vrot.slane %v1518_v1, %v1626_v33  ;;  %v159_v37 = vrot.slane %v1544_v10, %v1626_v33  ;;  %v283_v39 = vrot.slane %v1549_v11, %v1626_v33  ;;  %v371_v41 = vrot.slane %v1556_v13, %v1626_v33 }
  0x13   :  { %v1635_v36 = vrot.slane %v1518_v1, %v1631_v35  ;;  %v1641_v38 = vrot.slane %v1544_v10, %v1631_v35  ;;  %v1647_v40 = vrot.slane %v1549_v11, %v1631_v35  ;;  %v1654_v43 = vrot.slane %v1556_v13, %v1631_v35 }
  0x14   :  { %154 = vbcast.lane.b32.xlu1 %v148_v25, 264  ;;  %150 = vbcast.lane.b32.xlu0 %v148_v25, 256  ;;  %v82_v44 = vrot.slane %v1518_v1, %v81_v42  ;;  %v170_v46 = vrot.slane %v1544_v10, %v81_v42  ;;  %v294_v47 = vrot.slane %v1549_v11, %v81_v42  ;;  %v1726_v11 = vld [vmem:[%s2197_s2] sm:$0x7]  ;;  %vm817_vm0 = vcmask 523264  }
  0x15   :  { %v382_v49 = vrot.slane %v1556_v13, %v81_v42  ;;  %v505_v50 = vrot.slane %v1613_v28, %v1526_v4  ;;  %v516_v51 = vrot.slane %v1613_v28, %v1523_v3  ;;  %v1679_v53 = vrot.slane %v1613_v28, %v1631_v35 }
  0x16   :  { %v593_v54 = vrot.slane %v1675_v52, %v1526_v4  ;;  %v604_v55 = vrot.slane %v1675_v52, %v1523_v3  ;;  %v527_v56 = vrot.slane %v1613_v28, %v1626_v33  ;;  %v615_v57 = vrot.slane %v1675_v52, %v1626_v33 }
  0x17   :  { %v538_v60 = vrot.slane %v1613_v28, %v81_v42  ;;  %v626_v63 = vrot.slane %v1675_v52, %v81_v42  ;;  %vm1025_vm1 = vcmask 1041409   ;;  %vm1456_vm2 = vmmov 0  }
  0x18   :  { %267 = vbcast.lane.b32.xlu1 %v261_v27, 264  ;;  %263 = vbcast.lane.b32.xlu0 %v261_v27, 256  ;;  %vm1027_vm3 = vcmask 1042434   ;;  %vm1029_vm4 = vcmask 1043459   ;;  %vm1031_vm5 = vcmask 1044484   ;;  %vm1033_vm6 = vcmask 1045509  }
  0x19   :  { %vm1035_vm7 = vcmask 1046534   ;;  %vm1037_vm8 = vcmask 1047559   ;;  %vm1322_vm9 = vcmask 261120  }
  0x1c   :  { %278 = vbcast.lane.b32.xlu1 %v272_v30, 264  ;;  %274 = vbcast.lane.b32.xlu0 %v272_v30, 256 }
  0x20   :  { %355 = vbcast.lane.b32.xlu1 %v349_v31, 264  ;;  %351 = vbcast.lane.b32.xlu0 %v349_v31, 256 }
  0x24   :  { %366 = vbcast.lane.b32.xlu1 %v360_v32, 264  ;;  %362 = vbcast.lane.b32.xlu0 %v360_v32, 256 }
  0x28   :  { %77 = vbcast.lane.b32.xlu1 %v71_v34, 264  ;;  %73 = vbcast.lane.b32.xlu0 %v71_v34, 256 }
  0x2c   :  { %165 = vbcast.lane.b32.xlu1 %v159_v37, 264  ;;  %161 = vbcast.lane.b32.xlu0 %v159_v37, 256  ;;  %v1767_v37 = vld [vmem:[%s2196_s1 + $0x4] sm:$0x7] }
  0x30   :  { %289 = vbcast.lane.b32.xlu1 %v283_v39, 264  ;;  %285 = vbcast.lane.b32.xlu0 %v283_v39, 256  ;;  %v1772_v39 = vld [vmem:[%s2196_s1] sm:$0x7] }
  0x34   :  { %377 = vbcast.lane.b32.xlu1 %v371_v41, 264  ;;  %373 = vbcast.lane.b32.xlu0 %v371_v41, 256 }
  0x38   :  { %88 = vbcast.lane.b32.xlu1 %v82_v44, 264  ;;  %84 = vbcast.lane.b32.xlu0 %v82_v44, 256 }
  0x3c   :  { %176 = vbcast.lane.b32.xlu1 %v170_v46, 264  ;;  %172 = vbcast.lane.b32.xlu0 %v170_v46, 256 }
  0x40   :  { %300 = vbcast.lane.b32.xlu1 %v294_v47, 264  ;;  %296 = vbcast.lane.b32.xlu0 %v294_v47, 256  ;;  %v1146_v47 = vrot.slane %v1767_v37, %v1523_v3 }
  0x44   :  { %388 = vbcast.lane.b32.xlu1 %v382_v49, 264  ;;  %384 = vbcast.lane.b32.xlu0 %v382_v49, 256  ;;  %v1139_v49 = vrot.slane %v1772_v39, %v1523_v3 }
  0x48   :  { %511 = vbcast.lane.b32.xlu1 %v505_v50, 264  ;;  %507 = vbcast.lane.b32.xlu0 %v505_v50, 256 }
  0x4c   :  { %522 = vbcast.lane.b32.xlu1 %v516_v51, 264  ;;  %518 = vbcast.lane.b32.xlu0 %v516_v51, 256 }
  0x50   :  { %599 = vbcast.lane.b32.xlu1 %v593_v54, 264  ;;  %595 = vbcast.lane.b32.xlu0 %v593_v54, 256 }
  0x54   :  { %610 = vbcast.lane.b32.xlu1 %v604_v55, 264  ;;  %606 = vbcast.lane.b32.xlu0 %v604_v55, 256 }
  0x58   :  { %99 = vbcast.lane.b32.xlu1 %v1560_v14, 264  ;;  %95 = vbcast.lane.b32.xlu0 %v1560_v14, 256  ;;  %v1736_v14 = vrot.slane %v1726_v11, %v1523_v3 }
  0x5c   :  { %187 = vbcast.lane.b32.xlu1 %v1564_v15, 264  ;;  %183 = vbcast.lane.b32.xlu0 %v1564_v15, 256  ;;  %v1740_v15 = vrot.slane %v1726_v11, %v1526_v4 }
  0x60   :  { %311 = vbcast.lane.b32.xlu1 %v1568_v16, 264  ;;  %307 = vbcast.lane.b32.xlu0 %v1568_v16, 256 }
  0x64   :  { %399 = vbcast.lane.b32.xlu1 %v1572_v17, 264  ;;  %395 = vbcast.lane.b32.xlu0 %v1572_v17, 256 }
  0x68   :  { %533 = vbcast.lane.b32.xlu1 %v527_v56, 264  ;;  %529 = vbcast.lane.b32.xlu0 %v527_v56, 256 }
  0x6c   :  { %621 = vbcast.lane.b32.xlu1 %v615_v57, 264  ;;  %617 = vbcast.lane.b32.xlu0 %v615_v57, 256 }
  0x70   :  { %110 = vbcast.lane.b32.xlu1 %v1576_v18, 264  ;;  %106 = vbcast.lane.b32.xlu0 %v1576_v18, 256 }
  0x74   :  { %198 = vbcast.lane.b32.xlu1 %v1580_v19, 264  ;;  %194 = vbcast.lane.b32.xlu0 %v1580_v19, 256 }
  0x78   :  { %322 = vbcast.lane.b32.xlu1 %v1584_v20, 264  ;;  %318 = vbcast.lane.b32.xlu0 %v1584_v20, 256 }
  0x7a   :  { %v1703_v58 = vpop.permute.xlu1 %62  ;;  %v1705_v59 = vpop.permute.xlu0 %51 }
  0x7c   :  { %410 = vbcast.lane.b32.xlu1 %v1588_v21, 264  ;;  %406 = vbcast.lane.b32.xlu0 %v1588_v21, 256 }
  0x7e   :  { %v1710_v61 = vpop.permute.xlu1 %66  ;;  %v1712_v62 = vpop.permute.xlu0 %55 }
  0x80   :  { %544 = vbcast.lane.b32.xlu1 %v538_v60, 264  ;;  %540 = vbcast.lane.b32.xlu0 %v538_v60, 256 }
  0x82   :  { %v144_v0 = vpop.permute.xlu1 %143  ;;  %v140_v1 = vpop.permute.xlu0 %139 }
  0x83   :  { %v243_v18 = vmul.f32 %v1740_v15, %v144_v0  ;;  %v242_v19 = vmul.f32 %v1740_v15, %v140_v1 }
  0x84   :  { %632 = vbcast.lane.b32.xlu1 %v626_v63, 264  ;;  %628 = vbcast.lane.b32.xlu0 %v626_v63, 256 }
  0x86   :  { %v155_v2 = vpop.permute.xlu1 %154  ;;  %v151_v8 = vpop.permute.xlu0 %150 }
  0x87   :  { %v245_v27 = vmul.f32 %v1740_v15, %v155_v2  ;;  %v244_v28 = vmul.f32 %v1740_v15, %v151_v8 }
  0x88   :  { %121 = vbcast.lane.b32.xlu1 %v1592_v22, 264  ;;  %117 = vbcast.lane.b32.xlu0 %v1592_v22, 256 }
  0x8a   :  { %v1717_v9 = vpop.permute.xlu1 %267  ;;  %v1719_v10 = vpop.permute.xlu0 %263 }
  0x8c   :  { %209 = vbcast.lane.b32.xlu1 %v1596_v23, 264  ;;  %205 = vbcast.lane.b32.xlu0 %v1596_v23, 256 }
  0x8e   :  { %v1728_v12 = vpop.permute.xlu1 %278  ;;  %v1730_v13 = vpop.permute.xlu0 %274 }
  0x90   :  { %333 = vbcast.lane.b32.xlu1 %v1600_v24, 264  ;;  %329 = vbcast.lane.b32.xlu0 %v1600_v24, 256 }
  0x92   :  { %v356_v16 = vpop.permute.xlu1 %355  ;;  %v352_v17 = vpop.permute.xlu0 %351 }
  0x93   :  { %v455_v20 = vmul.f32 %v1736_v14, %v356_v16  ;;  %v454_v21 = vmul.f32 %v1736_v14, %v352_v17 }
  0x94   :  { %421 = vbcast.lane.b32.xlu1 %v1606_v26, 264  ;;  %417 = vbcast.lane.b32.xlu0 %v1606_v26, 256  ;;  %v637_v26 = vrot.slane %v1675_v52, %v1529_v5  ;;  %v1126_v5 = vrot.slane %v1767_v37, %v1526_v4 }
  0x95   :  { %v1748_v22 = vadd.f32 %v455_v20, %v243_v18  ;;  %v1750_v23 = vadd.f32 %v454_v21, %v242_v19 }
  0x96   :  { %v367_v24 = vpop.permute.xlu1 %366  ;;  %v363_v25 = vpop.permute.xlu0 %362 }
  0x97   :  { %v457_v30 = vmul.f32 %v1736_v14, %v367_v24  ;;  %v456_v31 = vmul.f32 %v1736_v14, %v363_v25 }
  0x98   :  { %555 = vbcast.lane.b32.xlu1 %v1617_v29, 264  ;;  %551 = vbcast.lane.b32.xlu0 %v1617_v29, 256  ;;  %v1119_v29 = vrot.slane %v1772_v39, %v1526_v4 }
  0x99   :  { %v1760_v32 = vadd.f32 %v457_v30, %v245_v27  ;;  %v1762_v34 = vadd.f32 %v456_v31, %v244_v28 }
  0x9a   :  { %v78_v41 = vpop.permute.xlu1 %77  ;;  %v74_v42 = vpop.permute.xlu0 %73 }
  0x9b   :  { %v231_v54 = vmul.f32 %v1740_v15, %v78_v41  ;;  %v230_v55 = vmul.f32 %v1740_v15, %v74_v42  ;;  %v439_v42 = vmul.f32 %v1736_v14, %v1717_v9  ;;  %v648_v9 = vrot.slane %v1675_v52, %v1532_v6 }
  0x9c   :  { %643 = vbcast.lane.b32.xlu1 %v637_v26, 264  ;;  %639 = vbcast.lane.b32.xlu0 %v637_v26, 256 }
  0x9e   :  { %v166_v44 = vpop.permute.xlu1 %165  ;;  %v162_v46 = vpop.permute.xlu0 %161 }
  0x9f   :  { %v247_v2 = vmul.f32 %v1740_v15, %v166_v44  ;;  %v246_v8 = vmul.f32 %v1740_v15, %v162_v46 }
  0xa0   :  { %1128 = vbcast.lane.b32.xlu1 %v1126_v5, 256  ;;  %1121 = vbcast.lane.b32.xlu0 %v1119_v29, 256  ;;  %v438_v5 = vmul.f32 %v1736_v14, %v1719_v10  ;;  %v226_v10 = vmul.f32 %v1740_v15, %v1705_v59 }
  0xa2   :  { %v290_v50 = vpop.permute.xlu1 %289  ;;  %v286_v51 = vpop.permute.xlu0 %285  ;;  %v470_v6 = vadd.f32 %v438_v5, %v226_v10  ;;  %v1161_v10 = vrot.slane %v1772_v39, %v1626_v33 }
  0xa3   :  { %v443_v56 = vmul.f32 %v1736_v14, %v290_v50  ;;  %v442_v57 = vmul.f32 %v1736_v14, %v286_v51 }
  0xa4   :  { %1148 = vbcast.lane.b32.xlu1 %v1146_v47, 256  ;;  %1141 = vbcast.lane.b32.xlu0 %v1139_v49, 256 }
  0xa5   :  { %v1786_v60 = vadd.f32 %v443_v56, %v231_v54  ;;  %v1788_v63 = vadd.f32 %v442_v57, %v230_v55  ;;  %v441_v54 = vmul.f32 %v1736_v14, %v1728_v12  ;;  %v440_v55 = vmul.f32 %v1736_v14, %v1730_v13  ;;  %v1851_v12 = vld [vmem:[%s2198_s3] ss:$0 sm:$0xff] }
  0xa6   :  { %v378_v0 = vpop.permute.xlu1 %377  ;;  %v374_v1 = vpop.permute.xlu0 %373 }
  0xa7   :  { %v459_v16 = vmul.f32 %v1736_v14, %v378_v0  ;;  %v458_v17 = vmul.f32 %v1736_v14, %v374_v1  ;;  %v229_v1 = vmul.f32 %v1740_v15, %v1710_v61 }
  0xa8   :  { %132 = vbcast.lane.b32.xlu1 %v1635_v36, 264  ;;  %128 = vbcast.lane.b32.xlu0 %v1635_v36, 256 }
  0xa9   :  { %v1796_v18 = vadd.f32 %v459_v16, %v247_v2  ;;  %v1798_v19 = vadd.f32 %v458_v17, %v246_v8  ;;  %v473_v8 = vadd.f32 %v441_v54, %v229_v1 }
  0xaa   :  { %v89_v20 = vpop.permute.xlu1 %88  ;;  %v85_v21 = vpop.permute.xlu0 %84 }
  0xab   :  { %v233_v36 = vmul.f32 %v1740_v15, %v89_v20  ;;  %v232_v30 = vmul.f32 %v1740_v15, %v85_v21 }
  0xac   :  { %220 = vbcast.lane.b32.xlu1 %v1641_v38, 264  ;;  %216 = vbcast.lane.b32.xlu0 %v1641_v38, 256 }
  0xae   :  { %v177_v24 = vpop.permute.xlu1 %176  ;;  %v173_v25 = vpop.permute.xlu0 %172 }
  0xaf   :  { %v249_v46 = vmul.f32 %v1740_v15, %v177_v24 }
  0xb0   :  { %344 = vbcast.lane.b32.xlu1 %v1647_v40, 264  ;;  %340 = vbcast.lane.b32.xlu0 %v1647_v40, 256  ;;  %v1816_v40 = vrot.slane %v1726_v11, %v1626_v33  ;;  %v227_v11 = vmul.f32 %v1740_v15, %v1712_v62  ;;  %v228_v62 = vmul.f32 %v1740_v15, %v1703_v58 }
  0xb2   :  { %v301_v27 = vpop.permute.xlu1 %300  ;;  %v297_v28 = vpop.permute.xlu0 %296  ;;  %v471_v57 = vadd.f32 %v439_v42, %v227_v11  ;;  %v472_v16 = vadd.f32 %v440_v55, %v228_v62  ;;  %v1416_v11 = vld [vmem:[%s2203_s8 + $0x8] sm:$0xff]  }
  0xb3   :  { %v445_v31 = vmul.f32 %v1736_v14, %v301_v27  ;;  %v444_v26 = vmul.f32 %v1736_v14, %v297_v28  ;;  %v1415_v27 = vld [vmem:[%s2203_s8] sm:$0xff]  }
  0xb4   :  { %432 = vbcast.lane.b32.xlu1 %v1654_v43, 264  ;;  %428 = vbcast.lane.b32.xlu0 %v1654_v43, 256  ;;  %v248_v43 = vmul.f32 %v1740_v15, %v173_v25  ;;  %v659_v25 = vrot.slane %v1675_v52, %v1535_v7 }
  0xb5   :  { %v1810_v38 = vadd.f32 %v445_v31, %v233_v36  ;;  %v1812_v41 = vadd.f32 %v444_v26, %v232_v30  ;;  %v1455_v26 = vmov 0.0  }
  0xb6   :  { %v389_v29 = vpop.permute.xlu1 %388  ;;  %v385_v44 = vpop.permute.xlu0 %384  ;;  %1384 = vmatprep.subr.bf16.mxu0 %v1455_v26  ;;  %1372 = vmatprep.subr.bf16.mxu1 %v1455_v26 }
  0xb7   :  { %v461_v47 = vmul.f32 %v1736_v14, %v389_v29  ;;  %v460_v49 = vmul.f32 %v1736_v14, %v385_v44  ;;  %1385 = vmatpush3.bf16.msra.mxu0 %v1415_v27  ;;  %1400 = vmatprep.mubr.msk.bf16.mxu0 %vm1456_vm2, %v1455_v26 }
  0xb8   :  { %566 = vbcast.lane.b32.xlu1 %v1659_v45, 264  ;;  %562 = vbcast.lane.b32.xlu0 %v1659_v45, 256 }
  0xb9   :  { %v1834_v50 = vadd.f32 %v461_v47, %v249_v46  ;;  %v1836_v51 = vadd.f32 %v460_v49, %v248_v43  ;;  %1386 = vmatprep.subr.bf16.mxu0 %v1455_v26  ;;  %1380 = vmatprep.mubr.msk.bf16.mxu1 %vm1456_vm2, %v1455_v26 }
  0xba   :  { %v512_v45 = vpop.permute.xlu1 %511  ;;  %v508_v56 = vpop.permute.xlu0 %507 }
  0xbb   :  { %v683_v0 = vmul.f32 %v1816_v40, %v512_v45  ;;  %v682_v59 = vmul.f32 %v1816_v40, %v508_v56  ;;  %1387 = vmatpush3.bf16.msra.mxu0 %v1416_v11 }
  0xbc   :  { %654 = vbcast.lane.b32.xlu1 %v648_v9, 264  ;;  %650 = vbcast.lane.b32.xlu0 %v648_v9, 256 }
  0xbd   :  { %v715_v13 = vadd.f32 %v683_v0, %v471_v57  ;;  %v714_v2 = vadd.f32 %v682_v59, %v470_v6  ;;  %1388 = vmatprep.subr.bf16.mxu0 %v1455_v26 }
  0xbe   :  { %v523_v17 = vpop.permute.xlu1 %522  ;;  %v519_v20 = vpop.permute.xlu0 %518 }
  0xbf   :  { %v754_v21 = vadd.f32 %v1851_v12, %v715_v13  ;;  %v753_v58 = vadd.f32 %v1851_v12, %v714_v2  ;;  %v685_v24 = vmul.f32 %v1816_v40, %v523_v17  ;;  %v684_v61 = vmul.f32 %v1816_v40, %v519_v20 }
  0xc0   :  { %577 = vbcast.lane.b32.xlu1 %v1665_v48, 264  ;;  %573 = vbcast.lane.b32.xlu0 %v1665_v48, 256  ;;  %v1168_v48 = vrot.slane %v1767_v37, %v1626_v33 }
  0xc1   :  { %v786_v28 = vmax.f32 %v754_v21, 0.0  ;;  %v785_v36 = vmax.f32 %v753_v58, 0.0  ;;  %v717_v30 = vadd.f32 %v685_v24, %v473_v8  ;;  %v716_v31 = vadd.f32 %v684_v61, %v472_v16  ;;  %v1417_v8 = vld [vmem:[%s2203_s8 + $0x10] sm:$0xff]  }
  0xc2   :  { %v600_v42 = vpop.permute.xlu1 %599  ;;  %v596_v5 = vpop.permute.xlu0 %595  ;;  %1389 = vmatpush3.bf16.msra.mxu0 %v1417_v8 }
  0xc3   :  { %v819_v7 = vsel %vm817_vm0, %v786_v28, -inf  ;;  %v818_v29 = vsel %vm817_vm0, %v785_v36, -inf  ;;  %v756_v44 = vadd.f32 %v1851_v12, %v717_v30  ;;  %v755_v46 = vadd.f32 %v1851_v12, %v716_v31  ;;  %1390 = vmatprep.subr.bf16.mxu0 %v1455_v26 }
  0xc4   :  { %v820_v43 = vmax.f32 %v818_v29, %v819_v7  ;;  %v699_v47 = vmul.f32 %v1816_v40, %v600_v42  ;;  %v698_v49 = vmul.f32 %v1816_v40, %v596_v5  ;;  %665 = vbcast.lane.b32.xlu1 %v659_v25, 264  ;;  %661 = vbcast.lane.b32.xlu0 %v659_v25, 256 }
  0xc5   :  { %v788_v9 = vmax.f32 %v756_v44, 0.0  ;;  %v787_v37 = vmax.f32 %v755_v46, 0.0 }
  0xc6   :  { %v821_v54 = vrot.slane %v820_v43, 4  ;;  %v731_v55 = vadd.f32 %v699_v47, %v1748_v22  ;;  %v730_v45 = vadd.f32 %v698_v49, %v1750_v23  ;;  %v611_v56 = vpop.permute.xlu1 %610  ;;  %v607_v57 = vpop.permute.xlu0 %606 }
  0xc7   :  { %v828_v6 = vsel %vm817_vm0, %v788_v9, -inf  ;;  %v827_v0 = vsel %vm817_vm0, %v787_v37, -inf  ;;  %v701_v59 = vmul.f32 %v1816_v40, %v611_v56  ;;  %v700_v62 = vmul.f32 %v1816_v40, %v607_v57 }
  0xc8   :  { %v822_v39 = vmax.f32 %v820_v43, %v821_v54  ;;  %v829_v1 = vmax.f32 %v827_v0, %v828_v6  ;;  %v770_v13 = vadd.f32 %v1851_v12, %v731_v55  ;;  %v769_v2 = vadd.f32 %v1851_v12, %v730_v45  ;;  %1170 = vbcast.lane.b32.xlu1 %v1168_v48, 256 }
  0xc9   :  { %v733_v22 = vadd.f32 %v701_v59, %v1760_v32  ;;  %v732_v23 = vadd.f32 %v700_v62, %v1762_v34  ;;  %1163 = vbcast.lane.b32.xlu0 %v1161_v10, 256  ;;  %v670_v32 = vrot.slane %v1675_v52, %v1631_v35  ;;  %v1418_v35 = vld [vmem:[%s2203_s8 + $0x18] sm:$0xff]  }
  0xca   :  { %v823_v16 = vrot.slane %v822_v39, 2  ;;  %v830_v17 = vrot.slane %v829_v1, 4  ;;  %v802_v20 = vmax.f32 %v770_v13, 0.0  ;;  %v801_v21 = vmax.f32 %v769_v2, 0.0  ;;  %v100_v58 = vpop.permute.xlu1 %99  ;;  %v96_v24 = vpop.permute.xlu0 %95  ;;  %1391 = vmatpush3.bf16.msra.mxu0 %v1418_v35 }
  0xcb   :  { %v772_v61 = vadd.f32 %v1851_v12, %v733_v22  ;;  %v771_v25 = vadd.f32 %v1851_v12, %v732_v23  ;;  %1392 = vmatprep.subr.bf16.mxu0 %v1455_v26  ;;  %v235_v11 = vmul.f32 %v1740_v15, %v100_v58  ;;  %v234_v56 = vmul.f32 %v1740_v15, %v96_v24  ;;  %v1421_v22 = vld [vmem:[%s2203_s8 + $0x28] sm:$0xff]  }
  0xcc   :  { %v824_v34 = vmax.f32 %v822_v39, %v823_v16  ;;  %v831_v27 = vmax.f32 %v829_v1, %v830_v17  ;;  %v891_v28 = vsel %vm817_vm0, %v802_v20, -inf  ;;  %v890_v36 = vsel %vm817_vm0, %v801_v21, -inf  ;;  %588 = vbcast.lane.b32.xlu1 %v1679_v53, 264  ;;  %v1420_v39 = vld [vmem:[%s2199_s4] sm:$0xff]  }
  0xcd   :  { %v892_v30 = vmax.f32 %v890_v36, %v891_v28  ;;  %v804_v31 = vmax.f32 %v772_v61, 0.0  ;;  %v803_v42 = vmax.f32 %v771_v25, 0.0  ;;  %584 = vbcast.lane.b32.xlu0 %v1679_v53, 256  ;;  %v1419_v53 = vld [vmem:[%s2203_s8 + $0x20] sm:$0xff]   ;;  %1373 = vmatpush3.bf16.msra.mxu1 %v1420_v39 }
  0xce   :  { %v825_v52 = vrot.slane %v824_v34, 1  ;;  %v832_v5 = vrot.slane %v831_v27, 2  ;;  %v188_v48 = vpop.permute.xlu1 %187  ;;  %v184_v7 = vpop.permute.xlu0 %183  ;;  %1393 = vmatpush3.bf16.msra.mxu0 %v1419_v53  ;;  %1374 = vmatprep.subr.bf16.mxu1 %v1455_v26 }
  0xcf   :  { %v893_v29 = vrot.slane %v892_v30, 4  ;;  %v900_v44 = vsel %vm817_vm0, %v804_v31, -inf  ;;  %v899_v46 = vsel %vm817_vm0, %v803_v42, -inf  ;;  %1394 = vmatprep.subr.bf16.mxu0 %v1455_v26  ;;  %v251_v16 = vmul.f32 %v1740_v15, %v188_v48  ;;  %v1423_v31 = vld [vmem:[%s2203_s8 + $0x30] sm:$0xff]  }
  0xd0   :  { %v826_v43 = vmax.f32 %v824_v34, %v825_v52  ;;  %v833_v47 = vmax.f32 %v831_v27, %v832_v5  ;;  %v901_v49 = vmax.f32 %v899_v46, %v900_v44  ;;  %676 = vbcast.lane.b32.xlu1 %v670_v32, 264  ;;  %v250_v58 = vmul.f32 %v1740_v15, %v184_v7  ;;  %v1422_v27 = vld [vmem:[%s2199_s4 + $0x8] sm:$0xff]   ;;  %v1424_v48 = vld [vmem:[%s2199_s4 + $0x10] sm:$0xff]   ;;  %v1425_v44 = vld [vmem:[%s2203_s8 + $0x38] sm:$0xff]  }
  0xd1   :  { %v894_v9 = vmax.f32 %v892_v30, %v893_v29  ;;  %672 = vbcast.lane.b32.xlu0 %v670_v32, 256  ;;  %1375 = vmatpush3.bf16.msra.mxu1 %v1422_v27 }
  0xd2   :  { %v834_v37 = vrot.slane %v833_v47, 1  ;;  %v902_v10 = vrot.slane %v901_v49, 4  ;;  %v312_v54 = vpop.permute.xlu1 %311  ;;  %v308_v55 = vpop.permute.xlu0 %307  ;;  %v962_v0 = vpack.c.bf16 %v826_v43, %v826_v43  ;;  %1395 = vmatpush3.bf16.msra.mxu0 %v1421_v22  ;;  %1376 = vmatprep.subr.bf16.mxu1 %v1455_v26 }
  0xd3   :  { %v895_v45 = vrot.slane %v894_v9, 2  ;;  %v447_v57 = vmul.f32 %v1736_v14, %v312_v54  ;;  %v446_v6 = vmul.f32 %v1736_v14, %v308_v55  ;;  %1396 = vmatprep.subr.bf16.mxu0 %v1455_v26 }
  0xd4   :  { %v835_v59 = vmax.f32 %v833_v47, %v834_v37  ;;  %v903_v62 = vmax.f32 %v901_v49, %v902_v10  ;;  %v1009_v25 = vunpack.c.l.b16 %v962_v0  ;;  %v1426_v10 = vld [vmem:[%s2199_s4 + $0x18] sm:$0xff]  }
  0xd5   :  { %v896_v1 = vmax.f32 %v894_v9, %v895_v45  ;;  %v1920_v13 = vadd.f32 %v447_v57, %v235_v11  ;;  %v1922_v2 = vadd.f32 %v446_v6, %v234_v56  ;;  %1377 = vmatpush3.bf16.msra.mxu1 %v1424_v48 }
  0xd6   :  { %v963_v23 = vpack.c.bf16 %v835_v59, %v835_v59  ;;  %v904_v8 = vrot.slane %v903_v62, 2  ;;  %v400_v17 = vpop.permute.xlu1 %399  ;;  %v396_v20 = vpop.permute.xlu0 %395  ;;  %1397 = vmatpush3.bf16.msra.mxu0 %v1423_v31  ;;  %1378 = vmatprep.subr.bf16.mxu1 %v1455_v26 }
  0xd7   :  { %v897_v21 = vrot.slane %v896_v1, 1  ;;  %v463_v24 = vmul.f32 %v1736_v14, %v400_v17  ;;  %v462_v61 = vmul.f32 %v1736_v14, %v396_v20  ;;  %1398 = vmatprep.subr.bf16.mxu0 %v1455_v26 }
  0xd8   :  { %v1010_v32 = vunpack.c.l.b16 %v963_v23  ;;  %v905_v34 = vmax.f32 %v903_v62, %v904_v8 }
  0xd9   :  { %v898_v28 = vmax.f32 %v896_v1, %v897_v21  ;;  %v1936_v36 = vadd.f32 %v463_v24, %v251_v16  ;;  %v1938_v30 = vadd.f32 %v462_v61, %v250_v58  ;;  %1379 = vmatpush3.bf16.msra.mxu1 %v1426_v10 }
  0xda   :  { %v1944_v42 = vsel %vm1025_vm1, %v1010_v32, %v1009_v25  ;;  %v906_v35 = vrot.slane %v905_v34, 1  ;;  %v534_v52 = vpop.permute.xlu1 %533  ;;  %v530_v5 = vpop.permute.xlu0 %529  ;;  %1399 = vmatpush3.bf16.msra.mxu0 %v1425_v44 }
  0xdb   :  { %v687_v7 = vmul.f32 %v1816_v40, %v534_v52  ;;  %v686_v29 = vmul.f32 %v1816_v40, %v530_v5  ;;  %v970_v46 = vpack.c.bf16 %v898_v28, %v898_v28 }
  0xdc   :  { %v907_v43 = vmax.f32 %v905_v34, %v906_v35 }
  0xdd   :  { %v719_v47 = vadd.f32 %v687_v7, %v1786_v60  ;;  %v718_v49 = vadd.f32 %v686_v29, %v1788_v63  ;;  %v1017_v63 = vunpack.c.l.b16 %v970_v46 }
  0xde   :  { %v971_v9 = vpack.c.bf16 %v907_v43, %v907_v43  ;;  %v622_v53 = vpop.permute.xlu1 %621  ;;  %v618_v37 = vpop.permute.xlu0 %617 }
  0xdf   :  { %v758_v11 = vadd.f32 %v1851_v12, %v719_v47  ;;  %v757_v54 = vadd.f32 %v1851_v12, %v718_v49  ;;  %v703_v55 = vmul.f32 %v1816_v40, %v622_v53  ;;  %v702_v60 = vmul.f32 %v1816_v40, %v618_v37 }
  0xe0   :  { %v1018_v45 = vunpack.c.l.b16 %v971_v9 }
  0xe1   :  { %v790_v56 = vmax.f32 %v758_v11, 0.0  ;;  %v789_v57 = vmax.f32 %v757_v54, 0.0  ;;  %v735_v6 = vadd.f32 %v703_v55, %v1796_v18  ;;  %v734_v0 = vadd.f32 %v702_v60, %v1798_v19 }
  0xe2   :  { %v1971_v59 = vsel %vm1025_vm1, %v1018_v45, %v1017_v63  ;;  %v111_v62 = vpop.permute.xlu1 %110  ;;  %v107_v39 = vpop.permute.xlu0 %106 }
  0xe3   :  { %v837_v1 = vsel %vm817_vm0, %v790_v56, -inf  ;;  %v836_v22 = vsel %vm817_vm0, %v789_v57, -inf  ;;  %v774_v23 = vadd.f32 %v1851_v12, %v735_v6  ;;  %v773_v26 = vadd.f32 %v1851_v12, %v734_v0 }
  0xe4   :  { %v838_v8 = vmax.f32 %v836_v22, %v837_v1  ;;  %v237_v28 = vmul.f32 %v1740_v15, %v111_v62  ;;  %v236_v31 = vmul.f32 %v1740_v15, %v107_v39 }
  0xe5   :  { %v806_v16 = vmax.f32 %v774_v23, 0.0  ;;  %v805_v17 = vmax.f32 %v773_v26, 0.0 }
  0xe6   :  { %v839_v18 = vrot.slane %v838_v8, 4  ;;  %v199_v20 = vpop.permute.xlu1 %198  ;;  %v195_v19 = vpop.permute.xlu0 %194 }
  0xe7   :  { %v909_v21 = vsel %vm817_vm0, %v806_v16, -inf  ;;  %v908_v58 = vsel %vm817_vm0, %v805_v17, -inf  ;;  %v253_v49 = vmul.f32 %v1740_v15, %v199_v20  ;;  %v252_v9 = vmul.f32 %v1740_v15, %v195_v19 }
  0xe8   :  { %v840_v24 = vmax.f32 %v838_v8, %v839_v18  ;;  %v910_v61 = vmax.f32 %v908_v58, %v909_v21 }
  0xea   :  { %v841_v25 = vrot.slane %v840_v24, 2  ;;  %v911_v32 = vrot.slane %v910_v61, 4  ;;  %v323_v34 = vpop.permute.xlu1 %322  ;;  %v319_v27 = vpop.permute.xlu0 %318 }
  0xeb   :  { %v449_v35 = vmul.f32 %v1736_v14, %v323_v34  ;;  %v448_v52 = vmul.f32 %v1736_v14, %v319_v27 }
  0xec   :  { %v842_v5 = vmax.f32 %v840_v24, %v841_v25  ;;  %v912_v48 = vmax.f32 %v910_v61, %v911_v32 }
  0xed   :  { %v1983_v7 = vadd.f32 %v449_v35, %v237_v28  ;;  %v1985_v29 = vadd.f32 %v448_v52, %v236_v31 }
  0xee   :  { %v843_v44 = vrot.slane %v842_v5, 1  ;;  %v913_v46 = vrot.slane %v912_v48, 2  ;;  %v411_v43 = vpop.permute.xlu1 %410  ;;  %v407_v47 = vpop.permute.xlu0 %406 }
  0xef   :  { %v465_v53 = vmul.f32 %v1736_v14, %v411_v43  ;;  %v464_v37 = vmul.f32 %v1736_v14, %v407_v47 }
  0xf0   :  { %v844_v10 = vmax.f32 %v842_v5, %v843_v44  ;;  %v914_v11 = vmax.f32 %v912_v48, %v913_v46 }
  0xf1   :  { %v1991_v54 = vadd.f32 %v465_v53, %v253_v49  ;;  %v1993_v55 = vadd.f32 %v464_v37, %v252_v9 }
  0xf2   :  { %v964_v60 = vpack.c.bf16 %v844_v10, %v844_v10  ;;  %v915_v63 = vrot.slane %v914_v11, 1  ;;  %v545_v45 = vpop.permute.xlu1 %544  ;;  %v541_v56 = vpop.permute.xlu0 %540 }
  0xf3   :  { %v689_v57 = vmul.f32 %v1816_v40, %v545_v45  ;;  %v688_v6 = vmul.f32 %v1816_v40, %v541_v56 }
  0xf4   :  { %v1011_v0 = vunpack.c.l.b16 %v964_v60  ;;  %v916_v62 = vmax.f32 %v914_v11, %v915_v63 }
  0xf5   :  { %v721_v39 = vadd.f32 %v689_v57, %v1810_v38  ;;  %v720_v1 = vadd.f32 %v688_v6, %v1812_v41 }
  0xf6   :  { %v1028_v22 = vsel %vm1027_vm3, %v1011_v0, %v1944_v42  ;;  %v972_v23 = vpack.c.bf16 %v916_v62, %v916_v62  ;;  %v633_v26 = vpop.permute.xlu1 %632  ;;  %v629_v8 = vpop.permute.xlu0 %628 }
  0xf7   :  { %v760_v16 = vadd.f32 %v1851_v12, %v721_v39  ;;  %v759_v17 = vadd.f32 %v1851_v12, %v720_v1  ;;  %v705_v18 = vmul.f32 %v1816_v40, %v633_v26  ;;  %v704_v20 = vmul.f32 %v1816_v40, %v629_v8 }
  0xf8   :  { %v1019_v19 = vunpack.c.l.b16 %v972_v23 }
  0xf9   :  { %v792_v21 = vmax.f32 %v760_v16, 0.0  ;;  %v791_v58 = vmax.f32 %v759_v17, 0.0  ;;  %v737_v38 = vadd.f32 %v705_v18, %v1834_v50  ;;  %v736_v41 = vadd.f32 %v704_v20, %v1836_v51 }
  0xfa   :  { %v1040_v42 = vsel %vm1027_vm3, %v1019_v19, %v1971_v59  ;;  %v2009_v24 = vpop.permute.xlu1 %121  ;;  %v2011_v61 = vpop.permute.xlu0 %117 }
  0xfb   :  { %v846_v25 = vsel %vm817_vm0, %v792_v21, -inf  ;;  %v845_v32 = vsel %vm817_vm0, %v791_v58, -inf  ;;  %v776_v34 = vadd.f32 %v1851_v12, %v737_v38  ;;  %v775_v27 = vadd.f32 %v1851_v12, %v736_v41 }
  0xfc   :  { %v847_v28 = vmax.f32 %v845_v32, %v846_v25 }
  0xfd   :  { %v808_v31 = vmax.f32 %v776_v34, 0.0  ;;  %v807_v50 = vmax.f32 %v775_v27, 0.0 }
  0xfe   :  { %v848_v35 = vrot.slane %v847_v28, 4  ;;  %v2017_v51 = vpop.permute.xlu1 %209  ;;  %v2019_v52 = vpop.permute.xlu0 %205 }
  0xff   :  { %v918_v59 = vsel %vm817_vm0, %v808_v31, -inf  ;;  %v917_v5 = vsel %vm817_vm0, %v807_v50, -inf }
 0x100   :  { %v849_v48 = vmax.f32 %v847_v28, %v848_v35  ;;  %v919_v44 = vmax.f32 %v917_v5, %v918_v59 }
 0x102   :  { %v850_v46 = vrot.slane %v849_v48, 2  ;;  %v920_v43 = vrot.slane %v919_v44, 4  ;;  %v2023_v47 = vpop.permute.xlu1 %333  ;;  %v2025_v49 = vpop.permute.xlu0 %329 }
 0x104   :  { %v851_v9 = vmax.f32 %v849_v48, %v850_v46  ;;  %v921_v53 = vmax.f32 %v919_v44, %v920_v43 }
 0x106   :  { %v852_v37 = vrot.slane %v851_v9, 1  ;;  %v922_v10 = vrot.slane %v921_v53, 2  ;;  %v2027_v11 = vpop.permute.xlu1 %421  ;;  %v2029_v60 = vpop.permute.xlu0 %417 }
 0x108   :  { %v853_v63 = vmax.f32 %v851_v9, %v852_v37  ;;  %v923_v45 = vmax.f32 %v921_v53, %v922_v10 }
 0x10a   :  { %v965_v56 = vpack.c.bf16 %v853_v63, %v853_v63  ;;  %v924_v57 = vrot.slane %v923_v45, 1  ;;  %v556_v6 = vpop.permute.xlu1 %555  ;;  %v552_v0 = vpop.permute.xlu0 %551 }
 0x10b   :  { %v691_v62 = vmul.f32 %v1816_v40, %v556_v6  ;;  %v690_v39 = vmul.f32 %v1816_v40, %v552_v0 }
 0x10c   :  { %v1012_v1 = vunpack.c.l.b16 %v965_v56  ;;  %v925_v23 = vmax.f32 %v923_v45, %v924_v57 }
 0x10d   :  { %v723_v26 = vadd.f32 %v691_v62, %v1920_v13  ;;  %v722_v8 = vadd.f32 %v690_v39, %v1922_v2 }
 0x10e   :  { %v973_v16 = vpack.c.bf16 %v925_v23, %v925_v23  ;;  %v644_v17 = vpop.permute.xlu1 %643  ;;  %v640_v18 = vpop.permute.xlu0 %639  ;;  %v1030_v20 = vsel %vm1029_vm4, %v1012_v1, %v1028_v22 }
 0x10f   :  { %v762_v19 = vadd.f32 %v1851_v12, %v723_v26  ;;  %v761_v21 = vadd.f32 %v1851_v12, %v722_v8  ;;  %v707_v58 = vmul.f32 %v1816_v40, %v644_v17  ;;  %v706_v38 = vmul.f32 %v1816_v40, %v640_v18 }
 0x110   :  { %v1020_v41 = vunpack.c.l.b16 %v973_v16 }
 0x111   :  { %v794_v25 = vmax.f32 %v762_v19, 0.0  ;;  %v793_v32 = vmax.f32 %v761_v21, 0.0  ;;  %v739_v13 = vadd.f32 %v707_v58, %v1936_v36  ;;  %v738_v2 = vadd.f32 %v706_v38, %v1938_v30 }
 0x112   :  { %v2042_v34 = vpop.permute.xlu1 %1128  ;;  %v2044_v27 = vpop.permute.xlu0 %1121  ;;  %v1041_v22 = vsel %vm1029_vm4, %v1020_v41, %v1040_v42  ;;  %v1115_v41 = vld [vmem:[%s2201_s6] sm:$0x7] }
 0x113   :  { %v855_v28 = vsel %vm817_vm0, %v794_v25, -inf  ;;  %v854_v31 = vsel %vm817_vm0, %v793_v32, -inf  ;;  %v778_v50 = vadd.f32 %v1851_v12, %v739_v13  ;;  %v777_v35 = vadd.f32 %v1851_v12, %v738_v2 }
 0x114   :  { %v856_v59 = vmax.f32 %v854_v31, %v855_v28  ;;  %v1153_v32 = vrot.slane %v1115_v41, %v1523_v3  ;;  %v451_v13 = vmul.f32 %v1736_v14, %v2023_v47  ;;  %v450_v2 = vmul.f32 %v1736_v14, %v2025_v49 }
 0x115   :  { %v810_v5 = vmax.f32 %v778_v50, 0.0  ;;  %v809_v48 = vmax.f32 %v777_v35, 0.0  ;;  %v467_v28 = vmul.f32 %v1736_v14, %v2027_v11  ;;  %v1133_v31 = vrot.slane %v1115_v41, %v1526_v4 }
 0x116   :  { %v857_v36 = vrot.slane %v856_v59, 4  ;;  %v1149_v44 = vpop.permute.xlu1 %1148  ;;  %v1142_v30 = vpop.permute.xlu0 %1141  ;;  %v238_v49 = vmul.f32 %v1740_v15, %v2011_v61  ;;  %v255_v4 = vmul.f32 %v1740_v15, %v2017_v51  ;;  %v466_v11 = vmul.f32 %v1736_v14, %v2029_v60 }
 0x117   :  { %v927_v46 = vsel %vm817_vm0, %v810_v5, -inf  ;;  %v926_v43 = vsel %vm817_vm0, %v809_v48, -inf  ;;  %v2081_v5 = vrot.slane %v1115_v41, %v1626_v33  ;;  %v1154_v61 = vmul.f32 %v1153_v32, %v1142_v30 }
 0x118   :  { %v858_v9 = vmax.f32 %v856_v59, %v857_v36  ;;  %v928_v42 = vmax.f32 %v926_v43, %v927_v46  ;;  %v239_v59 = vmul.f32 %v1740_v15, %v2009_v24  ;;  %v254_v24 = vmul.f32 %v1740_v15, %v2019_v52 }
 0x119   :  { %v482_v33 = vadd.f32 %v450_v2, %v238_v49  ;;  %v499_v43 = vadd.f32 %v467_v28, %v255_v4 }
 0x11a   :  { %v859_v53 = vrot.slane %v858_v9, 2  ;;  %v929_v37 = vrot.slane %v928_v42, 4  ;;  %v133_v10 = vpop.permute.xlu1 %132  ;;  %v129_v63 = vpop.permute.xlu0 %128  ;;  %v483_v48 = vadd.f32 %v451_v13, %v239_v59 }
 0x11c   :  { %v860_v45 = vmax.f32 %v858_v9, %v859_v53  ;;  %v930_v56 = vmax.f32 %v928_v42, %v929_v37  ;;  %v1135_v9 = vmul.f32 %v1133_v31, %v2042_v34  ;;  %v498_v37 = vadd.f32 %v466_v11, %v254_v24 }
 0x11e   :  { %v861_v57 = vrot.slane %v860_v45, 1  ;;  %v931_v6 = vrot.slane %v930_v56, 2  ;;  %v221_v0 = vpop.permute.xlu1 %220  ;;  %v2053_v62 = vpop.permute.xlu0 %216 }
 0x120   :  { %v862_v39 = vmax.f32 %v860_v45, %v861_v57  ;;  %v932_v1 = vmax.f32 %v930_v56, %v931_v6 }
 0x122   :  { %v966_v23 = vpack.c.bf16 %v862_v39, %v862_v39  ;;  %v933_v26 = vrot.slane %v932_v1, 1  ;;  %v345_v8 = vpop.permute.xlu1 %344  ;;  %v2055_v16 = vpop.permute.xlu0 %340  ;;  %v241_v39 = vmul.f32 %v1740_v15, %v133_v10 }
 0x124   :  { %v1013_v17 = vunpack.c.l.b16 %v966_v23  ;;  %v934_v18 = vmax.f32 %v932_v1, %v933_v26  ;;  %v240_v1 = vmul.f32 %v1740_v15, %v129_v63  ;;  %v257_v23 = vmul.f32 %v1740_v15, %v221_v0 }
 0x125   :  { %v452_v0 = vmul.f32 %v1736_v14, %v2055_v16 }
 0x126   :  { %v974_v19 = vpack.c.bf16 %v934_v18, %v934_v18  ;;  %v433_v21 = vpop.permute.xlu1 %432  ;;  %v2057_v58 = vpop.permute.xlu0 %428  ;;  %v2060_v38 = vsel %vm1031_vm5, %v1013_v17, %v1030_v20 }
 0x127   :  { %v469_v13 = vmul.f32 %v1736_v14, %v433_v21  ;;  %v484_v21 = vadd.f32 %v452_v0, %v240_v1  ;;  %v468_v11 = vmul.f32 %v1736_v14, %v2057_v58 }
 0x128   :  { %v1021_v25 = vunpack.c.l.b16 %v974_v19 }
 0x12a   :  { %v567_v20 = vpop.permute.xlu1 %566  ;;  %v563_v50 = vpop.permute.xlu0 %562  ;;  %v2074_v35 = vsel %vm1031_vm5, %v1021_v25, %v1041_v22  ;;  %v1155_v22 = vmul.f32 %v1153_v32, %v1149_v44 }
 0x12b   :  { %v693_v3 = vmul.f32 %v1816_v40, %v567_v20  ;;  %v692_v47 = vmul.f32 %v1816_v40, %v563_v50 }
 0x12c   :  { %v1157_v45 = vadd.f32 %v1155_v22, %v1135_v9 }
 0x12d   :  { %v725_v36 = vadd.f32 %v693_v3, %v1983_v7  ;;  %v724_v46 = vadd.f32 %v692_v47, %v1985_v29  ;;  %v1134_v7 = vmul.f32 %v1133_v31, %v2044_v27  ;;  %v453_v29 = vmul.f32 %v1736_v14, %v345_v8 }
 0x12e   :  { %v655_v42 = vpop.permute.xlu1 %654  ;;  %v651_v53 = vpop.permute.xlu0 %650 }
 0x12f   :  { %v764_v51 = vadd.f32 %v1851_v12, %v725_v36  ;;  %v763_v60 = vadd.f32 %v1851_v12, %v724_v46  ;;  %v709_v44 = vmul.f32 %v1816_v40, %v655_v42  ;;  %v708_v52 = vmul.f32 %v1816_v40, %v651_v53 }
 0x130   :  { %v2102_v6 = vadd.f32 %v1154_v61, %v1134_v7  ;;  %v2115_v41 = vadd.f32 %v453_v29, %v241_v39  ;;  %v2128_v61 = vadd.f32 %v469_v13, %v257_v23 }
 0x131   :  { %v796_v56 = vmax.f32 %v764_v51, 0.0  ;;  %v795_v57 = vmax.f32 %v763_v60, 0.0  ;;  %v741_v34 = vadd.f32 %v709_v44, %v1991_v54  ;;  %v740_v30 = vadd.f32 %v708_v52, %v1993_v55 }
 0x132   :  { %v578_v26 = vpop.permute.xlu1 %577  ;;  %v574_v17 = vpop.permute.xlu0 %573  ;;  %v256_v55 = vmul.f32 %v1740_v15, %v2053_v62 }
 0x133   :  { %v864_v27 = vsel %vm817_vm0, %v796_v56, -inf  ;;  %v863_v8 = vsel %vm817_vm0, %v795_v57, -inf  ;;  %v780_v18 = vadd.f32 %v1851_v12, %v741_v34  ;;  %v779_v54 = vadd.f32 %v1851_v12, %v740_v30 }
 0x134   :  { %v865_v19 = vmax.f32 %v863_v8, %v864_v27  ;;  %v695_v10 = vmul.f32 %v1816_v40, %v578_v26  ;;  %v694_v63 = vmul.f32 %v1816_v40, %v574_v17  ;;  %v500_v57 = vadd.f32 %v468_v11, %v256_v55 }
 0x135   :  { %v812_v25 = vmax.f32 %v780_v18, 0.0  ;;  %v811_v32 = vmax.f32 %v779_v54, 0.0 }
 0x136   :  { %v866_v2 = vrot.slane %v865_v19, 4  ;;  %v727_v28 = vadd.f32 %v695_v10, %v483_v48  ;;  %v726_v31 = vadd.f32 %v694_v63, %v482_v33  ;;  %v666_v20 = vpop.permute.xlu1 %665  ;;  %v662_v50 = vpop.permute.xlu0 %661 }
 0x137   :  { %v936_v15 = vsel %vm817_vm0, %v812_v25, -inf  ;;  %v935_v62 = vsel %vm817_vm0, %v811_v32, -inf  ;;  %v711_v59 = vmul.f32 %v1816_v40, %v666_v20  ;;  %v710_v3 = vmul.f32 %v1816_v40, %v662_v50 }
 0x138   :  { %v867_v47 = vmax.f32 %v865_v19, %v866_v2  ;;  %v937_v49 = vmax.f32 %v935_v62, %v936_v15  ;;  %v766_v16 = vadd.f32 %v1851_v12, %v727_v28  ;;  %v765_v4 = vadd.f32 %v1851_v12, %v726_v31 }
 0x139   :  { %v743_v22 = vadd.f32 %v711_v59, %v499_v43  ;;  %v742_v24 = vadd.f32 %v710_v3, %v498_v37  ;;  %v1348_v43 = vld [vmem:[%s2202_s7] ss:$0 sm:$0xff] }
 0x13a   :  { %v868_v48 = vrot.slane %v867_v47, 2  ;;  %v938_v36 = vrot.slane %v937_v49, 4  ;;  %v798_v46 = vmax.f32 %v766_v16, 0.0  ;;  %v797_v33 = vmax.f32 %v765_v4, 0.0  ;;  %v1171_v9 = vpop.permute.xlu1 %1170 }
 0x13b   :  { %v782_v42 = vadd.f32 %v1851_v12, %v743_v22  ;;  %v781_v53 = vadd.f32 %v1851_v12, %v742_v24  ;;  %v1177_v51 = vmul.f32 %v2081_v5, %v1171_v9  ;;  %v1164_v60 = vpop.permute.xlu0 %1163 }
 0x13c   :  { %v869_v44 = vmax.f32 %v867_v47, %v868_v48  ;;  %v939_v52 = vmax.f32 %v937_v49, %v938_v36  ;;  %v873_v14 = vsel %vm817_vm0, %v798_v46, -inf  ;;  %v872_v58 = vsel %vm817_vm0, %v797_v33, -inf }
 0x13d   :  { %v874_v37 = vmax.f32 %v872_v58, %v873_v14  ;;  %v814_v7 = vmax.f32 %v782_v42, 0.0  ;;  %v813_v29 = vmax.f32 %v781_v53, 0.0  ;;  %v1179_v56 = vadd.f32 %v1177_v51, %v1157_v45 }
 0x13e   :  { %v870_v34 = vrot.slane %v869_v44, 1  ;;  %v940_v30 = vrot.slane %v939_v52, 2  ;;  %v1176_v39 = vmul.f32 %v2081_v5, %v1164_v60  ;;  %v589_v1 = vpop.permute.xlu1 %588 }
 0x13f   :  { %v875_v23 = vrot.slane %v874_v37, 4  ;;  %v945_v26 = vsel %vm817_vm0, %v814_v7, -inf  ;;  %v944_v17 = vsel %vm817_vm0, %v813_v29, -inf  ;;  %v2141_v27 = vadd.f32 %v1348_v43, %v1179_v56  ;;  %v585_v8 = vpop.permute.xlu0 %584 }
 0x140   :  { %v871_v18 = vmax.f32 %v869_v44, %v870_v34  ;;  %v941_v54 = vmax.f32 %v939_v52, %v940_v30  ;;  %v946_v19 = vmax.f32 %v944_v17, %v945_v26  ;;  %v1178_v10 = vadd.f32 %v1176_v39, %v2102_v6 }
 0x141   :  { %v876_v45 = vmax.f32 %v874_v37, %v875_v23  ;;  %v1190_v55 = vmul.f32 %v2141_v27, %v2141_v27  ;;  %v697_v5 = vmul.f32 %v1816_v40, %v589_v1  ;;  %v696_v63 = vmul.f32 %v1816_v40, %v585_v8 }
 0x142   :  { %v967_v0 = vpack.c.bf16 %v871_v18, %v871_v18  ;;  %v942_v25 = vrot.slane %v941_v54, 1  ;;  %v947_v32 = vrot.slane %v946_v19, 4  ;;  %v2148_v13 = vadd.f32 %v1348_v43, %v1178_v10  ;;  %v677_v20 = vpop.permute.xlu1 %676 }
 0x143   :  { %v877_v2 = vrot.slane %v876_v45, 2  ;;  %v1192_v28 = vmul.f32 %v1190_v55, %v2141_v27  ;;  %v729_v31 = vadd.f32 %v697_v5, %v2115_v41  ;;  %v728_v6 = vadd.f32 %v696_v63, %v484_v21  ;;  %v673_v3 = vpop.permute.xlu0 %672 }
 0x144   :  { %v1014_v50 = vunpack.c.l.b16 %v967_v0  ;;  %v943_v15 = vmax.f32 %v941_v54, %v942_v25  ;;  %v948_v62 = vmax.f32 %v946_v19, %v947_v32  ;;  %v1189_v59 = vmul.f32 %v2148_v13, %v2148_v13 }
 0x145   :  { %v878_v47 = vmax.f32 %v876_v45, %v877_v2  ;;  %v1194_v49 = vmul.f32 0.044715, %v1192_v28  ;;  %v768_v16 = vadd.f32 %v1851_v12, %v729_v31  ;;  %v767_v4 = vadd.f32 %v1851_v12, %v728_v6 }
 0x146   :  { %v975_v11 = vpack.c.bf16 %v943_v15, %v943_v15  ;;  %v949_v22 = vrot.slane %v948_v62, 2  ;;  %v1191_v41 = vmul.f32 %v1189_v59, %v2148_v13  ;;  %v713_v21 = vmul.f32 %v1816_v40, %v677_v20 }
 0x147   :  { %v879_v24 = vrot.slane %v878_v47, 1  ;;  %v800_v48 = vmax.f32 %v768_v16, 0.0  ;;  %v799_v36 = vmax.f32 %v767_v4, 0.0  ;;  %v712_v46 = vmul.f32 %v1816_v40, %v673_v3 }
 0x148   :  { %v1022_v33 = vunpack.c.l.b16 %v975_v11  ;;  %v950_v9 = vmax.f32 %v948_v62, %v949_v22  ;;  %v1193_v42 = vmul.f32 0.044715, %v1191_v41  ;;  %v745_v53 = vadd.f32 %v713_v21, %v2128_v61 }
 0x149   :  { %v880_v51 = vmax.f32 %v878_v47, %v879_v24  ;;  %v882_v60 = vsel %vm817_vm0, %v800_v48, -inf  ;;  %v881_v44 = vsel %vm817_vm0, %v799_v36, -inf  ;;  %v744_v52 = vadd.f32 %v712_v46, %v500_v57  ;;  %v1342_v36 = vld [vmem:[%s2200_s5] ss:$0 sm:$0xff]  ;;  %s1431_s5 = scalar_lea.vmem %s1331_s14, 256 }
 0x14a   :  { %v951_v14 = vrot.slane %v950_v9, 1  ;;  %v883_v58 = vmax.f32 %v881_v44, %v882_v60  ;;  %v784_v43 = vadd.f32 %v1851_v12, %v745_v53  ;;  %v1195_v37 = vadd.f32 %v1193_v42, %v2148_v13  ;;  %p1432_p0 = scmp.ne.s32.totalorder %s1331_s14, %s1431_s5  ;;  %p1437_p2 = scmp.lt.s32.totalorder %s1431_s5, %s1431_s5 }
 0x14b   :  { %v968_v7 = vpack.c.bf16 %v880_v51, %v880_v51  ;;  %v783_v40 = vadd.f32 %v1851_v12, %v744_v52  ;;  %v1196_v29 = vadd.f32 %v1194_v49, %v2141_v27  ;;  %v1034_v61 = vsel %vm1033_vm6, %v1014_v50, %v2060_v38 }
 0x14c   :  { %v952_v56 = vmax.f32 %v950_v9, %v951_v14  ;;  %v884_v34 = vrot.slane %v883_v58, 4  ;;  %v816_v30 = vmax.f32 %v784_v43, 0.0  ;;  %v1197_v39 = vmul.f32 0.7978846, %v1195_v37  ;;  %p1438_p3 = por %p1437_p2, %p1436_p1 }
 0x14d   :  { %v1015_v1 = vunpack.c.l.b16 %v968_v7  ;;  %v815_v57 = vmax.f32 %v783_v40, 0.0  ;;  %v1198_v23 = vmul.f32 0.7978846, %v1196_v29  ;;  %v1043_v26 = vsel %vm1033_vm6, %v1022_v33, %v2074_v35 }
 0x14e   :  { %v976_v17 = vpack.c.bf16 %v952_v56, %v952_v56  ;;  %v885_v8 = vmax.f32 %v883_v58, %v884_v34  ;;  %v954_v18 = vsel %vm817_vm0, %v816_v30, -inf  ;;  %1427 = vtanh.f32 %v1197_v39  ;;  %p1439_p4 = pnand %p1438_p3, %p1432_p0 }
 0x14f   :  { %v953_v12 = vsel %vm817_vm0, %v815_v57, -inf  ;;  %1429 = vtanh.f32 %v1198_v23  ;;  %v1036_v38 = vsel %vm1035_vm7, %v1015_v1, %v1034_v61 }
 0x150   :  { %v1023_v54 = vunpack.c.l.b16 %v976_v17  ;;  %v886_v19 = vrot.slane %v885_v8, 2  ;;  %v955_v10 = vmax.f32 %v953_v12, %v954_v18 }
 0x152   :  { %v887_v45 = vmax.f32 %v885_v8, %v886_v19  ;;  %v956_v55 = vrot.slane %v955_v10, 4  ;;  %v1044_v5 = vsel %vm1035_vm7, %v1023_v54, %v1043_v26 }
 0x154   :  { %v888_v63 = vrot.slane %v887_v45, 1  ;;  %v957_v0 = vmax.f32 %v955_v10, %v956_v55 }
 0x156   :  { %v958_v35 = vrot.slane %v957_v0, 2  ;;  %v889_v25 = vmax.f32 %v887_v45, %v888_v63 }
 0x158   :  { %v1428_v32 = vpop.eup %1427  ;;  %v959_v2 = vmax.f32 %v957_v0, %v958_v35  ;;  %v969_v50 = vpack.c.bf16 %v889_v25, %v889_v25 }
 0x159   :  { %v1430_v28 = vpop.eup %1429  ;;  %v1201_v31 = vadd.f32 1.0, %v1428_v32 }
 0x15a   :  { %v960_v6 = vrot.slane %v959_v2, 1  ;;  %v1202_v20 = vadd.f32 1.0, %v1430_v28  ;;  %v1016_v16 = vunpack.c.l.b16 %v969_v50 }
 0x15b   :  { %v1203_v15 = vmul.f32 0.5, %v1201_v31 }
 0x15c   :  { %v1204_v62 = vmul.f32 0.5, %v1202_v20  ;;  %v961_v59 = vmax.f32 %v959_v2, %v960_v6  ;;  %v1038_v22 = vsel %vm1037_vm8, %v1016_v16, %v1036_v38 }
 0x15d   :  { %v1205_v3 = vmul.f32 %v1203_v15, %v2148_v13 }
 0x15e   :  { %v1206_v47 = vmul.f32 %v1204_v62, %v2141_v27  ;;  %v977_v49 = vpack.c.bf16 %v961_v59, %v961_v59  ;;  %v1349_v27 = vld [vmem:[%s2204_s9] ss:$0 sm:$0xff] }
 0x160   :  { %v1207_v4 = vpack.c.bf16 %v1206_v47, %v1205_v3  ;;  %v1024_v11 = vunpack.c.l.b16 %v977_v49 }
 0x162   :  { %1401 = vmatmul.mubr.bf16.vlgmr.msra.gmra.mrb[0].mxu0 %v1207_v4  ;;  %v1045_v41 = vsel %vm1037_vm8, %v1024_v11, %v1044_v5 }
 0x163   :  { %v1046_v21 = vpack.c.b16 %v1045_v41, %v1038_v22 }
 0x165   :  { %1381 = vmatmul.mubr.msk.bf16.vlgmr.msra.gmra.mrb[0].mxu1 %vm817_vm0, %v1046_v21 }
 0x235   :  { %v1313_v24 = vpop.f32.mrb[0].mxu0 }
 0x236   :  { %v1402_v48 = vpop.f32.mrb[1].mxu0 }
 0x237   :  { %v1316_v13 = vpop.f32.mrb[2].mxu0 }
 0x238   :  { %v1108_v46 = vpop.f32.mrb[0].mxu1  ;;  %v1403_v33 = vpop.f32.mrb[3].mxu0 }
 0x239   :  { %v1109_v9 = vadd.f32 %v1342_v36, %v1108_v46  ;;  %v1382_v42 = vpop.f32.mrb[1].mxu1 }
 0x23a   :  { %v1111_v53 = vpop.f32.mrb[2].mxu1 }
 0x23b   :  { %v1405_v51 = vadd.f32 %v1349_v27, %v1109_v9  ;;  %v1112_v60 = vadd.f32 %v1342_v36, %v1111_v53  ;;  %v1383_v44 = vpop.f32.mrb[3].mxu1 }
 0x23d   :  { %v1406_v52 = vadd.f32 %v1405_v51, %v1313_v24  ;;  %v1408_v14 = vadd.f32 %v1349_v27, %v1112_v60 }
 0x23f   :  { %1323 = vst.msk [vmem:[#allocation2] sm:$0xff] %vm1322_vm9, %v1406_v52  ;;  %v1409_v58 = vadd.f32 %v1408_v14, %v1316_v13 }
 0x241   :  { %1324 = vst.msk [vmem:[#allocation2 + $0x8] sm:$0xff] %vm1322_vm9, %v1409_v58 }
 0x242   :  { %1442 = shalt.err (!%p1439_p4)
}
 0x243   :  { %s1443_s16 = scalar_lea.hbm %s2205_s10, 256 }
 0x244   :  { %p1444_p5 = scmp.ne.s32.totalorder %s2205_s10, %s1443_s16  ;;  %p1447_p6 = scmp.lt.u32.totalorder %s1443_s16, %s2205_s10 }
 0x246   :  { %p1449_p7 = pnand %p1447_p6, %p1444_p5 }
 0x248   :  { %1452 = shalt.err (!%p1449_p7)
}
 0x249   :  { %s1458_s21 = smov 128   ;;  %s1459_s22 = smov 8  }
 0x24a   :  { %1336 = dma.vmem_to_hbm [thread:$0]  %s1331_s14, 256, %s2205_s10, [#allocation3], %s1458_s21, %s1458_s21, %s1459_s22  }
 0x24b   :  { %1453 = dma.done.wait [#allocation3], 256  }
 0x24c   :  { %1454 = vsyncadd [#allocation3], 4294967040 }
 0x24d   :  { %1340 = vsyncpa [#allocation3], 1 }

// kernel: tramba_ultra_forward.5
= control target key start
LH: loop header
LB: loop body
LE: loop exit
PB: predicated region body
PF: predicated region fallthrough
CT: control target
= control target key end

     0   :  { %s4852_s0 = inlined_call_operand.hbm [shape: f32[2,8,32], index: 0, kind: input, shape index: {}]   ;;  %s4853_s1 = inlined_call_operand.hbm [shape: f32[2,1,32], index: 1, kind: input, shape index: {}]   ;;  %s4854_s2 = inlined_call_operand.hbm [shape: f32[2,1,32], index: 2, kind: input, shape index: {}]   ;;  %s4855_s3 = inlined_call_operand.hbm [shape: bf16[2,32,32], index: 3, kind: input, shape index: {}]   ;;  %s4856_s4 = inlined_call_operand.hbm [shape: f32[2,1,32], index: 4, kind: input, shape index: {}]   ;;  %s4857_s5 = inlined_call_operand.hbm [shape: bf16[2,32,32], index: 5, kind: input, shape index: {}]   ;;  %s4858_s6 = inlined_call_operand.hbm [shape: f32[2,1,32], index: 6, kind: input, shape index: {}]   ;;  %s4859_s7 = inlined_call_operand.hbm [shape: bf16[2,32,32], index: 7, kind: input, shape index: {}]   ;;  %s4860_s8 = inlined_call_operand.hbm [shape: f32[2,1,32], index: 8, kind: input, shape index: {}]   ;;  %s4861_s9 = inlined_call_operand.hbm [shape: bf16[2,32,32], index: 9, kind: input, shape index: {}]   ;;  %s4862_s10 = inlined_call_operand.hbm [shape: f32[2,1,32], index: 10, kind: input, shape index: {}]   ;;  %s4863_s11 = inlined_call_operand.hbm [shape: f32[2,1,32], index: 11, kind: input, shape index: {}]   ;;  %s4864_s12 = inlined_call_operand.hbm [shape: f32[2,1,32], index: 12, kind: input, shape index: {}]   ;;  %s4865_s13 = inlined_call_operand.hbm [shape: bf16[2,32,128], index: 13, kind: input, shape index: {}]   ;;  %s4866_s14 = inlined_call_operand.hbm [shape: f32[2,1,128], index: 14, kind: input, shape index: {}]   ;;  %s4867_s15 = inlined_call_operand.hbm [shape: bf16[2,128,32], index: 15, kind: input, shape index: {}]   ;;  %s4868_s16 = inlined_call_operand.hbm [shape: f32[2,1,32], index: 16, kind: input, shape index: {}]   ;;  %s4869_s17 = inlined_call_operand.hbm [shape: bf16[32,32], index: 17, kind: input, shape index: {}]   ;;  %s4870_s18 = inlined_call_operand.hbm [shape: f32[1,32], index: 18, kind: input, shape index: {}]   ;;  %s4871_s19 = inlined_call_operand.hbm [shape: f32[1,32], index: 19, kind: input, shape index: {}]   ;;  %s4872_s20 = inlined_call_operand.<no memory space> [shape: f32[1,1], index: 20, kind: input, shape index: {}]   ;;  %s4873_s21 = inlined_call_operand.hbm [shape: f32[2,8,32], index: 21, kind: output, shape index: {0}]   ;;  %s4874_s22 = inlined_call_operand.hbm [shape: f32[2,1,8], index: 22, kind: output, shape index: {1}]  }
   0x1   :  { %4912 = sst [smem:[#allocation58_spill]] %s4852_s0  ;;  %v28_v0 = vstv %s4872_s20 }
   0x2   :  { %4913 = sst [smem:[#allocation59_spill]] %s4853_s1  ;;  %29 = vst [vmem:[#allocation2] sm:$0x1] %v28_v0 }
   0x3   :  { %4914 = sst [smem:[#allocation60_spill]] %s4854_s2 }
   0x4   :  { %4915 = sst [smem:[#allocation61_spill]] %s4855_s3 }
   0x5   :  { %4916 = sst [smem:[#allocation62_spill]] %s4856_s4 }
   0x6   :  { %4917 = sst [smem:[#allocation63_spill]] %s4857_s5 }
   0x7   :  { %4918 = sst [smem:[#allocation64_spill]] %s4858_s6 }
   0x8   :  { %4919 = sst [smem:[#allocation65_spill]] %s4859_s7 }
   0x9   :  { %4920 = sst [smem:[#allocation66_spill]] %s4860_s8 }
   0xa   :  { %4921 = sst [smem:[#allocation67_spill]] %s4862_s10 }
   0xb   :  { %4922 = sst [smem:[#allocation68_spill]] %s4864_s12 }
   0xc   :  { %4923 = sst [smem:[#allocation69_spill]] %s4866_s14 }
   0xd   :  { %4924 = sst [smem:[#allocation70_spill]] %s4868_s16 }
   0xe   :  { %4925 = sst [smem:[#allocation71_spill]] %s4869_s17 }
   0xf   :  { %4926 = sst [smem:[#allocation72_spill]] %s4870_s18 }
  0x10   :  { %4927 = sst [smem:[#allocation73_spill]] %s4871_s19 }
  0x11   :  { %4928 = sst [smem:[#allocation74_spill]] %s4873_s21 }
  0x12   :  { %4929 = sst [smem:[#allocation75_spill]] %s4874_s22 }
  0x13   :  { %30 = vsyncpa [#allocation4], 0 }
  0x14   :  { %31 = vsyncpa [#allocation7], 0 }
  0x15   :  { %33 = vsyncpa [#allocation7 + $0x1], 0 }
  0x16   :  { %34 = vsyncpa [#allocation10], 0 }
  0x17   :  { %36 = vsyncpa [#allocation10 + $0x1], 0 }
  0x18   :  { %37 = vsyncpa [#allocation13], 0 }
  0x19   :  { %39 = vsyncpa [#allocation13 + $0x1], 0 }
  0x1a   :  { %40 = vsyncpa [#allocation16], 0 }
  0x1b   :  { %42 = vsyncpa [#allocation16 + $0x1], 0 }
  0x1c   :  { %43 = vsyncpa [#allocation19], 0 }
  0x1d   :  { %45 = vsyncpa [#allocation19 + $0x1], 0 }
  0x1e   :  { %46 = vsyncpa [#allocation22], 0 }
  0x1f   :  { %48 = vsyncpa [#allocation22 + $0x1], 0 }
  0x20   :  { %49 = vsyncpa [#allocation25], 0 }
  0x21   :  { %51 = vsyncpa [#allocation25 + $0x1], 0 }
  0x22   :  { %52 = vsyncpa [#allocation28], 0 }
  0x23   :  { %54 = vsyncpa [#allocation28 + $0x1], 0 }
  0x24   :  { %55 = vsyncpa [#allocation31], 0 }
  0x25   :  { %56 = vsyncpa [#allocation34], 0 }
  0x26   :  { %57 = vsyncpa [#allocation5], 0 }
  0x27   :  { %58 = vsyncpa [#allocation37], 0  ;;  %s3925_s20 = smov 0   ;;  %s3927_s29 = smov 0  }
  0x28   :  { %s3929_s30 = smov 0   ;;  %s3931_s4 = smov 0  }
  0x29   :  { %s3933_s0 = smov 0   ;;  %s3935_s23 = smov 0  }
  0x2a LB: > { %4930 = sst [smem:[#allocation51_spill]] %s3752_s29  ;;  %s3954_s1 = sadd.s32 4294967295, %s3768_s23   ;;  %s3768_s23 = sphi %s3935_s23, %s64_s23   ;;  %s3764_s0 = sphi %s3933_s0, %s5004_s0   ;;  %s3760_s4 = sphi %s3931_s4, %s5003_s4   ;;  %s3756_s30 = sphi %s3929_s30, %s5002_s30   ;;  %s3752_s29 = sphi %s3927_s29, %s5001_s29   ;;  %s3748_s20 = sphi %s3925_s20, %s4998_s20  }
  0x2b   : > { %4931 = sst [smem:[#allocation52_spill]] %s3760_s4  ;;  %s73_s5 = sadd.s32 1, %s3764_s0 }
  0x2c   : > { %4932 = sst [smem:[#allocation53_spill]] %s3954_s1  ;;  %p74_p0 = scmp.ge.s32.totalorder %s73_s5, 2 }
  0x2d   : > { %s109_s24 = sadd.s32 1, %s3756_s30  ;;  %p116_p1 = scmp.ne.s32.totalorder %s3756_s30, %s3752_s29 }
  0x2e   : > { %p117_p2 = scmp.eq.s32.totalorder %s3768_s23, 0  ;;  %s5006_s5 = smov (%p74_p0, %s73_s5), 0 }
  0x2f   : > { %4933 = sst [smem:[#allocation54_spill]] %s5006_s5  ;;  %p122_p4 = scmp.ne.s32.totalorder %s3752_s29, %s3748_s20 }
  0x30   : > { %p3963_p3 = por %p117_p2, %p116_p1  ;;  %s106_s25 = ssub.s32 %s3764_s0, %s5006_s5 }
  0x31   : > { %p4888_p5 = scmp.eq.s32.totalorder %s3954_s1, 0  ;;  %p107_p6 = scmp.eq.s32.totalorder %s106_s25, 0 }
  0x32   : > { %s4934_s6 = scalar_select %p3963_p3, 1, 0 }
  0x33   : > { %p2637_p7 = scmp.ge.s32.totalorder %s3768_s23, 1  ;;  %p3974_p8 = por %p4888_p5, %p122_p4 }
  0x34   : > { %p659_p9 = scmp.lt.s32.totalorder %s3768_s23, 3  ;;  %s3770_s3 = smov [#allocation30]  }
  0x35   : > { %s4935_s26 = scalar_select %p3974_p8, 1, 0 }
  0x36   : > { %s3980_s2 = scalar_select %p107_p6, %s3756_s30, %s109_s24  }
  0x37   : > { %4936 = sst [smem:[#allocation55_spill]] %s4935_s26  ;;  %p3982_p10 = pnand %p2637_p7, %p659_p9 }
  0x38   : > { %4937 = sst [smem:[#allocation56_spill]] %s3980_s2  ;;  %s687_s28 = sshll.u32 %s3770_s3, 4  ;;  %s688_s28 = int_to_ptr.vmem [resolvable:$true] %s687_s28 }
  0x39   : > { %s4938_s27 = scalar_select %p3982_p10, 1, 0 }
  0x3a   : > { %p2922_p11 = pneg %p3982_p10  ;;  %s3771_s25 = smov [#allocation3]  }
  0x3b   : > { %4939 = sst [smem:[#allocation57_spill]] %s4938_s27  ;;  %s674_s5 = sshll.u32 %s3771_s25, 4  ;;  %s675_s5 = int_to_ptr.vmem [resolvable:$true] %s674_s5 }
  0x3c   : > { %p3990_p12 = pnand %p2922_p11, %p4888_p5  ;;  %s4941_s17 = sld [smem:[#allocation71_spill]] }
  0x3e   : > { %p4002_p0 = pneg %p3990_p12 }
  0x42   : > { %s3058_s22 = scalar_lea.hbm %s4941_s17, 256 }
  0x43   : > { %p3059_p13 = scmp.ne.s32.totalorder %s4941_s17, %s3058_s22  ;;  %p3065_p4 = scmp.lt.u32.totalorder %s3058_s22, %s4941_s17 }
  0x45   : > { %p3061_p1 = pnand %p4002_p0, %p3059_p13 }
  0x47   : > { %p3062_p2 = pneg %p3061_p1 }
  0x49   : > { %p3067_p6 = pnand %p3065_p4, %p3062_p2 }
  0x4b   : > { %3070 = shalt.err (!%p3067_p6)
}
  0x4c   : > { %s3071_s2 = scalar_lea.vmem %s688_s28, 256  ;;  %p3079_p5 = scmp.lt.s32.totalorder %s688_s28, %s688_s28 }
  0x4d   : > { %p3072_p7 = scmp.ne.s32.totalorder %s688_s28, %s3071_s2  ;;  %p3080_p8 = scmp.lt.s32.totalorder %s3071_s2, %s3071_s2 }
  0x4f   : > { %p3074_p9 = pnand %p3072_p7, %p4002_p0  ;;  %p3081_p10 = por %p3080_p8, %p3079_p5 }
  0x51   : > { %p3075_p11 = pneg %p3074_p9 }
  0x53   : > { %p3082_p3 = pnand %p3081_p10, %p3075_p11 }
  0x55   : > { %3085 = shalt.err (!%p3082_p3)
}
  0x56   : > { %s3772_s21 = smov 64   ;;  %s3773_s4 = smov 4  }
  0x57   : > { %2928 = dma.hbm_to_vmem [thread:$0]  (!%p3990_p12), %s4941_s17, 256, %s688_s28, [#allocation31], %s3772_s21, %s3772_s21, %s3773_s4  }
  0x58   : > { %s4943_s24 = sld [smem:[#allocation58_spill]] }
  0x5e   : > { %s3086_s1 = scalar_lea.hbm %s4943_s24, 256 }
  0x5f   : > { %p3087_p5 = scmp.ne.s32.totalorder %s4943_s24, %s3086_s1  ;;  %p3093_p10 = scmp.lt.u32.totalorder %s3086_s1, %s4943_s24 }
  0x61   : > { %p3089_p3 = pnand %p3087_p5, %p4002_p0 }
  0x63   : > { %p3090_p8 = pneg %p3089_p3 }
  0x65   : > { %p3095_p13 = pnand %p3093_p10, %p3090_p8 }
  0x67   : > { %3098 = shalt.err (!%p3095_p13)
}
  0x68   : > { %s3099_s29 = scalar_lea.vmem %s675_s5, 256  ;;  %p3107_p6 = scmp.lt.s32.totalorder %s675_s5, %s675_s5 }
  0x69   : > { %p3100_p1 = scmp.ne.s32.totalorder %s675_s5, %s3099_s29  ;;  %p3108_p7 = scmp.lt.s32.totalorder %s3099_s29, %s3099_s29 }
  0x6b   : > { %p3102_p2 = pnand %p3100_p1, %p4002_p0  ;;  %p3109_p9 = por %p3108_p7, %p3107_p6 }
  0x6d   : > { %p3103_p4 = pneg %p3102_p2 }
  0x6f   : > { %p3110_p11 = pnand %p3109_p9, %p3103_p4 }
  0x71   : > { %3113 = shalt.err (!%p3110_p11)
}
  0x72   : > { %s3774_s16 = smov 128   ;;  %s3775_s27 = smov 8  }
  0x73   : > { %2925 = dma.hbm_to_vmem [thread:$0]  (!%p3990_p12), %s4943_s24, 256, %s675_s5, [#allocation4], %s3774_s16, %s3774_s16, %s3775_s27  }
  0x74   : > { %s3776_s28 = smov [#allocation32]   ;;  %s3777_s4 = smov [#allocation33]  }
  0x75   : > { %s701_s21 = sshll.u32 %s3776_s28, 4  ;;  %s712_s22 = sshll.u32 %s3777_s4, 4  ;;  %s702_s21 = int_to_ptr.vmem [resolvable:$true] %s701_s21  ;;  %s713_s22 = int_to_ptr.vmem [resolvable:$true] %s712_s22 }
  0x76   : > { %s4944_s18 = sld [smem:[#allocation72_spill]] }
  0x7c   : > { %s3114_s2 = scalar_lea.hbm %s4944_s18, 16 }
  0x7d   : > { %p3115_p5 = scmp.ne.s32.totalorder %s4944_s18, %s3114_s2  ;;  %p3121_p10 = scmp.lt.u32.totalorder %s3114_s2, %s4944_s18 }
  0x7f   : > { %p3117_p3 = pnand %p3115_p5, %p4002_p0 }
  0x81   : > { %p3118_p8 = pneg %p3117_p3 }
  0x83   : > { %p3123_p13 = pnand %p3121_p10, %p3118_p8 }
  0x85   : > { %3126 = shalt.err (!%p3123_p13)
}
  0x86   : > { %s3127_s5 = scalar_lea.vmem %s702_s21, 16  ;;  %s3134_s16 = scalar_lea.vmem %s702_s21, 32 }
  0x87   : > { %p3128_p1 = scmp.ne.s32.totalorder %s702_s21, %s3127_s5  ;;  %p3135_p6 = scmp.lt.s32.totalorder %s702_s21, %s702_s21 }
  0x88   : > { %p3136_p7 = scmp.lt.s32.totalorder %s3134_s16, %s3127_s5 }
  0x89   : > { %p3130_p2 = pnand %p3128_p1, %p4002_p0 }
  0x8a   : > { %p3137_p9 = por %p3136_p7, %p3135_p6 }
  0x8b   : > { %p3131_p4 = pneg %p3130_p2 }
  0x8d   : > { %p3138_p11 = pnand %p3137_p9, %p3131_p4 }
  0x8f   : > { %3141 = shalt.err (!%p3138_p11)
}
  0x90   : > { %2931 = dma.hbm_to_vmem [thread:$0]  (!%p3990_p12), %s4944_s18, 16, %s702_s21, [#allocation31]  }
  0x91   : > { %s4945_s19 = sld [smem:[#allocation73_spill]] }
  0x97   : > { %s3142_s14 = scalar_lea.hbm %s4945_s19, 16 }
  0x98   : > { %p3143_p5 = scmp.ne.s32.totalorder %s4945_s19, %s3142_s14  ;;  %p3149_p10 = scmp.lt.u32.totalorder %s3142_s14, %s4945_s19 }
  0x9a   : > { %p3145_p3 = pnand %p3143_p5, %p4002_p0 }
  0x9c   : > { %p3146_p8 = pneg %p3145_p3 }
  0x9e   : > { %p3151_p13 = pnand %p3149_p10, %p3146_p8 }
  0xa0   : > { %3154 = shalt.err (!%p3151_p13)
}
  0xa1   : > { %s3155_s25 = scalar_lea.vmem %s713_s22, 16  ;;  %s3162_s21 = scalar_lea.vmem %s713_s22, 32 }
  0xa2   : > { %p3156_p1 = scmp.ne.s32.totalorder %s713_s22, %s3155_s25  ;;  %p3163_p6 = scmp.lt.s32.totalorder %s713_s22, %s713_s22 }
  0xa3   : > { %p3164_p7 = scmp.lt.s32.totalorder %s3162_s21, %s3155_s25 }
  0xa4   : > { %p3158_p2 = pnand %p3156_p1, %p4002_p0 }
  0xa5   : > { %p3165_p9 = por %p3164_p7, %p3163_p6 }
  0xa6   : > { %p3159_p4 = pneg %p3158_p2 }
  0xa8   : > { %p3166_p11 = pnand %p3165_p9, %p3159_p4 }
  0xaa   : > { %3169 = shalt.err (!%p3166_p11)
}
  0xab   : > { %2934 = dma.hbm_to_vmem [thread:$0]  (!%p3990_p12), %s4945_s19, 16, %s713_s22, [#allocation34]  }
  0xac   : > { %p2642_p5 = scmp.ge.s32.totalorder %s3768_s23, 2 }
  0xad   : > { %s4074_s3 = sand.u32 (!%p2642_p5), 1, %s3768_s23   ;;  %s4077_s5 = sand.u32 (!%p2642_p5), 1, %s3756_s30  }
  0xae   : > { %722 = sbr.rel (%p2642_p5) target bundleno = 605 (0x25d), region = 36  ;;  %s4080_s16 = sshll.u32 (!%p2642_p5), %s3764_s0, 4 }
  0xaf   : > { %s729_s20 = scalar_lea.vmem (!%p2642_p5), [#allocation6], %s4077_s5  ;;  %s4946_s10 = sld [smem:[#allocation59_spill]] (!%p2642_p5) }
  0xb0   : > { %s736_s17 = sshll.u32 (!%p2642_p5), %s729_s20, 4  ;;  %s4900_s14 = scalar_lea.sflag (!%p2642_p5), [#allocation7], %s4074_s3  ;;  %s737_s17 = int_to_ptr.vmem [resolvable:$true] %s736_s17 }
  0xb1   : > { %p4947_p0 = scmp.ne.s32.totalorder (!%p2642_p5), %s4934_s6, 0 }
  0xb5   : > { %s4087_s12 = scalar_lea.hbm %s4946_s10, %s4080_s16  ;;  %s3174_s26 = scalar_lea.hbm %s4946_s10, 32 }
  0xb6   : > { %s3170_s1 = scalar_lea.hbm %s4087_s12, 16  ;;  %p3175_p10 = scmp.lt.u32.totalorder %s4087_s12, %s4946_s10 }
  0xb7   : > { %p3171_p12 = scmp.ne.s32.totalorder %s4087_s12, %s3170_s1  ;;  %p3176_p13 = scmp.lt.u32.totalorder %s3174_s26, %s3170_s1 }
  0xb8   : > { %p3178_p2 = scmp.lt.u32.totalorder %s3170_s1, %s4087_s12 }
  0xb9   : > { %p3172_p3 = pnand %p3171_p12, %p4947_p0  ;;  %p3177_p1 = por %p3176_p13, %p3175_p10 }
  0xbb   : > { %p3173_p8 = pneg %p3172_p3  ;;  %p3179_p4 = por %p3178_p2, %p3177_p1 }
  0xbd   : > { %p3180_p6 = pnand %p3179_p4, %p3173_p8 }
  0xbf   : > { %3183 = shalt.err (!%p3180_p6)
}
  0xc0   : > { %s3184_s2 = scalar_lea.vmem %s737_s17, 16  ;;  %s3778_s29 = smov [#allocation6]  }
  0xc1   : > { %p3185_p7 = scmp.ne.s32.totalorder %s737_s17, %s3184_s2  ;;  %s3188_s20 = sshll.u32 %s3778_s29, 4  ;;  %s3189_s20 = int_to_ptr.vmem [resolvable:$false] %s3188_s20 }
  0xc2   : > { %s3190_s27 = scalar_lea.vmem %s3189_s20, 32  ;;  %p3191_p5 = scmp.lt.s32.totalorder %s737_s17, %s3189_s20 }
  0xc3   : > { %p3186_p9 = pnand %p3185_p7, %p4947_p0  ;;  %p3192_p12 = scmp.lt.s32.totalorder %s3190_s27, %s3184_s2 }
  0xc5   : > { %p3187_p11 = pneg %p3186_p9  ;;  %p3193_p3 = por %p3192_p12, %p3191_p5 }
  0xc7   : > { %p3194_p10 = pnand %p3193_p3, %p3187_p11 }
  0xc9   : > { %3197 = shalt.err (!%p3194_p10)
}
  0xca   : > { %2874 = dma.hbm_to_vmem [thread:$0]  (%p4947_p0), %s4087_s12, 16, %s737_s17, %s4900_s14  }
  0xcb   : > { %s4110_s22 = sshll.u32 %s4077_s5, 4  ;;  %s4113_s1 = sshll.u32 %s3764_s0, 8 }
  0xcc   : > { %s4948_s26 = sld [smem:[#allocation61_spill]]  ;;  %s764_s21 = scalar_lea.vmem [#allocation9], %s4110_s22 }
  0xcd   : > { %s771_s2 = sshll.u32 %s764_s21, 4  ;;  %s4904_s17 = scalar_lea.sflag [#allocation10], %s4074_s3  ;;  %s4122_s2 = int_to_ptr.vmem [resolvable:$true] %s771_s2 }
  0xd2   : > { %s4119_s25 = scalar_lea.hbm %s4948_s26, %s4113_s1  ;;  %s3202_s27 = scalar_lea.hbm %s4948_s26, 512 }
  0xd3   : > { %s3198_s12 = scalar_lea.hbm %s4119_s25, 256  ;;  %p3203_p2 = scmp.lt.u32.totalorder %s4119_s25, %s4948_s26 }
  0xd4   : > { %p3199_p8 = scmp.ne.s32.totalorder %s4119_s25, %s3198_s12  ;;  %p3204_p4 = scmp.lt.u32.totalorder %s3202_s27, %s3198_s12 }
  0xd5   : > { %p3206_p7 = scmp.lt.u32.totalorder %s3198_s12, %s4119_s25 }
  0xd6   : > { %p3200_p13 = pnand %p3199_p8, %p4947_p0  ;;  %p3205_p6 = por %p3204_p4, %p3203_p2 }
  0xd8   : > { %p3201_p1 = pneg %p3200_p13  ;;  %p3207_p9 = por %p3206_p7, %p3205_p6 }
  0xda   : > { %p3208_p11 = pnand %p3207_p9, %p3201_p1 }
  0xdc   : > { %3211 = shalt.err (!%p3208_p11)
}
  0xdd   : > { %s3212_s21 = scalar_lea.vmem %s4122_s2, 256  ;;  %s3779_s29 = smov [#allocation9]  }
  0xde   : > { %p3213_p5 = scmp.ne.s32.totalorder %s4122_s2, %s3212_s21  ;;  %s3216_s20 = sshll.u32 %s3779_s29, 4  ;;  %s3217_s20 = int_to_ptr.vmem [resolvable:$false] %s3216_s20 }
  0xdf   : > { %s3218_s28 = scalar_lea.vmem %s3217_s20, 512  ;;  %p3219_p10 = scmp.lt.s32.totalorder %s4122_s2, %s3217_s20 }
  0xe0   : > { %p3214_p12 = pnand %p3213_p5, %p4947_p0  ;;  %p3220_p8 = scmp.lt.s32.totalorder %s3218_s28, %s3212_s21 }
  0xe2   : > { %p3215_p3 = pneg %p3214_p12  ;;  %p3221_p13 = por %p3220_p8, %p3219_p10 }
  0xe4   : > { %p3222_p2 = pnand %p3221_p13, %p3215_p3 }
  0xe6   : > { %3225 = shalt.err (!%p3222_p2)
}
  0xe7   : > { %s4906_s12 = smov 64   ;;  %s3781_s27 = smov 4  }
  0xe8   : > { %2876 = dma.hbm_to_vmem [thread:$0]  (%p4947_p0), %s4119_s25, 256, %s4122_s2, %s4904_s17, %s4906_s12, %s4906_s12, %s3781_s27  }
  0xe9   : > { %s4949_s29 = sld [smem:[#allocation63_spill]]  ;;  %s802_s14 = scalar_lea.vmem [#allocation12], %s4110_s22 }
  0xea   : > { %s809_s10 = sshll.u32 %s802_s14, 4  ;;  %s4902_s18 = scalar_lea.sflag [#allocation13], %s4074_s3  ;;  %s4158_s10 = int_to_ptr.vmem [resolvable:$true] %s809_s10 }
  0xef   : > { %s4950_s28 = smov %s4949_s29  ;;  %s4155_s20 = scalar_lea.hbm %s4949_s29, %s4113_s1 }
  0xf0   : > { %s3226_s19 = scalar_lea.hbm %s4155_s20, 256  ;;  %s3230_s4 = scalar_lea.hbm %s4950_s28, 512 }
  0xf1   : > { %p3227_p1 = scmp.ne.s32.totalorder %s4155_s20, %s3226_s19  ;;  %p3231_p7 = scmp.lt.u32.totalorder %s4155_s20, %s4950_s28 }
  0xf2   : > { %p3232_p9 = scmp.lt.u32.totalorder %s3230_s4, %s3226_s19  ;;  %p3234_p5 = scmp.lt.u32.totalorder %s3226_s19, %s4155_s20 }
  0xf3   : > { %p3228_p4 = pnand %p3227_p1, %p4947_p0 }
  0xf4   : > { %p3233_p11 = por %p3232_p9, %p3231_p7 }
  0xf5   : > { %p3229_p6 = pneg %p3228_p4 }
  0xf6   : > { %p3235_p12 = por %p3234_p5, %p3233_p11 }
  0xf8   : > { %p3236_p3 = pnand %p3235_p12, %p3229_p6 }
  0xfa   : > { %3239 = shalt.err (!%p3236_p3)
}
  0xfb   : > { %s3240_s14 = scalar_lea.vmem %s4158_s10, 256  ;;  %s3782_s25 = smov [#allocation12]  }
  0xfc   : > { %p3241_p10 = scmp.ne.s32.totalorder %s4158_s10, %s3240_s14  ;;  %s3244_s2 = sshll.u32 %s3782_s25, 4  ;;  %s3245_s2 = int_to_ptr.vmem [resolvable:$false] %s3244_s2 }
  0xfd   : > { %s3246_s21 = scalar_lea.vmem %s3245_s2, 512  ;;  %p3247_p2 = scmp.lt.s32.totalorder %s4158_s10, %s3245_s2 }
  0xfe   : > { %p3242_p8 = pnand %p3241_p10, %p4947_p0  ;;  %p3248_p1 = scmp.lt.s32.totalorder %s3246_s21, %s3240_s14 }
 0x100   : > { %p3243_p13 = pneg %p3242_p8  ;;  %p3249_p4 = por %p3248_p1, %p3247_p2 }
 0x102   : > { %p3250_p7 = pnand %p3249_p4, %p3243_p13 }
 0x104   : > { %3253 = shalt.err (!%p3250_p7)
}
 0x105   : > { %2878 = dma.hbm_to_vmem [thread:$0]  (%p4947_p0), %s4155_s20, 256, %s4158_s10, %s4902_s18, %s4906_s12, %s4906_s12, %s3781_s27  }
 0x106   : > { %s4951_s7 = sld [smem:[#allocation65_spill]]  ;;  %s840_s14 = scalar_lea.vmem [#allocation15], %s4110_s22 }
 0x107   : > { %s847_s25 = sshll.u32 %s840_s14, 4  ;;  %s4903_s2 = scalar_lea.sflag [#allocation16], %s4074_s3  ;;  %s4194_s25 = int_to_ptr.vmem [resolvable:$true] %s847_s25 }
 0x10c   : > { %s4191_s29 = scalar_lea.hbm %s4951_s7, %s4113_s1  ;;  %s3258_s19 = scalar_lea.hbm %s4951_s7, 512 }
 0x10d   : > { %s3254_s21 = scalar_lea.hbm %s4191_s29, 256  ;;  %p3259_p5 = scmp.lt.u32.totalorder %s4191_s29, %s4951_s7 }
 0x10e   : > { %p3255_p6 = scmp.ne.s32.totalorder %s4191_s29, %s3254_s21  ;;  %p3260_p12 = scmp.lt.u32.totalorder %s3258_s19, %s3254_s21 }
 0x10f   : > { %p3262_p10 = scmp.lt.u32.totalorder %s3254_s21, %s4191_s29 }
 0x110   : > { %p3256_p9 = pnand %p3255_p6, %p4947_p0  ;;  %p3261_p3 = por %p3260_p12, %p3259_p5 }
 0x112   : > { %p3257_p11 = pneg %p3256_p9  ;;  %p3263_p8 = por %p3262_p10, %p3261_p3 }
 0x114   : > { %p3264_p13 = pnand %p3263_p8, %p3257_p11 }
 0x116   : > { %3267 = shalt.err (!%p3264_p13)
}
 0x117   : > { %s3268_s14 = scalar_lea.vmem %s4194_s25, 256  ;;  %s3783_s10 = smov [#allocation15]  }
 0x118   : > { %p3269_p2 = scmp.ne.s32.totalorder %s4194_s25, %s3268_s14  ;;  %s3272_s20 = sshll.u32 %s3783_s10, 4  ;;  %s3273_s20 = int_to_ptr.vmem [resolvable:$false] %s3272_s20 }
 0x119   : > { %s3274_s18 = scalar_lea.vmem %s3273_s20, 512  ;;  %p3275_p7 = scmp.lt.s32.totalorder %s4194_s25, %s3273_s20 }
 0x11a   : > { %p3270_p1 = pnand %p3269_p2, %p4947_p0  ;;  %p3276_p6 = scmp.lt.s32.totalorder %s3274_s18, %s3268_s14 }
 0x11c   : > { %p3271_p4 = pneg %p3270_p1  ;;  %p3277_p9 = por %p3276_p6, %p3275_p7 }
 0x11e   : > { %p3278_p5 = pnand %p3277_p9, %p3271_p4 }
 0x120   : > { %3281 = shalt.err (!%p3278_p5)
}
 0x121   : > { %2880 = dma.hbm_to_vmem [thread:$0]  (%p4947_p0), %s4191_s29, 256, %s4194_s25, %s4903_s2, %s4906_s12, %s4906_s12, %s3781_s27  }
 0x122   : > { %s4227_s4 = scalar_lea.hbm %s4861_s9, %s4113_s1  ;;  %s878_s14 = scalar_lea.vmem [#allocation18], %s4110_s22 }
 0x123   : > { %s885_s10 = sshll.u32 %s878_s14, 4  ;;  %s4905_s20 = scalar_lea.sflag [#allocation19], %s4074_s3  ;;  %s4230_s10 = int_to_ptr.vmem [resolvable:$true] %s885_s10 }
 0x124   : > { %s3282_s18 = scalar_lea.hbm %s4227_s4, 256  ;;  %s3286_s21 = scalar_lea.hbm %s4861_s9, 512 }
 0x125   : > { %p3283_p11 = scmp.ne.s32.totalorder %s4227_s4, %s3282_s18  ;;  %p3287_p10 = scmp.lt.u32.totalorder %s4227_s4, %s4861_s9 }
 0x126   : > { %p3288_p8 = scmp.lt.u32.totalorder %s3286_s21, %s3282_s18  ;;  %p3290_p2 = scmp.lt.u32.totalorder %s3282_s18, %s4227_s4 }
 0x127   : > { %p3284_p12 = pnand %p3283_p11, %p4947_p0 }
 0x128   : > { %p3289_p13 = por %p3288_p8, %p3287_p10 }
 0x129   : > { %p3285_p3 = pneg %p3284_p12 }
 0x12a   : > { %p3291_p1 = por %p3290_p2, %p3289_p13 }
 0x12c   : > { %p3292_p4 = pnand %p3291_p1, %p3285_p3 }
 0x12e   : > { %3295 = shalt.err (!%p3292_p4)
}
 0x12f   : > { %s3296_s14 = scalar_lea.vmem %s4230_s10, 256  ;;  %s3784_s29 = smov [#allocation18]  }
 0x130   : > { %p3297_p7 = scmp.ne.s32.totalorder %s4230_s10, %s3296_s14  ;;  %s3300_s25 = sshll.u32 %s3784_s29, 4  ;;  %s3301_s25 = int_to_ptr.vmem [resolvable:$false] %s3300_s25 }
 0x131   : > { %s3302_s2 = scalar_lea.vmem %s3301_s25, 512  ;;  %p3303_p5 = scmp.lt.s32.totalorder %s4230_s10, %s3301_s25 }
 0x132   : > { %p3298_p6 = pnand %p3297_p7, %p4947_p0  ;;  %p3304_p11 = scmp.lt.s32.totalorder %s3302_s2, %s3296_s14 }
 0x134   : > { %p3299_p9 = pneg %p3298_p6  ;;  %p3305_p12 = por %p3304_p11, %p3303_p5 }
 0x136   : > { %p3306_p10 = pnand %p3305_p12, %p3299_p9 }
 0x138   : > { %3309 = shalt.err (!%p3306_p10)
}
 0x139   : > { %2882 = dma.hbm_to_vmem [thread:$0]  (%p4947_p0), %s4227_s4, 256, %s4230_s10, %s4905_s20, %s4906_s12, %s4906_s12, %s3781_s27  }
 0x13a   : > { %s4263_s19 = scalar_lea.hbm %s4863_s11, %s4080_s16  ;;  %s915_s14 = scalar_lea.vmem [#allocation21], %s4077_s5 }
 0x13b   : > { %s922_s29 = sshll.u32 %s915_s14, 4  ;;  %s4910_s25 = scalar_lea.sflag [#allocation22], %s4074_s3  ;;  %s923_s29 = int_to_ptr.vmem [resolvable:$true] %s922_s29 }
 0x13c   : > { %s3310_s2 = scalar_lea.hbm %s4263_s19, 16  ;;  %s3314_s10 = scalar_lea.hbm %s4863_s11, 32 }
 0x13d   : > { %p3311_p3 = scmp.ne.s32.totalorder %s4263_s19, %s3310_s2  ;;  %p3315_p2 = scmp.lt.u32.totalorder %s4263_s19, %s4863_s11 }
 0x13e   : > { %p3316_p1 = scmp.lt.u32.totalorder %s3314_s10, %s3310_s2  ;;  %p3318_p7 = scmp.lt.u32.totalorder %s3310_s2, %s4263_s19 }
 0x13f   : > { %p3312_p8 = pnand %p3311_p3, %p4947_p0 }
 0x140   : > { %p3317_p4 = por %p3316_p1, %p3315_p2 }
 0x141   : > { %p3313_p13 = pneg %p3312_p8 }
 0x142   : > { %p3319_p6 = por %p3318_p7, %p3317_p4 }
 0x144   : > { %p3320_p9 = pnand %p3319_p6, %p3313_p13 }
 0x146   : > { %3323 = shalt.err (!%p3320_p9)
}
 0x147   : > { %s3324_s14 = scalar_lea.vmem %s923_s29, 16  ;;  %s3785_s20 = smov [#allocation21]  }
 0x148   : > { %p3325_p5 = scmp.ne.s32.totalorder %s923_s29, %s3324_s14  ;;  %s3328_s12 = sshll.u32 %s3785_s20, 4  ;;  %s3329_s12 = int_to_ptr.vmem [resolvable:$false] %s3328_s12 }
 0x149   : > { %s3330_s17 = scalar_lea.vmem %s3329_s12, 32  ;;  %p3331_p10 = scmp.lt.s32.totalorder %s923_s29, %s3329_s12 }
 0x14a   : > { %p3326_p11 = pnand %p3325_p5, %p4947_p0  ;;  %p3332_p3 = scmp.lt.s32.totalorder %s3330_s17, %s3324_s14 }
 0x14c   : > { %p3327_p12 = pneg %p3326_p11  ;;  %p3333_p8 = por %p3332_p3, %p3331_p10 }
 0x14e   : > { %p3334_p1 = pnand %p3333_p8, %p3327_p12 }
 0x150   : > { %3337 = shalt.err (!%p3334_p1)
}
 0x151   : > { %2884 = dma.hbm_to_vmem [thread:$0]  (%p4947_p0), %s4263_s19, 16, %s923_s29, %s4910_s25  }
 0x152   : > { %s4290_s4 = scalar_lea.hbm %s4865_s13, %s4113_s1  ;;  %s950_s12 = scalar_lea.vmem [#allocation24], %s4110_s22 }
 0x153   : > { %s957_s10 = sshll.u32 %s950_s12, 4  ;;  %s2667_s18 = sshll.u32 %s4077_s5, 6  ;;  %s4293_s10 = int_to_ptr.vmem [resolvable:$true] %s957_s10 }
 0x154   : > { %s4908_s21 = scalar_lea.sflag [#allocation25], %s4074_s3  ;;  %s3338_s14 = scalar_lea.hbm %s4290_s4, 256 }
 0x155   : > { %p3339_p13 = scmp.ne.s32.totalorder %s4290_s4, %s3338_s14  ;;  %s3342_s1 = scalar_lea.hbm %s4865_s13, 512 }
 0x156   : > { %p3343_p7 = scmp.lt.u32.totalorder %s4290_s4, %s4865_s13  ;;  %p3344_p6 = scmp.lt.u32.totalorder %s3342_s1, %s3338_s14 }
 0x157   : > { %p3340_p2 = pnand %p3339_p13, %p4947_p0  ;;  %p3346_p5 = scmp.lt.u32.totalorder %s3338_s14, %s4290_s4 }
 0x158   : > { %p3345_p9 = por %p3344_p6, %p3343_p7 }
 0x159   : > { %p3341_p4 = pneg %p3340_p2 }
 0x15a   : > { %p3347_p11 = por %p3346_p5, %p3345_p9 }
 0x15c   : > { %p3348_p12 = pnand %p3347_p11, %p3341_p4 }
 0x15e   : > { %3351 = shalt.err (!%p3348_p12)
}
 0x15f   : > { %s3352_s22 = scalar_lea.vmem %s4293_s10, 256  ;;  %s3786_s20 = smov [#allocation24]  }
 0x160   : > { %p3353_p10 = scmp.ne.s32.totalorder %s4293_s10, %s3352_s22  ;;  %s3356_s12 = sshll.u32 %s3786_s20, 4  ;;  %s3357_s12 = int_to_ptr.vmem [resolvable:$false] %s3356_s12 }
 0x161   : > { %s3358_s19 = scalar_lea.vmem %s3357_s12, 512  ;;  %p3359_p1 = scmp.lt.s32.totalorder %s4293_s10, %s3357_s12 }
 0x162   : > { %p3354_p3 = pnand %p3353_p10, %p4947_p0  ;;  %p3360_p13 = scmp.lt.s32.totalorder %s3358_s19, %s3352_s22 }
 0x164   : > { %p3355_p8 = pneg %p3354_p3  ;;  %p3361_p2 = por %p3360_p13, %p3359_p1 }
 0x166   : > { %p3362_p7 = pnand %p3361_p2, %p3355_p8 }
 0x168   : > { %3365 = shalt.err (!%p3362_p7)
}
 0x169   : > { %s4952_s14 = smov 64   ;;  %s2738_s29 = sshll.u32 %s3764_s0, 10 }
 0x16a   : > { %2886 = dma.hbm_to_vmem [thread:$0]  (%p4947_p0), %s4290_s4, 256, %s4293_s10, %s4908_s21, %s4952_s14, %s4952_s14, %s3781_s27  }
 0x16b   : > { %s4327_s2 = scalar_lea.hbm %s4867_s15, %s2738_s29  ;;  %s988_s22 = scalar_lea.vmem [#allocation27], %s2667_s18 }
 0x16c   : > { %s995_s20 = sshll.u32 %s988_s22, 4  ;;  %s4909_s12 = scalar_lea.sflag [#allocation28], %s4074_s3  ;;  %s4331_s20 = int_to_ptr.vmem [resolvable:$true] %s995_s20 }
 0x16d   : > { %s3366_s19 = scalar_lea.hbm %s4327_s2, 1024  ;;  %s3370_s29 = scalar_lea.hbm %s4867_s15, 2048 }
 0x16e   : > { %p3367_p4 = scmp.ne.s32.totalorder %s4327_s2, %s3366_s19  ;;  %p3371_p5 = scmp.lt.u32.totalorder %s4327_s2, %s4867_s15 }
 0x16f   : > { %p3372_p11 = scmp.lt.u32.totalorder %s3370_s29, %s3366_s19  ;;  %p3374_p10 = scmp.lt.u32.totalorder %s3366_s19, %s4327_s2 }
 0x170   : > { %p3368_p6 = pnand %p3367_p4, %p4947_p0 }
 0x171   : > { %p3373_p12 = por %p3372_p11, %p3371_p5 }
 0x172   : > { %p3369_p9 = pneg %p3368_p6 }
 0x173   : > { %p3375_p3 = por %p3374_p10, %p3373_p12 }
 0x175   : > { %p3376_p8 = pnand %p3375_p3, %p3369_p9 }
 0x177   : > { %3379 = shalt.err (!%p3376_p8)
}
 0x178   : > { %s3380_s18 = scalar_lea.vmem %s4331_s20, 1024  ;;  %s3787_s22 = smov [#allocation27]  }
 0x179   : > { %p3381_p1 = scmp.ne.s32.totalorder %s4331_s20, %s3380_s18  ;;  %s3384_s4 = sshll.u32 %s3787_s22, 4  ;;  %s3385_s4 = int_to_ptr.vmem [resolvable:$false] %s3384_s4 }
 0x17a   : > { %s3386_s10 = scalar_lea.vmem %s3385_s4, 2048  ;;  %p3387_p7 = scmp.lt.s32.totalorder %s4331_s20, %s3385_s4 }
 0x17b   : > { %p3382_p13 = pnand %p3381_p1, %p4947_p0  ;;  %p3388_p4 = scmp.lt.s32.totalorder %s3386_s10, %s3380_s18 }
 0x17d   : > { %p3383_p2 = pneg %p3382_p13  ;;  %p3389_p6 = por %p3388_p4, %p3387_p7 }
 0x17f   : > { %p3390_p5 = pnand %p3389_p6, %p3383_p2 }
 0x181   : > { %3393 = shalt.err (!%p3390_p5)
}
 0x182   : > { %2888 = dma.hbm_to_vmem [thread:$0]  (%p4947_p0), %s4327_s2, 1024, %s4331_s20, %s4909_s12, %s4952_s14, %s4952_s14, %s3781_s27  }
 0x183   : > { %s4953_s1 = sld [smem:[#allocation60_spill]]  ;;  %s746_s18 = scalar_lea.vmem [#allocation8], %s4077_s5 }
 0x184   : > { %s753_s22 = sshll.u32 %s746_s18, 4  ;;  %s754_s22 = int_to_ptr.vmem [resolvable:$true] %s753_s22 }
 0x189   : > { %s4364_s17 = scalar_lea.hbm %s4953_s1, %s4080_s16  ;;  %s3398_s27 = scalar_lea.hbm %s4953_s1, 32 }
 0x18a   : > { %s3394_s4 = scalar_lea.hbm %s4364_s17, 16  ;;  %p3399_p10 = scmp.lt.u32.totalorder %s4364_s17, %s4953_s1 }
 0x18b   : > { %p3395_p9 = scmp.ne.s32.totalorder %s4364_s17, %s3394_s4  ;;  %p3400_p3 = scmp.lt.u32.totalorder %s3398_s27, %s3394_s4 }
 0x18c   : > { %p3402_p1 = scmp.lt.u32.totalorder %s3394_s4, %s4364_s17 }
 0x18d   : > { %p3396_p11 = pnand %p3395_p9, %p4947_p0  ;;  %p3401_p8 = por %p3400_p3, %p3399_p10 }
 0x18f   : > { %p3397_p12 = pneg %p3396_p11  ;;  %p3403_p13 = por %p3402_p1, %p3401_p8 }
 0x191   : > { %p3404_p2 = pnand %p3403_p13, %p3397_p12 }
 0x193   : > { %3407 = shalt.err (!%p3404_p2)
}
 0x194   : > { %s3408_s20 = scalar_lea.vmem %s754_s22, 16  ;;  %s3788_s19 = smov [#allocation8]  }
 0x195   : > { %p3409_p7 = scmp.ne.s32.totalorder %s754_s22, %s3408_s20  ;;  %s3412_s29 = sshll.u32 %s3788_s19, 4  ;;  %s3413_s29 = int_to_ptr.vmem [resolvable:$false] %s3412_s29 }
 0x196   : > { %s3414_s21 = scalar_lea.vmem %s3413_s29, 32  ;;  %p3415_p5 = scmp.lt.s32.totalorder %s754_s22, %s3413_s29 }
 0x197   : > { %p3410_p4 = pnand %p3409_p7, %p4947_p0  ;;  %p3416_p9 = scmp.lt.s32.totalorder %s3414_s21, %s3408_s20 }
 0x199   : > { %p3411_p6 = pneg %p3410_p4  ;;  %p3417_p11 = por %p3416_p9, %p3415_p5 }
 0x19b   : > { %p3418_p3 = pnand %p3417_p11, %p3411_p6 }
 0x19d   : > { %3421 = shalt.err (!%p3418_p3)
}
 0x19e   : > { %s4954_s18 = scalar_lea.sflag [#allocation7], %s4074_s3  ;;  %s4955_s27 = sld [smem:[#allocation62_spill]] }
 0x19f   : > { %2875 = dma.hbm_to_vmem [thread:$0]  (%p4947_p0), %s4364_s17, 16, %s754_s22, %s4954_s18  }
 0x1a0   : > { %s784_s2 = scalar_lea.vmem [#allocation11], %s4077_s5 }
 0x1a1   : > { %s791_s20 = sshll.u32 %s784_s2, 4  ;;  %s792_s20 = int_to_ptr.vmem [resolvable:$true] %s791_s20 }
 0x1a4   : > { %s4390_s14 = scalar_lea.hbm %s4955_s27, %s4080_s16  ;;  %s3426_s17 = scalar_lea.hbm %s4955_s27, 32 }
 0x1a5   : > { %s3422_s19 = scalar_lea.hbm %s4390_s14, 16  ;;  %p3427_p1 = scmp.lt.u32.totalorder %s4390_s14, %s4955_s27 }
 0x1a6   : > { %p3423_p12 = scmp.ne.s32.totalorder %s4390_s14, %s3422_s19  ;;  %p3428_p13 = scmp.lt.u32.totalorder %s3426_s17, %s3422_s19 }
 0x1a7   : > { %p3430_p7 = scmp.lt.u32.totalorder %s3422_s19, %s4390_s14 }
 0x1a8   : > { %p3424_p10 = pnand %p3423_p12, %p4947_p0  ;;  %p3429_p2 = por %p3428_p13, %p3427_p1 }
 0x1aa   : > { %p3425_p8 = pneg %p3424_p10  ;;  %p3431_p4 = por %p3430_p7, %p3429_p2 }
 0x1ac   : > { %p3432_p6 = pnand %p3431_p4, %p3425_p8 }
 0x1ae   : > { %3435 = shalt.err (!%p3432_p6)
}
 0x1af   : > { %s3436_s4 = scalar_lea.vmem %s792_s20, 16  ;;  %s3789_s10 = smov [#allocation11]  }
 0x1b0   : > { %p3437_p5 = scmp.ne.s32.totalorder %s792_s20, %s3436_s4  ;;  %s3440_s2 = sshll.u32 %s3789_s10, 4  ;;  %s3441_s2 = int_to_ptr.vmem [resolvable:$false] %s3440_s2 }
 0x1b1   : > { %s3442_s29 = scalar_lea.vmem %s3441_s2, 32  ;;  %p3443_p3 = scmp.lt.s32.totalorder %s792_s20, %s3441_s2 }
 0x1b2   : > { %p3438_p9 = pnand %p3437_p5, %p4947_p0  ;;  %p3444_p12 = scmp.lt.s32.totalorder %s3442_s29, %s3436_s4 }
 0x1b4   : > { %p3439_p11 = pneg %p3438_p9  ;;  %p3445_p10 = por %p3444_p12, %p3443_p3 }
 0x1b6   : > { %p3446_p1 = pnand %p3445_p10, %p3439_p11 }
 0x1b8   : > { %3449 = shalt.err (!%p3446_p1)
}
 0x1b9   : > { %s4956_s19 = scalar_lea.sflag [#allocation10], %s4074_s3  ;;  %s4957_s22 = sld [smem:[#allocation64_spill]] }
 0x1ba   : > { %2877 = dma.hbm_to_vmem [thread:$0]  (%p4947_p0), %s4390_s14, 16, %s792_s20, %s4956_s19  }
 0x1bb   : > { %s822_s4 = scalar_lea.vmem [#allocation14], %s4077_s5 }
 0x1bc   : > { %s829_s10 = sshll.u32 %s822_s4, 4  ;;  %s830_s10 = int_to_ptr.vmem [resolvable:$true] %s829_s10 }
 0x1bf   : > { %s4416_s18 = scalar_lea.hbm %s4957_s22, %s4080_s16  ;;  %s3454_s14 = scalar_lea.hbm %s4957_s22, 32 }
 0x1c0   : > { %s3450_s2 = scalar_lea.hbm %s4416_s18, 16  ;;  %p3455_p7 = scmp.lt.u32.totalorder %s4416_s18, %s4957_s22 }
 0x1c1   : > { %p3451_p8 = scmp.ne.s32.totalorder %s4416_s18, %s3450_s2  ;;  %p3456_p4 = scmp.lt.u32.totalorder %s3454_s14, %s3450_s2 }
 0x1c2   : > { %p3458_p5 = scmp.lt.u32.totalorder %s3450_s2, %s4416_s18 }
 0x1c3   : > { %p3452_p13 = pnand %p3451_p8, %p4947_p0  ;;  %p3457_p6 = por %p3456_p4, %p3455_p7 }
 0x1c5   : > { %p3453_p2 = pneg %p3452_p13  ;;  %p3459_p9 = por %p3458_p5, %p3457_p6 }
 0x1c7   : > { %p3460_p11 = pnand %p3459_p9, %p3453_p2 }
 0x1c9   : > { %3463 = shalt.err (!%p3460_p11)
}
 0x1ca   : > { %s3464_s21 = scalar_lea.vmem %s830_s10, 16  ;;  %s3790_s17 = smov [#allocation14]  }
 0x1cb   : > { %p3465_p3 = scmp.ne.s32.totalorder %s830_s10, %s3464_s21  ;;  %s3468_s4 = sshll.u32 %s3790_s17, 4  ;;  %s3469_s4 = int_to_ptr.vmem [resolvable:$false] %s3468_s4 }
 0x1cc   : > { %s3470_s12 = scalar_lea.vmem %s3469_s4, 32  ;;  %p3471_p1 = scmp.lt.s32.totalorder %s830_s10, %s3469_s4 }
 0x1cd   : > { %p3466_p12 = pnand %p3465_p3, %p4947_p0  ;;  %p3472_p8 = scmp.lt.s32.totalorder %s3470_s12, %s3464_s21 }
 0x1cf   : > { %p3467_p10 = pneg %p3466_p12  ;;  %p3473_p13 = por %p3472_p8, %p3471_p1 }
 0x1d1   : > { %p3474_p4 = pnand %p3473_p13, %p3467_p10 }
 0x1d3   : > { %3477 = shalt.err (!%p3474_p4)
}
 0x1d4   : > { %s4958_s2 = scalar_lea.sflag [#allocation13], %s4074_s3  ;;  %s4959_s8 = sld [smem:[#allocation66_spill]] }
 0x1d5   : > { %2879 = dma.hbm_to_vmem [thread:$0]  (%p4947_p0), %s4416_s18, 16, %s830_s10, %s4958_s2  }
 0x1d6   : > { %s860_s19 = scalar_lea.vmem [#allocation17], %s4077_s5 }
 0x1d7   : > { %s867_s21 = sshll.u32 %s860_s19, 4  ;;  %s868_s21 = int_to_ptr.vmem [resolvable:$true] %s867_s21 }
 0x1da   : > { %s4442_s20 = scalar_lea.hbm %s4959_s8, %s4080_s16  ;;  %s3482_s18 = scalar_lea.hbm %s4959_s8, 32 }
 0x1db   : > { %s3478_s17 = scalar_lea.hbm %s4442_s20, 16  ;;  %p3483_p5 = scmp.lt.u32.totalorder %s4442_s20, %s4959_s8 }
 0x1dc   : > { %p3479_p2 = scmp.ne.s32.totalorder %s4442_s20, %s3478_s17  ;;  %p3484_p9 = scmp.lt.u32.totalorder %s3482_s18, %s3478_s17 }
 0x1dd   : > { %p3486_p3 = scmp.lt.u32.totalorder %s3478_s17, %s4442_s20 }
 0x1de   : > { %p3480_p7 = pnand %p3479_p2, %p4947_p0  ;;  %p3485_p11 = por %p3484_p9, %p3483_p5 }
 0x1e0   : > { %p3481_p6 = pneg %p3480_p7  ;;  %p3487_p12 = por %p3486_p3, %p3485_p11 }
 0x1e2   : > { %p3488_p10 = pnand %p3487_p12, %p3481_p6 }
 0x1e4   : > { %3491 = shalt.err (!%p3488_p10)
}
 0x1e5   : > { %s3492_s29 = scalar_lea.vmem %s868_s21, 16  ;;  %s3791_s14 = smov [#allocation17]  }
 0x1e6   : > { %p3493_p1 = scmp.ne.s32.totalorder %s868_s21, %s3492_s29  ;;  %s3496_s19 = sshll.u32 %s3791_s14, 4  ;;  %s3497_s19 = int_to_ptr.vmem [resolvable:$false] %s3496_s19 }
 0x1e7   : > { %s3498_s4 = scalar_lea.vmem %s3497_s19, 32  ;;  %p3499_p4 = scmp.lt.s32.totalorder %s868_s21, %s3497_s19 }
 0x1e8   : > { %p3494_p8 = pnand %p3493_p1, %p4947_p0  ;;  %p3500_p2 = scmp.lt.s32.totalorder %s3498_s4, %s3492_s29 }
 0x1ea   : > { %p3495_p13 = pneg %p3494_p8  ;;  %p3501_p7 = por %p3500_p2, %p3499_p4 }
 0x1ec   : > { %p3502_p5 = pnand %p3501_p7, %p3495_p13 }
 0x1ee   : > { %3505 = shalt.err (!%p3502_p5)
}
 0x1ef   : > { %s4960_s17 = scalar_lea.sflag [#allocation16], %s4074_s3  ;;  %s4961_s10 = sld [smem:[#allocation67_spill]] }
 0x1f0   : > { %2881 = dma.hbm_to_vmem [thread:$0]  (%p4947_p0), %s4442_s20, 16, %s868_s21, %s4960_s17  }
 0x1f1   : > { %s898_s29 = scalar_lea.vmem [#allocation20], %s4077_s5 }
 0x1f2   : > { %s905_s14 = sshll.u32 %s898_s29, 4  ;;  %s906_s14 = int_to_ptr.vmem [resolvable:$true] %s905_s14 }
 0x1f5   : > { %s4468_s2 = scalar_lea.hbm %s4961_s10, %s4080_s16  ;;  %s3510_s20 = scalar_lea.hbm %s4961_s10, 32 }
 0x1f6   : > { %s3506_s19 = scalar_lea.hbm %s4468_s2, 16  ;;  %p3511_p3 = scmp.lt.u32.totalorder %s4468_s2, %s4961_s10 }
 0x1f7   : > { %p3507_p6 = scmp.ne.s32.totalorder %s4468_s2, %s3506_s19  ;;  %p3512_p12 = scmp.lt.u32.totalorder %s3510_s20, %s3506_s19 }
 0x1f8   : > { %p3514_p1 = scmp.lt.u32.totalorder %s3506_s19, %s4468_s2 }
 0x1f9   : > { %p3508_p9 = pnand %p3507_p6, %p4947_p0  ;;  %p3513_p10 = por %p3512_p12, %p3511_p3 }
 0x1fb   : > { %p3509_p11 = pneg %p3508_p9  ;;  %p3515_p8 = por %p3514_p1, %p3513_p10 }
 0x1fd   : > { %p3516_p13 = pnand %p3515_p8, %p3509_p11 }
 0x1ff   : > { %3519 = shalt.err (!%p3516_p13)
}
 0x200   : > { %s3520_s12 = scalar_lea.vmem %s906_s14, 16  ;;  %s3792_s18 = smov [#allocation20]  }
 0x201   : > { %p3521_p4 = scmp.ne.s32.totalorder %s906_s14, %s3520_s12  ;;  %s3524_s29 = sshll.u32 %s3792_s18, 4  ;;  %s3525_s29 = int_to_ptr.vmem [resolvable:$false] %s3524_s29 }
 0x202   : > { %s3526_s25 = scalar_lea.vmem %s3525_s29, 32  ;;  %p3527_p5 = scmp.lt.s32.totalorder %s906_s14, %s3525_s29 }
 0x203   : > { %p3522_p2 = pnand %p3521_p4, %p4947_p0  ;;  %p3528_p6 = scmp.lt.s32.totalorder %s3526_s25, %s3520_s12 }
 0x205   : > { %p3523_p7 = pneg %p3522_p2  ;;  %p3529_p9 = por %p3528_p6, %p3527_p5 }
 0x207   : > { %p3530_p3 = pnand %p3529_p9, %p3523_p7 }
 0x209   : > { %3533 = shalt.err (!%p3530_p3)
}
 0x20a   : > { %s4962_s19 = scalar_lea.sflag [#allocation19], %s4074_s3  ;;  %s4963_s21 = sld [smem:[#allocation68_spill]] }
 0x20b   : > { %2883 = dma.hbm_to_vmem [thread:$0]  (%p4947_p0), %s4468_s2, 16, %s906_s14, %s4962_s19  }
 0x20c   : > { %s932_s12 = scalar_lea.vmem [#allocation23], %s4077_s5 }
 0x20d   : > { %s939_s18 = sshll.u32 %s932_s12, 4  ;;  %s940_s18 = int_to_ptr.vmem [resolvable:$true] %s939_s18 }
 0x210   : > { %s4494_s17 = scalar_lea.hbm %s4963_s21, %s4080_s16  ;;  %s3538_s2 = scalar_lea.hbm %s4963_s21, 32 }
 0x211   : > { %s3534_s29 = scalar_lea.hbm %s4494_s17, 16  ;;  %p3539_p1 = scmp.lt.u32.totalorder %s4494_s17, %s4963_s21 }
 0x212   : > { %p3535_p11 = scmp.ne.s32.totalorder %s4494_s17, %s3534_s29  ;;  %p3540_p8 = scmp.lt.u32.totalorder %s3538_s2, %s3534_s29 }
 0x213   : > { %p3542_p4 = scmp.lt.u32.totalorder %s3534_s29, %s4494_s17 }
 0x214   : > { %p3536_p12 = pnand %p3535_p11, %p4947_p0  ;;  %p3541_p13 = por %p3540_p8, %p3539_p1 }
 0x216   : > { %p3537_p10 = pneg %p3536_p12  ;;  %p3543_p2 = por %p3542_p4, %p3541_p13 }
 0x218   : > { %p3544_p7 = pnand %p3543_p2, %p3537_p10 }
 0x21a   : > { %3547 = shalt.err (!%p3544_p7)
}
 0x21b   : > { %s3548_s4 = scalar_lea.vmem %s940_s18, 16  ;;  %s3793_s20 = smov [#allocation23]  }
 0x21c   : > { %p3549_p5 = scmp.ne.s32.totalorder %s940_s18, %s3548_s4  ;;  %s3552_s12 = sshll.u32 %s3793_s20, 4  ;;  %s3553_s12 = int_to_ptr.vmem [resolvable:$false] %s3552_s12 }
 0x21d   : > { %s3554_s1 = scalar_lea.vmem %s3553_s12, 32  ;;  %p3555_p3 = scmp.lt.s32.totalorder %s940_s18, %s3553_s12 }
 0x21e   : > { %p3550_p6 = pnand %p3549_p5, %p4947_p0  ;;  %p3556_p11 = scmp.lt.s32.totalorder %s3554_s1, %s3548_s4 }
 0x220   : > { %p3551_p9 = pneg %p3550_p6  ;;  %p3557_p12 = por %p3556_p11, %p3555_p3 }
 0x222   : > { %p3558_p1 = pnand %p3557_p12, %p3551_p9 }
 0x224   : > { %3561 = shalt.err (!%p3558_p1)
}
 0x225   : > { %s4964_s29 = scalar_lea.sflag [#allocation22], %s4074_s3  ;;  %s4965_s14 = sld [smem:[#allocation69_spill]] }
 0x226   : > { %2885 = dma.hbm_to_vmem [thread:$0]  (%p4947_p0), %s4494_s17, 16, %s940_s18, %s4964_s29  }
 0x227   : > { %s970_s4 = scalar_lea.vmem [#allocation26], %s4077_s5 }
 0x228   : > { %s977_s20 = sshll.u32 %s970_s4, 4  ;;  %s978_s20 = int_to_ptr.vmem [resolvable:$true] %s977_s20 }
 0x22b   : > { %s4520_s19 = scalar_lea.hbm %s4965_s14, %s4080_s16  ;;  %s3566_s17 = scalar_lea.hbm %s4965_s14, 32 }
 0x22c   : > { %s3562_s12 = scalar_lea.hbm %s4520_s19, 16  ;;  %p3567_p4 = scmp.lt.u32.totalorder %s4520_s19, %s4965_s14 }
 0x22d   : > { %p3563_p10 = scmp.ne.s32.totalorder %s4520_s19, %s3562_s12  ;;  %p3568_p2 = scmp.lt.u32.totalorder %s3566_s17, %s3562_s12 }
 0x22e   : > { %p3570_p5 = scmp.lt.u32.totalorder %s3562_s12, %s4520_s19 }
 0x22f   : > { %p3564_p8 = pnand %p3563_p10, %p4947_p0  ;;  %p3569_p7 = por %p3568_p2, %p3567_p4 }
 0x231   : > { %p3565_p13 = pneg %p3564_p8  ;;  %p3571_p6 = por %p3570_p5, %p3569_p7 }
 0x233   : > { %p3572_p9 = pnand %p3571_p6, %p3565_p13 }
 0x235   : > { %3575 = shalt.err (!%p3572_p9)
}
 0x236   : > { %s3576_s25 = scalar_lea.vmem %s978_s20, 16  ;;  %s3794_s2 = smov [#allocation26]  }
 0x237   : > { %p3577_p3 = scmp.ne.s32.totalorder %s978_s20, %s3576_s25  ;;  %s3580_s4 = sshll.u32 %s3794_s2, 4  ;;  %s3581_s4 = int_to_ptr.vmem [resolvable:$false] %s3580_s4 }
 0x238   : > { %s3582_s7 = scalar_lea.vmem %s3581_s4, 32  ;;  %p3583_p1 = scmp.lt.s32.totalorder %s978_s20, %s3581_s4 }
 0x239   : > { %p3578_p11 = pnand %p3577_p3, %p4947_p0  ;;  %p3584_p10 = scmp.lt.s32.totalorder %s3582_s7, %s3576_s25 }
 0x23b   : > { %p3579_p12 = pneg %p3578_p11  ;;  %p3585_p8 = por %p3584_p10, %p3583_p1 }
 0x23d   : > { %p3586_p2 = pnand %p3585_p8, %p3579_p12 }
 0x23f   : > { %3589 = shalt.err (!%p3586_p2)
}
 0x240   : > { %s4966_s12 = scalar_lea.sflag [#allocation25], %s4074_s3  ;;  %s4967_s18 = sld [smem:[#allocation70_spill]] }
 0x241   : > { %2887 = dma.hbm_to_vmem [thread:$0]  (%p4947_p0), %s4520_s19, 16, %s978_s20, %s4966_s12  }
 0x242   : > { %s1008_s25 = scalar_lea.vmem [#allocation29], %s4077_s5 }
 0x243   : > { %s1015_s2 = sshll.u32 %s1008_s25, 4  ;;  %s1016_s2 = int_to_ptr.vmem [resolvable:$true] %s1015_s2 }
 0x246   : > { %s4546_s29 = scalar_lea.hbm %s4967_s18, %s4080_s16  ;;  %s3594_s19 = scalar_lea.hbm %s4967_s18, 32 }
 0x247   : > { %s3590_s4 = scalar_lea.hbm %s4546_s29, 16  ;;  %p3595_p5 = scmp.lt.u32.totalorder %s4546_s29, %s4967_s18 }
 0x248   : > { %p3591_p13 = scmp.ne.s32.totalorder %s4546_s29, %s3590_s4  ;;  %p3596_p6 = scmp.lt.u32.totalorder %s3594_s19, %s3590_s4 }
 0x249   : > { %p3598_p3 = scmp.lt.u32.totalorder %s3590_s4, %s4546_s29 }
 0x24a   : > { %p3592_p4 = pnand %p3591_p13, %p4947_p0  ;;  %p3597_p9 = por %p3596_p6, %p3595_p5 }
 0x24c   : > { %p3593_p7 = pneg %p3592_p4  ;;  %p3599_p11 = por %p3598_p3, %p3597_p9 }
 0x24e   : > { %p3600_p12 = pnand %p3599_p11, %p3593_p7 }
 0x250   : > { %3603 = shalt.err (!%p3600_p12)
}
 0x251   : > { %s3604_s5 = scalar_lea.vmem %s1016_s2, 16  ;;  %s3795_s16 = smov [#allocation29]  }
 0x252   : > { %p3605_p1 = scmp.ne.s32.totalorder %s1016_s2, %s3604_s5  ;;  %s3608_s1 = sshll.u32 %s3795_s16, 4  ;;  %s3609_s1 = int_to_ptr.vmem [resolvable:$false] %s3608_s1 }
 0x253   : > { %s3610_s8 = scalar_lea.vmem %s3609_s1, 32  ;;  %p3611_p2 = scmp.lt.s32.totalorder %s1016_s2, %s3609_s1 }
 0x254   : > { %p3606_p10 = pnand %p3605_p1, %p4947_p0  ;;  %p3612_p13 = scmp.lt.s32.totalorder %s3610_s8, %s3604_s5 }
 0x256   : > { %p3607_p8 = pneg %p3606_p10  ;;  %p3613_p4 = por %p3612_p13, %p3611_p2 }
 0x258   : > { %p3614_p5 = pnand %p3613_p4, %p3607_p8 }
 0x25a   : > { %3617 = shalt.err (!%p3614_p5)
}
 0x25b   : > { %s4968_s17 = scalar_lea.sflag [#allocation28], %s4074_s3 }
 0x25c   : > { %2889 = dma.hbm_to_vmem [thread:$0]  (%p4947_p0), %s4546_s29, 16, %s1016_s2, %s4968_s17  }
 0x25d PF: > { %s4969_s25 = sld [smem:[#allocation57_spill]] }
 0x263   : > { %p4970_p7 = scmp.ne.s32.totalorder %s4969_s25, 0 }
 0x264   : > { %s4971_s4 = sld [smem:[#allocation53_spill]] (!%p4970_p7) }
 0x265   : > { %1024 = sbr.rel (%p4970_p7) target bundleno = 3398 (0xd46), region = 104 }
 0x26a   : > { %p4972_p6 = scmp.eq.s32.totalorder (!%p4970_p7), %s4971_s4, 0 }
 0x26c   : > { %3695 = dma.done.wait (%p4972_p6), [#allocation4], 256   ;;  %p4973_p9 = pmov %p4972_p6 }
 0x26d   : > { %s4974_s7 = sld [smem:[#allocation51_spill]]  ;;  %s4975_s19 = sld [smem:[#allocation55_spill]] }
 0x26e   : > { %3697 = vsyncadd (%p4973_p9), [#allocation4], 4294967040  ;;  %s4575_s20 = sand.u32 1, %s4971_s4  }
 0x26f   : > { %s1031_s3 = scalar_lea.sflag [#allocation7], %s4575_s20 }
 0x273   : > { %s4578_s6 = sand.u32 1, %s4974_s7   ;;  %p4976_p0 = scmp.ne.s32.totalorder %s4975_s19, 0 }
 0x274   : > { %s1033_s29 = scalar_lea.vmem [#allocation6], %s4578_s6 }
 0x275   : > { %3699 = dma.done.wait (%p4976_p0), %s1031_s3, 32  }
 0x276   : > { %3701 = vsyncadd (%p4976_p0), %s1031_s3, 4294967264  ;;  %s4587_s2 = sshll.u32 %s4578_s6, 4  ;;  %s1041_s12 = scalar_lea.vmem [#allocation8], %s4578_s6 }
 0x277   : > { %s1047_s5 = scalar_lea.sflag [#allocation10], %s4575_s20  ;;  %s1050_s16 = scalar_lea.vmem [#allocation9], %s4587_s2 }
 0x278   : > { %3703 = dma.done.wait (%p4976_p0), %s1047_s5, 272  }
 0x279   : > { %3705 = vsyncadd (%p4976_p0), %s1047_s5, 4294967024  ;;  %s1064_s8 = scalar_lea.sflag [#allocation13], %s4575_s20 }
 0x27a   : > { %3707 = dma.done.wait (%p4976_p0), %s1064_s8, 272  }
 0x27b   : > { %3709 = vsyncadd (%p4976_p0), %s1064_s8, 4294967024  ;;  %s1081_s7 = scalar_lea.sflag [#allocation16], %s4575_s20 }
 0x27c   : > { %3711 = dma.done.wait (%p4976_p0), %s1081_s7, 272  }
 0x27d   : > { %3713 = vsyncadd (%p4976_p0), %s1081_s7, 4294967024  ;;  %s1098_s1 = scalar_lea.sflag [#allocation19], %s4575_s20 }
 0x27e   : > { %3715 = dma.done.wait (%p4976_p0), %s1098_s1, 272  }
 0x27f   : > { %3717 = vsyncadd (%p4976_p0), %s1098_s1, 4294967024  ;;  %s1115_s25 = scalar_lea.sflag [#allocation22], %s4575_s20 }
 0x280   : > { %3719 = dma.done.wait (%p4976_p0), %s1115_s25, 32  }
 0x281   : > { %3721 = vsyncadd (%p4976_p0), %s1115_s25, 4294967264  ;;  %s1131_s17 = scalar_lea.sflag [#allocation25], %s4575_s20  ;;  %s1134_s5 = scalar_lea.vmem [#allocation24], %s4587_s2 }
 0x282   : > { %3723 = dma.done.wait (%p4976_p0), %s1131_s17, 272  }
 0x283   : > { %3725 = vsyncadd (%p4976_p0), %s1131_s17, 4294967024  ;;  %s2678_s1 = sshll.u32 %s4578_s6, 6  ;;  %s1142_s3 = scalar_lea.vmem [#allocation26], %s4578_s6 }
 0x284   : > { %s1148_s8 = scalar_lea.sflag [#allocation28], %s4575_s20  ;;  %s4634_s25 = scalar_lea.vmem [#allocation27], %s2678_s1 }
 0x285   : > { %3727 = dma.done.wait (%p4976_p0), %s1148_s8, 1040  }
 0x286   : > { %3729 = vsyncadd (%p4976_p0), %s1148_s8, 4294966256  ;;  %s1159_s7 = scalar_lea.vmem [#allocation29], %s4578_s6  ;;  %p4977_p3 = pmov %p4972_p6 }
 0x288   : > { %3731 = dma.done.wait (%p4977_p3), [#allocation31], 272   ;;  %p4978_p11 = pmov %p4977_p3 }
 0x289   : > { %p4979_p12 = pmov %p4977_p3 }
 0x28a   : > { %3733 = vsyncadd (%p4978_p11), [#allocation31], 4294967024 }
 0x28b   : > { %3735 = dma.done.wait (%p4979_p12), [#allocation34], 16   ;;  %p4980_p1 = pmov %p4977_p3 }
 0x28c   : > { %s4981_s20 = sld [smem:[#allocation52_spill]] }
 0x28d   : > { %3737 = vsyncadd (%p4980_p1), [#allocation34], 4294967280 }
 0x292   : > { %p2682_p10 = scmp.ne.s32.totalorder %s4981_s20, 0 }
 0x293   : > { %v1300_v1 = vld [vmem:[#allocation3] sm:$0xff] (!%p2682_p10)  ;;  %vm1302_vm0 = vcmask (!%p2682_p10), 261120   ;;  %v1301_v2 = vld [vmem:[#allocation3 + $0x8] sm:$0xff] (!%p2682_p10) }
 0x294   : > { %1299 = sbr.rel (%p2682_p10) target bundleno = 667 (0x29b), region = 188  ;;  %1303 = vst.msk [vmem:[#allocation35] sm:$0xff] (!%p2682_p10), %vm1302_vm0, %v1300_v1  ;;  %1304 = vst.msk [vmem:[#allocation35 + $0x8] sm:$0xff] (!%p2682_p10), %vm1302_vm0, %v1301_v2 }
 0x29b PF: > { %v4650_v3 = vld [vmem:[#allocation35] sm:$0xff]  ;;  %vm1309_vm1 = vcmask 261120   ;;  %v4652_v4 = vld [vmem:[#allocation35 + $0x8] sm:$0xff]  ;;  %v3796_v18 = vmov 0.0   ;;  %vm3797_vm2 = vmmov 0   ;;  %s4982_s4 = scalar_lea.vmem [#allocation12], %s4587_s2 }
 0x29c   : > { %v1310_v5 = vsel %vm1309_vm1, %v4650_v3, 0.0  ;;  %v1313_v6 = vsel %vm1309_vm1, %v4652_v4, 0.0  ;;  %v3016_v17 = vld [vmem:[%s1050_s16] sm:$0xff]   ;;  %2774 = vmatprep.subr.bf16.mxu0 %v3796_v18  ;;  %2798 = vmatprep.subr.bf16.mxu1 %v3796_v18  ;;  %v3017_v19 = vld [vmem:[%s1050_s16 + $0x8] sm:$0xff]   ;;  %s4983_s19 = smov %s4982_s4  ;;  %s4986_s16 = scalar_lea.vmem [#allocation14], %s4578_s6  ;;  %vm1675_vm3 = vcmask 1043456  }
 0x29d   : > { %1311 = vadd.xlane.f32.xlu0 %v1310_v5  ;;  %2775 = vmatpush3.bf16.msra.mxu0 %v3016_v17  ;;  %v2683_v28 = vld [vmem:[%s1033_s29] ss:$0 sm:$0xff]  ;;  %v3018_v36 = vld [vmem:[%s4982_s4] sm:$0xff]   ;;  %s4984_s29 = scalar_lea.vmem [#allocation15], %s4587_s2  ;;  %s4987_s17 = scalar_lea.vmem [#allocation11], %s4578_s6  ;;  %vm1645_vm4 = vcmask 64512  }
 0x29e   : > { %2778 = vmatprep.mubr.msk.bf16.mxu0 %vm3797_vm2, %v3796_v18  ;;  %2776 = vmatprep.subr.bf16.mxu0 %v3796_v18  ;;  %v2684_v32 = vld [vmem:[%s1041_s12] ss:$0 sm:$0xff]  ;;  %v3019_v38 = vld [vmem:[%s4983_s19 + $0x8] sm:$0xff]   ;;  %s4985_s12 = smov %s4984_s29  ;;  %s4988_s8 = scalar_lea.vmem [#allocation17], %s4578_s6 }
 0x29f   : > { %2800 = vmatprep.mubr.msk.bf16.mxu1 %vm3797_vm2, %v3796_v18  ;;  %v3020_v39 = vld [vmem:[%s4984_s29] sm:$0xff]   ;;  %s4989_s1 = scalar_lea.vmem [#allocation18], %s4587_s2  ;;  %s4991_s4 = scalar_lea.vmem [#allocation20], %s4578_s6 }
 0x2a0   : > { %v3021_v40 = vld [vmem:[%s4985_s12 + $0x8] sm:$0xff]   ;;  %v2689_v45 = vld [vmem:[%s4986_s16] ss:$0 sm:$0xff]  ;;  %s4990_s20 = smov %s4989_s1  ;;  %s4992_s19 = scalar_lea.vmem [#allocation21], %s4578_s6 }
 0x2a1   : > { %1314 = vadd.xlane.f32.xlu0 %v1313_v6  ;;  %2777 = vmatpush3.bf16.msra.mxu0 %v3017_v19  ;;  %v2685_v53 = vld [vmem:[%s4987_s17] ss:$0 sm:$0xff]  ;;  %s4993_s2 = scalar_lea.vmem [#allocation23], %s4578_s6 }
 0x2a2   : > { %2782 = vmatprep.subr.bf16.mxu0 %v3796_v18  ;;  %v2693_v56 = vld [vmem:[%s4988_s8] ss:$0 sm:$0xff] }
 0x32a   : > { %v1312_v7 = vpop.xlane.xlu0 %1311 }
 0x32b   : > { %v1317_v8 = vmul.f32 0.03125, %v1312_v7 }
 0x32d   : > { %v1319_v9 = vsub.f32 %v4650_v3, %v1317_v8 }
 0x32e   : > { %v1315_v10 = vpop.xlane.xlu0 %1314 }
 0x32f   : > { %v1318_v11 = vmul.f32 0.03125, %v1315_v10  ;;  %v1321_v12 = vmul.f32 %v1319_v9, %v1319_v9 }
 0x331   : > { %v1320_v13 = vsub.f32 %v4652_v4, %v1318_v11  ;;  %v1323_v14 = vsel %vm1309_vm1, %v1321_v12, 0.0 }
 0x332   : > { %1324 = vadd.xlane.f32.xlu1 %v1323_v14 }
 0x333   : > { %v1322_v15 = vmul.f32 %v1320_v13, %v1320_v13 }
 0x335   : > { %v1326_v16 = vsel %vm1309_vm1, %v1322_v15, 0.0 }
 0x336   : > { %1327 = vadd.xlane.f32.xlu1 %v1326_v16 }
 0x3bf   : > { %v1325_v20 = vpop.xlane.xlu1 %1324 }
 0x3c0   : > { %v1329_v21 = vmul.f32 0.03125, %v1325_v20 }
 0x3c2   : > { %v1331_v22 = vadd.f32 1e-05, %v1329_v21 }
 0x3c3   : > { %v1328_v23 = vpop.xlane.xlu1 %1327 }
 0x3c4   : > { %3034 = vrsqrt.f32 %v1331_v22  ;;  %v1330_v24 = vmul.f32 0.03125, %v1328_v23 }
 0x3c6   : > { %v1332_v25 = vadd.f32 1e-05, %v1330_v24 }
 0x3c8   : > { %3036 = vrsqrt.f32 %v1332_v25 }
 0x3ce   : > { %v3035_v26 = vpop.eup %3034 }
 0x3cf   : > { %v1335_v27 = vmul.f32 %v3035_v26, %v1319_v9 }
 0x3d1   : > { %v1343_v31 = vmul.f32 %v2683_v28, %v1335_v27 }
 0x3d2   : > { %v3037_v29 = vpop.eup %3036 }
 0x3d3   : > { %v1336_v30 = vmul.f32 %v3037_v29, %v1320_v13  ;;  %v1351_v34 = vadd.f32 %v2684_v32, %v1343_v31 }
 0x3d5   : > { %v1344_v33 = vmul.f32 %v2683_v28, %v1336_v30 }
 0x3d7   : > { %v1352_v35 = vadd.f32 %v2684_v32, %v1344_v33 }
 0x3d9   : > { %v1353_v37 = vpack.c.bf16 %v1352_v35, %v1351_v34 }
 0x3db   : > { %2779 = vmatmul.mubr.msk.bf16.vlgmr.msra.gmra.mrb[0].mxu0 %vm1309_vm1, %v1353_v37 }
 0x3dc   : > { %2783 = vmatpush3.bf16.msra.mxu0 %v3018_v36  ;;  %2786 = vmatprep.mubr.msk.bf16.mxu0 %vm3797_vm2, %v3796_v18  ;;  %v3022_v36 = vld [vmem:[%s4989_s1] sm:$0xff]  }
 0x3dd   : > { %2784 = vmatprep.subr.bf16.mxu0 %v3796_v18 }
 0x3e0   : > { %2785 = vmatpush3.bf16.msra.mxu0 %v3019_v38 }
 0x3e1   : > { %2790 = vmatprep.subr.bf16.mxu0 %v3796_v18 }
 0x3e3   : > { %2787 = vmatmul.mubr.msk.bf16.vlgmr.msra.gmra.mrb[4].mxu0 %vm1309_vm1, %v1353_v37 }
 0x3e4   : > { %2791 = vmatpush3.bf16.msra.mxu0 %v3020_v39  ;;  %2794 = vmatprep.mubr.msk.bf16.mxu0 %vm3797_vm2, %v3796_v18 }
 0x3e5   : > { %2792 = vmatprep.subr.bf16.mxu0 %v3796_v18 }
 0x3e8   : > { %2793 = vmatpush3.bf16.msra.mxu0 %v3021_v40  ;;  %v3023_v40 = vld [vmem:[%s4990_s20 + $0x8] sm:$0xff]  }
 0x3e9   : > { %2804 = vmatprep.subr.bf16.mxu0 %v3796_v18 }
 0x3eb   : > { %2795 = vmatmul.mubr.msk.bf16.vlgmr.msra.gmra.mrb[8].mxu0 %vm1309_vm1, %v1353_v37 }
 0x3ec   : > { %2806 = vmatprep.mubr.msk.bf16.mxu0 %vm3797_vm2, %v3796_v18 }
 0x4ae   : > { %v1414_v41 = vpop.f32.mrb[0].mxu0 }
 0x4af   : > { %v2780_v42 = vpop.f32.mrb[1].mxu0  ;;  %v1415_v57 = vadd.f32 %v2685_v53, %v1414_v41 }
 0x4b0   : > { %v1417_v43 = vpop.f32.mrb[2].mxu0 }
 0x4b1   : > { %v2781_v44 = vpop.f32.mrb[3].mxu0  ;;  %v1418_v60 = vadd.f32 %v2685_v53, %v1417_v43  ;;  %v1549_v0 = vpack.c.bf16 %v1415_v57, %v1415_v57 }
 0x4b3   : > { %v1550_v6 = vpack.c.bf16 %v1418_v60, %v1418_v60 }
 0x4b6   : > { %v1478_v46 = vpop.f32.mrb[4].mxu0 }
 0x4b7   : > { %v1479_v47 = vadd.f32 %v2689_v45, %v1478_v46  ;;  %v2788_v48 = vpop.f32.mrb[5].mxu0 }
 0x4b8   : > { %v1481_v49 = vpop.f32.mrb[6].mxu0 }
 0x4b9   : > { %v1551_v50 = vpack.c.bf16 %v1479_v47, %v1479_v47  ;;  %v1482_v51 = vadd.f32 %v2689_v45, %v1481_v49  ;;  %v2789_v52 = vpop.f32.mrb[7].mxu0 }
 0x4bb   : > { %v1552_v54 = vpack.c.bf16 %v1482_v51, %v1482_v51  ;;  %v1557_v55 = vsel %vm1309_vm1, %v1551_v50, 0  ;;  %v2701_v50 = vld [vmem:[%s4991_s4] ss:$0 sm:$0xff] }
 0x4bc   : > { %2799 = vmatpush3.bf16.xpose.msra.mxu1 %v1557_v55 }
 0x4bd   : > { %v1603_v58 = vsel %vm1309_vm1, %v1552_v54, 0  ;;  %2810 = vmatprep.subr.bf16.mxu1 %v3796_v18 }
 0x4be   : > { %v1542_v59 = vpop.f32.mrb[8].mxu0  ;;  %2805 = vmatpush3.bf16.xpose.msra.mxu0 %v1603_v58 }
 0x4bf   : > { %v1543_v61 = vadd.f32 %v2693_v56, %v1542_v59  ;;  %v2796_v62 = vpop.f32.mrb[9].mxu0  ;;  %2816 = vmatprep.subr.bf16.mxu0 %v3796_v18 }
 0x4c0   : > { %v1545_v63 = vpop.f32.mrb[10].mxu0 }
 0x4c1   : > { %v1670_v1 = vpack.c.bf16 %v1543_v61, %v1543_v61  ;;  %v1546_v2 = vadd.f32 %v2693_v56, %v1545_v63  ;;  %v2797_v5 = vpop.f32.mrb[11].mxu0 }
 0x4c3   : > { %v1677_v7 = vsel %vm1675_vm3, %v1670_v1, 0  ;;  %v1671_v8 = vpack.c.bf16 %v1546_v2, %v1546_v2  ;;  %2801 = vmatmul.mubr.msk.bf16.vlgmr.msra.gmra.mrb[0].mxu1 %vm1309_vm1, %v1549_v0 }
 0x4c4   : > { %2811 = vmatpush3.bf16.msra.mxu1 %v1677_v7  ;;  %2812 = vmatprep.mubr.msk.bf16.mxu1 %vm3797_vm2, %v3796_v18  ;;  %v3024_v7 = vld [vmem:[%s1134_s5] sm:$0xff]  }
 0x4c5   : > { %v1723_v9 = vsel %vm1675_vm3, %v1671_v8, 0  ;;  %2807 = vmatmul.mubr.msk.bf16.vlgmr.msra.gmra.mrb[12].mxu0 %vm1309_vm1, %v1550_v6  ;;  %2822 = vmatprep.subr.bf16.mxu1 %v3796_v18  ;;  %v3025_v8 = vld [vmem:[%s1134_s5 + $0x8] sm:$0xff]  }
 0x4c6   : > { %2817 = vmatpush3.bf16.msra.mxu0 %v1723_v9  ;;  %2818 = vmatprep.mubr.msk.bf16.mxu0 %vm3797_vm2, %v3796_v18 }
 0x4c7   : > { %2830 = vmatprep.subr.bf16.mxu0 %v3796_v18 }
 0x596   : > { %v1593_v10 = vpop.f32.mrb[0].mxu1 }
 0x597   : > { %v2802_v11 = vpop.f32.mrb[1].mxu1  ;;  %v1646_v12 = vsel %vm1645_vm4, %v1593_v10, -inf }
 0x598   : > { %1647 = vmax.xlane.f32.xlu0 %v1646_v12  ;;  %v1596_v13 = vpop.f32.mrb[2].mxu1  ;;  %v1639_v14 = vpop.f32.mrb[12].mxu0 }
 0x599   : > { %v2803_v15 = vpop.f32.mrb[3].mxu1  ;;  %v2808_v16 = vpop.f32.mrb[13].mxu0  ;;  %v1649_v17 = vsel %vm1645_vm4, %v1639_v14, -inf }
 0x59a   : > { %1650 = vmax.xlane.f32.xlu1 %v1649_v17  ;;  %v1642_v19 = vpop.f32.mrb[14].mxu0  ;;  %v2705_v16 = vld [vmem:[%s4992_s19] ss:$0 sm:$0xff] }
 0x59b   : > { %v2809_v20 = vpop.f32.mrb[15].mxu0 }
 0x625   : > { %v1648_v21 = vpop.xlane.xlu0 %1647 }
 0x626   : > { %v1652_v22 = vsub.f32 %v1593_v10, %v1648_v21 }
 0x627   : > { %v1651_v23 = vpop.xlane.xlu1 %1650 }
 0x628   : > { %v1654_v24 = vmul.f32 1.442695, %v1652_v22  ;;  %v1653_v25 = vsub.f32 %v1639_v14, %v1651_v23  ;;  %v2706_v22 = vld [vmem:[%s4993_s2] ss:$0 sm:$0xff] }
 0x62a   : > { %3038 = vpow2.f32 %v1654_v24  ;;  %v1656_v26 = vmul.f32 1.442695, %v1653_v25 }
 0x62c   : > { %3040 = vpow2.f32 %v1656_v26 }
 0x634   : > { %v3039_v27 = vpop.eup %3038 }
 0x635   : > { %v1658_v28 = vsel %vm1645_vm4, %v3039_v27, 0.0 }
 0x636   : > { %v3041_v29 = vpop.eup %3040  ;;  %1659 = vadd.xlane.f32.xlu0 %v1658_v28  ;;  %v3027_v28 = vld [vmem:[%s4634_s25 + $0x8] sm:$0xff]  }
 0x637   : > { %v1661_v30 = vsel %vm1645_vm4, %v3041_v29, 0.0 }
 0x638   : > { %1662 = vadd.xlane.f32.xlu1 %v1661_v30  ;;  %v3029_v30 = vld [vmem:[%s4634_s25 + $0x18] sm:$0xff]  }
 0x6c3   : > { %v1660_v31 = vpop.xlane.xlu0 %1659 }
 0x6c4   : > { %3042 = vrcp.f32 %v1660_v31  ;;  %v3030_v31 = vld [vmem:[%s4634_s25 + $0x20] sm:$0xff]  }
 0x6c5   : > { %v1663_v32 = vpop.xlane.xlu1 %1662 }
 0x6c6   : > { %3044 = vrcp.f32 %v1663_v32  ;;  %v3031_v32 = vld [vmem:[%s4634_s25 + $0x28] sm:$0xff]  }
 0x6ce   : > { %v3043_v33 = vpop.eup %3042 }
 0x6cf   : > { %v1666_v34 = vmul.f32 %v3043_v33, %v3039_v27  ;;  %v3026_v27 = vld [vmem:[%s4634_s25] sm:$0xff]   ;;  %v3032_v33 = vld [vmem:[%s4634_s25 + $0x30] sm:$0xff]  }
 0x6d0   : > { %v3045_v35 = vpop.eup %3044 }
 0x6d1   : > { %v1667_v37 = vmul.f32 %v3045_v35, %v3041_v29  ;;  %v1668_v38 = vpack.c.bf16 %v1666_v34, %v1666_v34  ;;  %v3028_v29 = vld [vmem:[%s4634_s25 + $0x10] sm:$0xff]   ;;  %v3033_v34 = vld [vmem:[%s4634_s25 + $0x38] sm:$0xff]  }
 0x6d2   : > { %v2707_v35 = vld [vmem:[%s1142_s3] ss:$0 sm:$0xff]  ;;  %s4994_s3 = sld [smem:[#allocation52_spill]] }
 0x6d3   : > { %2813 = vmatmul.mubr.msk.bf16.vlgmr.msra.gmra.mrb[4].mxu1 %vm1645_vm4, %v1668_v38  ;;  %v1669_v39 = vpack.c.bf16 %v1667_v37, %v1667_v37 }
 0x6d4   : > { %2823 = vmatpush3.bf16.msra.mxu1 %v3022_v36  ;;  %2826 = vmatprep.mubr.msk.bf16.mxu1 %vm3797_vm2, %v3796_v18 }
 0x6d5   : > { %2819 = vmatmul.mubr.msk.bf16.vlgmr.msra.gmra.mrb[16].mxu0 %vm1645_vm4, %v1669_v39  ;;  %2824 = vmatprep.subr.bf16.mxu1 %v3796_v18 }
 0x6d6   : > { %2834 = vmatprep.mubr.msk.bf16.mxu0 %vm3797_vm2, %v3796_v18  ;;  %2831 = vmatpush3.bf16.msra.mxu0 %v3024_v7 }
 0x6d7   : > { %2832 = vmatprep.subr.bf16.mxu0 %v3796_v18 }
 0x6d8   : > { %2825 = vmatpush3.bf16.msra.mxu1 %v3023_v40  ;;  %p2720_p8 = scmp.ne.s32.totalorder %s4994_s3, 1 }
 0x6d9   : > { %2838 = vmatprep.subr.bf16.mxu1 %v3796_v18  ;;  %v3056_v7 = vld [vmem:[#allocation30] sm:$0xff] (!%p2720_p8)   ;;  %vm3799_vm5 = vmmov (!%p2720_p8), 0   ;;  %vm2197_vm6 = vcmask (!%p2720_p8), 57344  }
 0x6da   : > { %2833 = vmatpush3.bf16.msra.mxu0 %v3025_v8  ;;  %v3798_v8 = vmov (!%p2720_p8), 0.0  }
 0x6db   : > { %2858 = vmatprep.subr.bf16.mxu0 (!%p2720_p8), %v3798_v8 }
 0x7a6   : > { %v1713_v41 = vpop.f32.mrb[4].mxu1 }
 0x7a7   : > { %v2814_v42 = vpop.f32.mrb[5].mxu1 }
 0x7a8   : > { %v1716_v43 = vpop.f32.mrb[6].mxu1  ;;  %v1759_v44 = vpop.f32.mrb[16].mxu0 }
 0x7a9   : > { %v1765_v45 = vpack.c.bf16 %v1759_v44, %v1713_v41  ;;  %v2815_v46 = vpop.f32.mrb[7].mxu1  ;;  %v2820_v47 = vpop.f32.mrb[17].mxu0 }
 0x7aa   : > { %v1762_v48 = vpop.f32.mrb[18].mxu0 }
 0x7ab   : > { %v2821_v49 = vpop.f32.mrb[19].mxu0  ;;  %2827 = vmatmul.mubr.msk.bf16.vlgmr.msra.gmra.mrb[8].mxu1 %vm1309_vm1, %v1765_v45 }
 0x7ac   : > { %2854 = vmatprep.mubr.msk.bf16.mxu1 %vm3797_vm2, %v3796_v18  ;;  %2839 = vmatpush3.bf16.msra.mxu1 %v3026_v27 }
 0x7ad   : > { %2840 = vmatprep.subr.bf16.mxu1 %v3796_v18 }
 0x7b0   : > { %2841 = vmatpush3.bf16.msra.mxu1 %v3027_v28 }
 0x7b1   : > { %2842 = vmatprep.subr.bf16.mxu1 %v3796_v18 }
 0x7b4   : > { %2843 = vmatpush3.bf16.msra.mxu1 %v3028_v29 }
 0x7b5   : > { %2844 = vmatprep.subr.bf16.mxu1 %v3796_v18 }
 0x7b8   : > { %2845 = vmatpush3.bf16.msra.mxu1 %v3029_v30 }
 0x7b9   : > { %2846 = vmatprep.subr.bf16.mxu1 %v3796_v18 }
 0x7bc   : > { %2847 = vmatpush3.bf16.msra.mxu1 %v3030_v31 }
 0x7bd   : > { %2848 = vmatprep.subr.bf16.mxu1 %v3796_v18 }
 0x7c0   : > { %2849 = vmatpush3.bf16.msra.mxu1 %v3031_v32 }
 0x7c1   : > { %2850 = vmatprep.subr.bf16.mxu1 %v3796_v18 }
 0x7c4   : > { %2851 = vmatpush3.bf16.msra.mxu1 %v3032_v33 }
 0x7c5   : > { %2852 = vmatprep.subr.bf16.mxu1 %v3796_v18 }
 0x7c8   : > { %2853 = vmatpush3.bf16.msra.mxu1 %v3033_v34 }
 0x87e   : > { %v1826_v51 = vpop.f32.mrb[8].mxu1 }
 0x87f   : > { %v1827_v52 = vadd.f32 %v2701_v50, %v1826_v51  ;;  %v2828_v53 = vpop.f32.mrb[9].mxu1 }
 0x880   : > { %v1829_v54 = vpop.f32.mrb[10].mxu1 }
 0x881   : > { %v4739_v55 = vadd.f32 %v1827_v52, %v4650_v3  ;;  %v1830_v56 = vadd.f32 %v2701_v50, %v1829_v54  ;;  %v2829_v57 = vpop.f32.mrb[11].mxu1 }
 0x883   : > { %v4742_v58 = vadd.f32 %v1830_v56, %v4652_v4  ;;  %v1837_v59 = vsel %vm1309_vm1, %v4739_v55, 0.0 }
 0x884   : > { %1838 = vadd.xlane.f32.xlu0 %v1837_v59 }
 0x885   : > { %v1840_v60 = vsel %vm1309_vm1, %v4742_v58, 0.0 }
 0x886   : > { %1841 = vadd.xlane.f32.xlu1 %v1840_v60 }
 0x911   : > { %v1839_v61 = vpop.xlane.xlu0 %1838 }
 0x912   : > { %v1843_v62 = vmul.f32 0.03125, %v1839_v61 }
 0x913   : > { %v1842_v63 = vpop.xlane.xlu1 %1841 }
 0x914   : > { %v1845_v3 = vsub.f32 %v4739_v55, %v1843_v62  ;;  %v1844_v0 = vmul.f32 0.03125, %v1842_v63  ;;  %v2711_v62 = vld [vmem:[%s1159_s7] ss:$0 sm:$0xff] }
 0x916   : > { %v1846_v1 = vsub.f32 %v4742_v58, %v1844_v0  ;;  %v1847_v4 = vmul.f32 %v1845_v3, %v1845_v3 }
 0x918   : > { %v1849_v2 = vsel %vm1309_vm1, %v1847_v4, 0.0  ;;  %v1848_v5 = vmul.f32 %v1846_v1, %v1846_v1 }
 0x919   : > { %1850 = vadd.xlane.f32.xlu0 %v1849_v2 }
 0x91a   : > { %v1852_v6 = vsel %vm1309_vm1, %v1848_v5, 0.0 }
 0x91b   : > { %1853 = vadd.xlane.f32.xlu1 %v1852_v6 }
 0x9a6   : > { %v1851_v9 = vpop.xlane.xlu0 %1850 }
 0x9a7   : > { %v1855_v10 = vmul.f32 0.03125, %v1851_v9  ;;  %v3057_v9 = vld [vmem:[#allocation30 + $0x8] sm:$0xff] (!%p2720_p8)  }
 0x9a8   : > { %v1854_v11 = vpop.xlane.xlu1 %1853 }
 0x9a9   : > { %v1857_v12 = vadd.f32 1e-05, %v1855_v10  ;;  %v1856_v13 = vmul.f32 0.03125, %v1854_v11  ;;  %v2726_v10 = vld [vmem:[#allocation2] ss:$0 sm:$0xff] (!%p2720_p8)  ;;  %v3800_v11 = vmov (!%p2720_p8), 0  }
 0x9aa   : > { %3054 = vset.pattern.permute.xlu1 (!%p2720_p8), %v3800_v11  ;;  %3055 = vset.pattern.permute.xlu0 (!%p2720_p8), %v3800_v11 }
 0x9ab   : > { %3046 = vrsqrt.f32 %v1857_v12  ;;  %v1858_v14 = vadd.f32 1e-05, %v1856_v13  ;;  %2178 = vperm.xlu1 (!%p2720_p8), %3054, %v2726_v10  }
 0x9ad   : > { %3048 = vrsqrt.f32 %v1858_v14 }
 0x9b5   : > { %v3047_v15 = vpop.eup %3046 }
 0x9b6   : > { %v1861_v17 = vmul.f32 %v3047_v15, %v1845_v3 }
 0x9b7   : > { %v3049_v19 = vpop.eup %3048 }
 0x9b8   : > { %v1869_v20 = vmul.f32 %v2705_v16, %v1861_v17  ;;  %v1862_v21 = vmul.f32 %v3049_v19, %v1846_v1 }
 0x9ba   : > { %v1870_v23 = vmul.f32 %v2705_v16, %v1862_v21  ;;  %v1877_v24 = vadd.f32 %v2706_v22, %v1869_v20  ;;  %v2725_v16 = vld [vmem:[#allocation33] ss:$0 sm:$0xff] (!%p2720_p8) }
 0x9bc   : > { %v1878_v25 = vadd.f32 %v2706_v22, %v1870_v23 }
 0x9be   : > { %v1879_v26 = vpack.c.bf16 %v1878_v25, %v1877_v24 }
 0x9c0   : > { %2835 = vmatmul.mubr.msk.bf16.vlgmr.msra.gmra.mrb[20].mxu0 %vm1309_vm1, %v1879_v26  ;;  %v2185_v26 = vlaneseq (!%p2720_p8) }
 0x9c1   : > { %2859 = vmatpush3.bf16.msra.mxu0 (!%p2720_p8), %v3056_v7  ;;  %2862 = vmatprep.mubr.msk.bf16.mxu0 (!%p2720_p8), %vm3799_vm5, %v3798_v8 }
 0x9c2   : > { %2860 = vmatprep.subr.bf16.mxu0 (!%p2720_p8), %v3798_v8  ;;  %v2186_v27 = vand.u32 (!%p2720_p8), 127, %v2185_v26  ;;  %v2188_v28 = vshrl.u32 (!%p2720_p8), %v2185_v26, 7 }
 0x9c4   : > { %v2189_v30 = vsub.s32 (!%p2720_p8), %v2186_v27, %v2188_v28 }
 0x9c5   : > { %2861 = vmatpush3.bf16.msra.mxu0 (!%p2720_p8), %v3057_v9 }
 0xa2a   : > { %v2179_v29 = vpop.permute.xlu1 (!%p2720_p8), %2178 }
 0xa93   : > { %v1940_v36 = vpop.f32.mrb[20].mxu0 }
 0xa94   : > { %v1941_v37 = vadd.f32 %v2707_v35, %v1940_v36  ;;  %v2836_v38 = vpop.f32.mrb[21].mxu0 }
 0xa95   : > { %v1943_v39 = vpop.f32.mrb[22].mxu0 }
 0xa96   : > { %v1947_v40 = vmul.f32 %v1941_v37, %v1941_v37  ;;  %v1944_v41 = vadd.f32 %v2707_v35, %v1943_v39  ;;  %v2837_v42 = vpop.f32.mrb[23].mxu0 }
 0xa98   : > { %v1949_v43 = vmul.f32 %v1947_v40, %v1941_v37  ;;  %v1948_v44 = vmul.f32 %v1944_v41, %v1944_v41 }
 0xa9a   : > { %v1951_v45 = vmul.f32 0.044715, %v1949_v43  ;;  %v1950_v46 = vmul.f32 %v1948_v44, %v1944_v41 }
 0xa9c   : > { %v1953_v47 = vadd.f32 %v1951_v45, %v1941_v37  ;;  %v1952_v48 = vmul.f32 0.044715, %v1950_v46 }
 0xa9e   : > { %v1955_v49 = vmul.f32 0.7978846, %v1953_v47  ;;  %v1954_v18 = vadd.f32 %v1952_v48, %v1944_v41 }
 0xaa0   : > { %3050 = vtanh.f32 %v1955_v49  ;;  %v1956_v50 = vmul.f32 0.7978846, %v1954_v18 }
 0xaa2   : > { %3052 = vtanh.f32 %v1956_v50 }
 0xaaa   : > { %v3051_v51 = vpop.eup %3050 }
 0xaab   : > { %v1959_v52 = vadd.f32 1.0, %v3051_v51 }
 0xaac   : > { %v3053_v53 = vpop.eup %3052 }
 0xaad   : > { %v1961_v54 = vmul.f32 0.5, %v1959_v52  ;;  %v1960_v56 = vadd.f32 1.0, %v3053_v53 }
 0xaaf   : > { %v1962_v57 = vmul.f32 0.5, %v1960_v56  ;;  %v1963_v59 = vmul.f32 %v1961_v54, %v1941_v37 }
 0xab1   : > { %v1964_v60 = vmul.f32 %v1962_v57, %v1944_v41 }
 0xab3   : > { %v1965_v61 = vpack.c.bf16 %v1964_v60, %v1963_v59 }
 0xab5   : > { %2855 = vmatmul.mubr.bf16.vlgmr.msra.gmra.mrb[12].mxu1 %v1965_v61 }
 0xb88   : > { %v2071_v63 = vpop.f32.mrb[12].mxu1 }
 0xb89   : > { %v2072_v3 = vadd.f32 %v2711_v62, %v2071_v63  ;;  %v2856_v0 = vpop.f32.mrb[13].mxu1  ;;  %2085 = sbr.rel (%p2720_p8) target bundleno = 3331 (0xd03), region = 192 }
 0xb8a   : > { %v2074_v1 = vpop.f32.mrb[14].mxu1 }
 0xb8b   : > { %v2078_v4 = vadd.f32 %v2072_v3, %v4739_v55  ;;  %v2075_v2 = vadd.f32 %v2711_v62, %v2074_v1  ;;  %v2857_v5 = vpop.f32.mrb[15].mxu1 }
 0xb8d   : > { %2080 = vst.msk [vmem:[#allocation35] sm:$0xff] %vm1309_vm1, %v2078_v4  ;;  %v2079_v6 = vadd.f32 %v2075_v2, %v4742_v58  ;;  %v2721_v58 = vld [vmem:[#allocation32] ss:$0 sm:$0xff] (!%p2720_p8) }
 0xb8f   : > { %2081 = vst.msk [vmem:[#allocation35 + $0x8] sm:$0xff] %vm1309_vm1, %v2079_v6  ;;  %v2086_v55 = vpack.c.bf16 (!%p2720_p8), %v2079_v6, %v2078_v4 }
 0xb91   : > { %2863 = vmatmul.mubr.msk.bf16.vlgmr.msra.gmra.mrb[0].mxu0 %vm1309_vm1, %v2086_v55 }
 0xc64   : > { %v2147_v12 = vpop.f32.mrb[0].mxu0 }
 0xc65   : > { %v2148_v13 = vadd.f32 %v2721_v58, %v2147_v12  ;;  %v2864_v14 = vpop.f32.mrb[1].mxu0 }
 0xc66   : > { %v2150_v15 = vpop.f32.mrb[2].mxu0 }
 0xc67   : > { %v2154_v17 = vmax.f32 %v2148_v13, 0.0  ;;  %v2151_v19 = vadd.f32 %v2721_v58, %v2150_v15  ;;  %v2865_v20 = vpop.f32.mrb[3].mxu0 }
 0xc69   : > { %v2155_v21 = vmax.f32 %v2151_v19, 0.0  ;;  %v2163_v22 = vmul.f32 %v2725_v16, %v2154_v17 }
 0xc6b   : > { %v2165_v23 = vsel %vm1309_vm1, %v2163_v22, 0.0  ;;  %v2164_v24 = vmul.f32 %v2725_v16, %v2155_v21 }
 0xc6c   : > { %2166 = vadd.xlane.f32.xlu0 %v2165_v23 }
 0xc6d   : > { %v2168_v25 = vsel %vm1309_vm1, %v2164_v24, 0.0 }
 0xc70   : > { %2169 = vadd.xlane.f32.xlu0 %v2168_v25 }
 0xcf9   : > { %v2167_v31 = vpop.xlane.xlu0 %2166 }
 0xcfa   : > { %v2181_v32 = vadd.f32 %v2179_v29, %v2167_v31 }
 0xcfc   : > { %v2190_v33 = vrot.slane %v2181_v32, %v2189_v30 }
 0xcfd   : > { %v2170_v34 = vpop.xlane.xlu0 %2169 }
 0xcfe   : > { %2198 = vst.msk [vmem:[#allocation36] sm:$0x1] %vm2197_vm6, %v2190_v33  ;;  %v2182_v35 = vadd.f32 %v2179_v29, %v2170_v34 }
 0xd00   : > { %v2194_v36 = vrot.slane %v2182_v35, %v2189_v30 }
 0xd02   : > { %2199 = vst.msk [vmem:[#allocation36 + $0x1] sm:$0x1] %vm2197_vm6, %v2194_v36 }
 0xd03 PF: > { %s4995_s6 = sld [smem:[#allocation53_spill]]  ;;  %s3801_s5 = smov [#allocation35]  }
 0xd04   : > { %s2209_s7 = sshll.u32 %s3801_s5, 4  ;;  %s2210_s7 = int_to_ptr.vmem [resolvable:$true] %s2209_s7 }
 0xd05   : > { %s3618_s25 = scalar_lea.vmem %s2210_s7, 256  ;;  %p3625_p7 = scmp.lt.s32.totalorder %s2210_s7, %s2210_s7 }
 0xd06   : > { %p3619_p13 = scmp.ne.s32.totalorder %s2210_s7, %s3618_s25  ;;  %p3626_p6 = scmp.lt.s32.totalorder %s3618_s25, %s3618_s25 }
 0xd08   : > { %p3627_p9 = por %p3626_p6, %p3625_p7 }
 0xd09   : > { %p2943_p2 = scmp.eq.s32.totalorder %s4995_s6, 1 }
 0xd0b   : > { %p3620_p4 = pnand %p3619_p13, %p2943_p2 }
 0xd0d   : > { %p3621_p5 = pneg %p3620_p4 }
 0xd0f   : > { %p3628_p0 = pnand %p3627_p9, %p3621_p5 }
 0xd11   : > { %3631 = shalt.err (!%p3628_p0)
}
 0xd12   : > { %s4996_s16 = sld [smem:[#allocation74_spill]] }
 0xd18   : > { %s3632_s17 = scalar_lea.hbm %s4996_s16, 256 }
 0xd19   : > { %p3633_p3 = scmp.ne.s32.totalorder %s4996_s16, %s3632_s17  ;;  %p3638_p1 = scmp.lt.u32.totalorder %s3632_s17, %s4996_s16 }
 0xd1b   : > { %p3634_p11 = pnand %p3633_p3, %p2943_p2 }
 0xd1d   : > { %p3635_p12 = pneg %p3634_p11 }
 0xd1f   : > { %p3640_p10 = pnand %p3638_p1, %p3635_p12 }
 0xd21   : > { %3643 = shalt.err (!%p3640_p10)
}
 0xd22   : > { %s3802_s19 = smov 128   ;;  %s3803_s2 = smov 8  }
 0xd23   : > { %2915 = dma.vmem_to_hbm [thread:$0]  (%p2943_p2), %s2210_s7, 256, %s4996_s16, [#allocation5], %s3802_s19, %s3802_s19, %s3803_s2  }
 0xd24   : > { %s3804_s25 = smov [#allocation36]  }
 0xd25   : > { %s2225_s29 = sshll.u32 %s3804_s25, 4  ;;  %s2226_s29 = int_to_ptr.vmem [resolvable:$true] %s2225_s29 }
 0xd26   : > { %s3644_s12 = scalar_lea.vmem %s2226_s29, 32  ;;  %p3651_p5 = scmp.lt.s32.totalorder %s2226_s29, %s2226_s29 }
 0xd27   : > { %p3645_p8 = scmp.ne.s32.totalorder %s2226_s29, %s3644_s12  ;;  %p3652_p7 = scmp.lt.s32.totalorder %s3644_s12, %s3644_s12 }
 0xd29   : > { %p3646_p13 = pnand %p3645_p8, %p2943_p2  ;;  %p3653_p6 = por %p3652_p7, %p3651_p5 }
 0xd2b   : > { %p3647_p4 = pneg %p3646_p13 }
 0xd2d   : > { %p3654_p9 = pnand %p3653_p6, %p3647_p4 }
 0xd2f   : > { %3657 = shalt.err (!%p3654_p9)
}
 0xd30   : > { %s4997_s1 = sld [smem:[#allocation75_spill]] }
 0xd36   : > { %s3658_s20 = scalar_lea.hbm %s4997_s1, 32 }
 0xd37   : > { %p3659_p0 = scmp.ne.s32.totalorder %s4997_s1, %s3658_s20  ;;  %p3664_p12 = scmp.lt.u32.totalorder %s3658_s20, %s4997_s1 }
 0xd39   : > { %p3660_p3 = pnand %p3659_p0, %p2943_p2 }
 0xd3b   : > { %p3661_p11 = pneg %p3660_p3 }
 0xd3d   : > { %p3666_p1 = pnand %p3664_p12, %p3661_p11 }
 0xd3f   : > { %3669 = shalt.err (!%p3666_p1)
}
 0xd40   : > { %s3805_s3 = smov 16   ;;  %s3806_s5 = smov 1  }
 0xd41   : > { %2917 = dma.vmem_to_hbm [thread:$0]  (%p2943_p2), %s2226_s29, 32, %s4997_s1, [#allocation37], %s3805_s3, %s3805_s3, %s3806_s5  }
 0xd42   : > { %3739 = dma.done.wait (%p2943_p2), [#allocation5], 256  }
 0xd43   : > { %3741 = vsyncadd (%p2943_p2), [#allocation5], 4294967040 }
 0xd44   : > { %3743 = dma.done.wait (%p2943_p2), [#allocation37], 32  }
 0xd45   : > { %3745 = vsyncadd (%p2943_p2), [#allocation37], 4294967264 }
 0xd46 PF: > { %s64_s23 = sadd.s32 1, %s3768_s23   ;;  %s4998_s20 = sld [smem:[#allocation51_spill]] }
 0xd47   : > { %p61_p10 = scmp.ge.s32.totalorder %s64_s23, 4   ;;  %s4999_s17 = sld [smem:[#allocation56_spill]] }
 0xd48   : > { %s5000_s8 = sld [smem:[#allocation54_spill]]  ;;  %s5001_s29 = smov %s3756_s30 }
 0xd49   : > { %s5003_s4 = smov %s3764_s0  ;;  %63 = sbr.rel (!%p61_p10) target bundleno = 42 (0x2a), region = 356 }
 0xd4d   : > { %s5002_s30 = smov %s4999_s17 }
 0xd4e   : > { %s5004_s0 = smov %s5000_s8 }
 0xd50   :  { %2245 = vsyncpa [#allocation4], 1 }
 0xd51   :  { %2247 = vsyncpa [#allocation4 + $0x1], 1 }
 0xd52   :  { %2248 = vsyncpa [#allocation7], 1 }
 0xd53   :  { %2250 = vsyncpa [#allocation7 + $0x1], 1 }
 0xd54   :  { %2251 = vsyncpa [#allocation10], 1 }
 0xd55   :  { %2253 = vsyncpa [#allocation10 + $0x1], 1 }
 0xd56   :  { %2254 = vsyncpa [#allocation13], 1 }
 0xd57   :  { %2256 = vsyncpa [#allocation13 + $0x1], 1 }
 0xd58   :  { %2257 = vsyncpa [#allocation16], 1 }
 0xd59   :  { %2259 = vsyncpa [#allocation16 + $0x1], 1 }
 0xd5a   :  { %2260 = vsyncpa [#allocation19], 1 }
 0xd5b   :  { %2262 = vsyncpa [#allocation19 + $0x1], 1 }
 0xd5c   :  { %2263 = vsyncpa [#allocation22], 1 }
 0xd5d   :  { %2265 = vsyncpa [#allocation22 + $0x1], 1 }
 0xd5e   :  { %2266 = vsyncpa [#allocation25], 1 }
 0xd5f   :  { %2268 = vsyncpa [#allocation25 + $0x1], 1 }
 0xd60   :  { %2269 = vsyncpa [#allocation28], 1 }
 0xd61   :  { %2271 = vsyncpa [#allocation28 + $0x1], 1 }
 0xd62   :  { %2272 = vsyncpa [#allocation31], 1 }
 0xd63   :  { %2273 = vsyncpa [#allocation34], 1 }
 0xd64   :  { %2274 = vsyncpa [#allocation5], 1 }
 0xd65   :  { %2276 = vsyncpa [#allocation5 + $0x1], 1 }
 0xd66   :  { %2277 = vsyncpa [#allocation37], 1 }

// kernel: neg.3
= control target key start
LH: loop header
LB: loop body
LE: loop exit
PB: predicated region body
PF: predicated region fallthrough
CT: control target
= control target key end

     0   :  { %s24_s0 = inlined_call_operand.vmem [shape: f32[2,8], index: 0, kind: input, shape index: {}]   ;;  %s25_s1 = inlined_call_operand.vmem [shape: f32[2,8], index: 1, kind: output, shape index: {}]  }
   0x1   :  { %v2_v0 = vld [vmem:[%s24_s0] sm:$0xff] }
   0x2   :  { %v5_v1 = vxor.u32 2147483648, %v2_v0 }
   0x4   :  { %7 = vst [vmem:[%s25_s1] sm:$0xff] %v5_v1 }

// kernel: tramba_ultra_forward.6
= control target key start
LH: loop header
LB: loop body
LE: loop exit
PB: predicated region body
PF: predicated region fallthrough
CT: control target
= control target key end

     0   :  { %s2776_s0 = inlined_call_operand.hbm [shape: f32[4,8,32], index: 0, kind: input, shape index: {}]   ;;  %s2777_s1 = inlined_call_operand.hbm [shape: f32[2,1,32], index: 1, kind: input, shape index: {}]   ;;  %s2778_s2 = inlined_call_operand.hbm [shape: f32[2,1,32], index: 2, kind: input, shape index: {}]   ;;  %s2779_s3 = inlined_call_operand.hbm [shape: bf16[2,32,32], index: 3, kind: input, shape index: {}]   ;;  %s2780_s4 = inlined_call_operand.hbm [shape: f32[2,1,32], index: 4, kind: input, shape index: {}]   ;;  %s2781_s5 = inlined_call_operand.hbm [shape: bf16[2,32,32], index: 5, kind: input, shape index: {}]   ;;  %s2782_s6 = inlined_call_operand.hbm [shape: f32[2,1,32], index: 6, kind: input, shape index: {}]   ;;  %s2783_s7 = inlined_call_operand.hbm [shape: f32[2,1,32], index: 7, kind: input, shape index: {}]   ;;  %s2784_s8 = inlined_call_operand.hbm [shape: bf16[2,32,32], index: 8, kind: input, shape index: {}]   ;;  %s2785_s9 = inlined_call_operand.hbm [shape: f32[2,1,32], index: 9, kind: input, shape index: {}]   ;;  %s2786_s10 = inlined_call_operand.hbm [shape: f32[4,8,32], index: 10, kind: output, shape index: {}]  }
   0x1   :  { %2818 = sst [smem:[#allocation41_spill]] %s2776_s0 }
   0x2   :  { %2819 = sst [smem:[#allocation42_spill]] %s2777_s1 }
   0x3   :  { %2820 = sst [smem:[#allocation43_spill]] %s2778_s2 }
   0x4   :  { %2821 = sst [smem:[#allocation44_spill]] %s2779_s3 }
   0x5   :  { %2822 = sst [smem:[#allocation45_spill]] %s2780_s4 }
   0x6   :  { %2823 = sst [smem:[#allocation46_spill]] %s2781_s5 }
   0x7   :  { %2824 = sst [smem:[#allocation47_spill]] %s2782_s6 }
   0x8   :  { %2825 = sst [smem:[#allocation48_spill]] %s2783_s7 }
   0x9   :  { %2826 = sst [smem:[#allocation49_spill]] %s2784_s8 }
   0xa   :  { %2827 = sst [smem:[#allocation50_spill]] %s2785_s9 }
   0xb   :  { %2828 = sst [smem:[#allocation51_spill]] %s2786_s10 }
   0xc   :  { %15 = vsyncpa [#allocation3], 0 }
   0xd   :  { %17 = vsyncpa [#allocation3 + $0x1], 0 }
   0xe   :  { %18 = vsyncpa [#allocation6], 0 }
   0xf   :  { %20 = vsyncpa [#allocation6 + $0x1], 0 }
  0x10   :  { %21 = vsyncpa [#allocation9], 0 }
  0x11   :  { %23 = vsyncpa [#allocation9 + $0x1], 0 }
  0x12   :  { %24 = vsyncpa [#allocation12], 0 }
  0x13   :  { %26 = vsyncpa [#allocation12 + $0x1], 0 }
  0x14   :  { %27 = vsyncpa [#allocation15], 0 }
  0x15   :  { %29 = vsyncpa [#allocation15 + $0x1], 0 }
  0x16   :  { %30 = vsyncpa [#allocation18], 0 }
  0x17   :  { %32 = vsyncpa [#allocation18 + $0x1], 0 }
  0x18   :  { %33 = vsyncpa [#allocation4], 0 }
  0x19   :  { %35 = vsyncpa [#allocation4 + $0x1], 0  ;;  %s2109_s13 = smov 0   ;;  %s2111_s14 = smov 0  }
  0x1a   :  { %s2113_s15 = smov 0   ;;  %s2115_s16 = smov 0  }
  0x1b   :  { %s2117_s17 = smov 0   ;;  %s2119_s18 = smov 0  }
  0x1c   :  { %s2121_s19 = smov 0   ;;  %s2123_s20 = smov 0  }
  0x1d   :  { %s2125_s21 = smov 0   ;;  %s2127_s22 = smov 0  }
  0x1e   :  { %s2129_s23 = smov 0  }
  0x1f LB: > { %2829 = sst [smem:[#allocation27_spill]] %s2001_s15  ;;  %s50_s24 = sadd.s32 1, %s2025_s21  ;;  %s2033_s23 = sphi %s2129_s23, %s41_s23   ;;  %s2029_s22 = sphi %s2127_s22, %s2901_s22   ;;  %s2025_s21 = sphi %s2125_s21, %s2900_s21   ;;  %s2021_s20 = sphi %s2123_s20, %s2899_s20   ;;  %s2017_s19 = sphi %s2121_s19, %s2898_s19   ;;  %s2013_s18 = sphi %s2119_s18, %s2897_s18   ;;  %s2009_s17 = sphi %s2117_s17, %s2906_s17   ;;  %s2005_s16 = sphi %s2115_s16, %s2905_s16   ;;  %s2001_s15 = sphi %s2113_s15, %s2904_s15   ;;  %s1997_s14 = sphi %s2111_s14, %s2903_s14   ;;  %s1993_s13 = sphi %s2109_s13, %s2902_s13  }
  0x20   : > { %2830 = sst [smem:[#allocation28_spill]] %s2005_s16  ;;  %p2793_p0 = scmp.eq.s32.totalorder %s2033_s23, 0 }
  0x21   : > { %2831 = sst [smem:[#allocation29_spill]] %s2013_s18  ;;  %p2166_p1 = scmp.ge.s32.totalorder %s50_s24, 2 }
  0x22   : > { %2832 = sst [smem:[#allocation30_spill]] %s2017_s19  ;;  %s86_s26 = sadd.s32 1, %s2001_s15 }
  0x23   : > { %2833 = sst [smem:[#allocation31_spill]] %s2021_s20  ;;  %p93_p2 = scmp.ne.s32.totalorder %s2001_s15, %s1997_s14 }
  0x24   : > { %2834 = sst [smem:[#allocation32_spill]] %s2025_s21  ;;  %s2908_s24 = smov (%p2166_p1, %s50_s24), 0 }
  0x25   : > { %2835 = sst [smem:[#allocation33_spill]] %s2029_s22  ;;  %p95_p3 = por %p93_p2, %p2793_p0 }
  0x26   : > { %s2836_s25 = scalar_select %p2166_p1, 1, 0 }
  0x27   : > { %2837 = sst [smem:[#allocation34_spill]] %s2908_s24  ;;  %p2792_p4 = scmp.lt.s32.totalorder %s2033_s23, 4 }
  0x28   : > { %s83_s27 = ssub.s32 %s2025_s21, %s2908_s24  ;;  %s2183_s28 = sand.u32 1, %s2033_s23  }
  0x29   : > { %p84_p5 = scmp.eq.s32.totalorder %s83_s27, 0  ;;  %s2186_s29 = sand.u32 1, %s2001_s15  }
  0x2a   : > { %s2189_s30 = sshll.u32 %s2025_s21, 4  ;;  %s2839_s1 = sld [smem:[#allocation42_spill]] }
  0x2b   : > { %s2192_s11 = scalar_select %p84_p5, %s2001_s15, %s86_s26  }
  0x2c   : > { %s381_s24 = scalar_lea.vmem [#allocation5], %s2186_s29  ;;  %p2203_p6 = pnand %p2792_p4, %p95_p3 }
  0x2d   : > { %2838 = sst [smem:[#allocation35_spill]] %s2192_s11  ;;  %s388_s19 = sshll.u32 %s381_s24, 4  ;;  %s2207_s19 = int_to_ptr.vmem [resolvable:$true] %s388_s19 }
  0x2e   : > { %s2840_s27 = scalar_select %p2203_p6, 1, 0 }
  0x2f   : > { %p2216_p10 = pneg %p2203_p6 }
  0x30   : > { %s2198_s20 = scalar_lea.hbm %s2839_s1, %s2189_s30  ;;  %s1596_s15 = scalar_lea.hbm %s2839_s1, 32 }
  0x31   : > { %s1591_s10 = scalar_lea.hbm %s2198_s20, 16  ;;  %p1597_p13 = scmp.lt.u32.totalorder %s2198_s20, %s2839_s1 }
  0x32   : > { %p1592_p9 = scmp.ne.s32.totalorder %s2198_s20, %s1591_s10  ;;  %p1598_p2 = scmp.lt.u32.totalorder %s1596_s15, %s1591_s10 }
  0x33   : > { %p1600_p5 = scmp.lt.u32.totalorder %s1591_s10, %s2198_s20 }
  0x34   : > { %p1594_p11 = pnand %p2216_p10, %p1592_p9  ;;  %p1599_p3 = por %p1598_p2, %p1597_p13 }
  0x36   : > { %p1595_p12 = pneg %p1594_p11  ;;  %p1601_p4 = por %p1600_p5, %p1599_p3 }
  0x38   : > { %p1602_p0 = pnand %p1601_p4, %p1595_p12 }
  0x3a   : > { %1605 = shalt.err (!%p1602_p0)
}
  0x3b   : > { %s1606_s26 = scalar_lea.vmem %s2207_s19, 16  ;;  %s2035_s11 = smov [#allocation5]  }
  0x3c   : > { %p1607_p9 = scmp.ne.s32.totalorder %s2207_s19, %s1606_s26  ;;  %s1611_s24 = sshll.u32 %s2035_s11, 4  ;;  %s1612_s24 = int_to_ptr.vmem [resolvable:$false] %s1611_s24 }
  0x3d   : > { %s1613_s8 = scalar_lea.vmem %s1612_s24, 32  ;;  %p1614_p8 = scmp.lt.s32.totalorder %s2207_s19, %s1612_s24 }
  0x3e   : > { %p1609_p11 = pnand %p1607_p9, %p2216_p10  ;;  %p1615_p1 = scmp.lt.s32.totalorder %s1613_s8, %s1606_s26 }
  0x40   : > { %p1610_p7 = pneg %p1609_p11  ;;  %p1616_p13 = por %p1615_p1, %p1614_p8 }
  0x42   : > { %p1617_p2 = pnand %p1616_p13, %p1610_p7 }
  0x44   : > { %1620 = shalt.err (!%p1617_p2)
}
  0x45   : > { %s2842_s9 = scalar_lea.sflag [#allocation6], %s2183_s28  ;;  %p2843_p0 = scmp.lt.s32.totalorder %s2033_s23, 5 }
  0x46   : > { %1442 = dma.hbm_to_vmem [thread:$0]  (!%p2203_p6), %s2198_s20, 16, %s2207_s19, %s2842_s9  }
  0x47   : > { %p2844_p4 = scmp.ge.s32.totalorder %s2033_s23, 1  ;;  %s2250_s26 = sshll.u32 %s2186_s29, 4 }
  0x48   : > { %s2253_s10 = sshll.u32 %s2025_s21, 8  ;;  %s2847_s3 = sld [smem:[#allocation44_spill]] }
  0x49   : > { %p2245_p12 = pnand %p2844_p4, %p2843_p0  ;;  %s416_s19 = scalar_lea.vmem [#allocation8], %s2250_s26 }
  0x4a   : > { %s423_s20 = sshll.u32 %s416_s19, 4  ;;  %s2799_s9 = scalar_lea.sflag [#allocation9], %s2183_s28  ;;  %s2262_s20 = int_to_ptr.vmem [resolvable:$true] %s423_s20 }
  0x4b   : > { %s2845_s15 = scalar_select %p2245_p12, 1, 0 }
  0x4d   : > { %2846 = sst [smem:[#allocation36_spill]] %s2845_s15 }
  0x4e   : > { %s2259_s8 = scalar_lea.hbm %s2847_s3, %s2253_s10  ;;  %s1626_s11 = scalar_lea.hbm %s2847_s3, 512 }
  0x4f   : > { %s1621_s1 = scalar_lea.hbm %s2259_s8, 256  ;;  %p1627_p3 = scmp.lt.u32.totalorder %s2259_s8, %s2847_s3 }
  0x50   : > { %p1622_p1 = scmp.ne.s32.totalorder %s2259_s8, %s1621_s1  ;;  %p1628_p5 = scmp.lt.u32.totalorder %s1626_s11, %s1621_s1 }
  0x51   : > { %p1630_p11 = scmp.lt.u32.totalorder %s1621_s1, %s2259_s8 }
  0x52   : > { %p1624_p7 = pnand %p1622_p1, %p2216_p10  ;;  %p1629_p9 = por %p1628_p5, %p1627_p3 }
  0x54   : > { %p1625_p8 = pneg %p1624_p7  ;;  %p1631_p13 = por %p1630_p11, %p1629_p9 }
  0x56   : > { %p1632_p2 = pnand %p1631_p13, %p1625_p8 }
  0x58   : > { %1635 = shalt.err (!%p1632_p2)
}
  0x59   : > { %s1636_s19 = scalar_lea.vmem %s2262_s20, 256  ;;  %s2036_s21 = smov [#allocation8]  }
  0x5a   : > { %p1637_p0 = scmp.ne.s32.totalorder %s2262_s20, %s1636_s19  ;;  %s1641_s15 = sshll.u32 %s2036_s21, 4  ;;  %s1642_s15 = int_to_ptr.vmem [resolvable:$false] %s1641_s15 }
  0x5b   : > { %s1643_s6 = scalar_lea.vmem %s1642_s15, 512  ;;  %p1644_p7 = scmp.lt.s32.totalorder %s2262_s20, %s1642_s15 }
  0x5c   : > { %p1639_p4 = pnand %p1637_p0, %p2216_p10  ;;  %p1645_p12 = scmp.lt.s32.totalorder %s1643_s6, %s1636_s19 }
  0x5e   : > { %p1640_p1 = pneg %p1639_p4  ;;  %p1646_p3 = por %p1645_p12, %p1644_p7 }
  0x60   : > { %p1647_p5 = pnand %p1646_p3, %p1640_p1 }
  0x62   : > { %1650 = shalt.err (!%p1647_p5)
}
  0x63   : > { %s2800_s1 = smov 64   ;;  %s2801_s11 = smov 4  }
  0x64   : > { %1448 = dma.hbm_to_vmem [thread:$0]  (!%p2203_p6), %s2259_s8, 256, %s2262_s20, %s2799_s9, %s2800_s1, %s2800_s1, %s2801_s11  }
  0x65   : > { %s2848_s5 = sld [smem:[#allocation46_spill]]  ;;  %s454_s15 = scalar_lea.vmem [#allocation11], %s2250_s26 }
  0x66   : > { %s461_s6 = sshll.u32 %s454_s15, 4  ;;  %s2805_s3 = scalar_lea.sflag [#allocation12], %s2183_s28  ;;  %s2298_s6 = int_to_ptr.vmem [resolvable:$true] %s461_s6 }
  0x6b   : > { %s2295_s21 = scalar_lea.hbm %s2848_s5, %s2253_s10  ;;  %s1656_s24 = scalar_lea.hbm %s2848_s5, 512 }
  0x6c   : > { %s1651_s4 = scalar_lea.hbm %s2295_s21, 256  ;;  %p1657_p11 = scmp.lt.u32.totalorder %s2295_s21, %s2848_s5 }
  0x6d   : > { %p1652_p12 = scmp.ne.s32.totalorder %s2295_s21, %s1651_s4  ;;  %p1658_p13 = scmp.lt.u32.totalorder %s1656_s24, %s1651_s4 }
  0x6e   : > { %p1660_p0 = scmp.lt.u32.totalorder %s1651_s4, %s2295_s21 }
  0x6f   : > { %p1654_p8 = pnand %p1652_p12, %p2216_p10  ;;  %p1659_p2 = por %p1658_p13, %p1657_p11 }
  0x71   : > { %p1655_p9 = pneg %p1654_p8  ;;  %p1661_p4 = por %p1660_p0, %p1659_p2 }
  0x73   : > { %p1662_p1 = pnand %p1661_p4, %p1655_p9 }
  0x75   : > { %1665 = shalt.err (!%p1662_p1)
}
  0x76   : > { %s1666_s15 = scalar_lea.vmem %s2298_s6, 256  ;;  %s2039_s8 = smov [#allocation11]  }
  0x77   : > { %p1667_p7 = scmp.ne.s32.totalorder %s2298_s6, %s1666_s15  ;;  %s1671_s20 = sshll.u32 %s2039_s8, 4  ;;  %s1672_s20 = int_to_ptr.vmem [resolvable:$false] %s1671_s20 }
  0x78   : > { %s1673_s9 = scalar_lea.vmem %s1672_s20, 512  ;;  %p1674_p12 = scmp.lt.s32.totalorder %s2298_s6, %s1672_s20 }
  0x79   : > { %p1669_p3 = pnand %p1667_p7, %p2216_p10  ;;  %p1675_p8 = scmp.lt.s32.totalorder %s1673_s9, %s1666_s15 }
  0x7b   : > { %p1670_p5 = pneg %p1669_p3  ;;  %p1676_p11 = por %p1675_p8, %p1674_p12 }
  0x7d   : > { %p1677_p13 = pnand %p1676_p11, %p1670_p5 }
  0x7f   : > { %1680 = shalt.err (!%p1677_p13)
}
  0x80   : > { %1454 = dma.hbm_to_vmem [thread:$0]  (!%p2203_p6), %s2295_s21, 256, %s2298_s6, %s2805_s3, %s2800_s1, %s2800_s1, %s2801_s11  }
  0x81   : > { %s2849_s7 = sld [smem:[#allocation48_spill]]  ;;  %s491_s15 = scalar_lea.vmem [#allocation14], %s2186_s29 }
  0x82   : > { %s498_s8 = sshll.u32 %s491_s15, 4  ;;  %s2804_s20 = scalar_lea.sflag [#allocation15], %s2183_s28  ;;  %s499_s8 = int_to_ptr.vmem [resolvable:$true] %s498_s8 }
  0x87   : > { %s2331_s19 = scalar_lea.hbm %s2849_s7, %s2189_s30  ;;  %s1686_s6 = scalar_lea.hbm %s2849_s7, 32 }
  0x88   : > { %s1681_s9 = scalar_lea.hbm %s2331_s19, 16  ;;  %p1687_p4 = scmp.lt.u32.totalorder %s2331_s19, %s2849_s7 }
  0x89   : > { %p1682_p9 = scmp.ne.s32.totalorder %s2331_s19, %s1681_s9  ;;  %p1688_p1 = scmp.lt.u32.totalorder %s1686_s6, %s1681_s9 }
  0x8a   : > { %p1690_p3 = scmp.lt.u32.totalorder %s1681_s9, %s2331_s19 }
  0x8b   : > { %p1684_p2 = pnand %p1682_p9, %p2216_p10  ;;  %p1689_p7 = por %p1688_p1, %p1687_p4 }
  0x8d   : > { %p1685_p0 = pneg %p1684_p2  ;;  %p1691_p5 = por %p1690_p3, %p1689_p7 }
  0x8f   : > { %p1692_p12 = pnand %p1691_p5, %p1685_p0 }
  0x91   : > { %1695 = shalt.err (!%p1692_p12)
}
  0x92   : > { %s1696_s15 = scalar_lea.vmem %s499_s8, 16  ;;  %s2040_s1 = smov [#allocation14]  }
  0x93   : > { %p1697_p8 = scmp.ne.s32.totalorder %s499_s8, %s1696_s15  ;;  %s1701_s11 = sshll.u32 %s2040_s1, 4  ;;  %s1702_s11 = int_to_ptr.vmem [resolvable:$false] %s1701_s11 }
  0x94   : > { %s1703_s5 = scalar_lea.vmem %s1702_s11, 32  ;;  %p1704_p9 = scmp.lt.s32.totalorder %s499_s8, %s1702_s11 }
  0x95   : > { %p1699_p11 = pnand %p1697_p8, %p2216_p10  ;;  %p1705_p2 = scmp.lt.s32.totalorder %s1703_s5, %s1696_s15 }
  0x97   : > { %p1700_p13 = pneg %p1699_p11  ;;  %p1706_p6 = por %p1705_p2, %p1704_p9 }
  0x99   : > { %p1707_p1 = pnand %p1706_p6, %p1700_p13 }
  0x9b   : > { %1710 = shalt.err (!%p1707_p1)
}
  0x9c   : > { %p2850_p4 = scmp.ne.s32.totalorder %s2840_s27, 0  ;;  %s2355_s1 = sadd.s32 4294967295, %s2033_s23  }
  0x9d   : > { %s1326_s11 = sadd.s32 4294967294, %s2033_s23   ;;  %s53_s9 = sadd.s32 1, %s2029_s22 }
  0x9e   : > { %1460 = dma.hbm_to_vmem [thread:$0]  (!%p2850_p4), %s2331_s19, 16, %s499_s8, %s2804_s20  }
  0x9f   : > { %s60_s21 = sadd.s32 1, %s2013_s18  ;;  %p2851_p6 = scmp.ne.s32.totalorder %s2836_s25, 0 }
  0xa0   : > { %p67_p0 = scmp.ne.s32.totalorder %s2013_s18, %s2009_s17  ;;  %p73_p7 = scmp.ne.s32.totalorder %s2009_s17, %s2005_s16 }
  0xa1   : > { %s2910_s9 = smov (!%p2851_p6, %s53_s9), %s2029_s22  ;;  %p74_p5 = scmp.eq.s32.totalorder %s2355_s1, 0 }
  0xa2   : > { %p55_p3 = scmp.ge.s32.totalorder %s2910_s9, 2  ;;  %p2852_p12 = scmp.eq.s32.totalorder %s2033_s23, 0 }
  0xa3   : > { %p99_p11 = scmp.ne.s32.totalorder %s1997_s14, %s1993_s13  ;;  %p2384_p13 = por %p74_p5, %p73_p7 }
  0xa4   : > { %p2373_p8 = por %p2852_p12, %p67_p0  ;;  %s2912_s9 = smov (%p55_p3, %s2910_s9), 0 }
  0xa5   : > { %2854 = sst [smem:[#allocation37_spill]] %s2912_s9  ;;  %p2388_p9 = por %p99_p11, %p74_p5 }
  0xa6   : > { %s2855_s25 = scalar_select %p2384_p13, 1, 0 }
  0xa7   : > { %s2856_s8 = scalar_select %p2388_p9, 1, 0 }
  0xa8   : > { %s57_s6 = ssub.s32 %s2029_s22, %s2912_s9  ;;  %p331_p2 = scmp.eq.s32.totalorder %s2355_s1, 3 }
  0xa9   : > { %2857 = sst [smem:[#allocation38_spill]] %s2856_s8  ;;  %p58_p1 = scmp.eq.s32.totalorder %s57_s6, 0 }
  0xaa   : > { %p337_p6 = scmp.eq.s32.totalorder %s1326_s11, 3  ;;  %p2398_p12 = por %p331_p2, %p67_p0 }
  0xab   : > { %s357_s4 = sand.u32 1, %s2013_s18   ;;  %s1376_s20 = sshll.u32 %s2029_s22, 8 }
  0xac   : > { %s2858_s13 = scalar_select %p2398_p12, 1, 0 }
  0xad   : > { %s2404_s24 = scalar_select %p58_p1, %s2013_s18, %s60_s21  }
  0xae   : > { %p2409_p3 = por %p337_p6, %p73_p7  ;;  %s1329_s5 = sshll.u32 %s357_s4, 4 }
  0xaf   : > { %2859 = sst [smem:[#allocation39_spill]] %s2404_s24  ;;  %s2862_s0 = sld [smem:[#allocation41_spill]] }
  0xb0   : > { %s2860_s15 = scalar_select %p2409_p3, 1, 0 }
  0xb1   : > { %s361_s11 = scalar_lea.vmem [#allocation2], %s1329_s5  ;;  %p2863_p0 = scmp.lt.s32.totalorder %s2033_s23, 4 }
  0xb2   : > { %2861 = sst [smem:[#allocation40_spill]] %s2860_s15  ;;  %s368_s9 = sshll.u32 %s361_s11, 4  ;;  %s2427_s9 = int_to_ptr.vmem [resolvable:$true] %s368_s9 }
  0xb3   : > { %p2423_p5 = pnand %p2863_p0, %p2373_p8  ;;  %s2429_s22 = scalar_lea.sflag [#allocation3], %s357_s4 }
  0xb5   : > { %s2417_s6 = scalar_lea.hbm %s2862_s0, %s1376_s20  ;;  %p1713_p11 = pneg %p2423_p5 }
  0xb6   : > { %s1711_s3 = scalar_lea.hbm %s2417_s6, 256  ;;  %s1716_s19 = scalar_lea.hbm %s2862_s0, 512 }
  0xb7   : > { %p1712_p7 = scmp.ne.s32.totalorder %s2417_s6, %s1711_s3  ;;  %p1717_p8 = scmp.lt.u32.totalorder %s2417_s6, %s2862_s0 }
  0xb8   : > { %p1718_p6 = scmp.lt.u32.totalorder %s1716_s19, %s1711_s3  ;;  %p1720_p3 = scmp.lt.u32.totalorder %s1711_s3, %s2417_s6 }
  0xb9   : > { %p1714_p2 = pnand %p1713_p11, %p1712_p7 }
  0xba   : > { %p1719_p0 = por %p1718_p6, %p1717_p8 }
  0xbb   : > { %p1715_p1 = pneg %p1714_p2 }
  0xbc   : > { %p1721_p12 = por %p1720_p3, %p1719_p0 }
  0xbe   : > { %p1722_p9 = pnand %p1721_p12, %p1715_p1 }
  0xc0   : > { %1725 = shalt.err (!%p1722_p9)
}
  0xc1   : > { %s1726_s4 = scalar_lea.vmem %s2427_s9, 256  ;;  %s2041_s7 = smov [#allocation2]  }
  0xc2   : > { %p1727_p7 = scmp.ne.s32.totalorder %s2427_s9, %s1726_s4  ;;  %s1731_s20 = sshll.u32 %s2041_s7, 4  ;;  %s1732_s20 = int_to_ptr.vmem [resolvable:$false] %s1731_s20 }
  0xc3   : > { %s1733_s5 = scalar_lea.vmem %s1732_s20, 512  ;;  %p1734_p4 = scmp.lt.s32.totalorder %s2427_s9, %s1732_s20 }
  0xc4   : > { %p1729_p2 = pnand %p1727_p7, %p1713_p11  ;;  %p1735_p8 = scmp.lt.s32.totalorder %s1733_s5, %s1726_s4 }
  0xc6   : > { %p1730_p13 = pneg %p1729_p2  ;;  %p1736_p6 = por %p1735_p8, %p1734_p4 }
  0xc8   : > { %p1737_p3 = pnand %p1736_p6, %p1730_p13 }
  0xca   : > { %1740 = shalt.err (!%p1737_p3)
}
  0xcb   : > { %s2042_s3 = smov 128   ;;  %s2043_s19 = smov 8  }
  0xcc   : > { %1439 = dma.hbm_to_vmem [thread:$0]  (!%p2423_p5), %s2417_s6, 256, %s2427_s9, %s2429_s22, %s2042_s3, %s2042_s3, %s2043_s19  }
  0xcd   : > { %s2865_s2 = sld [smem:[#allocation43_spill]]  ;;  %s398_s4 = scalar_lea.vmem [#allocation7], %s2186_s29 }
  0xce   : > { %s405_s5 = sshll.u32 %s398_s4, 4  ;;  %s2866_s18 = sld [smem:[#allocation45_spill]]  ;;  %s406_s5 = int_to_ptr.vmem [resolvable:$true] %s405_s5 }
  0xd3   : > { %s2461_s20 = scalar_lea.hbm %s2865_s2, %s2189_s30  ;;  %s1746_s6 = scalar_lea.hbm %s2865_s2, 32 }
  0xd4   : > { %s2867_s8 = smov %s2866_s18  ;;  %s2468_s15 = scalar_lea.hbm %s2866_s18, %s2189_s30 }
  0xd5   : > { %s1741_s16 = scalar_lea.hbm %s2461_s20, 16  ;;  %p1747_p12 = scmp.lt.u32.totalorder %s2461_s20, %s2865_s2 }
  0xd6   : > { %p1742_p4 = scmp.ne.s32.totalorder %s2461_s20, %s1741_s16  ;;  %p1748_p5 = scmp.lt.u32.totalorder %s1746_s6, %s1741_s16 }
  0xd7   : > { %p1750_p1 = scmp.lt.u32.totalorder %s1741_s16, %s2461_s20 }
  0xd8   : > { %p1744_p13 = pnand %p1742_p4, %p2216_p10  ;;  %p1749_p11 = por %p1748_p5, %p1747_p12 }
  0xda   : > { %p1745_p9 = pneg %p1744_p13  ;;  %p1751_p0 = por %p1750_p1, %p1749_p11 }
  0xdc   : > { %p1752_p7 = pnand %p1751_p0, %p1745_p9 }
  0xde   : > { %1755 = shalt.err (!%p1752_p7)
}
  0xdf   : > { %s1756_s0 = scalar_lea.vmem %s406_s5, 16  ;;  %s2044_s18 = smov [#allocation7]  }
  0xe0   : > { %p1757_p2 = scmp.ne.s32.totalorder %s406_s5, %s1756_s0  ;;  %s1761_s24 = sshll.u32 %s2044_s18, 4  ;;  %s1762_s24 = int_to_ptr.vmem [resolvable:$false] %s1761_s24 }
  0xe1   : > { %s1763_s19 = scalar_lea.vmem %s1762_s24, 32  ;;  %p1764_p3 = scmp.lt.s32.totalorder %s406_s5, %s1762_s24 }
  0xe2   : > { %p1759_p8 = pnand %p1757_p2, %p2216_p10  ;;  %p1765_p4 = scmp.lt.s32.totalorder %s1763_s19, %s1756_s0 }
  0xe4   : > { %p1760_p6 = pneg %p1759_p8  ;;  %p1766_p13 = por %p1765_p4, %p1764_p3 }
  0xe6   : > { %p1767_p5 = pnand %p1766_p13, %p1760_p6 }
  0xe8   : > { %1770 = shalt.err (!%p1767_p5)
}
  0xe9   : > { %p2868_p12 = scmp.ne.s32.totalorder %s2840_s27, 0  ;;  %s2869_s16 = scalar_lea.sflag [#allocation6], %s2183_s28 }
  0xea   : > { %s436_s11 = scalar_lea.vmem [#allocation10], %s2186_s29  ;;  %s2870_s9 = sld [smem:[#allocation47_spill]] }
  0xeb   : > { %1445 = dma.hbm_to_vmem [thread:$0]  (!%p2868_p12), %s2461_s20, 16, %s406_s5, %s2869_s16  }
  0xec   : > { %s443_s7 = sshll.u32 %s436_s11, 4  ;;  %s1771_s21 = scalar_lea.hbm %s2468_s15, 16  ;;  %s444_s7 = int_to_ptr.vmem [resolvable:$true] %s443_s7 }
  0xed   : > { %p1772_p9 = scmp.ne.s32.totalorder %s2468_s15, %s1771_s21  ;;  %s1776_s18 = scalar_lea.hbm %s2867_s8, 32 }
  0xee   : > { %p1777_p0 = scmp.lt.u32.totalorder %s2468_s15, %s2867_s8  ;;  %p1778_p7 = scmp.lt.u32.totalorder %s1776_s18, %s1771_s21 }
  0xef   : > { %p1774_p11 = pnand %p1772_p9, %p2216_p10  ;;  %p1780_p8 = scmp.lt.u32.totalorder %s1771_s21, %s2468_s15 }
  0xf0   : > { %s2494_s6 = scalar_lea.hbm %s2870_s9, %s2189_s30  ;;  %p1779_p2 = por %p1778_p7, %p1777_p0 }
  0xf1   : > { %p1775_p1 = pneg %p1774_p11 }
  0xf2   : > { %p1781_p6 = por %p1780_p8, %p1779_p2 }
  0xf4   : > { %p1782_p3 = pnand %p1781_p6, %p1775_p1 }
  0xf6   : > { %1785 = shalt.err (!%p1782_p3)
}
  0xf7   : > { %s1786_s20 = scalar_lea.vmem %s444_s7, 16  ;;  %s2045_s5 = smov [#allocation10]  }
  0xf8   : > { %p1787_p4 = scmp.ne.s32.totalorder %s444_s7, %s1786_s20  ;;  %s1791_s16 = sshll.u32 %s2045_s5, 4  ;;  %s1792_s16 = int_to_ptr.vmem [resolvable:$false] %s1791_s16 }
  0xf9   : > { %s1793_s11 = scalar_lea.vmem %s1792_s16, 32  ;;  %p1794_p9 = scmp.lt.s32.totalorder %s444_s7, %s1792_s16 }
  0xfa   : > { %p1789_p13 = pnand %p1787_p4, %p2216_p10  ;;  %p1795_p11 = scmp.lt.s32.totalorder %s1793_s11, %s1786_s20 }
  0xfc   : > { %p1790_p5 = pneg %p1789_p13  ;;  %p1796_p12 = por %p1795_p11, %p1794_p9 }
  0xfe   : > { %p1797_p0 = pnand %p1796_p12, %p1790_p5 }
 0x100   : > { %1800 = shalt.err (!%p1797_p0)
}
 0x101   : > { %p2871_p7 = scmp.ne.s32.totalorder %s2840_s27, 0  ;;  %s2872_s4 = scalar_lea.sflag [#allocation9], %s2183_s28 }
 0x102   : > { %s474_s22 = scalar_lea.vmem [#allocation13], %s2186_s29  ;;  %s2873_s18 = sld [smem:[#allocation49_spill]] }
 0x103   : > { %1451 = dma.hbm_to_vmem [thread:$0]  (!%p2871_p7), %s2468_s15, 16, %s444_s7, %s2872_s4  }
 0x104   : > { %s481_s21 = sshll.u32 %s474_s22, 4  ;;  %s1801_s20 = scalar_lea.hbm %s2494_s6, 16  ;;  %s482_s21 = int_to_ptr.vmem [resolvable:$true] %s481_s21 }
 0x105   : > { %p1802_p12 = scmp.ne.s32.totalorder %s2494_s6, %s1801_s20  ;;  %s1806_s11 = scalar_lea.hbm %s2870_s9, 32 }
 0x106   : > { %p1807_p8 = scmp.lt.u32.totalorder %s2494_s6, %s2870_s9  ;;  %p1808_p6 = scmp.lt.u32.totalorder %s1806_s11, %s1801_s20 }
 0x107   : > { %p1804_p1 = pnand %p1802_p12, %p2216_p10  ;;  %p1810_p4 = scmp.lt.u32.totalorder %s1801_s20, %s2494_s6 }
 0x108   : > { %s2874_s24 = smov %s2873_s18  ;;  %s2520_s19 = scalar_lea.hbm %s2873_s18, %s2253_s10 }
 0x109   : > { %p1805_p2 = pneg %p1804_p1  ;;  %p1809_p3 = por %p1808_p6, %p1807_p8 }
 0x10b   : > { %p1811_p13 = por %p1810_p4, %p1809_p3 }
 0x10d   : > { %p1812_p5 = pnand %p1811_p13, %p1805_p2 }
 0x10f   : > { %1815 = shalt.err (!%p1812_p5)
}
 0x110   : > { %s1816_s10 = scalar_lea.vmem %s482_s21, 16  ;;  %s2046_s15 = smov [#allocation13]  }
 0x111   : > { %p1817_p9 = scmp.ne.s32.totalorder %s482_s21, %s1816_s10  ;;  %s1821_s7 = sshll.u32 %s2046_s15, 4  ;;  %s1822_s7 = int_to_ptr.vmem [resolvable:$false] %s1821_s7 }
 0x112   : > { %s1823_s4 = scalar_lea.vmem %s1822_s7, 32  ;;  %p1824_p12 = scmp.lt.s32.totalorder %s482_s21, %s1822_s7 }
 0x113   : > { %p1819_p11 = pnand %p1817_p9, %p2216_p10  ;;  %p1825_p1 = scmp.lt.s32.totalorder %s1823_s4, %s1816_s10 }
 0x115   : > { %p1820_p0 = pneg %p1819_p11  ;;  %p1826_p7 = por %p1825_p1, %p1824_p12 }
 0x117   : > { %p1827_p6 = pnand %p1826_p7, %p1820_p0 }
 0x119   : > { %1830 = shalt.err (!%p1827_p6)
}
 0x11a   : > { %p2875_p8 = scmp.ne.s32.totalorder %s2840_s27, 0  ;;  %s2876_s2 = scalar_lea.sflag [#allocation12], %s2183_s28 }
 0x11b   : > { %s509_s8 = scalar_lea.vmem [#allocation16], %s2250_s26  ;;  %s1831_s3 = scalar_lea.hbm %s2520_s19, 256 }
 0x11c   : > { %1457 = dma.hbm_to_vmem [thread:$0]  (!%p2875_p8), %s2494_s6, 16, %s482_s21, %s2876_s2  }
 0x11d   : > { %s516_s22 = sshll.u32 %s509_s8, 4  ;;  %p1832_p2 = scmp.ne.s32.totalorder %s2520_s19, %s1831_s3  ;;  %s2542_s22 = int_to_ptr.vmem [resolvable:$true] %s516_s22 }
 0x11e   : > { %s1836_s20 = scalar_lea.hbm %s2874_s24, 512  ;;  %p1837_p4 = scmp.lt.u32.totalorder %s2520_s19, %s2874_s24 }
 0x11f   : > { %p1834_p7 = pnand %p1832_p2, %p2216_p10  ;;  %p1838_p13 = scmp.lt.u32.totalorder %s1836_s20, %s1831_s3 }
 0x120   : > { %p1840_p9 = scmp.lt.u32.totalorder %s1831_s3, %s2520_s19 }
 0x121   : > { %p1835_p3 = pneg %p1834_p7  ;;  %p1839_p5 = por %p1838_p13, %p1837_p4 }
 0x123   : > { %p1841_p11 = por %p1840_p9, %p1839_p5 }
 0x125   : > { %p1842_p0 = pnand %p1841_p11, %p1835_p3 }
 0x127   : > { %1845 = shalt.err (!%p1842_p0)
}
 0x128   : > { %s1846_s26 = scalar_lea.vmem %s2542_s22, 256  ;;  %s2047_s6 = smov [#allocation16]  }
 0x129   : > { %p1847_p12 = scmp.ne.s32.totalorder %s2542_s22, %s1846_s26  ;;  %s1851_s21 = sshll.u32 %s2047_s6, 4  ;;  %s1852_s21 = int_to_ptr.vmem [resolvable:$false] %s1851_s21 }
 0x12a   : > { %s1853_s11 = scalar_lea.vmem %s1852_s21, 512  ;;  %p1854_p2 = scmp.lt.s32.totalorder %s2542_s22, %s1852_s21 }
 0x12b   : > { %p1849_p1 = pnand %p1847_p12, %p2216_p10  ;;  %p1855_p7 = scmp.lt.s32.totalorder %s1853_s11, %s1846_s26 }
 0x12d   : > { %p1850_p6 = pneg %p1849_p1  ;;  %p1856_p4 = por %p1855_p7, %p1854_p2 }
 0x12f   : > { %p1857_p13 = pnand %p1856_p4, %p1850_p6 }
 0x131   : > { %1860 = shalt.err (!%p1857_p13)
}
 0x132   : > { %s2877_s10 = smov 4   ;;  %s2878_s15 = smov 64  }
 0x133   : > { %s2879_s7 = scalar_lea.sflag [#allocation15], %s2183_s28  ;;  %s2880_s8 = sld [smem:[#allocation50_spill]] }
 0x134   : > { %1463 = dma.hbm_to_vmem [thread:$0]  (!%p2875_p8), %s2520_s19, 256, %s2542_s22, %s2879_s7, %s2878_s15, %s2878_s15, %s2877_s10  }
 0x135   : > { %s529_s0 = scalar_lea.vmem [#allocation17], %s2186_s29  ;;  %s527_s28 = scalar_lea.sflag [#allocation18], %s2186_s29 }
 0x136   : > { %s536_s18 = sshll.u32 %s529_s0, 4  ;;  %s537_s18 = int_to_ptr.vmem [resolvable:$true] %s536_s18 }
 0x139   : > { %s2574_s3 = scalar_lea.hbm %s2880_s8, %s2189_s30  ;;  %s1866_s22 = scalar_lea.hbm %s2880_s8, 32 }
 0x13a   : > { %s1861_s20 = scalar_lea.hbm %s2574_s3, 16  ;;  %p1867_p11 = scmp.lt.u32.totalorder %s2574_s3, %s2880_s8 }
 0x13b   : > { %p1862_p3 = scmp.ne.s32.totalorder %s2574_s3, %s1861_s20  ;;  %p1868_p0 = scmp.lt.u32.totalorder %s1866_s22, %s1861_s20 }
 0x13c   : > { %p1870_p1 = scmp.lt.u32.totalorder %s1861_s20, %s2574_s3 }
 0x13d   : > { %p1864_p5 = pnand %p1862_p3, %p2216_p10  ;;  %p1869_p12 = por %p1868_p0, %p1867_p11 }
 0x13f   : > { %p1865_p9 = pneg %p1864_p5  ;;  %p1871_p6 = por %p1870_p1, %p1869_p12 }
 0x141   : > { %p1872_p2 = pnand %p1871_p6, %p1865_p9 }
 0x143   : > { %1875 = shalt.err (!%p1872_p2)
}
 0x144   : > { %s1876_s29 = scalar_lea.vmem %s537_s18, 16  ;;  %s2048_s26 = smov [#allocation17]  }
 0x145   : > { %p1877_p7 = scmp.ne.s32.totalorder %s537_s18, %s1876_s29  ;;  %s1881_s6 = sshll.u32 %s2048_s26, 4  ;;  %s1882_s6 = int_to_ptr.vmem [resolvable:$false] %s1881_s6 }
 0x146   : > { %s1883_s21 = scalar_lea.vmem %s1882_s6, 32  ;;  %p1884_p3 = scmp.lt.s32.totalorder %s537_s18, %s1882_s6 }
 0x147   : > { %p1879_p4 = pnand %p1877_p7, %p2216_p10  ;;  %p1885_p5 = scmp.lt.s32.totalorder %s1883_s21, %s1876_s29 }
 0x149   : > { %p1880_p13 = pneg %p1879_p4  ;;  %p1886_p8 = por %p1885_p5, %p1884_p3 }
 0x14b   : > { %p1887_p0 = pnand %p1886_p8, %p1880_p13 }
 0x14d   : > { %1890 = shalt.err (!%p1887_p0)
}
 0x14e   : > { %p2881_p11 = scmp.ne.s32.totalorder %s2840_s27, 0  ;;  %s2882_s11 = sld [smem:[#allocation36_spill]] }
 0x150   : > { %1466 = dma.hbm_to_vmem [thread:$0]  (!%p2881_p11), %s2574_s3, 16, %s537_s18, %s527_s28  }
 0x154   : > { %p2883_p9 = scmp.ne.s32.totalorder %s2882_s11, 0 }
 0x155   : > { %s2598_s12 = sand.u32 (!%p2883_p9), 1, %s2009_s17   ;;  %p2884_p10 = scmp.ne.s32.totalorder (!%p2883_p9), %s2855_s25, 0 }
 0x156   : > { %545 = sbr.rel (%p2883_p9) target bundleno = 1187 (0x4a3), region = 60  ;;  %s1348_s10 = sshll.u32 (!%p2883_p9), %s2598_s12, 4 }
 0x157   : > { %s548_s15 = scalar_lea.sflag (!%p2883_p9), [#allocation3], %s2598_s12  ;;  %s2604_s7 = scalar_lea.vmem (!%p2883_p9), [#allocation2], %s1348_s10 }
 0x15d   : > { %1964 = dma.done.wait (%p2884_p10), %s548_s15, 256  }
 0x15e   : > { %1966 = vsyncadd (%p2884_p10), %s548_s15, 4294967040  ;;  %s2885_s27 = sld [smem:[#allocation38_spill]]  ;;  %s556_s4 = sand.u32 1, %s2355_s1  }
 0x15f   : > { %s2612_s2 = sand.u32 1, %s1997_s14   ;;  %s557_s3 = scalar_lea.sflag [#allocation6], %s556_s4 }
 0x160   : > { %s559_s0 = scalar_lea.vmem [#allocation5], %s2612_s2 }
 0x164   : > { %p2886_p8 = scmp.ne.s32.totalorder %s2885_s27, 0 }
 0x166   : > { %1968 = dma.done.wait (%p2886_p8), %s557_s3, 32  }
 0x167   : > { %1970 = vsyncadd (%p2886_p8), %s557_s3, 4294967264  ;;  %s2620_s18 = sshll.u32 %s2612_s2, 4  ;;  %s567_s25 = scalar_lea.vmem [#allocation7], %s2612_s2 }
 0x168   : > { %s573_s28 = scalar_lea.sflag [#allocation9], %s556_s4  ;;  %s576_s20 = scalar_lea.vmem [#allocation8], %s2620_s18 }
 0x169   : > { %1972 = dma.done.wait (%p2886_p8), %s573_s28, 272  }
 0x16a   : > { %1974 = vsyncadd (%p2886_p8), %s573_s28, 4294967024  ;;  %s584_s1 = scalar_lea.vmem [#allocation10], %s2612_s2  ;;  %s590_s5 = scalar_lea.sflag [#allocation12], %s556_s4 }
 0x16b   : > { %s593_s19 = scalar_lea.vmem [#allocation11], %s2620_s18 }
 0x16c   : > { %1976 = dma.done.wait (%p2886_p8), %s590_s5, 272  }
 0x16d   : > { %1978 = vsyncadd (%p2886_p8), %s590_s5, 4294967024  ;;  %s601_s22 = scalar_lea.vmem [#allocation13], %s2612_s2  ;;  %s607_s16 = scalar_lea.sflag [#allocation15], %s556_s4 }
 0x16e   : > { %s609_s30 = scalar_lea.vmem [#allocation14], %s2612_s2 }
 0x16f   : > { %1980 = dma.done.wait (%p2886_p8), %s607_s16, 272  }
 0x170   : > { %1982 = vsyncadd (%p2886_p8), %s607_s16, 4294967024  ;;  %s618_s29 = scalar_lea.vmem [#allocation16], %s2620_s18  ;;  %s624_s26 = scalar_lea.sflag [#allocation18], %s2612_s2 }
 0x171   : > { %s626_s6 = scalar_lea.vmem [#allocation17], %s2612_s2 }
 0x172   : > { %1984 = dma.done.wait (%p2886_p8), %s624_s26, 16  }
 0x173   : > { %1986 = vsyncadd (%p2886_p8), %s624_s26, 4294967280  ;;  %s2649_s21 = scalar_lea.vmem [#allocation19], %s1348_s10  ;;  %s2887_s11 = sld [smem:[#allocation30_spill]] }
 0x179   : > { %p1353_p12 = scmp.ne.s32.totalorder %s2887_s11, 0 }
 0x17a   : > { %v709_v0 = vld [vmem:[%s2604_s7] sm:$0xff] (!%p1353_p12)  ;;  %vm711_vm0 = vcmask (!%p1353_p12), 261120   ;;  %v710_v1 = vld [vmem:[%s2604_s7 + $0x8] sm:$0xff] (!%p1353_p12) }
 0x17b   : > { %708 = sbr.rel (%p1353_p12) target bundleno = 386 (0x182), region = 104  ;;  %712 = vst.msk [vmem:[%s2649_s21] sm:$0xff] (!%p1353_p12), %vm711_vm0, %v709_v0  ;;  %713 = vst.msk [vmem:[%s2649_s21 + $0x8] sm:$0xff] (!%p1353_p12), %vm711_vm0, %v710_v1 }
 0x182 PF: > { %v2657_v2 = vld [vmem:[%s2649_s21] sm:$0xff]  ;;  %vm718_vm1 = vcmask 261120   ;;  %v2660_v3 = vld [vmem:[%s2649_s21 + $0x8] sm:$0xff]  ;;  %v1569_v16 = vld [vmem:[%s576_s20] sm:$0xff]   ;;  %v2049_v18 = vmov 0.0   ;;  %vm2050_vm2 = vmmov 0   ;;  %v902_v44 = vlaneseq }
 0x183   : > { %v719_v4 = vsel %vm718_vm1, %v2657_v2, 0.0  ;;  %v722_v5 = vsel %vm718_vm1, %v2660_v3, 0.0  ;;  %v1570_v17 = vld [vmem:[%s593_s19] sm:$0xff]   ;;  %1390 = vmatprep.subr.bf16.mxu0 %v2049_v18  ;;  %1398 = vmatprep.subr.bf16.mxu1 %v2049_v18  ;;  %v1572_v20 = vld [vmem:[%s593_s19 + $0x8] sm:$0xff]   ;;  %vm916_vm3 = vcmask 1040384   ;;  %vm934_vm4 = vcmask 1041408  }
 0x184   : > { %720 = vadd.xlane.f32.xlu0 %v719_v4  ;;  %1391 = vmatpush3.bf16.msra.mxu0 %v1569_v16  ;;  %v1571_v19 = vld [vmem:[%s576_s20 + $0x8] sm:$0xff]   ;;  %v903_v45 = vshrl.u32 %v902_v44, 7  ;;  %vm955_vm5 = vcmask 1043456   ;;  %s2888_s10 = sld [smem:[#allocation31_spill]]  ;;  %s1064_s7 = sshll.u32 %s2649_s21, 4  ;;  %s2708_s7 = int_to_ptr.vmem [resolvable:$true] %s1064_s7 }
 0x185   : > { %1399 = vmatpush3.bf16.msra.mxu1 %v1570_v17  ;;  %1392 = vmatprep.subr.bf16.mxu0 %v2049_v18  ;;  %v1354_v29 = vld [vmem:[%s559_s0] ss:$0 sm:$0xff]  ;;  %v1574_v39 = vld [vmem:[%s618_s29 + $0x8] sm:$0xff]   ;;  %s2889_s3 = sld [smem:[#allocation51_spill]]  ;;  %s1051_s2 = scalar_lea.sflag [#allocation4], %s2598_s12 }
 0x186   : > { %1400 = vmatprep.subr.bf16.mxu1 %v2049_v18  ;;  %1394 = vmatprep.mubr.msk.bf16.mxu0 %vm2050_vm2, %v2049_v18  ;;  %v1355_v33 = vld [vmem:[%s567_s25] ss:$0 sm:$0xff]  ;;  %v904_v47 = vsub.s32 0, %v903_v45  ;;  %s1891_s18 = scalar_lea.vmem %s2708_s7, 256  ;;  %p2890_p6 = scmp.ne.s32.totalorder %s2858_s13, 0 }
 0x187   : > { %1402 = vmatprep.mubr.msk.bf16.mxu1 %vm2050_vm2, %v2049_v18  ;;  %v1573_v38 = vld [vmem:[%s618_s29] sm:$0xff]   ;;  %p1892_p1 = scmp.ne.s32.totalorder %s2708_s7, %s1891_s18  ;;  %s2051_s25 = smov [#allocation19]  }
 0x188   : > { %723 = vadd.xlane.f32.xlu0 %v722_v5  ;;  %1393 = vmatpush3.bf16.msra.mxu0 %v1571_v19  ;;  %v894_v40 = vld [vmem:[%s609_s30] sm:$0x1]  ;;  %s1895_s28 = sshll.u32 %s2051_s25, 4  ;;  %s1896_s28 = int_to_ptr.vmem [resolvable:$false] %s1895_s28 }
 0x189   : > { %1401 = vmatpush3.bf16.msra.mxu1 %v1572_v20  ;;  %1406 = vmatprep.subr.bf16.mxu0 %v2049_v18  ;;  %v1364_v41 = vmul.f32 -1.442695, %v894_v40  ;;  %v1356_v49 = vld [vmem:[%s584_s1] ss:$0 sm:$0xff]  ;;  %p1893_p2 = pnand %p1892_p1, %p2890_p6  ;;  %s1897_s20 = scalar_lea.vmem %s1896_s28, 512 }
 0x18a   : > { %v1360_v50 = vld [vmem:[%s601_s22] ss:$0 sm:$0xff]  ;;  %s1380_s15 = sshll.u32 %s2888_s10, 8  ;;  %p1898_p4 = scmp.lt.s32.totalorder %s2708_s7, %s1896_s28 }
 0x18b   : > { %s2706_s0 = scalar_lea.hbm %s2889_s3, %s1380_s15  ;;  %p1894_p7 = pneg %p1893_p2 }
 0x18c   : > { %p1899_p13 = scmp.lt.s32.totalorder %s1897_s20, %s1891_s18 }
 0x18e   : > { %p1900_p3 = por %p1899_p13, %p1898_p4 }
 0x190   : > { %p1901_p5 = pnand %p1900_p3, %p1894_p7 }
 0x211   : > { %v721_v6 = vpop.xlane.xlu0 %720 }
 0x212   : > { %v726_v7 = vmul.f32 0.03125, %v721_v6 }
 0x214   : > { %v728_v8 = vsub.f32 %v2657_v2, %v726_v7 }
 0x215   : > { %v724_v9 = vpop.xlane.xlu0 %723 }
 0x216   : > { %v727_v10 = vmul.f32 0.03125, %v724_v9  ;;  %v730_v11 = vmul.f32 %v728_v8, %v728_v8 }
 0x218   : > { %v729_v12 = vsub.f32 %v2660_v3, %v727_v10  ;;  %v732_v13 = vsel %vm718_vm1, %v730_v11, 0.0 }
 0x219   : > { %733 = vadd.xlane.f32.xlu1 %v732_v13 }
 0x21a   : > { %v731_v14 = vmul.f32 %v729_v12, %v729_v12 }
 0x21c   : > { %v735_v15 = vsel %vm718_vm1, %v731_v14, 0.0 }
 0x21d   : > { %736 = vadd.xlane.f32.xlu1 %v735_v15 }
 0x2a6   : > { %v734_v21 = vpop.xlane.xlu1 %733 }
 0x2a7   : > { %v738_v22 = vmul.f32 0.03125, %v734_v21 }
 0x2a9   : > { %v740_v23 = vadd.f32 1e-05, %v738_v22 }
 0x2aa   : > { %v737_v24 = vpop.xlane.xlu1 %736 }
 0x2ab   : > { %1575 = vrsqrt.f32 %v740_v23  ;;  %v739_v25 = vmul.f32 0.03125, %v737_v24 }
 0x2ad   : > { %v741_v26 = vadd.f32 1e-05, %v739_v25 }
 0x2af   : > { %1577 = vrsqrt.f32 %v741_v26 }
 0x2b0   : > { %1579 = vpow2.f32 %v1364_v41 }
 0x2b5   : > { %v1576_v27 = vpop.eup %1575 }
 0x2b6   : > { %v744_v28 = vmul.f32 %v1576_v27, %v728_v8 }
 0x2b8   : > { %v752_v32 = vmul.f32 %v1354_v29, %v744_v28 }
 0x2b9   : > { %v1578_v30 = vpop.eup %1577 }
 0x2ba   : > { %v745_v31 = vmul.f32 %v1578_v30, %v729_v12  ;;  %v760_v35 = vadd.f32 %v1355_v33, %v752_v32  ;;  %v1580_v42 = vpop.eup %1579 }
 0x2bb   : > { %v898_v43 = vadd.f32 1.0, %v1580_v42 }
 0x2bc   : > { %v753_v34 = vmul.f32 %v1354_v29, %v745_v31 }
 0x2bd   : > { %1581 = vrcp.f32 %v898_v43 }
 0x2be   : > { %v761_v36 = vadd.f32 %v1355_v33, %v753_v34 }
 0x2c0   : > { %v762_v37 = vpack.c.bf16 %v761_v36, %v760_v35 }
 0x2c2   : > { %1395 = vmatmul.mubr.msk.bf16.vlgmr.msra.gmra.mrb[0].mxu0 %vm718_vm1, %v762_v37  ;;  %1403 = vmatmul.mubr.msk.bf16.vlgmr.msra.gmra.mrb[0].mxu1 %vm718_vm1, %v762_v37 }
 0x2c3   : > { %1410 = vmatprep.mubr.msk.bf16.mxu0 %vm2050_vm2, %v2049_v18  ;;  %1407 = vmatpush3.bf16.msra.mxu0 %v1573_v38 }
 0x2c4   : > { %1408 = vmatprep.subr.bf16.mxu0 %v2049_v18 }
 0x2c7   : > { %1409 = vmatpush3.bf16.msra.mxu0 %v1574_v39  ;;  %v1582_v46 = vpop.eup %1581 }
 0x2c8   : > { %v907_v48 = vsub.f32 1.0, %v1582_v46  ;;  %v905_v4 = vrot.slane %v1582_v46, %v904_v47 }
 0x2ca   : > { %v912_v51 = vrot.slane %v907_v48, %v904_v47  ;;  %v917_v10 = vsel %vm916_vm3, 1.0, %v905_v4  ;;  %v1367_v47 = vld [vmem:[%s626_s6] ss:$0 sm:$0xff] }
 0x2cb   : > { %v930_v15 = vmul.f32 %v917_v10, %v905_v4 }
 0x2cd   : > { %v932_v19 = vrot.slane %v930_v15, 6 }
 0x2cf   : > { %v935_v28 = vsel %vm934_vm4, 1.0, %v932_v19 }
 0x2d0   : > { %v948_v32 = vmul.f32 %v935_v28, %v930_v15 }
 0x395   : > { %v823_v52 = vpop.f32.mrb[0].mxu0  ;;  %v887_v53 = vpop.f32.mrb[0].mxu1 }
 0x396   : > { %v824_v54 = vadd.f32 %v1356_v49, %v823_v52  ;;  %v888_v55 = vadd.f32 %v1360_v50, %v887_v53  ;;  %v1396_v56 = vpop.f32.mrb[1].mxu0  ;;  %v1404_v57 = vpop.f32.mrb[1].mxu1 }
 0x397   : > { %v826_v58 = vpop.f32.mrb[2].mxu0  ;;  %v890_v59 = vpop.f32.mrb[2].mxu1 }
 0x398   : > { %v914_v60 = vmul.f32 %v912_v51, %v824_v54  ;;  %v1365_v61 = vmul.f32 -1.442695, %v888_v55  ;;  %v827_v62 = vadd.f32 %v1356_v49, %v826_v58  ;;  %v891_v63 = vadd.f32 %v1360_v50, %v890_v59  ;;  %v1397_v0 = vpop.f32.mrb[3].mxu0  ;;  %v1405_v1 = vpop.f32.mrb[3].mxu1 }
 0x39a   : > { %v920_v5 = vrot.slane %v914_v60, 7  ;;  %1583 = vpow2.f32 %v1365_v61  ;;  %v915_v6 = vmul.f32 %v912_v51, %v827_v62  ;;  %v1366_v7 = vmul.f32 -1.442695, %v891_v63 }
 0x39c   : > { %v924_v8 = vsel %vm916_vm3, 0.0, %v920_v5  ;;  %v921_v9 = vrot.slane %v915_v6, 7  ;;  %1585 = vpow2.f32 %v1366_v7 }
 0x39d   : > { %v926_v11 = vmul.f32 %v924_v8, %v905_v4 }
 0x39e   : > { %v925_v12 = vsel %vm916_vm3, 0.0, %v921_v9 }
 0x39f   : > { %v928_v13 = vadd.f32 %v926_v11, %v914_v60  ;;  %v927_v14 = vmul.f32 %v925_v12, %v905_v4 }
 0x3a1   : > { %v938_v16 = vrot.slane %v928_v13, 6  ;;  %v929_v17 = vadd.f32 %v927_v14, %v915_v6 }
 0x3a3   : > { %v942_v18 = vsel %vm934_vm4, 0.0, %v938_v16  ;;  %v939_v20 = vrot.slane %v929_v17, 6 }
 0x3a4   : > { %v1584_v21 = vpop.eup %1583  ;;  %v944_v22 = vmul.f32 %v942_v18, %v930_v15 }
 0x3a5   : > { %v968_v23 = vadd.f32 1.0, %v1584_v21  ;;  %v943_v24 = vsel %vm934_vm4, 0.0, %v939_v20 }
 0x3a6   : > { %v1586_v25 = vpop.eup %1585  ;;  %v946_v26 = vadd.f32 %v944_v22, %v928_v13  ;;  %v945_v27 = vmul.f32 %v943_v24, %v930_v15 }
 0x3a7   : > { %1587 = vrcp.f32 %v968_v23  ;;  %v969_v29 = vadd.f32 1.0, %v1586_v25 }
 0x3a8   : > { %v951_v30 = vrot.slane %v946_v26, 4  ;;  %v947_v31 = vadd.f32 %v945_v27, %v929_v17 }
 0x3a9   : > { %1589 = vrcp.f32 %v969_v29 }
 0x3aa   : > { %v952_v33 = vrot.slane %v947_v31, 4  ;;  %v956_v34 = vsel %vm955_vm5, 0.0, %v951_v30 }
 0x3ab   : > { %v958_v36 = vmul.f32 %v956_v34, %v948_v32 }
 0x3ac   : > { %v957_v35 = vsel %vm955_vm5, 0.0, %v952_v33 }
 0x3ad   : > { %v959_v37 = vmul.f32 %v957_v35, %v948_v32  ;;  %v960_v39 = vadd.f32 %v958_v36, %v946_v26 }
 0x3af   : > { %v961_v43 = vadd.f32 %v959_v37, %v947_v31 }
 0x3b1   : > { %v1588_v38 = vpop.eup %1587 }
 0x3b2   : > { %v974_v40 = vmul.f32 %v1588_v38, %v888_v55 }
 0x3b3   : > { %v1590_v41 = vpop.eup %1589 }
 0x3b4   : > { %v976_v42 = vmul.f32 %v974_v40, %v960_v39  ;;  %v975_v44 = vmul.f32 %v1590_v41, %v891_v63 }
 0x3b6   : > { %v977_v45 = vmul.f32 %v975_v44, %v961_v43 }
 0x3b8   : > { %v978_v46 = vpack.c.bf16 %v977_v45, %v976_v42 }
 0x3ba   : > { %1411 = vmatmul.mubr.msk.bf16.vlgmr.msra.gmra.mrb[4].mxu0 %vm718_vm1, %v978_v46 }
 0x48d   : > { %v1039_v48 = vpop.f32.mrb[4].mxu0 }
 0x48e   : > { %v1040_v49 = vadd.f32 %v1367_v47, %v1039_v48  ;;  %v1412_v50 = vpop.f32.mrb[5].mxu0 }
 0x48f   : > { %v1042_v51 = vpop.f32.mrb[6].mxu0 }
 0x490   : > { %v1046_v52 = vadd.f32 %v1040_v49, %v2657_v2  ;;  %v1043_v53 = vadd.f32 %v1367_v47, %v1042_v51  ;;  %v1413_v54 = vpop.f32.mrb[7].mxu0 }
 0x492   : > { %1048 = vst.msk [vmem:[%s2649_s21] sm:$0xff] %vm718_vm1, %v1046_v52  ;;  %v1047_v55 = vadd.f32 %v1043_v53, %v2660_v3 }
 0x494   : > { %1049 = vst.msk [vmem:[%s2649_s21 + $0x8] sm:$0xff] %vm718_vm1, %v1047_v55 }
 0x495   : > { %1904 = shalt.err (!%p1901_p5)
}
 0x496   : > { %s1905_s1 = scalar_lea.hbm %s2706_s0, 256  ;;  %s1909_s22 = scalar_lea.hbm %s2889_s3, 512 }
 0x497   : > { %p1906_p0 = scmp.ne.s32.totalorder %s2706_s0, %s1905_s1  ;;  %p1910_p10 = scmp.lt.u32.totalorder %s2706_s0, %s2889_s3 }
 0x498   : > { %p1911_p8 = scmp.lt.u32.totalorder %s1909_s22, %s1905_s1  ;;  %p1913_p1 = scmp.lt.u32.totalorder %s1905_s1, %s2706_s0 }
 0x499   : > { %p1907_p11 = pnand %p1906_p0, %p2890_p6 }
 0x49a   : > { %p1912_p12 = por %p1911_p8, %p1910_p10 }
 0x49b   : > { %p1908_p9 = pneg %p1907_p11 }
 0x49c   : > { %p1914_p2 = por %p1913_p1, %p1912_p12 }
 0x49e   : > { %p1915_p7 = pnand %p1914_p2, %p1908_p9 }
 0x4a0   : > { %1918 = shalt.err (!%p1915_p7)
}
 0x4a1   : > { %s2052_s29 = smov 128   ;;  %s2053_s26 = smov 8  }
 0x4a2   : > { %1434 = dma.vmem_to_hbm [thread:$0]  (%p2890_p6), %s2708_s7, 256, %s2706_s0, %s1051_s2, %s2052_s29, %s2052_s29, %s2053_s26  }
 0x4a3 PF: > { %s2891_s6 = sld [smem:[#allocation28_spill]]  ;;  %s2892_s21 = sld [smem:[#allocation40_spill]] }
 0x4a4   : > { %p1472_p4 = scmp.ge.s32.totalorder %s2033_s23, 2 }
 0x4a9   : > { %s1079_s11 = sand.u32 1, %s2891_s6   ;;  %p2893_p13 = scmp.ne.s32.totalorder %s2892_s21, 0 }
 0x4aa   : > { %s1080_s10 = scalar_lea.sflag [#allocation4], %s1079_s11 }
 0x4ab   : > { %p1468_p3 = pnand %p1472_p4, %p2893_p13 }
 0x4ad   : > { %1988 = dma.done.wait (!%p1468_p3), %s1080_s10, 256  }
 0x4ae   : > { %1990 = vsyncadd (!%p1468_p3), %s1080_s10, 4294967040  ;;  %s41_s23 = sadd.s32 1, %s2033_s23   ;;  %s2894_s15 = sld [smem:[#allocation27_spill]] }
 0x4af   : > { %p38_p5 = scmp.ge.s32.totalorder %s41_s23, 6   ;;  %s2895_s27 = sld [smem:[#allocation35_spill]] }
 0x4b0   : > { %s2896_s12 = sld [smem:[#allocation29_spill]]  ;;  %s2897_s18 = sld [smem:[#allocation39_spill]] }
 0x4b1   : > { %s2898_s19 = sld [smem:[#allocation32_spill]]  ;;  %s2899_s20 = sld [smem:[#allocation33_spill]] }
 0x4b2   : > { %s2900_s21 = sld [smem:[#allocation34_spill]]  ;;  %s2901_s22 = sld [smem:[#allocation37_spill]] }
 0x4b3   : > { %s2902_s13 = smov %s1997_s14  ;;  %s2905_s16 = smov %s2009_s17 }
 0x4b4   : > { %s2903_s14 = smov %s2894_s15  ;;  %40 = sbr.rel (!%p38_p5) target bundleno = 31 (0x1f), region = 218 }
 0x4b5   : > { %s2904_s15 = smov %s2895_s27 }
 0x4b6   : > { %s2906_s17 = smov %s2896_s12 }
 0x4bb   :  { %1085 = vsyncpa [#allocation3], 1 }
 0x4bc   :  { %1087 = vsyncpa [#allocation3 + $0x1], 1 }
 0x4bd   :  { %1088 = vsyncpa [#allocation6], 1 }
 0x4be   :  { %1090 = vsyncpa [#allocation6 + $0x1], 1 }
 0x4bf   :  { %1091 = vsyncpa [#allocation9], 1 }
 0x4c0   :  { %1093 = vsyncpa [#allocation9 + $0x1], 1 }
 0x4c1   :  { %1094 = vsyncpa [#allocation12], 1 }
 0x4c2   :  { %1096 = vsyncpa [#allocation12 + $0x1], 1 }
 0x4c3   :  { %1097 = vsyncpa [#allocation15], 1 }
 0x4c4   :  { %1099 = vsyncpa [#allocation15 + $0x1], 1 }
 0x4c5   :  { %1100 = vsyncpa [#allocation18], 1 }
 0x4c6   :  { %1102 = vsyncpa [#allocation18 + $0x1], 1 }
 0x4c7   :  { %1103 = vsyncpa [#allocation4], 1 }
 0x4c8   :  { %1105 = vsyncpa [#allocation4 + $0x1], 1 }

// kernel: tramba_ultra_forward.7
= control target key start
LH: loop header
LB: loop body
LE: loop exit
PB: predicated region body
PF: predicated region fallthrough
CT: control target
= control target key end

     0   :  { %s3202_s0 = inlined_call_operand.hbm [shape: f32[4,8,32], index: 0, kind: input, shape index: {}, may-alias: {0,1}]   ;;  %s3203_s1 = inlined_call_operand.hbm [shape: f32[4,8,32], index: 1, kind: input, shape index: {}, may-alias: {0,1}]   ;;  %s3204_s2 = inlined_call_operand.vmem [shape: bf16[32,32], index: 2, kind: input, shape index: {}]   ;;  %s3205_s3 = inlined_call_operand.hbm [shape: f32[1,32], index: 3, kind: input, shape index: {}]   ;;  %s3206_s4 = inlined_call_operand.hbm [shape: bf16[32,32], index: 4, kind: input, shape index: {}]   ;;  %s3207_s5 = inlined_call_operand.hbm [shape: f32[1,32], index: 5, kind: input, shape index: {}]   ;;  %s3208_s6 = inlined_call_operand.hbm [shape: bf16[32,32], index: 6, kind: input, shape index: {}]   ;;  %s3209_s7 = inlined_call_operand.hbm [shape: f32[1,32], index: 7, kind: input, shape index: {}]   ;;  %s3210_s8 = inlined_call_operand.hbm [shape: bf16[32,32], index: 8, kind: input, shape index: {}]   ;;  %s3211_s9 = inlined_call_operand.hbm [shape: f32[1,32], index: 9, kind: input, shape index: {}]   ;;  %s3212_s10 = inlined_call_operand.hbm [shape: bf16[32,32], index: 10, kind: input, shape index: {}]   ;;  %s3213_s11 = inlined_call_operand.hbm [shape: f32[1,32], index: 11, kind: input, shape index: {}]   ;;  %s3214_s12 = inlined_call_operand.hbm [shape: bf16[32,32], index: 12, kind: input, shape index: {}]   ;;  %s3215_s13 = inlined_call_operand.hbm [shape: f32[1,32], index: 13, kind: input, shape index: {}]   ;;  %s3216_s14 = inlined_call_operand.hbm [shape: bf16[32,32], index: 14, kind: input, shape index: {}]   ;;  %s3217_s15 = inlined_call_operand.hbm [shape: f32[1,32], index: 15, kind: input, shape index: {}]   ;;  %s3218_s16 = inlined_call_operand.hbm [shape: bf16[32,32], index: 16, kind: input, shape index: {}]   ;;  %s3219_s17 = inlined_call_operand.hbm [shape: f32[1,32], index: 17, kind: input, shape index: {}]   ;;  %s3220_s18 = inlined_call_operand.hbm [shape: bf16[32,32], index: 18, kind: input, shape index: {}]   ;;  %s3221_s19 = inlined_call_operand.hbm [shape: bf16[32,32], index: 19, kind: input, shape index: {}]   ;;  %s3222_s20 = inlined_call_operand.hbm [shape: f32[1,32], index: 20, kind: input, shape index: {}]   ;;  %s3223_s21 = inlined_call_operand.hbm [shape: f32[1,32], index: 21, kind: input, shape index: {}]   ;;  %s3224_s22 = inlined_call_operand.hbm [shape: f32[1,32], index: 22, kind: input, shape index: {}]   ;;  %s3225_s23 = inlined_call_operand.vmem [shape: bf16[32,16], index: 23, kind: input, shape index: {}]   ;;  %s3226_s24 = inlined_call_operand.hbm [shape: f32[1,16], index: 24, kind: input, shape index: {}]   ;;  %s3227_s25 = inlined_call_operand.vmem [shape: bf16[16,128], index: 25, kind: input, shape index: {}]   ;;  %s3228_s26 = inlined_call_operand.hbm [shape: f32[1,128], index: 26, kind: input, shape index: {}]   ;;  %s3229_s27 = inlined_call_operand.vmem [shape: f32[2,8,128], index: 27, kind: output, shape index: {}]  }
   0x1   :  { %3246 = sst [smem:[#allocation52_spill]] %s3202_s0 }
   0x2   :  { %3247 = sst [smem:[#allocation53_spill]] %s3203_s1 }
   0x3   :  { %3248 = sst [smem:[#allocation54_spill]] %s3204_s2 }
   0x4   :  { %3249 = sst [smem:[#allocation55_spill]] %s3205_s3 }
   0x5   :  { %3250 = sst [smem:[#allocation56_spill]] %s3206_s4 }
   0x6   :  { %3251 = sst [smem:[#allocation57_spill]] %s3207_s5 }
   0x7   :  { %3252 = sst [smem:[#allocation58_spill]] %s3208_s6 }
   0x8   :  { %3253 = sst [smem:[#allocation59_spill]] %s3209_s7 }
   0x9   :  { %3254 = sst [smem:[#allocation60_spill]] %s3210_s8 }
   0xa   :  { %3255 = sst [smem:[#allocation61_spill]] %s3211_s9 }
   0xb   :  { %3256 = sst [smem:[#allocation62_spill]] %s3212_s10 }
   0xc   :  { %3257 = sst [smem:[#allocation63_spill]] %s3213_s11 }
   0xd   :  { %3258 = sst [smem:[#allocation64_spill]] %s3225_s23 }
   0xe   :  { %3259 = sst [smem:[#allocation65_spill]] %s3227_s25 }
   0xf   :  { %3260 = sst [smem:[#allocation66_spill]] %s3229_s27 }
  0x10   :  { %32 = vsyncpa [#allocation3], 0 }
  0x11   :  { %33 = vsyncpa [#allocation5], 0 }
  0x12   :  { %34 = vsyncpa [#allocation8], 0 }
  0x13   :  { %35 = vsyncpa [#allocation11], 0 }
  0x14   :  { %36 = vsyncpa [#allocation14], 0 }
  0x15   :  { %37 = vsyncpa [#allocation17], 0 }
  0x16   :  { %38 = vsyncpa [#allocation20], 0 }
  0x17   :  { %39 = vsyncpa [#allocation23], 0 }
  0x18   :  { %40 = vsyncpa [#allocation26], 0 }
  0x19   :  { %41 = vsyncpa [#allocation29], 0 }
  0x1a   :  { %42 = vsyncpa [#allocation32], 0 }
  0x1b   :  { %43 = vsyncpa [#allocation35], 0 }
  0x1c   :  { %44 = vsyncpa [#allocation38], 0  ;;  %s3261_s8 = sld [smem:[#allocation53_spill]]  ;;  %s2561_s9 = smov [#allocation4]  }
  0x1d   :  { %s66_s5 = sshll.u32 %s2561_s9, 4  ;;  %s2562_s28 = smov [#allocation7]   ;;  %s67_s5 = int_to_ptr.vmem [resolvable:$true] %s66_s5 }
  0x1e   :  { %s90_s0 = sshll.u32 %s2562_s28, 4  ;;  %s91_s0 = int_to_ptr.vmem [resolvable:$true] %s90_s0 }
  0x22   :  { %s1681_s30 = scalar_lea.hbm %s3261_s8, 256  ;;  %s2028_s1 = scalar_lea.hbm %s3261_s8, 512 }
  0x23   :  { %p2005_p0 = scmp.ne.s32.totalorder %s1681_s30, %s2028_s1  ;;  %p2007_p1 = scmp.lt.u32.totalorder %s1681_s30, %s3261_s8 }
  0x24   :  { %p2008_p2 = scmp.lt.u32.totalorder %s2028_s1, %s2028_s1  ;;  %p2010_p4 = scmp.lt.u32.totalorder %s2028_s1, %s1681_s30 }
  0x26   :  { %p2009_p3 = por %p2008_p2, %p2007_p1 }
  0x28   :  { %p2011_p5 = por %p2010_p4, %p2009_p3 }
  0x2a   :  { %p2012_p6 = pnand %p2011_p5, %p2005_p0 }
  0x2c   :  { %2015 = shalt.err (!%p2012_p6)
}
  0x2d   :  { %s2016_s2 = scalar_lea.vmem %s67_s5, 256  ;;  %p2021_p8 = scmp.lt.s32.totalorder %s67_s5, %s67_s5 }
  0x2e   :  { %p2017_p7 = scmp.ne.s32.totalorder %s67_s5, %s2016_s2  ;;  %p2022_p9 = scmp.lt.s32.totalorder %s2016_s2, %s2016_s2 }
  0x30   :  { %p2023_p10 = por %p2022_p9, %p2021_p8 }
  0x32   :  { %p2024_p11 = pnand %p2023_p10, %p2017_p7 }
  0x34   :  { %2027 = shalt.err (!%p2024_p11)
}
  0x35   :  { %s3242_s3 = smov 128   ;;  %s3243_s7 = smov 8  }
  0x36   :  { %72 = dma.hbm_to_vmem [thread:$0]  %s1681_s30, 256, %s67_s5, [#allocation5], %s3242_s3, %s3242_s3, %s3243_s7  }
  0x37   :  { %s3262_s9 = sld [smem:[#allocation56_spill]] }
  0x3d   :  { %s2029_s28 = scalar_lea.hbm %s3262_s9, 256 }
  0x3e   :  { %p2030_p12 = scmp.ne.s32.totalorder %s3262_s9, %s2029_s28  ;;  %p2033_p13 = scmp.lt.u32.totalorder %s2029_s28, %s3262_s9 }
  0x40   :  { %p2035_p0 = pnand %p2033_p13, %p2030_p12 }
  0x42   :  { %2038 = shalt.err (!%p2035_p0)
}
  0x43   :  { %s2039_s11 = scalar_lea.vmem %s91_s0, 256  ;;  %p2044_p2 = scmp.lt.s32.totalorder %s91_s0, %s91_s0 }
  0x44   :  { %p2040_p1 = scmp.ne.s32.totalorder %s91_s0, %s2039_s11  ;;  %p2045_p3 = scmp.lt.s32.totalorder %s2039_s11, %s2039_s11 }
  0x46   :  { %p2046_p4 = por %p2045_p3, %p2044_p2 }
  0x48   :  { %p2047_p5 = pnand %p2046_p4, %p2040_p1 }
  0x4a   :  { %2050 = shalt.err (!%p2047_p5)
}
  0x4b   :  { %s2565_s30 = smov 64   ;;  %s2566_s5 = smov 4  }
  0x4c   :  { %96 = dma.hbm_to_vmem [thread:$0]  %s3262_s9, 256, %s91_s0, [#allocation8], %s2565_s30, %s2565_s30, %s2566_s5  }
  0x4d   :  { %s2567_s8 = smov [#allocation10]   ;;  %s2568_s10 = smov [#allocation13]  }
  0x4e   :  { %s112_s28 = sshll.u32 %s2567_s8, 4  ;;  %s134_s29 = sshll.u32 %s2568_s10, 4  ;;  %s113_s28 = int_to_ptr.vmem [resolvable:$true] %s112_s28  ;;  %s135_s29 = int_to_ptr.vmem [resolvable:$true] %s134_s29 }
  0x4f   :  { %s3263_s11 = sld [smem:[#allocation58_spill]] }
  0x55   :  { %s2051_s3 = scalar_lea.hbm %s3263_s11, 256 }
  0x56   :  { %p2052_p6 = scmp.ne.s32.totalorder %s3263_s11, %s2051_s3  ;;  %p2055_p7 = scmp.lt.u32.totalorder %s2051_s3, %s3263_s11 }
  0x58   :  { %p2057_p8 = pnand %p2055_p7, %p2052_p6 }
  0x5a   :  { %2060 = shalt.err (!%p2057_p8)
}
  0x5b   :  { %s2061_s0 = scalar_lea.vmem %s113_s28, 256  ;;  %p2066_p10 = scmp.lt.s32.totalorder %s113_s28, %s113_s28 }
  0x5c   :  { %p2062_p9 = scmp.ne.s32.totalorder %s113_s28, %s2061_s0  ;;  %p2067_p11 = scmp.lt.s32.totalorder %s2061_s0, %s2061_s0 }
  0x5e   :  { %p2068_p12 = por %p2067_p11, %p2066_p10 }
  0x60   :  { %p2069_p13 = pnand %p2068_p12, %p2062_p9 }
  0x62   :  { %2072 = shalt.err (!%p2069_p13)
}
  0x63   :  { %118 = dma.hbm_to_vmem [thread:$0]  %s3263_s11, 256, %s113_s28, [#allocation11], %s2565_s30, %s2565_s30, %s2566_s5  }
  0x64   :  { %s3264_s25 = sld [smem:[#allocation60_spill]] }
  0x6a   :  { %s2073_s3 = scalar_lea.hbm %s3264_s25, 256 }
  0x6b   :  { %p2074_p0 = scmp.ne.s32.totalorder %s3264_s25, %s2073_s3  ;;  %p2077_p1 = scmp.lt.u32.totalorder %s2073_s3, %s3264_s25 }
  0x6d   :  { %p2079_p2 = pnand %p2077_p1, %p2074_p0 }
  0x6f   :  { %2082 = shalt.err (!%p2079_p2)
}
  0x70   :  { %s2083_s1 = scalar_lea.vmem %s135_s29, 256  ;;  %p2088_p4 = scmp.lt.s32.totalorder %s135_s29, %s135_s29 }
  0x71   :  { %p2084_p3 = scmp.ne.s32.totalorder %s135_s29, %s2083_s1  ;;  %p2089_p5 = scmp.lt.s32.totalorder %s2083_s1, %s2083_s1 }
  0x73   :  { %p2090_p6 = por %p2089_p5, %p2088_p4 }
  0x75   :  { %p2091_p7 = pnand %p2090_p6, %p2084_p3 }
  0x77   :  { %2094 = shalt.err (!%p2091_p7)
}
  0x78   :  { %140 = dma.hbm_to_vmem [thread:$0]  %s3264_s25, 256, %s135_s29, [#allocation14], %s2565_s30, %s2565_s30, %s2566_s5  }
  0x79   :  { %s2569_s11 = smov [#allocation16]   ;;  %s2570_s9 = smov [#allocation19]  }
  0x7a   :  { %s156_s0 = sshll.u32 %s2569_s11, 4  ;;  %s178_s2 = sshll.u32 %s2570_s9, 4  ;;  %s157_s0 = int_to_ptr.vmem [resolvable:$true] %s156_s0  ;;  %s179_s2 = int_to_ptr.vmem [resolvable:$true] %s178_s2 }
  0x7b   :  { %s3265_s3 = sld [smem:[#allocation62_spill]] }
  0x81   :  { %s2095_s7 = scalar_lea.hbm %s3265_s3, 256 }
  0x82   :  { %p2096_p8 = scmp.ne.s32.totalorder %s3265_s3, %s2095_s7  ;;  %p2099_p9 = scmp.lt.u32.totalorder %s2095_s7, %s3265_s3 }
  0x84   :  { %p2101_p10 = pnand %p2099_p9, %p2096_p8 }
  0x86   :  { %2104 = shalt.err (!%p2101_p10)
}
  0x87   :  { %s2105_s29 = scalar_lea.vmem %s157_s0, 256  ;;  %p2110_p12 = scmp.lt.s32.totalorder %s157_s0, %s157_s0 }
  0x88   :  { %p2106_p11 = scmp.ne.s32.totalorder %s157_s0, %s2105_s29  ;;  %p2111_p13 = scmp.lt.s32.totalorder %s2105_s29, %s2105_s29 }
  0x8a   :  { %p2112_p0 = por %p2111_p13, %p2110_p12 }
  0x8c   :  { %p2113_p1 = pnand %p2112_p0, %p2106_p11 }
  0x8e   :  { %2116 = shalt.err (!%p2113_p1)
}
  0x8f   :  { %162 = dma.hbm_to_vmem [thread:$0]  %s3265_s3, 256, %s157_s0, [#allocation17], %s2565_s30, %s2565_s30, %s2566_s5  }
  0x90   :  { %s2117_s9 = scalar_lea.hbm %s3214_s12, 256 }
  0x91   :  { %p2118_p2 = scmp.ne.s32.totalorder %s3214_s12, %s2117_s9  ;;  %p2121_p3 = scmp.lt.u32.totalorder %s2117_s9, %s3214_s12 }
  0x93   :  { %p2123_p4 = pnand %p2121_p3, %p2118_p2 }
  0x95   :  { %2126 = shalt.err (!%p2123_p4)
}
  0x96   :  { %s2127_s8 = scalar_lea.vmem %s179_s2, 256  ;;  %p2132_p6 = scmp.lt.s32.totalorder %s179_s2, %s179_s2 }
  0x97   :  { %p2128_p5 = scmp.ne.s32.totalorder %s179_s2, %s2127_s8  ;;  %p2133_p7 = scmp.lt.s32.totalorder %s2127_s8, %s2127_s8 }
  0x99   :  { %p2134_p8 = por %p2133_p7, %p2132_p6 }
  0x9b   :  { %p2135_p9 = pnand %p2134_p8, %p2128_p5 }
  0x9d   :  { %2138 = shalt.err (!%p2135_p9)
}
  0x9e   :  { %184 = dma.hbm_to_vmem [thread:$0]  %s3214_s12, 256, %s179_s2, [#allocation20], %s2565_s30, %s2565_s30, %s2566_s5  }
  0x9f   :  { %s2571_s10 = smov [#allocation22]   ;;  %s2572_s29 = smov [#allocation25]  }
  0xa0   :  { %s200_s1 = sshll.u32 %s2571_s10, 4  ;;  %s222_s25 = sshll.u32 %s2572_s29, 4  ;;  %s201_s1 = int_to_ptr.vmem [resolvable:$true] %s200_s1  ;;  %s223_s25 = int_to_ptr.vmem [resolvable:$true] %s222_s25 }
  0xa1   :  { %s2139_s11 = scalar_lea.hbm %s3216_s14, 256 }
  0xa2   :  { %p2140_p10 = scmp.ne.s32.totalorder %s3216_s14, %s2139_s11  ;;  %p2143_p11 = scmp.lt.u32.totalorder %s2139_s11, %s3216_s14 }
  0xa4   :  { %p2145_p12 = pnand %p2143_p11, %p2140_p10 }
  0xa6   :  { %2148 = shalt.err (!%p2145_p12)
}
  0xa7   :  { %s2149_s12 = scalar_lea.vmem %s201_s1, 256  ;;  %p2154_p0 = scmp.lt.s32.totalorder %s201_s1, %s201_s1 }
  0xa8   :  { %p2150_p13 = scmp.ne.s32.totalorder %s201_s1, %s2149_s12  ;;  %p2155_p1 = scmp.lt.s32.totalorder %s2149_s12, %s2149_s12 }
  0xaa   :  { %p2156_p2 = por %p2155_p1, %p2154_p0 }
  0xac   :  { %p2157_p3 = pnand %p2156_p2, %p2150_p13 }
  0xae   :  { %2160 = shalt.err (!%p2157_p3)
}
  0xaf   :  { %206 = dma.hbm_to_vmem [thread:$0]  %s3216_s14, 256, %s201_s1, [#allocation23], %s2565_s30, %s2565_s30, %s2566_s5  }
  0xb0   :  { %s2161_s3 = scalar_lea.hbm %s3218_s16, 256 }
  0xb1   :  { %p2162_p4 = scmp.ne.s32.totalorder %s3218_s16, %s2161_s3  ;;  %p2165_p5 = scmp.lt.u32.totalorder %s2161_s3, %s3218_s16 }
  0xb3   :  { %p2167_p6 = pnand %p2165_p5, %p2162_p4 }
  0xb5   :  { %2170 = shalt.err (!%p2167_p6)
}
  0xb6   :  { %s2171_s11 = scalar_lea.vmem %s223_s25, 256  ;;  %p2176_p8 = scmp.lt.s32.totalorder %s223_s25, %s223_s25 }
  0xb7   :  { %p2172_p7 = scmp.ne.s32.totalorder %s223_s25, %s2171_s11  ;;  %p2177_p9 = scmp.lt.s32.totalorder %s2171_s11, %s2171_s11 }
  0xb9   :  { %p2178_p10 = por %p2177_p9, %p2176_p8 }
  0xbb   :  { %p2179_p11 = pnand %p2178_p10, %p2172_p7 }
  0xbd   :  { %2182 = shalt.err (!%p2179_p11)
}
  0xbe   :  { %228 = dma.hbm_to_vmem [thread:$0]  %s3218_s16, 256, %s223_s25, [#allocation26], %s2565_s30, %s2565_s30, %s2566_s5  }
  0xbf   :  { %s2573_s9 = smov [#allocation28]   ;;  %s2574_s23 = smov [#allocation31]  }
  0xc0   :  { %s244_s27 = sshll.u32 %s2573_s9, 4  ;;  %s269_s7 = sshll.u32 %s2574_s23, 4  ;;  %s245_s27 = int_to_ptr.vmem [resolvable:$true] %s244_s27  ;;  %s270_s7 = int_to_ptr.vmem [resolvable:$true] %s269_s7 }
  0xc1   :  { %s2183_s4 = scalar_lea.hbm %s3220_s18, 256 }
  0xc2   :  { %p2184_p12 = scmp.ne.s32.totalorder %s3220_s18, %s2183_s4  ;;  %p2187_p13 = scmp.lt.u32.totalorder %s2183_s4, %s3220_s18 }
  0xc4   :  { %p2189_p0 = pnand %p2187_p13, %p2184_p12 }
  0xc6   :  { %2192 = shalt.err (!%p2189_p0)
}
  0xc7   :  { %s2193_s16 = scalar_lea.vmem %s245_s27, 256  ;;  %p2198_p2 = scmp.lt.s32.totalorder %s245_s27, %s245_s27 }
  0xc8   :  { %p2194_p1 = scmp.ne.s32.totalorder %s245_s27, %s2193_s16  ;;  %p2199_p3 = scmp.lt.s32.totalorder %s2193_s16, %s2193_s16 }
  0xca   :  { %p2200_p4 = por %p2199_p3, %p2198_p2 }
  0xcc   :  { %p2201_p5 = pnand %p2200_p4, %p2194_p1 }
  0xce   :  { %2204 = shalt.err (!%p2201_p5)
}
  0xcf   :  { %250 = dma.hbm_to_vmem [thread:$0]  %s3220_s18, 256, %s245_s27, [#allocation29], %s2565_s30, %s2565_s30, %s2566_s5  }
  0xd0   :  { %s2205_s11 = scalar_lea.hbm %s3222_s20, 16 }
  0xd1   :  { %p2206_p6 = scmp.ne.s32.totalorder %s3222_s20, %s2205_s11  ;;  %p2209_p7 = scmp.lt.u32.totalorder %s2205_s11, %s3222_s20 }
  0xd3   :  { %p2211_p8 = pnand %p2209_p7, %p2206_p6 }
  0xd5   :  { %2214 = shalt.err (!%p2211_p8)
}
  0xd6   :  { %s2215_s12 = scalar_lea.vmem %s270_s7, 16  ;;  %s2219_s2 = scalar_lea.vmem %s270_s7, 32 }
  0xd7   :  { %p2216_p9 = scmp.ne.s32.totalorder %s270_s7, %s2215_s12  ;;  %p2220_p10 = scmp.lt.s32.totalorder %s270_s7, %s270_s7 }
  0xd8   :  { %p2221_p11 = scmp.lt.s32.totalorder %s2219_s2, %s2215_s12 }
  0xda   :  { %p2222_p12 = por %p2221_p11, %p2220_p10 }
  0xdc   :  { %p2223_p13 = pnand %p2222_p12, %p2216_p9 }
  0xde   :  { %2226 = shalt.err (!%p2223_p13)
}
  0xdf   :  { %272 = dma.hbm_to_vmem [thread:$0]  %s3222_s20, 16, %s270_s7, [#allocation32]  }
  0xe0   :  { %s2575_s4 = smov [#allocation34]   ;;  %s2576_s0 = smov [#allocation2]  }
  0xe1   :  { %s289_s8 = sshll.u32 %s2575_s4, 4  ;;  %s50_s3 = sshll.u32 %s2576_s0, 4  ;;  %s290_s8 = int_to_ptr.vmem [resolvable:$true] %s289_s8  ;;  %s51_s3 = int_to_ptr.vmem [resolvable:$true] %s50_s3 }
  0xe2   :  { %s2227_s25 = scalar_lea.hbm %s3224_s22, 16 }
  0xe3   :  { %p2228_p0 = scmp.ne.s32.totalorder %s3224_s22, %s2227_s25  ;;  %p2231_p1 = scmp.lt.u32.totalorder %s2227_s25, %s3224_s22 }
  0xe5   :  { %p2233_p2 = pnand %p2231_p1, %p2228_p0 }
  0xe7   :  { %2236 = shalt.err (!%p2233_p2)
}
  0xe8   :  { %s2237_s20 = scalar_lea.vmem %s290_s8, 16  ;;  %s2241_s7 = scalar_lea.vmem %s290_s8, 32 }
  0xe9   :  { %p2238_p3 = scmp.ne.s32.totalorder %s290_s8, %s2237_s20  ;;  %p2242_p4 = scmp.lt.s32.totalorder %s290_s8, %s290_s8 }
  0xea   :  { %p2243_p5 = scmp.lt.s32.totalorder %s2241_s7, %s2237_s20 }
  0xec   :  { %p2244_p6 = por %p2243_p5, %p2242_p4 }
  0xee   :  { %p2245_p7 = pnand %p2244_p6, %p2238_p3 }
  0xf0   :  { %2248 = shalt.err (!%p2245_p7)
}
  0xf1   :  { %292 = dma.hbm_to_vmem [thread:$0]  %s3224_s22, 16, %s290_s8, [#allocation35]  }
  0xf2   :  { %s3266_s12 = sld [smem:[#allocation52_spill]] }
  0xf8   :  { %s2249_s2 = scalar_lea.hbm %s3266_s12, 256  ;;  %s2251_s10 = scalar_lea.hbm %s3266_s12, 512 }
  0xf9   :  { %p2250_p8 = scmp.ne.s32.totalorder %s3266_s12, %s2249_s2  ;;  %p2252_p9 = scmp.lt.u32.totalorder %s2251_s10, %s2249_s2 }
  0xfa   :  { %p2253_p10 = scmp.lt.u32.totalorder %s2249_s2, %s3266_s12 }
  0xfc   :  { %p2254_p11 = por %p2253_p10, %p2252_p9 }
  0xfe   :  { %p2255_p12 = pnand %p2254_p11, %p2250_p8 }
 0x100   :  { %2258 = shalt.err (!%p2255_p12)
}
 0x101   :  { %s2259_s22 = scalar_lea.vmem %s51_s3, 256  ;;  %p2264_p0 = scmp.lt.s32.totalorder %s51_s3, %s51_s3 }
 0x102   :  { %p2260_p13 = scmp.ne.s32.totalorder %s51_s3, %s2259_s22  ;;  %p2265_p1 = scmp.lt.s32.totalorder %s2259_s22, %s2259_s22 }
 0x104   :  { %p2266_p2 = por %p2265_p1, %p2264_p0 }
 0x106   :  { %p2267_p3 = pnand %p2266_p2, %p2260_p13 }
 0x108   :  { %2270 = shalt.err (!%p2267_p3)
}
 0x109   :  { %s3267_s8 = smov 8   ;;  %s3268_s29 = smov 128  }
 0x10a   :  { %56 = dma.hbm_to_vmem [thread:$0]  %s3266_s12, 256, %s51_s3, [#allocation3], %s3268_s29, %s3268_s29, %s3267_s8  }
 0x10b   :  { %s2577_s11 = smov [#allocation6]   ;;  %s2578_s7 = smov [#allocation9]  }
 0x10c   :  { %s81_s20 = sshll.u32 %s2577_s11, 4  ;;  %s103_s14 = sshll.u32 %s2578_s7, 4  ;;  %s82_s20 = int_to_ptr.vmem [resolvable:$true] %s81_s20  ;;  %s104_s14 = int_to_ptr.vmem [resolvable:$true] %s103_s14 }
 0x10d   :  { %s3269_s23 = sld [smem:[#allocation55_spill]] }
 0x113   :  { %s2271_s2 = scalar_lea.hbm %s3269_s23, 16 }
 0x114   :  { %p2272_p4 = scmp.ne.s32.totalorder %s3269_s23, %s2271_s2  ;;  %p2275_p5 = scmp.lt.u32.totalorder %s2271_s2, %s3269_s23 }
 0x116   :  { %p2277_p6 = pnand %p2275_p5, %p2272_p4 }
 0x118   :  { %2280 = shalt.err (!%p2277_p6)
}
 0x119   :  { %s2281_s3 = scalar_lea.vmem %s82_s20, 16  ;;  %s2285_s12 = scalar_lea.vmem %s82_s20, 32 }
 0x11a   :  { %p2282_p7 = scmp.ne.s32.totalorder %s82_s20, %s2281_s3  ;;  %p2286_p8 = scmp.lt.s32.totalorder %s82_s20, %s82_s20 }
 0x11b   :  { %p2287_p9 = scmp.lt.s32.totalorder %s2285_s12, %s2281_s3 }
 0x11d   :  { %p2288_p10 = por %p2287_p9, %p2286_p8 }
 0x11f   :  { %p2289_p11 = pnand %p2288_p10, %p2282_p7 }
 0x121   :  { %2292 = shalt.err (!%p2289_p11)
}
 0x122   :  { %84 = dma.hbm_to_vmem [thread:$0]  %s3269_s23, 16, %s82_s20, [#allocation5]  }
 0x123   :  { %s3270_s8 = sld [smem:[#allocation57_spill]] }
 0x129   :  { %s2293_s29 = scalar_lea.hbm %s3270_s8, 16 }
 0x12a   :  { %p2294_p12 = scmp.ne.s32.totalorder %s3270_s8, %s2293_s29  ;;  %p2297_p13 = scmp.lt.u32.totalorder %s2293_s29, %s3270_s8 }
 0x12c   :  { %p2299_p0 = pnand %p2297_p13, %p2294_p12 }
 0x12e   :  { %2302 = shalt.err (!%p2299_p0)
}
 0x12f   :  { %s2303_s1 = scalar_lea.vmem %s104_s14, 16  ;;  %s2307_s9 = scalar_lea.vmem %s104_s14, 32 }
 0x130   :  { %p2304_p1 = scmp.ne.s32.totalorder %s104_s14, %s2303_s1  ;;  %p2308_p2 = scmp.lt.s32.totalorder %s104_s14, %s104_s14 }
 0x131   :  { %p2309_p3 = scmp.lt.s32.totalorder %s2307_s9, %s2303_s1 }
 0x133   :  { %p2310_p4 = por %p2309_p3, %p2308_p2 }
 0x135   :  { %p2311_p5 = pnand %p2310_p4, %p2304_p1 }
 0x137   :  { %2314 = shalt.err (!%p2311_p5)
}
 0x138   :  { %106 = dma.hbm_to_vmem [thread:$0]  %s3270_s8, 16, %s104_s14, [#allocation8]  }
 0x139   :  { %s2579_s2 = smov [#allocation12]   ;;  %s2580_s27 = smov [#allocation15]  }
 0x13a   :  { %s125_s18 = sshll.u32 %s2579_s2, 4  ;;  %s147_s4 = sshll.u32 %s2580_s27, 4  ;;  %s126_s18 = int_to_ptr.vmem [resolvable:$true] %s125_s18  ;;  %s148_s4 = int_to_ptr.vmem [resolvable:$true] %s147_s4 }
 0x13b   :  { %s3271_s12 = sld [smem:[#allocation59_spill]] }
 0x141   :  { %s2315_s10 = scalar_lea.hbm %s3271_s12, 16 }
 0x142   :  { %p2316_p6 = scmp.ne.s32.totalorder %s3271_s12, %s2315_s10  ;;  %p2319_p7 = scmp.lt.u32.totalorder %s2315_s10, %s3271_s12 }
 0x144   :  { %p2321_p8 = pnand %p2319_p7, %p2316_p6 }
 0x146   :  { %2324 = shalt.err (!%p2321_p8)
}
 0x147   :  { %s2325_s14 = scalar_lea.vmem %s126_s18, 16  ;;  %s2329_s8 = scalar_lea.vmem %s126_s18, 32 }
 0x148   :  { %p2326_p9 = scmp.ne.s32.totalorder %s126_s18, %s2325_s14  ;;  %p2330_p10 = scmp.lt.s32.totalorder %s126_s18, %s126_s18 }
 0x149   :  { %p2331_p11 = scmp.lt.s32.totalorder %s2329_s8, %s2325_s14 }
 0x14b   :  { %p2332_p12 = por %p2331_p11, %p2330_p10 }
 0x14d   :  { %p2333_p13 = pnand %p2332_p12, %p2326_p9 }
 0x14f   :  { %2336 = shalt.err (!%p2333_p13)
}
 0x150   :  { %128 = dma.hbm_to_vmem [thread:$0]  %s3271_s12, 16, %s126_s18, [#allocation11]  }
 0x151   :  { %s3272_s1 = sld [smem:[#allocation61_spill]] }
 0x157   :  { %s2337_s9 = scalar_lea.hbm %s3272_s1, 16 }
 0x158   :  { %p2338_p0 = scmp.ne.s32.totalorder %s3272_s1, %s2337_s9  ;;  %p2341_p1 = scmp.lt.u32.totalorder %s2337_s9, %s3272_s1 }
 0x15a   :  { %p2343_p2 = pnand %p2341_p1, %p2338_p0 }
 0x15c   :  { %2346 = shalt.err (!%p2343_p2)
}
 0x15d   :  { %s2347_s0 = scalar_lea.vmem %s148_s4, 16  ;;  %s2351_s3 = scalar_lea.vmem %s148_s4, 32 }
 0x15e   :  { %p2348_p3 = scmp.ne.s32.totalorder %s148_s4, %s2347_s0  ;;  %p2352_p4 = scmp.lt.s32.totalorder %s148_s4, %s148_s4 }
 0x15f   :  { %p2353_p5 = scmp.lt.s32.totalorder %s2351_s3, %s2347_s0 }
 0x161   :  { %p2354_p6 = por %p2353_p5, %p2352_p4 }
 0x163   :  { %p2355_p7 = pnand %p2354_p6, %p2348_p3 }
 0x165   :  { %2358 = shalt.err (!%p2355_p7)
}
 0x166   :  { %150 = dma.hbm_to_vmem [thread:$0]  %s3272_s1, 16, %s148_s4, [#allocation14]  }
 0x167   :  { %s2581_s10 = smov [#allocation18]   ;;  %s2582_s25 = smov [#allocation21]  }
 0x168   :  { %s169_s16 = sshll.u32 %s2581_s10, 4  ;;  %s191_s22 = sshll.u32 %s2582_s25, 4  ;;  %s170_s16 = int_to_ptr.vmem [resolvable:$true] %s169_s16  ;;  %s192_s22 = int_to_ptr.vmem [resolvable:$true] %s191_s22 }
 0x169   :  { %s3273_s8 = sld [smem:[#allocation63_spill]] }
 0x16f   :  { %s2359_s28 = scalar_lea.hbm %s3273_s8, 16 }
 0x170   :  { %p2360_p8 = scmp.ne.s32.totalorder %s3273_s8, %s2359_s28  ;;  %p2363_p9 = scmp.lt.u32.totalorder %s2359_s28, %s3273_s8 }
 0x172   :  { %p2365_p10 = pnand %p2363_p9, %p2360_p8 }
 0x174   :  { %2368 = shalt.err (!%p2365_p10)
}
 0x175   :  { %s2369_s4 = scalar_lea.vmem %s170_s16, 16  ;;  %s2373_s1 = scalar_lea.vmem %s170_s16, 32 }
 0x176   :  { %p2370_p11 = scmp.ne.s32.totalorder %s170_s16, %s2369_s4  ;;  %p2374_p12 = scmp.lt.s32.totalorder %s170_s16, %s170_s16 }
 0x177   :  { %p2375_p13 = scmp.lt.s32.totalorder %s2373_s1, %s2369_s4 }
 0x179   :  { %p2376_p0 = por %p2375_p13, %p2374_p12 }
 0x17b   :  { %p2377_p1 = pnand %p2376_p0, %p2370_p11 }
 0x17d   :  { %2380 = shalt.err (!%p2377_p1)
}
 0x17e   :  { %172 = dma.hbm_to_vmem [thread:$0]  %s3273_s8, 16, %s170_s16, [#allocation17]  }
 0x17f   :  { %s2381_s0 = scalar_lea.hbm %s3215_s13, 16 }
 0x180   :  { %p2382_p2 = scmp.ne.s32.totalorder %s3215_s13, %s2381_s0  ;;  %p2385_p3 = scmp.lt.u32.totalorder %s2381_s0, %s3215_s13 }
 0x182   :  { %p2387_p4 = pnand %p2385_p3, %p2382_p2 }
 0x184   :  { %2390 = shalt.err (!%p2387_p4)
}
 0x185   :  { %s2391_s25 = scalar_lea.vmem %s192_s22, 16  ;;  %s2395_s29 = scalar_lea.vmem %s192_s22, 32 }
 0x186   :  { %p2392_p5 = scmp.ne.s32.totalorder %s192_s22, %s2391_s25  ;;  %p2396_p6 = scmp.lt.s32.totalorder %s192_s22, %s192_s22 }
 0x187   :  { %p2397_p7 = scmp.lt.s32.totalorder %s2395_s29, %s2391_s25 }
 0x189   :  { %p2398_p8 = por %p2397_p7, %p2396_p6 }
 0x18b   :  { %p2399_p9 = pnand %p2398_p8, %p2392_p5 }
 0x18d   :  { %2402 = shalt.err (!%p2399_p9)
}
 0x18e   :  { %194 = dma.hbm_to_vmem [thread:$0]  %s3215_s13, 16, %s192_s22, [#allocation20]  }
 0x18f   :  { %s2583_s8 = smov [#allocation24]   ;;  %s2584_s6 = smov [#allocation27]  }
 0x190   :  { %s213_s28 = sshll.u32 %s2583_s8, 4  ;;  %s235_s11 = sshll.u32 %s2584_s6, 4  ;;  %s214_s28 = int_to_ptr.vmem [resolvable:$true] %s213_s28  ;;  %s236_s11 = int_to_ptr.vmem [resolvable:$true] %s235_s11 }
 0x191   :  { %s2403_s4 = scalar_lea.hbm %s3217_s15, 16 }
 0x192   :  { %p2404_p10 = scmp.ne.s32.totalorder %s3217_s15, %s2403_s4  ;;  %p2407_p11 = scmp.lt.u32.totalorder %s2403_s4, %s3217_s15 }
 0x194   :  { %p2409_p12 = pnand %p2407_p11, %p2404_p10 }
 0x196   :  { %2412 = shalt.err (!%p2409_p12)
}
 0x197   :  { %s2413_s13 = scalar_lea.vmem %s214_s28, 16  ;;  %s2417_s22 = scalar_lea.vmem %s214_s28, 32 }
 0x198   :  { %p2414_p13 = scmp.ne.s32.totalorder %s214_s28, %s2413_s13  ;;  %p2418_p0 = scmp.lt.s32.totalorder %s214_s28, %s214_s28 }
 0x199   :  { %p2419_p1 = scmp.lt.s32.totalorder %s2417_s22, %s2413_s13 }
 0x19b   :  { %p2420_p2 = por %p2419_p1, %p2418_p0 }
 0x19d   :  { %p2421_p3 = pnand %p2420_p2, %p2414_p13 }
 0x19f   :  { %2424 = shalt.err (!%p2421_p3)
}
 0x1a0   :  { %216 = dma.hbm_to_vmem [thread:$0]  %s3217_s15, 16, %s214_s28, [#allocation23]  }
 0x1a1   :  { %s2425_s12 = scalar_lea.hbm %s3219_s17, 16 }
 0x1a2   :  { %p2426_p4 = scmp.ne.s32.totalorder %s3219_s17, %s2425_s12  ;;  %p2429_p5 = scmp.lt.u32.totalorder %s2425_s12, %s3219_s17 }
 0x1a4   :  { %p2431_p6 = pnand %p2429_p5, %p2426_p4 }
 0x1a6   :  { %2434 = shalt.err (!%p2431_p6)
}
 0x1a7   :  { %s2435_s14 = scalar_lea.vmem %s236_s11, 16  ;;  %s2439_s8 = scalar_lea.vmem %s236_s11, 32 }
 0x1a8   :  { %p2436_p7 = scmp.ne.s32.totalorder %s236_s11, %s2435_s14  ;;  %p2440_p8 = scmp.lt.s32.totalorder %s236_s11, %s236_s11 }
 0x1a9   :  { %p2441_p9 = scmp.lt.s32.totalorder %s2439_s8, %s2435_s14 }
 0x1ab   :  { %p2442_p10 = por %p2441_p9, %p2440_p8 }
 0x1ad   :  { %p2443_p11 = pnand %p2442_p10, %p2436_p7 }
 0x1af   :  { %2446 = shalt.err (!%p2443_p11)
}
 0x1b0   :  { %238 = dma.hbm_to_vmem [thread:$0]  %s3219_s17, 16, %s236_s11, [#allocation26]  }
 0x1b1   :  { %s2585_s6 = smov [#allocation30]   ;;  %s2586_s9 = smov [#allocation33]  }
 0x1b2   :  { %s256_s7 = sshll.u32 %s2585_s6, 4  ;;  %s279_s4 = sshll.u32 %s2586_s9, 4  ;;  %s257_s7 = int_to_ptr.vmem [resolvable:$true] %s256_s7  ;;  %s280_s4 = int_to_ptr.vmem [resolvable:$true] %s279_s4 }
 0x1b3   :  { %s2447_s23 = scalar_lea.hbm %s3221_s19, 256 }
 0x1b4   :  { %p2448_p12 = scmp.ne.s32.totalorder %s3221_s19, %s2447_s23  ;;  %p2451_p13 = scmp.lt.u32.totalorder %s2447_s23, %s3221_s19 }
 0x1b6   :  { %p2453_p0 = pnand %p2451_p13, %p2448_p12 }
 0x1b8   :  { %2456 = shalt.err (!%p2453_p0)
}
 0x1b9   :  { %s2457_s17 = scalar_lea.vmem %s257_s7, 256  ;;  %p2462_p2 = scmp.lt.s32.totalorder %s257_s7, %s257_s7 }
 0x1ba   :  { %p2458_p1 = scmp.ne.s32.totalorder %s257_s7, %s2457_s17  ;;  %p2463_p3 = scmp.lt.s32.totalorder %s2457_s17, %s2457_s17 }
 0x1bc   :  { %p2464_p4 = por %p2463_p3, %p2462_p2 }
 0x1be   :  { %p2465_p5 = pnand %p2464_p4, %p2458_p1 }
 0x1c0   :  { %2468 = shalt.err (!%p2465_p5)
}
 0x1c1   :  { %262 = dma.hbm_to_vmem [thread:$0]  %s3221_s19, 256, %s257_s7, [#allocation29], %s2565_s30, %s2565_s30, %s2566_s5  }
 0x1c2   :  { %s2469_s12 = scalar_lea.hbm %s3223_s21, 16 }
 0x1c3   :  { %p2470_p6 = scmp.ne.s32.totalorder %s3223_s21, %s2469_s12  ;;  %p2473_p7 = scmp.lt.u32.totalorder %s2469_s12, %s3223_s21 }
 0x1c5   :  { %p2475_p8 = pnand %p2473_p7, %p2470_p6 }
 0x1c7   :  { %2478 = shalt.err (!%p2475_p8)
}
 0x1c8   :  { %s2479_s14 = scalar_lea.vmem %s280_s4, 16  ;;  %s2483_s8 = scalar_lea.vmem %s280_s4, 32 }
 0x1c9   :  { %p2480_p9 = scmp.ne.s32.totalorder %s280_s4, %s2479_s14  ;;  %p2484_p10 = scmp.lt.s32.totalorder %s280_s4, %s280_s4 }
 0x1ca   :  { %p2485_p11 = scmp.lt.s32.totalorder %s2483_s8, %s2479_s14 }
 0x1cc   :  { %p2486_p12 = por %p2485_p11, %p2484_p10 }
 0x1ce   :  { %p2487_p13 = pnand %p2486_p12, %p2480_p9 }
 0x1d0   :  { %2490 = shalt.err (!%p2487_p13)
}
 0x1d1   :  { %282 = dma.hbm_to_vmem [thread:$0]  %s3223_s21, 16, %s280_s4, [#allocation32]  }
 0x1d2   :  { %s2587_s5 = smov [#allocation36]   ;;  %s2588_s28 = smov [#allocation37]  }
 0x1d3   :  { %s301_s15 = sshll.u32 %s2587_s5, 4  ;;  %s313_s6 = sshll.u32 %s2588_s28, 4  ;;  %s302_s15 = int_to_ptr.vmem [resolvable:$true] %s301_s15  ;;  %s314_s6 = int_to_ptr.vmem [resolvable:$true] %s313_s6 }
 0x1d4   :  { %s2491_s1 = scalar_lea.hbm %s3226_s24, 16 }
 0x1d5   :  { %p2492_p0 = scmp.ne.s32.totalorder %s3226_s24, %s2491_s1  ;;  %p2495_p1 = scmp.lt.u32.totalorder %s2491_s1, %s3226_s24 }
 0x1d7   :  { %p2497_p2 = pnand %p2495_p1, %p2492_p0 }
 0x1d9   :  { %2500 = shalt.err (!%p2497_p2)
}
 0x1da   :  { %s2501_s21 = scalar_lea.vmem %s302_s15, 16  ;;  %s2505_s4 = scalar_lea.vmem %s302_s15, 32 }
 0x1db   :  { %p2502_p3 = scmp.ne.s32.totalorder %s302_s15, %s2501_s21  ;;  %p2506_p4 = scmp.lt.s32.totalorder %s302_s15, %s302_s15 }
 0x1dc   :  { %p2507_p5 = scmp.lt.s32.totalorder %s2505_s4, %s2501_s21 }
 0x1de   :  { %p2508_p6 = por %p2507_p5, %p2506_p4 }
 0x1e0   :  { %p2509_p7 = pnand %p2508_p6, %p2502_p3 }
 0x1e2   :  { %2512 = shalt.err (!%p2509_p7)
}
 0x1e3   :  { %304 = dma.hbm_to_vmem [thread:$0]  %s3226_s24, 16, %s302_s15, [#allocation35]  }
 0x1e4   :  { %s2513_s0 = scalar_lea.hbm %s3228_s26, 16 }
 0x1e5   :  { %p2514_p8 = scmp.ne.s32.totalorder %s3228_s26, %s2513_s0  ;;  %p2517_p9 = scmp.lt.u32.totalorder %s2513_s0, %s3228_s26 }
 0x1e7   :  { %p2519_p10 = pnand %p2517_p9, %p2514_p8 }
 0x1e9   :  { %2522 = shalt.err (!%p2519_p10)
}
 0x1ea   :  { %s2523_s25 = scalar_lea.vmem %s314_s6, 16  ;;  %s2527_s29 = scalar_lea.vmem %s314_s6, 32 }
 0x1eb   :  { %p2524_p11 = scmp.ne.s32.totalorder %s314_s6, %s2523_s25  ;;  %p2528_p12 = scmp.lt.s32.totalorder %s314_s6, %s314_s6 }
 0x1ec   :  { %p2529_p13 = scmp.lt.s32.totalorder %s2527_s29, %s2523_s25 }
 0x1ee   :  { %p2530_p0 = por %p2529_p13, %p2528_p12 }
 0x1f0   :  { %p2531_p1 = pnand %p2530_p0, %p2524_p11 }
 0x1f2   :  { %2534 = shalt.err (!%p2531_p1)
}
 0x1f3   :  { %316 = dma.hbm_to_vmem [thread:$0]  %s3228_s26, 16, %s314_s6, [#allocation38]  }
 0x1f4   :  { %2535 = dma.done.wait [#allocation3], 256  }
 0x1f5   :  { %2536 = vsyncadd [#allocation3], 4294967040 }
 0x1f6   :  { %2537 = dma.done.wait [#allocation5], 272  }
 0x1f7   :  { %2538 = vsyncadd [#allocation5], 4294967024 }
 0x1f8   :  { %2539 = dma.done.wait [#allocation8], 272  }
 0x1f9   :  { %2540 = vsyncadd [#allocation8], 4294967024 }
 0x1fa   :  { %2541 = dma.done.wait [#allocation11], 272  }
 0x1fb   :  { %2542 = vsyncadd [#allocation11], 4294967024 }
 0x1fc   :  { %2543 = dma.done.wait [#allocation14], 272  }
 0x1fd   :  { %2544 = vsyncadd [#allocation14], 4294967024 }
 0x1fe   :  { %2545 = dma.done.wait [#allocation17], 272  }
 0x1ff   :  { %2546 = vsyncadd [#allocation17], 4294967024 }
 0x200   :  { %2547 = dma.done.wait [#allocation20], 272  }
 0x201   :  { %2548 = vsyncadd [#allocation20], 4294967024 }
 0x202   :  { %2549 = dma.done.wait [#allocation23], 272  }
 0x203   :  { %2550 = vsyncadd [#allocation23], 4294967024 }
 0x204   :  { %2551 = dma.done.wait [#allocation26], 272  }
 0x205   :  { %2552 = vsyncadd [#allocation26], 4294967024 }
 0x206   :  { %2553 = dma.done.wait [#allocation29], 512  }
 0x207   :  { %2554 = vsyncadd [#allocation29], 4294966784 }
 0x208   :  { %2555 = dma.done.wait [#allocation32], 32  }
 0x209   :  { %2556 = vsyncadd [#allocation32], 4294967264 }
 0x20a   :  { %2557 = dma.done.wait [#allocation35], 32  }
 0x20b   :  { %2558 = vsyncadd [#allocation35], 4294967264 }
 0x20c   :  { %2559 = dma.done.wait [#allocation38], 16  }
 0x20d   :  { %2560 = vsyncadd [#allocation38], 4294967280  ;;  %v2589_v0 = vmov 0.0   ;;  %vm2590_vm0 = vmmov 0   ;;  %v1961_v1 = vld [vmem:[#allocation7] sm:$0xff]   ;;  %v1962_v2 = vld [vmem:[#allocation7 + $0x8] sm:$0xff]  }
 0x20e   :  { %1797 = vmatprep.subr.bf16.mxu1 %v2589_v0  ;;  %1789 = vmatprep.subr.bf16.mxu0 %v2589_v0  ;;  %s3274_s8 = sld [smem:[#allocation54_spill]]  ;;  %v394_v4 = vld [vmem:[#allocation4] sm:$0xff]  ;;  %v395_v5 = vld [vmem:[#allocation4 + $0x8] sm:$0xff]  ;;  %v392_v7 = vld [vmem:[#allocation2] sm:$0xff]  ;;  %vm421_vm1 = vcmask 261120   ;;  %vm723_vm2 = vcmask 1043456  }
 0x20f   :  { %1801 = vmatprep.mubr.msk.bf16.mxu1 %vm2590_vm0, %v2589_v0  ;;  %1793 = vmatprep.mubr.msk.bf16.mxu0 %vm2590_vm0, %v2589_v0  ;;  %v3065_v8 = vpack.c.bf16 %v395_v5, %v394_v4  ;;  %v393_v9 = vld [vmem:[#allocation2 + $0x8] sm:$0xff]  ;;  %v1965_v11 = vld [vmem:[#allocation10] sm:$0xff]   ;;  %v1966_v12 = vld [vmem:[#allocation10 + $0x8] sm:$0xff]   ;;  %vm693_vm3 = vcmask 64512   ;;  %s3275_s28 = sld [smem:[#allocation64_spill]]  ;;  %s3276_s20 = sld [smem:[#allocation65_spill]] }
 0x210   :  { %1798 = vmatpush3.bf16.msra.mxu1 %v1961_v1  ;;  %v3068_v10 = vpack.c.bf16 %v393_v9, %v392_v7  ;;  %v1686_v13 = vld [vmem:[#allocation9] ss:$0 sm:$0xff]  ;;  %v1682_v18 = vld [vmem:[#allocation6] ss:$0 sm:$0xff]  ;;  %v1690_v30 = vld [vmem:[#allocation12] ss:$0 sm:$0xff] }
 0x211   :  { %1799 = vmatprep.subr.bf16.mxu1 %v2589_v0  ;;  %vm1617_vm4 = vcmask 130048   ;;  %s3277_s13 = sld [smem:[#allocation66_spill]] }
 0x214   :  { %v1963_v3 = vld [vmem:[%s3274_s8] sm:$0xff]   ;;  %v1964_v6 = vld [vmem:[%s3274_s8 + $0x8] sm:$0xff]   ;;  %1800 = vmatpush3.bf16.msra.mxu1 %v1962_v2 }
 0x215   :  { %1790 = vmatpush3.bf16.msra.mxu0 %v1963_v3  ;;  %1813 = vmatprep.subr.bf16.mxu1 %v2589_v0 }
 0x216   :  { %1791 = vmatprep.subr.bf16.mxu0 %v2589_v0 }
 0x217   :  { %1802 = vmatmul.mubr.msk.bf16.vlgmr.msra.gmra.mrb[0].mxu1 %vm421_vm1, %v3065_v8 }
 0x218   :  { %1815 = vmatprep.mubr.msk.bf16.mxu1 %vm2590_vm0, %v2589_v0 }
 0x219   :  { %1792 = vmatpush3.bf16.msra.mxu0 %v1964_v6 }
 0x21a   :  { %1805 = vmatprep.subr.bf16.mxu0 %v2589_v0 }
 0x21c   :  { %1794 = vmatmul.mubr.msk.bf16.vlgmr.msra.gmra.mrb[0].mxu0 %vm421_vm1, %v3068_v10 }
 0x21d   :  { %1806 = vmatpush3.bf16.msra.mxu0 %v1965_v11  ;;  %1809 = vmatprep.mubr.msk.bf16.mxu0 %vm2590_vm0, %v2589_v0  ;;  %v1967_v11 = vld [vmem:[#allocation13] sm:$0xff]  }
 0x21e   :  { %1807 = vmatprep.subr.bf16.mxu0 %v2589_v0 }
 0x221   :  { %1808 = vmatpush3.bf16.msra.mxu0 %v1966_v12  ;;  %v1968_v12 = vld [vmem:[#allocation13 + $0x8] sm:$0xff]  }
 0x222   :  { %1819 = vmatprep.subr.bf16.mxu0 %v2589_v0 }
 0x224   :  { %1810 = vmatmul.mubr.msk.bf16.vlgmr.msra.gmra.mrb[4].mxu0 %vm421_vm1, %v3065_v8 }
 0x225   :  { %1821 = vmatprep.mubr.msk.bf16.mxu0 %vm2590_vm0, %v2589_v0 }
 0x2ea   :  { %v526_v14 = vpop.f32.mrb[0].mxu1 }
 0x2eb   :  { %v527_v15 = vadd.f32 %v1686_v13, %v526_v14  ;;  %v1803_v16 = vpop.f32.mrb[1].mxu1  ;;  %v1972_v14 = vld [vmem:[#allocation16 + $0x8] sm:$0xff]  }
 0x2ec   :  { %v529_v17 = vpop.f32.mrb[2].mxu1 }
 0x2ed   :  { %v599_v20 = vpack.c.bf16 %v527_v15, %v527_v15  ;;  %v530_v21 = vadd.f32 %v1686_v13, %v529_v17  ;;  %v1804_v22 = vpop.f32.mrb[3].mxu1  ;;  %v1971_v13 = vld [vmem:[#allocation16] sm:$0xff]  }
 0x2ef   :  { %v459_v19 = vpop.f32.mrb[0].mxu0  ;;  %v605_v25 = vsel %vm421_vm1, %v599_v20, 0  ;;  %v600_v26 = vpack.c.bf16 %v530_v21, %v530_v21  ;;  %v1969_v20 = vld [vmem:[#allocation19] sm:$0xff]  }
 0x2f0   :  { %v1795_v23 = vpop.f32.mrb[1].mxu0  ;;  %v460_v27 = vadd.f32 %v1682_v18, %v459_v19  ;;  %1814 = vmatpush3.bf16.xpose.msra.mxu1 %v605_v25  ;;  %v1970_v25 = vld [vmem:[#allocation19 + $0x8] sm:$0xff]  }
 0x2f1   :  { %v462_v24 = vpop.f32.mrb[2].mxu0  ;;  %v651_v29 = vsel %vm421_vm1, %v600_v26, 0  ;;  %1825 = vmatprep.subr.bf16.mxu1 %v2589_v0  ;;  %v1974_v26 = vld [vmem:[#allocation22 + $0x8] sm:$0xff]  }
 0x2f2   :  { %v1796_v28 = vpop.f32.mrb[3].mxu0  ;;  %1820 = vmatpush3.bf16.xpose.msra.mxu0 %v651_v29  ;;  %v597_v31 = vpack.c.bf16 %v460_v27, %v460_v27  ;;  %v463_v32 = vadd.f32 %v1682_v18, %v462_v24 }
 0x2f3   :  { %1831 = vmatprep.subr.bf16.mxu0 %v2589_v0 }
 0x2f4   :  { %v598_v37 = vpack.c.bf16 %v463_v32, %v463_v32 }
 0x2f7   :  { %v590_v33 = vpop.f32.mrb[4].mxu0  ;;  %1816 = vmatmul.mubr.msk.bf16.vlgmr.msra.gmra.mrb[4].mxu1 %vm421_vm1, %v597_v31  ;;  %v1698_v31 = vld [vmem:[#allocation15] ss:$0 sm:$0xff] }
 0x2f8   :  { %v591_v34 = vadd.f32 %v1690_v30, %v590_v33  ;;  %v1811_v35 = vpop.f32.mrb[5].mxu0  ;;  %1827 = vmatprep.mubr.msk.bf16.mxu1 %vm2590_vm0, %v2589_v0 }
 0x2f9   :  { %v593_v36 = vpop.f32.mrb[6].mxu0  ;;  %1822 = vmatmul.mubr.msk.bf16.vlgmr.msra.gmra.mrb[8].mxu0 %vm421_vm1, %v598_v37 }
 0x2fa   :  { %v718_v38 = vpack.c.bf16 %v591_v34, %v591_v34  ;;  %v594_v39 = vadd.f32 %v1690_v30, %v593_v36  ;;  %v1812_v40 = vpop.f32.mrb[7].mxu0  ;;  %1833 = vmatprep.mubr.msk.bf16.mxu0 %vm2590_vm0, %v2589_v0 }
 0x2fc   :  { %v725_v41 = vsel %vm723_vm2, %v718_v38, 0  ;;  %v719_v42 = vpack.c.bf16 %v594_v39, %v594_v39 }
 0x2fd   :  { %1826 = vmatpush3.bf16.msra.mxu1 %v725_v41 }
 0x2fe   :  { %v771_v43 = vsel %vm723_vm2, %v719_v42, 0  ;;  %1837 = vmatprep.subr.bf16.mxu1 %v2589_v0 }
 0x2ff   :  { %1832 = vmatpush3.bf16.msra.mxu0 %v771_v43  ;;  %v1702_v43 = vld [vmem:[#allocation18] ss:$0 sm:$0xff] }
 0x300   :  { %1845 = vmatprep.subr.bf16.mxu0 %v2589_v0 }
 0x3ca   :  { %v641_v44 = vpop.f32.mrb[4].mxu1 }
 0x3cb   :  { %v1817_v45 = vpop.f32.mrb[5].mxu1  ;;  %v694_v46 = vsel %vm693_vm3, %v641_v44, -inf }
 0x3cc   :  { %695 = vmax.xlane.f32.xlu0 %v694_v46  ;;  %v644_v47 = vpop.f32.mrb[6].mxu1  ;;  %v687_v48 = vpop.f32.mrb[8].mxu0 }
 0x3cd   :  { %v1818_v49 = vpop.f32.mrb[7].mxu1  ;;  %v1823_v50 = vpop.f32.mrb[9].mxu0  ;;  %v697_v53 = vsel %vm693_vm3, %v687_v48, -inf }
 0x3ce   :  { %v690_v51 = vpop.f32.mrb[10].mxu0 }
 0x3cf   :  { %v1824_v52 = vpop.f32.mrb[11].mxu0 }
 0x3d0   :  { %698 = vmax.xlane.f32.xlu0 %v697_v53 }
 0x459   :  { %v696_v54 = vpop.xlane.xlu0 %695 }
 0x45a   :  { %v700_v55 = vsub.f32 %v641_v44, %v696_v54  ;;  %v1710_v54 = vld [vmem:[#allocation24] ss:$0 sm:$0xff] }
 0x45c   :  { %v702_v56 = vmul.f32 1.442695, %v700_v55 }
 0x45d   :  { %v699_v57 = vpop.xlane.xlu0 %698 }
 0x45e   :  { %1984 = vpow2.f32 %v702_v56  ;;  %v701_v58 = vsub.f32 %v687_v48, %v699_v57 }
 0x460   :  { %v704_v59 = vmul.f32 1.442695, %v701_v58 }
 0x462   :  { %1986 = vpow2.f32 %v704_v59 }
 0x468   :  { %v1985_v60 = vpop.eup %1984 }
 0x469   :  { %v706_v61 = vsel %vm693_vm3, %v1985_v60, 0.0 }
 0x46a   :  { %707 = vadd.xlane.f32.xlu1 %v706_v61 }
 0x46c   :  { %v1987_v62 = vpop.eup %1986 }
 0x46d   :  { %v709_v63 = vsel %vm693_vm3, %v1987_v62, 0.0 }
 0x46e   :  { %710 = vadd.xlane.f32.xlu1 %v709_v63 }
 0x4f7   :  { %v708_v1 = vpop.xlane.xlu1 %707 }
 0x4f8   :  { %1988 = vrcp.f32 %v708_v1 }
 0x4fb   :  { %v711_v2 = vpop.xlane.xlu1 %710 }
 0x4fc   :  { %1990 = vrcp.f32 %v711_v2 }
 0x502   :  { %v1989_v3 = vpop.eup %1988 }
 0x503   :  { %v714_v4 = vmul.f32 %v1989_v3, %v1985_v60 }
 0x505   :  { %v716_v5 = vpack.c.bf16 %v714_v4, %v714_v4 }
 0x506   :  { %v1991_v6 = vpop.eup %1990 }
 0x507   :  { %v715_v7 = vmul.f32 %v1991_v6, %v1987_v62  ;;  %1828 = vmatmul.mubr.msk.bf16.vlgmr.msra.gmra.mrb[8].mxu1 %vm693_vm3, %v716_v5 }
 0x508   :  { %1841 = vmatprep.mubr.msk.bf16.mxu1 %vm2590_vm0, %v2589_v0  ;;  %1838 = vmatpush3.bf16.msra.mxu1 %v1967_v11 }
 0x509   :  { %v717_v9 = vpack.c.bf16 %v715_v7, %v715_v7  ;;  %1839 = vmatprep.subr.bf16.mxu1 %v2589_v0 }
 0x50b   :  { %1834 = vmatmul.mubr.msk.bf16.vlgmr.msra.gmra.mrb[12].mxu0 %vm693_vm3, %v717_v9 }
 0x50c   :  { %1849 = vmatprep.mubr.msk.bf16.mxu0 %vm2590_vm0, %v2589_v0  ;;  %1840 = vmatpush3.bf16.msra.mxu1 %v1968_v12 }
 0x50d   :  { %1853 = vmatprep.subr.bf16.mxu1 %v2589_v0  ;;  %1846 = vmatpush3.bf16.msra.mxu0 %v1971_v13 }
 0x50e   :  { %1847 = vmatprep.subr.bf16.mxu0 %v2589_v0 }
 0x511   :  { %1848 = vmatpush3.bf16.msra.mxu0 %v1972_v14 }
 0x512   :  { %1861 = vmatprep.subr.bf16.mxu0 %v2589_v0 }
 0x514   :  { %1850 = vmatmul.mubr.msk.bf16.vlgmr.msra.gmra.mrb[16].mxu0 %vm421_vm1, %v3065_v8  ;;  %v1973_v8 = vld [vmem:[#allocation22] sm:$0xff]  }
 0x515   :  { %1865 = vmatprep.mubr.msk.bf16.mxu0 %vm2590_vm0, %v2589_v0  ;;  %1862 = vmatpush3.bf16.msra.mxu0 %v1973_v8 }
 0x516   :  { %1863 = vmatprep.subr.bf16.mxu0 %v2589_v0 }
 0x519   :  { %1864 = vmatpush3.bf16.msra.mxu0 %v1974_v26 }
 0x51a   :  { %1875 = vmatprep.subr.bf16.mxu0 %v2589_v0 }
 0x51c   :  { %1866 = vmatmul.mubr.msk.bf16.vlgmr.msra.gmra.mrb[20].mxu0 %vm421_vm1, %v3068_v10 }
 0x51d   :  { %1877 = vmatprep.mubr.msk.bf16.mxu0 %vm2590_vm0, %v2589_v0 }
 0x5da   :  { %v761_v15 = vpop.f32.mrb[8].mxu1 }
 0x5db   :  { %v1829_v16 = vpop.f32.mrb[9].mxu1 }
 0x5dc   :  { %v764_v17 = vpop.f32.mrb[10].mxu1 }
 0x5dd   :  { %v1830_v18 = vpop.f32.mrb[11].mxu1 }
 0x5de   :  { %v807_v19 = vpop.f32.mrb[12].mxu0 }
 0x5df   :  { %v813_v21 = vpack.c.bf16 %v807_v19, %v761_v15  ;;  %v1835_v22 = vpop.f32.mrb[13].mxu0 }
 0x5e0   :  { %v810_v23 = vpop.f32.mrb[14].mxu0 }
 0x5e1   :  { %v1836_v24 = vpop.f32.mrb[15].mxu0  ;;  %1842 = vmatmul.mubr.msk.bf16.vlgmr.msra.gmra.mrb[12].mxu1 %vm421_vm1, %v813_v21 }
 0x5e2   :  { %1854 = vmatpush3.bf16.msra.mxu1 %v1969_v20  ;;  %1857 = vmatprep.mubr.msk.bf16.mxu1 %vm2590_vm0, %v2589_v0 }
 0x5e3   :  { %1855 = vmatprep.subr.bf16.mxu1 %v2589_v0 }
 0x5e6   :  { %1856 = vmatpush3.bf16.msra.mxu1 %v1970_v25 }
 0x5e7   :  { %1869 = vmatprep.subr.bf16.mxu1 %v2589_v0  ;;  %v938_v27 = vpop.f32.mrb[16].mxu0 }
 0x5e8   :  { %v1851_v28 = vpop.f32.mrb[17].mxu0  ;;  %v939_v49 = vadd.f32 %v1702_v43, %v938_v27 }
 0x5e9   :  { %1858 = vmatmul.mubr.msk.bf16.vlgmr.msra.gmra.mrb[16].mxu1 %vm421_vm1, %v3068_v10  ;;  %v941_v29 = vpop.f32.mrb[18].mxu0  ;;  %v1706_v10 = vld [vmem:[#allocation21] ss:$0 sm:$0xff]  ;;  %v1975_v28 = vld [vmem:[#allocation25] sm:$0xff]  }
 0x5ea   :  { %1871 = vmatprep.mubr.msk.bf16.mxu1 %vm2590_vm0, %v2589_v0  ;;  %v1852_v30 = vpop.f32.mrb[19].mxu0  ;;  %v1073_v51 = vpack.c.bf16 %v939_v49, %v939_v49  ;;  %v942_v52 = vadd.f32 %v1702_v43, %v941_v29 }
 0x5ec   :  { %v1074_v53 = vpack.c.bf16 %v942_v52, %v942_v52 }
 0x5ef   :  { %v1066_v55 = vpop.f32.mrb[20].mxu0 }
 0x5f0   :  { %v1067_v56 = vadd.f32 %v1710_v54, %v1066_v55  ;;  %v1867_v57 = vpop.f32.mrb[21].mxu0 }
 0x5f1   :  { %v1069_v58 = vpop.f32.mrb[22].mxu0 }
 0x5f2   :  { %v1193_v59 = vpack.c.bf16 %v1067_v56, %v1067_v56  ;;  %v1070_v60 = vadd.f32 %v1710_v54, %v1069_v58  ;;  %v1868_v61 = vpop.f32.mrb[23].mxu0  ;;  %v1728_v58 = vld [vmem:[#allocation31] ss:$0 sm:$0xff] }
 0x5f4   :  { %v1199_v62 = vsel %vm723_vm2, %v1193_v59, 0  ;;  %v1194_v63 = vpack.c.bf16 %v1070_v60, %v1070_v60 }
 0x5f6   :  { %v1245_v1 = vsel %vm723_vm2, %v1194_v63, 0 }
 0x6b4   :  { %v874_v32 = vpop.f32.mrb[12].mxu1 }
 0x6b5   :  { %v1843_v33 = vpop.f32.mrb[13].mxu1  ;;  %v3133_v35 = vadd.f32 %v1698_v31, %v874_v32  ;;  %v1976_v32 = vld [vmem:[#allocation25 + $0x8] sm:$0xff]  }
 0x6b6   :  { %v877_v34 = vpop.f32.mrb[14].mxu1 }
 0x6b7   :  { %v3135_v36 = vadd.f32 %v1698_v31, %v877_v34  ;;  %v1844_v37 = vpop.f32.mrb[15].mxu1 }
 0x6b9   :  { %v1355_v38 = vpack.c.bf16 %v3135_v36, %v3133_v35 }
 0x6bc   :  { %v1002_v39 = vpop.f32.mrb[16].mxu1 }
 0x6bd   :  { %v1003_v40 = vadd.f32 %v1706_v10, %v1002_v39  ;;  %v1859_v41 = vpop.f32.mrb[17].mxu1  ;;  %v1977_v39 = vld [vmem:[#allocation28] sm:$0xff]  }
 0x6be   :  { %v1005_v42 = vpop.f32.mrb[18].mxu1 }
 0x6bf   :  { %v1075_v44 = vpack.c.bf16 %v1003_v40, %v1003_v40  ;;  %v1006_v45 = vadd.f32 %v1706_v10, %v1005_v42  ;;  %v1860_v46 = vpop.f32.mrb[19].mxu1 }
 0x6c0   :  { %v1979_v46 = vld [vmem:[#allocation30] sm:$0xff]  }
 0x6c1   :  { %v1081_v47 = vsel %vm421_vm1, %v1075_v44, 0  ;;  %v1076_v48 = vpack.c.bf16 %v1006_v45, %v1006_v45  ;;  %v1978_v45 = vld [vmem:[#allocation28 + $0x8] sm:$0xff]  }
 0x6c2   :  { %1870 = vmatpush3.bf16.xpose.msra.mxu1 %v1081_v47  ;;  %v1980_v47 = vld [vmem:[#allocation30 + $0x8] sm:$0xff]  }
 0x6c3   :  { %v1127_v50 = vsel %vm421_vm1, %v1076_v48, 0  ;;  %1881 = vmatprep.subr.bf16.mxu1 %v2589_v0  ;;  %v1718_v48 = vld [vmem:[#allocation27] ss:$0 sm:$0xff] }
 0x6c4   :  { %1876 = vmatpush3.bf16.xpose.msra.mxu0 %v1127_v50 }
 0x6c5   :  { %1887 = vmatprep.subr.bf16.mxu0 %v2589_v0 }
 0x6c9   :  { %1872 = vmatmul.mubr.msk.bf16.vlgmr.msra.gmra.mrb[20].mxu1 %vm421_vm1, %v1073_v51 }
 0x6ca   :  { %1883 = vmatprep.mubr.msk.bf16.mxu1 %vm2590_vm0, %v2589_v0  ;;  %1882 = vmatpush3.bf16.msra.mxu1 %v1199_v62 }
 0x6cb   :  { %1878 = vmatmul.mubr.msk.bf16.vlgmr.msra.gmra.mrb[24].mxu0 %vm421_vm1, %v1074_v53  ;;  %1893 = vmatprep.subr.bf16.mxu1 %v2589_v0 }
 0x6cc   :  { %1889 = vmatprep.mubr.msk.bf16.mxu0 %vm2590_vm0, %v2589_v0  ;;  %1888 = vmatpush3.bf16.msra.mxu0 %v1245_v1 }
 0x6cd   :  { %1901 = vmatprep.subr.bf16.mxu0 %v2589_v0 }
 0x79c   :  { %v1117_v2 = vpop.f32.mrb[20].mxu1 }
 0x79d   :  { %v1873_v3 = vpop.f32.mrb[21].mxu1  ;;  %v1169_v4 = vsel %vm693_vm3, %v1117_v2, -inf }
 0x79e   :  { %1170 = vmax.xlane.f32.xlu0 %v1169_v4  ;;  %v1120_v5 = vpop.f32.mrb[22].mxu1  ;;  %v1163_v6 = vpop.f32.mrb[24].mxu0 }
 0x79f   :  { %v1874_v7 = vpop.f32.mrb[23].mxu1  ;;  %v1879_v9 = vpop.f32.mrb[25].mxu0  ;;  %v1172_v11 = vsel %vm693_vm3, %v1163_v6, -inf }
 0x7a0   :  { %1173 = vmax.xlane.f32.xlu1 %v1172_v11  ;;  %v1166_v12 = vpop.f32.mrb[26].mxu0 }
 0x7a1   :  { %v1880_v13 = vpop.f32.mrb[27].mxu0 }
 0x82b   :  { %v1171_v14 = vpop.xlane.xlu0 %1170 }
 0x82c   :  { %v1175_v15 = vsub.f32 %v1117_v2, %v1171_v14 }
 0x82d   :  { %v1174_v16 = vpop.xlane.xlu1 %1173 }
 0x82e   :  { %v1177_v17 = vmul.f32 1.442695, %v1175_v15  ;;  %v1176_v18 = vsub.f32 %v1163_v6, %v1174_v16 }
 0x830   :  { %1992 = vpow2.f32 %v1177_v17  ;;  %v1179_v19 = vmul.f32 1.442695, %v1176_v18  ;;  %v1981_v17 = vld [vmem:[%s3275_s28] sm:$0xff]   ;;  %v1982_v18 = vld [vmem:[%s3275_s28 + $0x8] sm:$0xff]  }
 0x832   :  { %1994 = vpow2.f32 %v1179_v19 }
 0x83a   :  { %v1993_v20 = vpop.eup %1992 }
 0x83b   :  { %v1181_v21 = vsel %vm693_vm3, %v1993_v20, 0.0 }
 0x83c   :  { %v1995_v22 = vpop.eup %1994  ;;  %1182 = vadd.xlane.f32.xlu0 %v1181_v21 }
 0x83d   :  { %v1184_v23 = vsel %vm693_vm3, %v1995_v22, 0.0 }
 0x83e   :  { %1185 = vadd.xlane.f32.xlu1 %v1184_v23 }
 0x8c9   :  { %v1183_v24 = vpop.xlane.xlu0 %1182 }
 0x8ca   :  { %1996 = vrcp.f32 %v1183_v24 }
 0x8cb   :  { %v1186_v25 = vpop.xlane.xlu1 %1185 }
 0x8cc   :  { %1998 = vrcp.f32 %v1186_v25 }
 0x8d4   :  { %v1997_v8 = vpop.eup %1996 }
 0x8d5   :  { %v1189_v26 = vmul.f32 %v1997_v8, %v1993_v20  ;;  %v1729_v8 = vld [vmem:[#allocation33] ss:$0 sm:$0xff] }
 0x8d6   :  { %v1999_v27 = vpop.eup %1998 }
 0x8d7   :  { %v1190_v29 = vmul.f32 %v1999_v27, %v1995_v22  ;;  %v1191_v30 = vpack.c.bf16 %v1189_v26, %v1189_v26 }
 0x8d9   :  { %1884 = vmatmul.mubr.msk.bf16.vlgmr.msra.gmra.mrb[24].mxu1 %vm693_vm3, %v1191_v30  ;;  %v1192_v31 = vpack.c.bf16 %v1190_v29, %v1190_v29 }
 0x8da   :  { %1894 = vmatpush3.bf16.msra.mxu1 %v1975_v28  ;;  %1897 = vmatprep.mubr.msk.bf16.mxu1 %vm2590_vm0, %v2589_v0 }
 0x8db   :  { %1890 = vmatmul.mubr.msk.bf16.vlgmr.msra.gmra.mrb[28].mxu0 %vm693_vm3, %v1192_v31  ;;  %1895 = vmatprep.subr.bf16.mxu1 %v2589_v0 }
 0x8dc   :  { %1905 = vmatprep.mubr.msk.bf16.mxu0 %vm2590_vm0, %v2589_v0  ;;  %1902 = vmatpush3.bf16.msra.mxu0 %v1979_v46 }
 0x8dd   :  { %1903 = vmatprep.subr.bf16.mxu0 %v2589_v0 }
 0x8de   :  { %1896 = vmatpush3.bf16.msra.mxu1 %v1976_v32 }
 0x8df   :  { %1909 = vmatprep.subr.bf16.mxu1 %v2589_v0 }
 0x8e0   :  { %1904 = vmatpush3.bf16.msra.mxu0 %v1980_v47  ;;  %v1735_v47 = vld [vmem:[#allocation37] ss:$0 sm:$0xff] }
 0x8e1   :  { %1917 = vmatprep.subr.bf16.mxu0 %v2589_v0 }
 0x9ac   :  { %v1235_v33 = vpop.f32.mrb[24].mxu1 }
 0x9ad   :  { %v1885_v34 = vpop.f32.mrb[25].mxu1 }
 0x9ae   :  { %v1238_v37 = vpop.f32.mrb[26].mxu1  ;;  %v1281_v10 = vpop.f32.mrb[28].mxu0  ;;  %v1983_v34 = vld [vmem:[%s3276_s20] sm:$0xff]  }
 0x9af   :  { %v1287_v40 = vpack.c.bf16 %v1281_v10, %v1235_v33  ;;  %v1886_v41 = vpop.f32.mrb[27].mxu1  ;;  %v1891_v42 = vpop.f32.mrb[29].mxu0  ;;  %v1731_v37 = vld [vmem:[#allocation36] ss:$0 sm:$0xff] }
 0x9b0   :  { %v1284_v43 = vpop.f32.mrb[30].mxu0 }
 0x9b1   :  { %v1892_v44 = vpop.f32.mrb[31].mxu0  ;;  %1898 = vmatmul.mubr.msk.bf16.vlgmr.msra.gmra.mrb[28].mxu1 %vm421_vm1, %v1287_v40 }
 0x9b2   :  { %1910 = vmatpush3.bf16.msra.mxu1 %v1977_v39  ;;  %1913 = vmatprep.mubr.msk.bf16.mxu1 %vm2590_vm0, %v2589_v0 }
 0x9b3   :  { %1911 = vmatprep.subr.bf16.mxu1 %v2589_v0 }
 0x9b6   :  { %1912 = vmatpush3.bf16.msra.mxu1 %v1978_v45 }
 0x9b7   :  { %1925 = vmatprep.subr.bf16.mxu1 %v2589_v0 }
 0x9b9   :  { %1914 = vmatmul.mubr.msk.bf16.vlgmr.msra.gmra.mrb[32].mxu1 %vm421_vm1, %v1355_v38 }
 0x9ba   :  { %1927 = vmatprep.mubr.msk.bf16.mxu1 %vm2590_vm0, %v2589_v0  ;;  %1926 = vmatpush3.bf16.msra.mxu1 %v1983_v34 }
 0xa84   :  { %v1348_v49 = vpop.f32.mrb[28].mxu1 }
 0xa85   :  { %v1899_v50 = vpop.f32.mrb[29].mxu1  ;;  %v1349_v52 = vadd.f32 %v1718_v48, %v1348_v49 }
 0xa86   :  { %v1351_v51 = vpop.f32.mrb[30].mxu1 }
 0xa87   :  { %v1352_v53 = vadd.f32 %v1718_v48, %v1351_v51  ;;  %v1900_v35 = vpop.f32.mrb[31].mxu1 }
 0xa89   :  { %v1360_v36 = vpack.c.bf16 %v1352_v53, %v1349_v52 }
 0xa8b   :  { %1906 = vmatmul.mubr.msk.bf16.vlgmr.msra.gmra.mrb[32].mxu0 %vm421_vm1, %v1360_v36 }
 0xa8c   :  { %v1470_v38 = vpop.f32.mrb[32].mxu1  ;;  %1921 = vmatprep.mubr.msk.bf16.mxu0 %vm2590_vm0, %v2589_v0  ;;  %1918 = vmatpush3.bf16.msra.mxu0 %v1981_v17 }
 0xa8d   :  { %v1915_v54 = vpop.f32.mrb[33].mxu1  ;;  %1919 = vmatprep.subr.bf16.mxu0 %v2589_v0  ;;  %v1730_v0 = vld [vmem:[#allocation34] ss:$0 sm:$0xff] }
 0xa8e   :  { %v1473_v55 = vpop.f32.mrb[34].mxu1 }
 0xa8f   :  { %v1916_v56 = vpop.f32.mrb[35].mxu1 }
 0xa90   :  { %1920 = vmatpush3.bf16.msra.mxu0 %v1982_v18 }
 0xb5e   :  { %v1414_v57 = vpop.f32.mrb[32].mxu0 }
 0xb5f   :  { %v1471_v59 = vadd.f32 %v1470_v38, %v1414_v57  ;;  %v1907_v60 = vpop.f32.mrb[33].mxu0 }
 0xb60   :  { %v1417_v61 = vpop.f32.mrb[34].mxu0 }
 0xb61   :  { %v1474_v62 = vadd.f32 %v1473_v55, %v1417_v61  ;;  %v1908_v63 = vpop.f32.mrb[35].mxu0  ;;  %v1484_v1 = vadd.f32 %v1728_v58, %v1471_v59 }
 0xb63   :  { %v1488_v2 = vsel %vm421_vm1, %v1484_v1, 0.0  ;;  %v1485_v3 = vadd.f32 %v1728_v58, %v1474_v62 }
 0xb64   :  { %1489 = vadd.xlane.f32.xlu0 %v1488_v2 }
 0xb65   :  { %v1491_v4 = vsel %vm421_vm1, %v1485_v3, 0.0 }
 0xb66   :  { %1492 = vadd.xlane.f32.xlu1 %v1491_v4 }
 0xbf1   :  { %v1490_v5 = vpop.xlane.xlu0 %1489 }
 0xbf2   :  { %v1495_v6 = vmul.f32 0.03125, %v1490_v5 }
 0xbf3   :  { %v1493_v7 = vpop.xlane.xlu1 %1492 }
 0xbf4   :  { %v1497_v9 = vsub.f32 %v1484_v1, %v1495_v6  ;;  %v1496_v11 = vmul.f32 0.03125, %v1493_v7 }
 0xbf6   :  { %v1498_v12 = vsub.f32 %v1485_v3, %v1496_v11  ;;  %v1499_v13 = vmul.f32 %v1497_v9, %v1497_v9 }
 0xbf8   :  { %v1501_v14 = vsel %vm421_vm1, %v1499_v13, 0.0  ;;  %v1500_v15 = vmul.f32 %v1498_v12, %v1498_v12 }
 0xbf9   :  { %1502 = vadd.xlane.f32.xlu0 %v1501_v14 }
 0xbfa   :  { %v1504_v16 = vsel %vm421_vm1, %v1500_v15, 0.0 }
 0xbfb   :  { %1505 = vadd.xlane.f32.xlu1 %v1504_v16 }
 0xc86   :  { %v1503_v19 = vpop.xlane.xlu0 %1502 }
 0xc87   :  { %v1507_v20 = vmul.f32 0.03125, %v1503_v19 }
 0xc88   :  { %v1506_v21 = vpop.xlane.xlu1 %1505 }
 0xc89   :  { %v1509_v22 = vadd.f32 1e-05, %v1507_v20  ;;  %v1508_v23 = vmul.f32 0.03125, %v1506_v21 }
 0xc8b   :  { %2000 = vrsqrt.f32 %v1509_v22  ;;  %v1510_v24 = vadd.f32 1e-05, %v1508_v23 }
 0xc8d   :  { %2002 = vrsqrt.f32 %v1510_v24 }
 0xc95   :  { %v2001_v25 = vpop.eup %2000 }
 0xc96   :  { %v1513_v26 = vmul.f32 %v2001_v25, %v1497_v9 }
 0xc97   :  { %v2003_v27 = vpop.eup %2002 }
 0xc98   :  { %v1521_v28 = vmul.f32 %v1729_v8, %v1513_v26  ;;  %v1514_v29 = vmul.f32 %v2003_v27, %v1498_v12 }
 0xc9a   :  { %v1522_v30 = vmul.f32 %v1729_v8, %v1514_v29  ;;  %v1529_v31 = vadd.f32 %v1730_v0, %v1521_v28 }
 0xc9c   :  { %v1530_v32 = vadd.f32 %v1730_v0, %v1522_v30 }
 0xc9e   :  { %v1531_v33 = vpack.c.bf16 %v1530_v32, %v1529_v31 }
 0xca0   :  { %1922 = vmatmul.mubr.msk.bf16.vlgmr.msra.gmra.mrb[36].mxu0 %vm421_vm1, %v1531_v33 }
 0xd73   :  { %v1592_v10 = vpop.f32.mrb[36].mxu0 }
 0xd74   :  { %v1593_v39 = vadd.f32 %v1731_v37, %v1592_v10  ;;  %v1923_v40 = vpop.f32.mrb[37].mxu0 }
 0xd75   :  { %v1595_v41 = vpop.f32.mrb[38].mxu0 }
 0xd76   :  { %v1596_v42 = vadd.f32 %v1731_v37, %v1595_v41  ;;  %v1924_v43 = vpop.f32.mrb[39].mxu0  ;;  %v1599_v44 = vmax.f32 %v1593_v39, 0.0 }
 0xd78   :  { %v1600_v45 = vmax.f32 %v1596_v42, 0.0 }
 0xd7a   :  { %v1601_v46 = vpack.c.bf16 %v1600_v45, %v1599_v44 }
 0xd7c   :  { %1928 = vmatmul.mubr.msk.bf16.vlgmr.msra.gmra.mrb[36].mxu1 %vm1617_vm4, %v1601_v46 }
 0xe4f   :  { %v1655_v48 = vpop.f32.mrb[36].mxu1 }
 0xe50   :  { %v1656_v49 = vadd.f32 %v1735_v47, %v1655_v48  ;;  %v1929_v50 = vpop.f32.mrb[37].mxu1 }
 0xe51   :  { %v1658_v51 = vpop.f32.mrb[38].mxu1 }
 0xe52   :  { %1662 = vst [vmem:[%s3277_s13] sm:$0xff] %v1656_v49  ;;  %v1659_v52 = vadd.f32 %v1735_v47, %v1658_v51  ;;  %v1930_v53 = vpop.f32.mrb[39].mxu1 }
 0xe54   :  { %1663 = vst [vmem:[%s3277_s13 + $0x8] sm:$0xff] %v1659_v52 }
 0xe55   :  { %1668 = vsyncpa [#allocation3], 1 }
 0xe56   :  { %1669 = vsyncpa [#allocation5], 1 }
 0xe57   :  { %1670 = vsyncpa [#allocation8], 1 }
 0xe58   :  { %1671 = vsyncpa [#allocation11], 1 }
 0xe59   :  { %1672 = vsyncpa [#allocation14], 1 }
 0xe5a   :  { %1673 = vsyncpa [#allocation17], 1 }
 0xe5b   :  { %1674 = vsyncpa [#allocation20], 1 }
 0xe5c   :  { %1675 = vsyncpa [#allocation23], 1 }
 0xe5d   :  { %1676 = vsyncpa [#allocation26], 1 }
 0xe5e   :  { %1677 = vsyncpa [#allocation29], 1 }
 0xe5f   :  { %1678 = vsyncpa [#allocation32], 1 }
 0xe60   :  { %1679 = vsyncpa [#allocation35], 1 }
 0xe61   :  { %1680 = vsyncpa [#allocation38], 1 }

</bundles_post_ra>
